<compile_context>
chip_gen: v5e
topology: v5e:2x2
jax: 0.10.0
libtpu: 0.0.40
codegen_flags: <defaults>
</compile_context>

<pallas_src>
import math

import numpy as np
import jax
import jax.numpy as jnp
from jax.experimental import pallas as pl
from jax.experimental.pallas import tpu as pltpu

# ----------------------------- synthetic config -----------------------------
BATCH = 2
NUM_CHANNELS = 2
IMG_SIZE = 16
HIDDEN_DIMS = (8, 8)            # img_size / 2**len(hidden_dims) == 4 -> fc in = 8*4*4
BASE_DIM = HIDDEN_DIMS[0]
LATENT_DIM = 16
IN_CH0 = NUM_CHANNELS * 2 + 1   # = 5
GN_EPS = 1e-5

HW0 = IMG_SIZE * IMG_SIZE                 # 256
HW1 = (IMG_SIZE // 2) * (IMG_SIZE // 2)   # 64
HW2 = (IMG_SIZE // 4) * (IMG_SIZE // 4)   # 16
FC_IN = HIDDEN_DIMS[-1] * 4 * 4           # 128

# packed output layout (single lane-dense slab, padded to a multiple of 128)
OUT_O0 = 0                      # mu0 | logvar0   : 2*256
OUT_O1 = OUT_O0 + 2 * HW0       # mu1 | logvar1   : 2*64
OUT_O2 = OUT_O1 + 2 * HW1       # mu2 | logvar2   : 2*16
OUT_O3 = OUT_O2 + 2 * HW2       # mu3 | logvar3   : 2*16
OUT_PAD = 64
OUT_W = OUT_O3 + 2 * LATENT_DIM + OUT_PAD   # 768 (multiple of 128)

# packed SMEM scalar layout
OFF_DE_W = 0      # 4
OFF_DE_B = 4      # 2
OFF_FZ_W = 6      # 10
OFF_FZ_B = 16     # 2
OFF_FZ_G = 18     # 2
OFF_FZ_BE = 20    # 2
OFF_LPE_W = 22    # 16
OFF_LPE_B = 38    # 8
OFF_LPE_G = 46    # 6
OFF_LPE_BE = 52   # 6
N_SCALARS = 58


# --------------------------------- kernel -----------------------------------
def _silu(v):
    # exact SiLU: x * sigmoid(x); exp + reciprocal use the EUP slot.
    return v * pl.reciprocal(1.0 + jnp.exp(-v), approx=False)


def _gn_pair_stats(a, b):
    # Single-pass GroupNorm(1, 2) stats for a 2-channel pair, per sample (row).
    n = a.shape[-1] + b.shape[-1]
    inv = 1.0 / float(n)
    s = jnp.sum(a, axis=-1, keepdims=True) + jnp.sum(b, axis=-1, keepdims=True)
    sq = jnp.sum(a * a, axis=-1, keepdims=True) + jnp.sum(b * b, axis=-1, keepdims=True)
    mean = s * inv
    var = jnp.maximum(sq * inv - mean * mean, 0.0)
    rstd = jax.lax.rsqrt(var + GN_EPS)
    return mean, rstd


def _zs_encoder_kernel(
    # VMEM inputs
    te_ref, tw1_ref, tw2_ref, tbias_ref,
    xt_ref, xp_ref,
    m0_ref, aff0_ref, m1_ref, aff1_ref,
    fcw_ref, fcb_ref,
    # SMEM packed scalar params
    sc_ref,
    # single lane-dense output slab (B, OUT_W)
    out_ref,
):
    B = te_ref.shape[0]

    # ---- hoist all SMEM scalar reads once --------------------------------
    de = [sc_ref[OFF_DE_W + k] for k in range(4)]
    deb = [sc_ref[OFF_DE_B + k] for k in range(2)]
    fzw = [sc_ref[OFF_FZ_W + k] for k in range(2 * IN_CH0)]
    fzb = [sc_ref[OFF_FZ_B + k] for k in range(2)]
    fzg = [sc_ref[OFF_FZ_G + k] for k in range(2)]
    fzbe = [sc_ref[OFF_FZ_BE + k] for k in range(2)]
    lpw = [sc_ref[OFF_LPE_W + k] for k in range(16)]
    lpb = [sc_ref[OFF_LPE_B + k] for k in range(8)]
    lpg = [sc_ref[OFF_LPE_G + k] for k in range(6)]
    lpbe = [sc_ref[OFF_LPE_BE + k] for k in range(6)]

    # ---- time embedding: linear -> SiLU -> linear (batched over B) -------
    t1 = jnp.dot(te_ref[...], tw1_ref[...],
                 preferred_element_type=jnp.float32) + tbias_ref[0:1, :]
    t1 = _silu(t1)
    temb = jnp.dot(t1, tw2_ref[...],
                   preferred_element_type=jnp.float32) + tbias_ref[1:2, :]    # (B, 256)

    # ---- data_embed: 1x1 conv 2->2 (VPU scalar FMAs, batched) ------------
    xt0 = xt_ref[:, 0:HW0]
    xt1 = xt_ref[:, HW0:2 * HW0]
    xp0 = xp_ref[:, 0:HW0]
    xp1 = xp_ref[:, HW0:2 * HW0]
    dt0 = de[0] * xt0 + de[1] * xt1 + deb[0]
    dt1 = de[2] * xt0 + de[3] * xt1 + deb[1]
    dp0 = de[0] * xp0 + de[1] * xp1 + deb[0]
    dp1 = de[2] * xp0 + de[3] * xp1 + deb[1]
    rows = [dt0, dt1, dp0, dp1, temb]          # the 5 input channels, each (B, 256)

    # ---- latent_param_encoding: 3x[1x1 conv 2->2, GN(1,2), SiLU] + 1x1 ---
    def latent_param_encode(y0, y1):
        for i in range(3):
            u0 = lpw[4 * i + 0] * y0 + lpw[4 * i + 1] * y1 + lpb[2 * i + 0]
            u1 = lpw[4 * i + 2] * y0 + lpw[4 * i + 3] * y1 + lpb[2 * i + 1]
            mean, rstd = _gn_pair_stats(u0, u1)
            y0 = _silu((u0 - mean) * rstd * lpg[2 * i + 0] + lpbe[2 * i + 0])
            y1 = _silu((u1 - mean) * rstd * lpg[2 * i + 1] + lpbe[2 * i + 1])
        f0 = lpw[12] * y0 + lpw[13] * y1 + lpb[6]
        f1 = lpw[14] * y0 + lpw[15] * y1 + lpb[7]
        return f0, f1

    # ---- first_z_encoder: 1x1 conv (5 -> 2) + GN(1,2) + SiLU -------------
    f0 = fzw[0] * rows[0]
    f1 = fzw[IN_CH0] * rows[0]
    for c in range(1, IN_CH0):
        f0 = f0 + fzw[c] * rows[c]
        f1 = f1 + fzw[IN_CH0 + c] * rows[c]
    f0 = f0 + fzb[0]
    f1 = f1 + fzb[1]
    mean, rstd = _gn_pair_stats(f0, f1)
    fz0 = _silu((f0 - mean) * rstd * fzg[0] + fzbe[0])
    fz1 = _silu((f1 - mean) * rstd * fzg[1] + fzbe[1])
    mu0, lv0 = latent_param_encode(fz0, fz1)                                  # (B, 256) each

    # ---- hierarchical encoder levels: one MXU matmul each ----------------
    def conv_level(x_flat, m_ref, aff_ref):
        # precomposed 3x3 stride-2 pad-1 conv: (B, Cin*HWin) @ (Cin*HWin, Cout*HWout)
        y = jnp.dot(x_flat, m_ref[...],
                    preferred_element_type=jnp.float32) + aff_ref[0:1, :]     # + bias row
        n = y.shape[-1]
        inv = 1.0 / float(n)
        s = jnp.sum(y, axis=-1, keepdims=True)
        sq = jnp.sum(y * y, axis=-1, keepdims=True)
        m = s * inv
        var = jnp.maximum(sq * inv - m * m, 0.0)
        yn = (y - m) * jax.lax.rsqrt(var + GN_EPS)
        return _silu(yn * aff_ref[1:2, :] + aff_ref[2:3, :])                  # GN affine + SiLU

    # level 0: (B, 5*256) -> (B, 10*64)
    x0 = jnp.concatenate(rows, axis=-1)                                       # (B, 1280)
    lvl0 = conv_level(x0, m0_ref, aff0_ref)                                   # (B, 640)
    mu1, lv1 = latent_param_encode(lvl0[:, 8 * HW1:9 * HW1],
                                   lvl0[:, 9 * HW1:10 * HW1])                 # (B, 64) each
    h1 = lvl0[:, 0:8 * HW1]                                                   # (B, 512)

    # level 1: (B, 8*64) -> (B, 10*16)
    lvl1 = conv_level(h1, m1_ref, aff1_ref)                                   # (B, 160)
    mu2, lv2 = latent_param_encode(lvl1[:, 8 * HW2:9 * HW2],
                                   lvl1[:, 9 * HW2:10 * HW2])                 # (B, 16) each
    h2 = lvl1[:, 0:8 * HW2]                                                   # (B, 128), NCHW flat order

    # ---- fc_mu / fc_var: one combined (B,128) x (128,32) matmul ----------
    acc = jnp.dot(h2, fcw_ref[...],
                  preferred_element_type=jnp.float32) + fcb_ref[...]          # (B, 32)
    mu3 = acc[:, 0:LATENT_DIM]
    lv3 = acc[:, LATENT_DIM:2 * LATENT_DIM]

    # ---- single lane-dense output slab ------------------------------------
    pad = jnp.zeros((B, OUT_PAD), jnp.float32)
    out_ref[...] = jnp.concatenate(
        [mu0, lv0, mu1, lv1, mu2, lv2, mu3, lv3, pad], axis=-1)               # (B, 768)


# ------------------------------ pallas wrapper -------------------------------
def _full_spec(shape):
    zeros = (0,) * len(shape)
    return pl.BlockSpec(shape, lambda i, _z=zeros: _z)


def zs_encoder_fused(params, te, x_t_flat, x_tp1_flat):
    B = te.shape[0]
    vmem_ins = (
        te, params['time_w1'], params['time_w2'], params['time_bias'],
        x_t_flat, x_tp1_flat,
        params['M0'], params['aff0'], params['M1'], params['aff1'],
        params['fc_w'], params['fc_b'],
    )
    in_specs = ([_full_spec(a.shape) for a in vmem_ins] +
                [pl.BlockSpec(memory_space=pltpu.MemorySpace.SMEM)])
    return pl.pallas_call(
        _zs_encoder_kernel,
        out_shape=jax.ShapeDtypeStruct((B, OUT_W), jnp.float32),
        grid=(1,),
        in_specs=in_specs,
        out_specs=_full_spec((B, OUT_W)),
        compiler_params=pltpu.CompilerParams(dimension_semantics=("arbitrary",)),
    )(*vmem_ins, params['scalars'])


# ---------------------------------- glue ------------------------------------
def timestep_encoding(timesteps, dim, max_period=10000.0):
    # TODO(synk): exact timestep_encoding not given in the reference; using the
    # standard sinusoidal embedding (cos||sin), dim assumed even.
    half = dim // 2
    freqs = jnp.exp(-math.log(max_period) * jnp.arange(half, dtype=jnp.float32) / half)
    args = timesteps.astype(jnp.float32)[:, None] * freqs[None, :]
    return jnp.concatenate([jnp.cos(args), jnp.sin(args)], axis=-1)


def _make_conv_matrix(w, H, W):
    """Precompose the 3x3 stride-2 pad-1 conv into one dense matrix.

    Returns M of shape (Cin*H*W, Cout*OH*OW) such that, for x laid out as
    (B, Cin*H*W) channel-major, y = x @ M is the conv output laid out as
    (B, Cout*OH*OW) channel-major (zero padding handled by zero rows).
    """
    w = np.asarray(w, np.float32)
    Cout, Cin = w.shape[0], w.shape[1]
    OH, OW = H // 2, W // 2
    OHW = OH * OW
    G = np.zeros((H * W, 9, OHW), np.float32)
    for kh in range(3):
        for kw in range(3):
            t = kh * 3 + kw
            for oh in range(OH):
                ih = 2 * oh + kh - 1
                if not (0 <= ih < H):
                    continue
                for ow in range(OW):
                    iw = 2 * ow + kw - 1
                    if not (0 <= iw < W):
                        continue
                    G[ih * W + iw, t, oh * OW + ow] = 1.0
    wr = w.reshape(Cout, Cin, 9)
    M = np.einsum('cit,pto->ipco', wr, G)                 # (Cin, HW, Cout, OHW)
    return jnp.asarray(M.reshape(Cin * H * W, Cout * OHW))


def init_params(key):
    def nrm(k, shape, scale=0.05):
        return scale * jax.random.normal(k, shape, jnp.float32)

    keys = iter(jax.random.split(key, 32))
    p = {}
    # time_embed: linear(base_dim, HW0) -> SiLU -> linear(HW0, HW0)
    p['time_w1'] = nrm(next(keys), (BASE_DIM, HW0))
    tb1 = nrm(next(keys), (1, HW0))
    p['time_w2'] = nrm(next(keys), (HW0, HW0))
    tb2 = nrm(next(keys), (1, HW0))
    p['time_bias'] = jnp.concatenate([tb1, tb2], axis=0)                # (2, 256)

    # data_embed 1x1 conv, first_z_encoder 1x1 conv + GN affine,
    # latent_param_encoding 4x 1x1 conv + 3x GN affine  -> one packed SMEM array
    de_w = nrm(next(keys), (NUM_CHANNELS, NUM_CHANNELS))
    de_b = nrm(next(keys), (NUM_CHANNELS,))
    fz_w = nrm(next(keys), (2, IN_CH0))
    fz_b = nrm(next(keys), (2,))
    fz_g = jnp.ones((2,), jnp.float32)
    fz_be = jnp.zeros((2,), jnp.float32)
    lpe_w = nrm(next(keys), (4, 4))                                     # [w00,w01,w10,w11] per layer
    lpe_b = nrm(next(keys), (4, 2))
    lpe_g = jnp.ones((3, 2), jnp.float32)
    lpe_be = jnp.zeros((3, 2), jnp.float32)
    p['scalars'] = jnp.concatenate([
        de_w.reshape(-1), de_b.reshape(-1),
        fz_w.reshape(-1), fz_b.reshape(-1), fz_g.reshape(-1), fz_be.reshape(-1),
        lpe_w.reshape(-1), lpe_b.reshape(-1), lpe_g.reshape(-1), lpe_be.reshape(-1),
    ])
    assert p['scalars'].shape == (N_SCALARS,)

    # hierarchical encoder: conv k3 s2 p1 (cin -> hdim+2) + GN, precomposed.
    # TODO(synk): `normalization` assumed to be GroupNorm(1, C), eps=1e-5.
    cin, H = IN_CH0, IMG_SIZE
    for i, hdim in enumerate(HIDDEN_DIMS):
        cout = hdim + 2
        w = nrm(next(keys), (cout, cin, 3, 3))                          # PyTorch layout
        b = nrm(next(keys), (cout,))
        gamma = jnp.ones((cout,), jnp.float32)
        beta = jnp.zeros((cout,), jnp.float32)
        p[f'M{i}'] = _make_conv_matrix(np.asarray(w), H, H)
        ohw = (H // 2) * (H // 2)
        p[f'aff{i}'] = jnp.stack([jnp.repeat(b, ohw),
                                  jnp.repeat(gamma, ohw),
                                  jnp.repeat(beta, ohw)], axis=0)       # (3, cout*ohw)
        cin, H = hdim, H // 2

    # fc_mu / fc_var fused into one (128, 2*latent_dim) matmul
    p['fc_w'] = jnp.concatenate([nrm(next(keys), (FC_IN, LATENT_DIM)),
                                 nrm(next(keys), (FC_IN, LATENT_DIM))], axis=1)
    p['fc_b'] = jnp.concatenate([nrm(next(keys), (1, LATENT_DIM)),
                                 nrm(next(keys), (1, LATENT_DIM))], axis=1)
    return p


def reparameterize(latent_params, key):
    # Matches the PyTorch reference: spatial zs are explicitly zeroed
    # (`if len(z.shape) > 2: z = torch.zeros_like(z)`); noise stays host-side JAX.
    zs = []
    for params_i in latent_params:
        mu, log_var = params_i[:, 0], params_i[:, 1]
        std = jnp.exp(0.5 * log_var)
        key, sub = jax.random.split(key)
        eps = jax.random.normal(sub, std.shape, std.dtype)
        z = eps * std + mu
        if z.ndim > 2:
            z = jnp.zeros_like(z)
        zs.append(z)
    return zs


@jax.jit
def zs_encoder_forward(params, x_t, x_tp1, scales, eps_key):
    # TODO(synk): Dropout is treated as identity (inference mode).
    B, C, H, W = x_t.shape
    te = timestep_encoding(scales, BASE_DIM)                            # (B, base_dim)
    out = zs_encoder_fused(
        params, te,
        x_t.reshape(B, C * H * W).astype(jnp.float32),
        x_tp1.reshape(B, C * H * W).astype(jnp.float32))
    latent_params = [
        out[:, OUT_O0:OUT_O0 + 2 * HW0].reshape(B, 2, H, W),
        out[:, OUT_O1:OUT_O1 + 2 * HW1].reshape(B, 2, H // 2, W // 2),
        out[:, OUT_O2:OUT_O2 + 2 * HW2].reshape(B, 2, H // 4, W // 4),
        out[:, OUT_O3:OUT_O3 + 2 * LATENT_DIM].reshape(B, 2, LATENT_DIM),
    ]
    zs = reparameterize(latent_params, eps_key)
    return zs, latent_params


# ----------------------------------- main ------------------------------------
if __name__ == "__main__":
    root = jax.random.PRNGKey(0)
    pkey, xkey, ykey, skey, ekey = jax.random.split(root, 5)
    params = init_params(pkey)

    x_t = jax.random.normal(xkey, (BATCH, NUM_CHANNELS, IMG_SIZE, IMG_SIZE), jnp.float32)
    x_tp1 = jax.random.normal(ykey, (BATCH, NUM_CHANNELS, IMG_SIZE, IMG_SIZE), jnp.float32)
    scales = jax.random.randint(skey, (BATCH,), 0, 1000).astype(jnp.float32)

    zs, latent_params = zs_encoder_forward(params, x_t, x_tp1, scales, ekey)
    jax.block_until_ready((zs, latent_params))

    # sanity checks on the shape contract
    assert latent_params[0].shape == (BATCH, 2, IMG_SIZE, IMG_SIZE)
    assert latent_params[1].shape == (BATCH, 2, IMG_SIZE // 2, IMG_SIZE // 2)
    assert latent_params[2].shape == (BATCH, 2, IMG_SIZE // 4, IMG_SIZE // 4)
    assert latent_params[3].shape == (BATCH, 2, LATENT_DIM)
    assert zs[0].shape == (BATCH, IMG_SIZE, IMG_SIZE) and bool(jnp.all(zs[0] == 0))
    assert zs[-1].shape == (BATCH, LATENT_DIM)
    for lp in latent_params:
        assert bool(jnp.all(jnp.isfinite(lp)))

    print("KERNEL_OK")
</pallas_src>

<mosaic_0001>
module attributes {stable_mosaic.version = 11 : i64} {
  func.func @_zs_encoder_kernel(%arg0: i32, %arg1: memref<2x8xf32, #tpu.memory_space<vmem>>, %arg2: memref<8x256xf32, #tpu.memory_space<vmem>>, %arg3: memref<256x256xf32, #tpu.memory_space<vmem>>, %arg4: memref<2x256xf32, #tpu.memory_space<vmem>>, %arg5: memref<2x512xf32, #tpu.memory_space<vmem>>, %arg6: memref<2x512xf32, #tpu.memory_space<vmem>>, %arg7: memref<1280x640xf32, #tpu.memory_space<vmem>>, %arg8: memref<3x640xf32, #tpu.memory_space<vmem>>, %arg9: memref<512x160xf32, #tpu.memory_space<vmem>>, %arg10: memref<3x160xf32, #tpu.memory_space<vmem>>, %arg11: memref<128x32xf32, #tpu.memory_space<vmem>>, %arg12: memref<1x32xf32, #tpu.memory_space<vmem>>, %arg13: memref<58xf32, #tpu.memory_space<smem>>, %arg14: memref<2x768xf32, #tpu.memory_space<vmem>>) attributes {dimension_semantics = [#tpu.dimension_semantics<arbitrary>], iteration_bounds = array<i64: 1>, scalar_prefetch = 0 : i64, scratch_operands = 0 : i64, tpu.core_type = #tpu.core_type<tc>, window_params = [{pipeline_mode = #tpu.pipeline_mode<synchronous>, transform_indices = @transform_0, window_bounds = array<i64: 2, 8>}, {pipeline_mode = #tpu.pipeline_mode<synchronous>, transform_indices = @transform_1, window_bounds = array<i64: 8, 256>}, {pipeline_mode = #tpu.pipeline_mode<synchronous>, transform_indices = @transform_2, window_bounds = array<i64: 256, 256>}, {pipeline_mode = #tpu.pipeline_mode<synchronous>, transform_indices = @transform_3, window_bounds = array<i64: 2, 256>}, {pipeline_mode = #tpu.pipeline_mode<synchronous>, transform_indices = @transform_4, window_bounds = array<i64: 2, 512>}, {pipeline_mode = #tpu.pipeline_mode<synchronous>, transform_indices = @transform_5, window_bounds = array<i64: 2, 512>}, {pipeline_mode = #tpu.pipeline_mode<synchronous>, transform_indices = @transform_6, window_bounds = array<i64: 1280, 640>}, {pipeline_mode = #tpu.pipeline_mode<synchronous>, transform_indices = @transform_7, window_bounds = array<i64: 3, 640>}, {pipeline_mode = #tpu.pipeline_mode<synchronous>, transform_indices = @transform_8, window_bounds = array<i64: 512, 160>}, {pipeline_mode = #tpu.pipeline_mode<synchronous>, transform_indices = @transform_9, window_bounds = array<i64: 3, 160>}, {pipeline_mode = #tpu.pipeline_mode<synchronous>, transform_indices = @transform_10, window_bounds = array<i64: 128, 32>}, {pipeline_mode = #tpu.pipeline_mode<synchronous>, transform_indices = @transform_11, window_bounds = array<i64: 1, 32>}, {transform_indices = @transform_12, window_bounds = array<i64: 58>}, {pipeline_mode = #tpu.pipeline_mode<synchronous>, transform_indices = @transform_13, window_bounds = array<i64: 2, 768>}]} {
    %c0 = arith.constant 0 : index
    %0 = memref.load %arg13[%c0] : memref<58xf32, #tpu.memory_space<smem>>
    %c1 = arith.constant 1 : index
    %1 = memref.load %arg13[%c1] : memref<58xf32, #tpu.memory_space<smem>>
    %c2 = arith.constant 2 : index
    %2 = memref.load %arg13[%c2] : memref<58xf32, #tpu.memory_space<smem>>
    %c3 = arith.constant 3 : index
    %3 = memref.load %arg13[%c3] : memref<58xf32, #tpu.memory_space<smem>>
    %c4 = arith.constant 4 : index
    %4 = memref.load %arg13[%c4] : memref<58xf32, #tpu.memory_space<smem>>
    %c5 = arith.constant 5 : index
    %5 = memref.load %arg13[%c5] : memref<58xf32, #tpu.memory_space<smem>>
    %c6 = arith.constant 6 : index
    %6 = memref.load %arg13[%c6] : memref<58xf32, #tpu.memory_space<smem>>
    %c7 = arith.constant 7 : index
    %7 = memref.load %arg13[%c7] : memref<58xf32, #tpu.memory_space<smem>>
    %c8 = arith.constant 8 : index
    %8 = memref.load %arg13[%c8] : memref<58xf32, #tpu.memory_space<smem>>
    %c9 = arith.constant 9 : index
    %9 = memref.load %arg13[%c9] : memref<58xf32, #tpu.memory_space<smem>>
    %c10 = arith.constant 10 : index
    %10 = memref.load %arg13[%c10] : memref<58xf32, #tpu.memory_space<smem>>
    %c11 = arith.constant 11 : index
    %11 = memref.load %arg13[%c11] : memref<58xf32, #tpu.memory_space<smem>>
    %c12 = arith.constant 12 : index
    %12 = memref.load %arg13[%c12] : memref<58xf32, #tpu.memory_space<smem>>
    %c13 = arith.constant 13 : index
    %13 = memref.load %arg13[%c13] : memref<58xf32, #tpu.memory_space<smem>>
    %c14 = arith.constant 14 : index
    %14 = memref.load %arg13[%c14] : memref<58xf32, #tpu.memory_space<smem>>
    %c15 = arith.constant 15 : index
    %15 = memref.load %arg13[%c15] : memref<58xf32, #tpu.memory_space<smem>>
    %c16 = arith.constant 16 : index
    %16 = memref.load %arg13[%c16] : memref<58xf32, #tpu.memory_space<smem>>
    %c17 = arith.constant 17 : index
    %17 = memref.load %arg13[%c17] : memref<58xf32, #tpu.memory_space<smem>>
    %c18 = arith.constant 18 : index
    %18 = memref.load %arg13[%c18] : memref<58xf32, #tpu.memory_space<smem>>
    %c19 = arith.constant 19 : index
    %19 = memref.load %arg13[%c19] : memref<58xf32, #tpu.memory_space<smem>>
    %c20 = arith.constant 20 : index
    %20 = memref.load %arg13[%c20] : memref<58xf32, #tpu.memory_space<smem>>
    %c21 = arith.constant 21 : index
    %21 = memref.load %arg13[%c21] : memref<58xf32, #tpu.memory_space<smem>>
    %c22 = arith.constant 22 : index
    %22 = memref.load %arg13[%c22] : memref<58xf32, #tpu.memory_space<smem>>
    %c23 = arith.constant 23 : index
    %23 = memref.load %arg13[%c23] : memref<58xf32, #tpu.memory_space<smem>>
    %c24 = arith.constant 24 : index
    %24 = memref.load %arg13[%c24] : memref<58xf32, #tpu.memory_space<smem>>
    %c25 = arith.constant 25 : index
    %25 = memref.load %arg13[%c25] : memref<58xf32, #tpu.memory_space<smem>>
    %c26 = arith.constant 26 : index
    %26 = memref.load %arg13[%c26] : memref<58xf32, #tpu.memory_space<smem>>
    %c27 = arith.constant 27 : index
    %27 = memref.load %arg13[%c27] : memref<58xf32, #tpu.memory_space<smem>>
    %c28 = arith.constant 28 : index
    %28 = memref.load %arg13[%c28] : memref<58xf32, #tpu.memory_space<smem>>
    %c29 = arith.constant 29 : index
    %29 = memref.load %arg13[%c29] : memref<58xf32, #tpu.memory_space<smem>>
    %c30 = arith.constant 30 : index
    %30 = memref.load %arg13[%c30] : memref<58xf32, #tpu.memory_space<smem>>
    %c31 = arith.constant 31 : index
    %31 = memref.load %arg13[%c31] : memref<58xf32, #tpu.memory_space<smem>>
    %c32 = arith.constant 32 : index
    %32 = memref.load %arg13[%c32] : memref<58xf32, #tpu.memory_space<smem>>
    %c33 = arith.constant 33 : index
    %33 = memref.load %arg13[%c33] : memref<58xf32, #tpu.memory_space<smem>>
    %c34 = arith.constant 34 : index
    %34 = memref.load %arg13[%c34] : memref<58xf32, #tpu.memory_space<smem>>
    %c35 = arith.constant 35 : index
    %35 = memref.load %arg13[%c35] : memref<58xf32, #tpu.memory_space<smem>>
    %c36 = arith.constant 36 : index
    %36 = memref.load %arg13[%c36] : memref<58xf32, #tpu.memory_space<smem>>
    %c37 = arith.constant 37 : index
    %37 = memref.load %arg13[%c37] : memref<58xf32, #tpu.memory_space<smem>>
    %c38 = arith.constant 38 : index
    %38 = memref.load %arg13[%c38] : memref<58xf32, #tpu.memory_space<smem>>
    %c39 = arith.constant 39 : index
    %39 = memref.load %arg13[%c39] : memref<58xf32, #tpu.memory_space<smem>>
    %c40 = arith.constant 40 : index
    %40 = memref.load %arg13[%c40] : memref<58xf32, #tpu.memory_space<smem>>
    %c41 = arith.constant 41 : index
    %41 = memref.load %arg13[%c41] : memref<58xf32, #tpu.memory_space<smem>>
    %c42 = arith.constant 42 : index
    %42 = memref.load %arg13[%c42] : memref<58xf32, #tpu.memory_space<smem>>
    %c43 = arith.constant 43 : index
    %43 = memref.load %arg13[%c43] : memref<58xf32, #tpu.memory_space<smem>>
    %c44 = arith.constant 44 : index
    %44 = memref.load %arg13[%c44] : memref<58xf32, #tpu.memory_space<smem>>
    %c45 = arith.constant 45 : index
    %45 = memref.load %arg13[%c45] : memref<58xf32, #tpu.memory_space<smem>>
    %c46 = arith.constant 46 : index
    %46 = memref.load %arg13[%c46] : memref<58xf32, #tpu.memory_space<smem>>
    %c47 = arith.constant 47 : index
    %47 = memref.load %arg13[%c47] : memref<58xf32, #tpu.memory_space<smem>>
    %c48 = arith.constant 48 : index
    %48 = memref.load %arg13[%c48] : memref<58xf32, #tpu.memory_space<smem>>
    %c49 = arith.constant 49 : index
    %49 = memref.load %arg13[%c49] : memref<58xf32, #tpu.memory_space<smem>>
    %c50 = arith.constant 50 : index
    %50 = memref.load %arg13[%c50] : memref<58xf32, #tpu.memory_space<smem>>
    %c51 = arith.constant 51 : index
    %51 = memref.load %arg13[%c51] : memref<58xf32, #tpu.memory_space<smem>>
    %c52 = arith.constant 52 : index
    %52 = memref.load %arg13[%c52] : memref<58xf32, #tpu.memory_space<smem>>
    %c53 = arith.constant 53 : index
    %53 = memref.load %arg13[%c53] : memref<58xf32, #tpu.memory_space<smem>>
    %c54 = arith.constant 54 : index
    %54 = memref.load %arg13[%c54] : memref<58xf32, #tpu.memory_space<smem>>
    %c55 = arith.constant 55 : index
    %55 = memref.load %arg13[%c55] : memref<58xf32, #tpu.memory_space<smem>>
    %c56 = arith.constant 56 : index
    %56 = memref.load %arg13[%c56] : memref<58xf32, #tpu.memory_space<smem>>
    %c57 = arith.constant 57 : index
    %57 = memref.load %arg13[%c57] : memref<58xf32, #tpu.memory_space<smem>>
    %c0_0 = arith.constant 0 : index
    %c0_1 = arith.constant 0 : index
    %58 = vector.load %arg1[%c0_0, %c0_1] : memref<2x8xf32, #tpu.memory_space<vmem>>, vector<2x8xf32>
    %c0_2 = arith.constant 0 : index
    %c0_3 = arith.constant 0 : index
    %59 = vector.load %arg2[%c0_2, %c0_3] : memref<8x256xf32, #tpu.memory_space<vmem>>, vector<8x256xf32>
    %cst = arith.constant dense<0.000000e+00> : vector<2x256xf32>
    %60 = tpu.matmul %58, %59, %cst {dimension_numbers = #tpu.dot_dimension_numbers<[1], [0], [0], [1], [0, 0, 1, 1], [], []>} : vector<2x8xf32>, vector<8x256xf32>, vector<2x256xf32> -> vector<2x256xf32>
    %c0_4 = arith.constant 0 : index
    %c0_5 = arith.constant 0 : index
    %61 = vector.load %arg4[%c0_4, %c0_5] : memref<2x256xf32, #tpu.memory_space<vmem>>, vector<1x256xf32>
    %62 = vector.broadcast %61 : vector<1x256xf32> to vector<2x256xf32>
    %63 = arith.addf %60, %62 : vector<2x256xf32>
    %cst_6 = arith.constant 0.000000e+00 : f32
    %64 = vector.broadcast %cst_6 : f32 to vector<2x256xf32>
    %65 = arith.subf %64, %63 : vector<2x256xf32>
    %66 = math.exp %65 : vector<2x256xf32>
    %cst_7 = arith.constant 1.000000e+00 : f32
    %67 = vector.broadcast %cst_7 : f32 to vector<2x256xf32>
    %68 = arith.addf %67, %66 : vector<2x256xf32>
    %69 = tpu.reciprocal %68 : vector<2x256xf32> -> vector<2x256xf32>
    %70 = arith.mulf %63, %69 : vector<2x256xf32>
    %c0_8 = arith.constant 0 : index
    %c0_9 = arith.constant 0 : index
    %71 = vector.load %arg3[%c0_8, %c0_9] : memref<256x256xf32, #tpu.memory_space<vmem>>, vector<256x256xf32>
    %cst_10 = arith.constant dense<0.000000e+00> : vector<2x256xf32>
    %72 = tpu.matmul %70, %71, %cst_10 {dimension_numbers = #tpu.dot_dimension_numbers<[1], [0], [0], [1], [0, 0, 1, 1], [], []>} : vector<2x256xf32>, vector<256x256xf32>, vector<2x256xf32> -> vector<2x256xf32>
    %c1_11 = arith.constant 1 : index
    %c0_12 = arith.constant 0 : index
    %73 = vector.load %arg4[%c1_11, %c0_12] : memref<2x256xf32, #tpu.memory_space<vmem>>, vector<1x256xf32>
    %74 = vector.broadcast %73 : vector<1x256xf32> to vector<2x256xf32>
    %75 = arith.addf %72, %74 : vector<2x256xf32>
    %c0_13 = arith.constant 0 : index
    %c0_14 = arith.constant 0 : index
    %76 = vector.load %arg5[%c0_13, %c0_14] : memref<2x512xf32, #tpu.memory_space<vmem>>, vector<2x256xf32>
    %c0_15 = arith.constant 0 : index
    %c256 = arith.constant 256 : index
    %77 = vector.load %arg5[%c0_15, %c256] : memref<2x512xf32, #tpu.memory_space<vmem>>, vector<2x256xf32>
    %c0_16 = arith.constant 0 : index
    %c0_17 = arith.constant 0 : index
    %78 = vector.load %arg6[%c0_16, %c0_17] : memref<2x512xf32, #tpu.memory_space<vmem>>, vector<2x256xf32>
    %c0_18 = arith.constant 0 : index
    %c256_19 = arith.constant 256 : index
    %79 = vector.load %arg6[%c0_18, %c256_19] : memref<2x512xf32, #tpu.memory_space<vmem>>, vector<2x256xf32>
    %80 = vector.broadcast %0 : f32 to vector<2x256xf32>
    %81 = arith.mulf %80, %76 : vector<2x256xf32>
    %82 = vector.broadcast %1 : f32 to vector<2x256xf32>
    %83 = arith.mulf %82, %77 : vector<2x256xf32>
    %84 = arith.addf %81, %83 : vector<2x256xf32>
    %85 = vector.broadcast %4 : f32 to vector<2x256xf32>
    %86 = arith.addf %84, %85 : vector<2x256xf32>
    %87 = vector.broadcast %2 : f32 to vector<2x256xf32>
    %88 = arith.mulf %87, %76 : vector<2x256xf32>
    %89 = vector.broadcast %3 : f32 to vector<2x256xf32>
    %90 = arith.mulf %89, %77 : vector<2x256xf32>
    %91 = arith.addf %88, %90 : vector<2x256xf32>
    %92 = vector.broadcast %5 : f32 to vector<2x256xf32>
    %93 = arith.addf %91, %92 : vector<2x256xf32>
    %94 = vector.broadcast %0 : f32 to vector<2x256xf32>
    %95 = arith.mulf %94, %78 : vector<2x256xf32>
    %96 = vector.broadcast %1 : f32 to vector<2x256xf32>
    %97 = arith.mulf %96, %79 : vector<2x256xf32>
    %98 = arith.addf %95, %97 : vector<2x256xf32>
    %99 = vector.broadcast %4 : f32 to vector<2x256xf32>
    %100 = arith.addf %98, %99 : vector<2x256xf32>
    %101 = vector.broadcast %2 : f32 to vector<2x256xf32>
    %102 = arith.mulf %101, %78 : vector<2x256xf32>
    %103 = vector.broadcast %3 : f32 to vector<2x256xf32>
    %104 = arith.mulf %103, %79 : vector<2x256xf32>
    %105 = arith.addf %102, %104 : vector<2x256xf32>
    %106 = vector.broadcast %5 : f32 to vector<2x256xf32>
    %107 = arith.addf %105, %106 : vector<2x256xf32>
    %108 = vector.broadcast %6 : f32 to vector<2x256xf32>
    %109 = arith.mulf %108, %86 : vector<2x256xf32>
    %110 = vector.broadcast %11 : f32 to vector<2x256xf32>
    %111 = arith.mulf %110, %86 : vector<2x256xf32>
    %112 = vector.broadcast %7 : f32 to vector<2x256xf32>
    %113 = arith.mulf %112, %93 : vector<2x256xf32>
    %114 = arith.addf %109, %113 : vector<2x256xf32>
    %115 = vector.broadcast %12 : f32 to vector<2x256xf32>
    %116 = arith.mulf %115, %93 : vector<2x256xf32>
    %117 = arith.addf %111, %116 : vector<2x256xf32>
    %118 = vector.broadcast %8 : f32 to vector<2x256xf32>
    %119 = arith.mulf %118, %100 : vector<2x256xf32>
    %120 = arith.addf %114, %119 : vector<2x256xf32>
    %121 = vector.broadcast %13 : f32 to vector<2x256xf32>
    %122 = arith.mulf %121, %100 : vector<2x256xf32>
    %123 = arith.addf %117, %122 : vector<2x256xf32>
    %124 = vector.broadcast %9 : f32 to vector<2x256xf32>
    %125 = arith.mulf %124, %107 : vector<2x256xf32>
    %126 = arith.addf %120, %125 : vector<2x256xf32>
    %127 = vector.broadcast %14 : f32 to vector<2x256xf32>
    %128 = arith.mulf %127, %107 : vector<2x256xf32>
    %129 = arith.addf %123, %128 : vector<2x256xf32>
    %130 = vector.broadcast %10 : f32 to vector<2x256xf32>
    %131 = arith.mulf %130, %75 : vector<2x256xf32>
    %132 = arith.addf %126, %131 : vector<2x256xf32>
    %133 = vector.broadcast %15 : f32 to vector<2x256xf32>
    %134 = arith.mulf %133, %75 : vector<2x256xf32>
    %135 = arith.addf %129, %134 : vector<2x256xf32>
    %136 = vector.broadcast %16 : f32 to vector<2x256xf32>
    %137 = arith.addf %132, %136 : vector<2x256xf32>
    %138 = vector.broadcast %17 : f32 to vector<2x256xf32>
    %139 = arith.addf %135, %138 : vector<2x256xf32>
    %cst_20 = arith.constant dense<0.000000e+00> : vector<2xf32>
    %140 = vector.multi_reduction <add>, %137, %cst_20 [1] : vector<2x256xf32> to vector<2xf32>
    %141 = vector.shape_cast %140 : vector<2xf32> to vector<2x1xf32>
    %cst_21 = arith.constant dense<0.000000e+00> : vector<2xf32>
    %142 = vector.multi_reduction <add>, %139, %cst_21 [1] : vector<2x256xf32> to vector<2xf32>
    %143 = vector.shape_cast %142 : vector<2xf32> to vector<2x1xf32>
    %144 = arith.addf %141, %143 : vector<2x1xf32>
    %145 = arith.mulf %137, %137 : vector<2x256xf32>
    %cst_22 = arith.constant dense<0.000000e+00> : vector<2xf32>
    %146 = vector.multi_reduction <add>, %145, %cst_22 [1] : vector<2x256xf32> to vector<2xf32>
    %147 = vector.shape_cast %146 : vector<2xf32> to vector<2x1xf32>
    %148 = arith.mulf %139, %139 : vector<2x256xf32>
    %cst_23 = arith.constant dense<0.000000e+00> : vector<2xf32>
    %149 = vector.multi_reduction <add>, %148, %cst_23 [1] : vector<2x256xf32> to vector<2xf32>
    %150 = vector.shape_cast %149 : vector<2xf32> to vector<2x1xf32>
    %151 = arith.addf %147, %150 : vector<2x1xf32>
    %cst_24 = arith.constant 0.001953125 : f32
    %152 = vector.broadcast %cst_24 : f32 to vector<2x1xf32>
    %153 = arith.mulf %144, %152 : vector<2x1xf32>
    %cst_25 = arith.constant 0.001953125 : f32
    %154 = vector.broadcast %cst_25 : f32 to vector<2x1xf32>
    %155 = arith.mulf %151, %154 : vector<2x1xf32>
    %156 = arith.mulf %153, %153 : vector<2x1xf32>
    %157 = arith.subf %155, %156 : vector<2x1xf32>
    %cst_26 = arith.constant 0.000000e+00 : f32
    %158 = vector.broadcast %cst_26 : f32 to vector<2x1xf32>
    %159 = arith.maximumf %157, %158 : vector<2x1xf32>
    %cst_27 = arith.constant 9.99999974E-6 : f32
    %160 = vector.broadcast %cst_27 : f32 to vector<2x1xf32>
    %161 = arith.addf %159, %160 : vector<2x1xf32>
    %162 = math.rsqrt %161 : vector<2x1xf32>
    %163 = vector.broadcast %153 : vector<2x1xf32> to vector<2x256xf32>
    %164 = arith.subf %137, %163 : vector<2x256xf32>
    %165 = vector.broadcast %162 : vector<2x1xf32> to vector<2x256xf32>
    %166 = arith.mulf %164, %165 : vector<2x256xf32>
    %167 = vector.broadcast %18 : f32 to vector<2x256xf32>
    %168 = arith.mulf %166, %167 : vector<2x256xf32>
    %169 = vector.broadcast %20 : f32 to vector<2x256xf32>
    %170 = arith.addf %168, %169 : vector<2x256xf32>
    %cst_28 = arith.constant 0.000000e+00 : f32
    %171 = vector.broadcast %cst_28 : f32 to vector<2x256xf32>
    %172 = arith.subf %171, %170 : vector<2x256xf32>
    %173 = math.exp %172 : vector<2x256xf32>
    %cst_29 = arith.constant 1.000000e+00 : f32
    %174 = vector.broadcast %cst_29 : f32 to vector<2x256xf32>
    %175 = arith.addf %174, %173 : vector<2x256xf32>
    %176 = tpu.reciprocal %175 : vector<2x256xf32> -> vector<2x256xf32>
    %177 = arith.mulf %170, %176 : vector<2x256xf32>
    %178 = vector.broadcast %153 : vector<2x1xf32> to vector<2x256xf32>
    %179 = arith.subf %139, %178 : vector<2x256xf32>
    %180 = vector.broadcast %162 : vector<2x1xf32> to vector<2x256xf32>
    %181 = arith.mulf %179, %180 : vector<2x256xf32>
    %182 = vector.broadcast %19 : f32 to vector<2x256xf32>
    %183 = arith.mulf %181, %182 : vector<2x256xf32>
    %184 = vector.broadcast %21 : f32 to vector<2x256xf32>
    %185 = arith.addf %183, %184 : vector<2x256xf32>
    %cst_30 = arith.constant 0.000000e+00 : f32
    %186 = vector.broadcast %cst_30 : f32 to vector<2x256xf32>
    %187 = arith.subf %186, %185 : vector<2x256xf32>
    %188 = math.exp %187 : vector<2x256xf32>
    %cst_31 = arith.constant 1.000000e+00 : f32
    %189 = vector.broadcast %cst_31 : f32 to vector<2x256xf32>
    %190 = arith.addf %189, %188 : vector<2x256xf32>
    %191 = tpu.reciprocal %190 : vector<2x256xf32> -> vector<2x256xf32>
    %192 = arith.mulf %185, %191 : vector<2x256xf32>
    %193 = vector.broadcast %22 : f32 to vector<2x256xf32>
    %194 = arith.mulf %193, %177 : vector<2x256xf32>
    %195 = vector.broadcast %23 : f32 to vector<2x256xf32>
    %196 = arith.mulf %195, %192 : vector<2x256xf32>
    %197 = arith.addf %194, %196 : vector<2x256xf32>
    %198 = vector.broadcast %38 : f32 to vector<2x256xf32>
    %199 = arith.addf %197, %198 : vector<2x256xf32>
    %200 = vector.broadcast %24 : f32 to vector<2x256xf32>
    %201 = arith.mulf %200, %177 : vector<2x256xf32>
    %202 = vector.broadcast %25 : f32 to vector<2x256xf32>
    %203 = arith.mulf %202, %192 : vector<2x256xf32>
    %204 = arith.addf %201, %203 : vector<2x256xf32>
    %205 = vector.broadcast %39 : f32 to vector<2x256xf32>
    %206 = arith.addf %204, %205 : vector<2x256xf32>
    %cst_32 = arith.constant dense<0.000000e+00> : vector<2xf32>
    %207 = vector.multi_reduction <add>, %199, %cst_32 [1] : vector<2x256xf32> to vector<2xf32>
    %208 = vector.shape_cast %207 : vector<2xf32> to vector<2x1xf32>
    %cst_33 = arith.constant dense<0.000000e+00> : vector<2xf32>
    %209 = vector.multi_reduction <add>, %206, %cst_33 [1] : vector<2x256xf32> to vector<2xf32>
    %210 = vector.shape_cast %209 : vector<2xf32> to vector<2x1xf32>
    %211 = arith.addf %208, %210 : vector<2x1xf32>
    %212 = arith.mulf %199, %199 : vector<2x256xf32>
    %cst_34 = arith.constant dense<0.000000e+00> : vector<2xf32>
    %213 = vector.multi_reduction <add>, %212, %cst_34 [1] : vector<2x256xf32> to vector<2xf32>
    %214 = vector.shape_cast %213 : vector<2xf32> to vector<2x1xf32>
    %215 = arith.mulf %206, %206 : vector<2x256xf32>
    %cst_35 = arith.constant dense<0.000000e+00> : vector<2xf32>
    %216 = vector.multi_reduction <add>, %215, %cst_35 [1] : vector<2x256xf32> to vector<2xf32>
    %217 = vector.shape_cast %216 : vector<2xf32> to vector<2x1xf32>
    %218 = arith.addf %214, %217 : vector<2x1xf32>
    %cst_36 = arith.constant 0.001953125 : f32
    %219 = vector.broadcast %cst_36 : f32 to vector<2x1xf32>
    %220 = arith.mulf %211, %219 : vector<2x1xf32>
    %cst_37 = arith.constant 0.001953125 : f32
    %221 = vector.broadcast %cst_37 : f32 to vector<2x1xf32>
    %222 = arith.mulf %218, %221 : vector<2x1xf32>
    %223 = arith.mulf %220, %220 : vector<2x1xf32>
    %224 = arith.subf %222, %223 : vector<2x1xf32>
    %cst_38 = arith.constant 0.000000e+00 : f32
    %225 = vector.broadcast %cst_38 : f32 to vector<2x1xf32>
    %226 = arith.maximumf %224, %225 : vector<2x1xf32>
    %cst_39 = arith.constant 9.99999974E-6 : f32
    %227 = vector.broadcast %cst_39 : f32 to vector<2x1xf32>
    %228 = arith.addf %226, %227 : vector<2x1xf32>
    %229 = math.rsqrt %228 : vector<2x1xf32>
    %230 = vector.broadcast %220 : vector<2x1xf32> to vector<2x256xf32>
    %231 = arith.subf %199, %230 : vector<2x256xf32>
    %232 = vector.broadcast %229 : vector<2x1xf32> to vector<2x256xf32>
    %233 = arith.mulf %231, %232 : vector<2x256xf32>
    %234 = vector.broadcast %46 : f32 to vector<2x256xf32>
    %235 = arith.mulf %233, %234 : vector<2x256xf32>
    %236 = vector.broadcast %52 : f32 to vector<2x256xf32>
    %237 = arith.addf %235, %236 : vector<2x256xf32>
    %cst_40 = arith.constant 0.000000e+00 : f32
    %238 = vector.broadcast %cst_40 : f32 to vector<2x256xf32>
    %239 = arith.subf %238, %237 : vector<2x256xf32>
    %240 = math.exp %239 : vector<2x256xf32>
    %cst_41 = arith.constant 1.000000e+00 : f32
    %241 = vector.broadcast %cst_41 : f32 to vector<2x256xf32>
    %242 = arith.addf %241, %240 : vector<2x256xf32>
    %243 = tpu.reciprocal %242 : vector<2x256xf32> -> vector<2x256xf32>
    %244 = arith.mulf %237, %243 : vector<2x256xf32>
    %245 = vector.broadcast %220 : vector<2x1xf32> to vector<2x256xf32>
    %246 = arith.subf %206, %245 : vector<2x256xf32>
    %247 = vector.broadcast %229 : vector<2x1xf32> to vector<2x256xf32>
    %248 = arith.mulf %246, %247 : vector<2x256xf32>
    %249 = vector.broadcast %47 : f32 to vector<2x256xf32>
    %250 = arith.mulf %248, %249 : vector<2x256xf32>
    %251 = vector.broadcast %53 : f32 to vector<2x256xf32>
    %252 = arith.addf %250, %251 : vector<2x256xf32>
    %cst_42 = arith.constant 0.000000e+00 : f32
    %253 = vector.broadcast %cst_42 : f32 to vector<2x256xf32>
    %254 = arith.subf %253, %252 : vector<2x256xf32>
    %255 = math.exp %254 : vector<2x256xf32>
    %cst_43 = arith.constant 1.000000e+00 : f32
    %256 = vector.broadcast %cst_43 : f32 to vector<2x256xf32>
    %257 = arith.addf %256, %255 : vector<2x256xf32>
    %258 = tpu.reciprocal %257 : vector<2x256xf32> -> vector<2x256xf32>
    %259 = arith.mulf %252, %258 : vector<2x256xf32>
    %260 = vector.broadcast %26 : f32 to vector<2x256xf32>
    %261 = arith.mulf %260, %244 : vector<2x256xf32>
    %262 = vector.broadcast %27 : f32 to vector<2x256xf32>
    %263 = arith.mulf %262, %259 : vector<2x256xf32>
    %264 = arith.addf %261, %263 : vector<2x256xf32>
    %265 = vector.broadcast %40 : f32 to vector<2x256xf32>
    %266 = arith.addf %264, %265 : vector<2x256xf32>
    %267 = vector.broadcast %28 : f32 to vector<2x256xf32>
    %268 = arith.mulf %267, %244 : vector<2x256xf32>
    %269 = vector.broadcast %29 : f32 to vector<2x256xf32>
    %270 = arith.mulf %269, %259 : vector<2x256xf32>
    %271 = arith.addf %268, %270 : vector<2x256xf32>
    %272 = vector.broadcast %41 : f32 to vector<2x256xf32>
    %273 = arith.addf %271, %272 : vector<2x256xf32>
    %cst_44 = arith.constant dense<0.000000e+00> : vector<2xf32>
    %274 = vector.multi_reduction <add>, %266, %cst_44 [1] : vector<2x256xf32> to vector<2xf32>
    %275 = vector.shape_cast %274 : vector<2xf32> to vector<2x1xf32>
    %cst_45 = arith.constant dense<0.000000e+00> : vector<2xf32>
    %276 = vector.multi_reduction <add>, %273, %cst_45 [1] : vector<2x256xf32> to vector<2xf32>
    %277 = vector.shape_cast %276 : vector<2xf32> to vector<2x1xf32>
    %278 = arith.addf %275, %277 : vector<2x1xf32>
    %279 = arith.mulf %266, %266 : vector<2x256xf32>
    %cst_46 = arith.constant dense<0.000000e+00> : vector<2xf32>
    %280 = vector.multi_reduction <add>, %279, %cst_46 [1] : vector<2x256xf32> to vector<2xf32>
    %281 = vector.shape_cast %280 : vector<2xf32> to vector<2x1xf32>
    %282 = arith.mulf %273, %273 : vector<2x256xf32>
    %cst_47 = arith.constant dense<0.000000e+00> : vector<2xf32>
    %283 = vector.multi_reduction <add>, %282, %cst_47 [1] : vector<2x256xf32> to vector<2xf32>
    %284 = vector.shape_cast %283 : vector<2xf32> to vector<2x1xf32>
    %285 = arith.addf %281, %284 : vector<2x1xf32>
    %cst_48 = arith.constant 0.001953125 : f32
    %286 = vector.broadcast %cst_48 : f32 to vector<2x1xf32>
    %287 = arith.mulf %278, %286 : vector<2x1xf32>
    %cst_49 = arith.constant 0.001953125 : f32
    %288 = vector.broadcast %cst_49 : f32 to vector<2x1xf32>
    %289 = arith.mulf %285, %288 : vector<2x1xf32>
    %290 = arith.mulf %287, %287 : vector<2x1xf32>
    %291 = arith.subf %289, %290 : vector<2x1xf32>
    %cst_50 = arith.constant 0.000000e+00 : f32
    %292 = vector.broadcast %cst_50 : f32 to vector<2x1xf32>
    %293 = arith.maximumf %291, %292 : vector<2x1xf32>
    %cst_51 = arith.constant 9.99999974E-6 : f32
    %294 = vector.broadcast %cst_51 : f32 to vector<2x1xf32>
    %295 = arith.addf %293, %294 : vector<2x1xf32>
    %296 = math.rsqrt %295 : vector<2x1xf32>
    %297 = vector.broadcast %287 : vector<2x1xf32> to vector<2x256xf32>
    %298 = arith.subf %266, %297 : vector<2x256xf32>
    %299 = vector.broadcast %296 : vector<2x1xf32> to vector<2x256xf32>
    %300 = arith.mulf %298, %299 : vector<2x256xf32>
    %301 = vector.broadcast %48 : f32 to vector<2x256xf32>
    %302 = arith.mulf %300, %301 : vector<2x256xf32>
    %303 = vector.broadcast %54 : f32 to vector<2x256xf32>
    %304 = arith.addf %302, %303 : vector<2x256xf32>
    %cst_52 = arith.constant 0.000000e+00 : f32
    %305 = vector.broadcast %cst_52 : f32 to vector<2x256xf32>
    %306 = arith.subf %305, %304 : vector<2x256xf32>
    %307 = math.exp %306 : vector<2x256xf32>
    %cst_53 = arith.constant 1.000000e+00 : f32
    %308 = vector.broadcast %cst_53 : f32 to vector<2x256xf32>
    %309 = arith.addf %308, %307 : vector<2x256xf32>
    %310 = tpu.reciprocal %309 : vector<2x256xf32> -> vector<2x256xf32>
    %311 = arith.mulf %304, %310 : vector<2x256xf32>
    %312 = vector.broadcast %287 : vector<2x1xf32> to vector<2x256xf32>
    %313 = arith.subf %273, %312 : vector<2x256xf32>
    %314 = vector.broadcast %296 : vector<2x1xf32> to vector<2x256xf32>
    %315 = arith.mulf %313, %314 : vector<2x256xf32>
    %316 = vector.broadcast %49 : f32 to vector<2x256xf32>
    %317 = arith.mulf %315, %316 : vector<2x256xf32>
    %318 = vector.broadcast %55 : f32 to vector<2x256xf32>
    %319 = arith.addf %317, %318 : vector<2x256xf32>
    %cst_54 = arith.constant 0.000000e+00 : f32
    %320 = vector.broadcast %cst_54 : f32 to vector<2x256xf32>
    %321 = arith.subf %320, %319 : vector<2x256xf32>
    %322 = math.exp %321 : vector<2x256xf32>
    %cst_55 = arith.constant 1.000000e+00 : f32
    %323 = vector.broadcast %cst_55 : f32 to vector<2x256xf32>
    %324 = arith.addf %323, %322 : vector<2x256xf32>
    %325 = tpu.reciprocal %324 : vector<2x256xf32> -> vector<2x256xf32>
    %326 = arith.mulf %319, %325 : vector<2x256xf32>
    %327 = vector.broadcast %30 : f32 to vector<2x256xf32>
    %328 = arith.mulf %327, %311 : vector<2x256xf32>
    %329 = vector.broadcast %31 : f32 to vector<2x256xf32>
    %330 = arith.mulf %329, %326 : vector<2x256xf32>
    %331 = arith.addf %328, %330 : vector<2x256xf32>
    %332 = vector.broadcast %42 : f32 to vector<2x256xf32>
    %333 = arith.addf %331, %332 : vector<2x256xf32>
    %334 = vector.broadcast %32 : f32 to vector<2x256xf32>
    %335 = arith.mulf %334, %311 : vector<2x256xf32>
    %336 = vector.broadcast %33 : f32 to vector<2x256xf32>
    %337 = arith.mulf %336, %326 : vector<2x256xf32>
    %338 = arith.addf %335, %337 : vector<2x256xf32>
    %339 = vector.broadcast %43 : f32 to vector<2x256xf32>
    %340 = arith.addf %338, %339 : vector<2x256xf32>
    %cst_56 = arith.constant dense<0.000000e+00> : vector<2xf32>
    %341 = vector.multi_reduction <add>, %333, %cst_56 [1] : vector<2x256xf32> to vector<2xf32>
    %342 = vector.shape_cast %341 : vector<2xf32> to vector<2x1xf32>
    %cst_57 = arith.constant dense<0.000000e+00> : vector<2xf32>
    %343 = vector.multi_reduction <add>, %340, %cst_57 [1] : vector<2x256xf32> to vector<2xf32>
    %344 = vector.shape_cast %343 : vector<2xf32> to vector<2x1xf32>
    %345 = arith.addf %342, %344 : vector<2x1xf32>
    %346 = arith.mulf %333, %333 : vector<2x256xf32>
    %cst_58 = arith.constant dense<0.000000e+00> : vector<2xf32>
    %347 = vector.multi_reduction <add>, %346, %cst_58 [1] : vector<2x256xf32> to vector<2xf32>
    %348 = vector.shape_cast %347 : vector<2xf32> to vector<2x1xf32>
    %349 = arith.mulf %340, %340 : vector<2x256xf32>
    %cst_59 = arith.constant dense<0.000000e+00> : vector<2xf32>
    %350 = vector.multi_reduction <add>, %349, %cst_59 [1] : vector<2x256xf32> to vector<2xf32>
    %351 = vector.shape_cast %350 : vector<2xf32> to vector<2x1xf32>
    %352 = arith.addf %348, %351 : vector<2x1xf32>
    %cst_60 = arith.constant 0.001953125 : f32
    %353 = vector.broadcast %cst_60 : f32 to vector<2x1xf32>
    %354 = arith.mulf %345, %353 : vector<2x1xf32>
    %cst_61 = arith.constant 0.001953125 : f32
    %355 = vector.broadcast %cst_61 : f32 to vector<2x1xf32>
    %356 = arith.mulf %352, %355 : vector<2x1xf32>
    %357 = arith.mulf %354, %354 : vector<2x1xf32>
    %358 = arith.subf %356, %357 : vector<2x1xf32>
    %cst_62 = arith.constant 0.000000e+00 : f32
    %359 = vector.broadcast %cst_62 : f32 to vector<2x1xf32>
    %360 = arith.maximumf %358, %359 : vector<2x1xf32>
    %cst_63 = arith.constant 9.99999974E-6 : f32
    %361 = vector.broadcast %cst_63 : f32 to vector<2x1xf32>
    %362 = arith.addf %360, %361 : vector<2x1xf32>
    %363 = math.rsqrt %362 : vector<2x1xf32>
    %364 = vector.broadcast %354 : vector<2x1xf32> to vector<2x256xf32>
    %365 = arith.subf %333, %364 : vector<2x256xf32>
    %366 = vector.broadcast %363 : vector<2x1xf32> to vector<2x256xf32>
    %367 = arith.mulf %365, %366 : vector<2x256xf32>
    %368 = vector.broadcast %50 : f32 to vector<2x256xf32>
    %369 = arith.mulf %367, %368 : vector<2x256xf32>
    %370 = vector.broadcast %56 : f32 to vector<2x256xf32>
    %371 = arith.addf %369, %370 : vector<2x256xf32>
    %cst_64 = arith.constant 0.000000e+00 : f32
    %372 = vector.broadcast %cst_64 : f32 to vector<2x256xf32>
    %373 = arith.subf %372, %371 : vector<2x256xf32>
    %374 = math.exp %373 : vector<2x256xf32>
    %cst_65 = arith.constant 1.000000e+00 : f32
    %375 = vector.broadcast %cst_65 : f32 to vector<2x256xf32>
    %376 = arith.addf %375, %374 : vector<2x256xf32>
    %377 = tpu.reciprocal %376 : vector<2x256xf32> -> vector<2x256xf32>
    %378 = arith.mulf %371, %377 : vector<2x256xf32>
    %379 = vector.broadcast %354 : vector<2x1xf32> to vector<2x256xf32>
    %380 = arith.subf %340, %379 : vector<2x256xf32>
    %381 = vector.broadcast %363 : vector<2x1xf32> to vector<2x256xf32>
    %382 = arith.mulf %380, %381 : vector<2x256xf32>
    %383 = vector.broadcast %51 : f32 to vector<2x256xf32>
    %384 = arith.mulf %382, %383 : vector<2x256xf32>
    %385 = vector.broadcast %57 : f32 to vector<2x256xf32>
    %386 = arith.addf %384, %385 : vector<2x256xf32>
    %cst_66 = arith.constant 0.000000e+00 : f32
    %387 = vector.broadcast %cst_66 : f32 to vector<2x256xf32>
    %388 = arith.subf %387, %386 : vector<2x256xf32>
    %389 = math.exp %388 : vector<2x256xf32>
    %cst_67 = arith.constant 1.000000e+00 : f32
    %390 = vector.broadcast %cst_67 : f32 to vector<2x256xf32>
    %391 = arith.addf %390, %389 : vector<2x256xf32>
    %392 = tpu.reciprocal %391 : vector<2x256xf32> -> vector<2x256xf32>
    %393 = arith.mulf %386, %392 : vector<2x256xf32>
    %394 = vector.broadcast %34 : f32 to vector<2x256xf32>
    %395 = arith.mulf %394, %378 : vector<2x256xf32>
    %396 = vector.broadcast %35 : f32 to vector<2x256xf32>
    %397 = arith.mulf %396, %393 : vector<2x256xf32>
    %398 = arith.addf %395, %397 : vector<2x256xf32>
    %399 = vector.broadcast %44 : f32 to vector<2x256xf32>
    %400 = arith.addf %398, %399 : vector<2x256xf32>
    %401 = vector.broadcast %36 : f32 to vector<2x256xf32>
    %402 = arith.mulf %401, %378 : vector<2x256xf32>
    %403 = vector.broadcast %37 : f32 to vector<2x256xf32>
    %404 = arith.mulf %403, %393 : vector<2x256xf32>
    %405 = arith.addf %402, %404 : vector<2x256xf32>
    %406 = vector.broadcast %45 : f32 to vector<2x256xf32>
    %407 = arith.addf %405, %406 : vector<2x256xf32>
    %408 = tpu.concatenate %86, %93, %100, %107, %75 in 1 : vector<2x256xf32>, vector<2x256xf32>, vector<2x256xf32>, vector<2x256xf32>, vector<2x256xf32> -> vector<2x1280xf32>
    %c0_68 = arith.constant 0 : index
    %c0_69 = arith.constant 0 : index
    %409 = vector.load %arg7[%c0_68, %c0_69] : memref<1280x640xf32, #tpu.memory_space<vmem>>, vector<1280x640xf32>
    %cst_70 = arith.constant dense<0.000000e+00> : vector<2x640xf32>
    %410 = tpu.matmul %408, %409, %cst_70 {dimension_numbers = #tpu.dot_dimension_numbers<[1], [0], [0], [1], [0, 0, 1, 1], [], []>} : vector<2x1280xf32>, vector<1280x640xf32>, vector<2x640xf32> -> vector<2x640xf32>
    %c0_71 = arith.constant 0 : index
    %c0_72 = arith.constant 0 : index
    %411 = vector.load %arg8[%c0_71, %c0_72] : memref<3x640xf32, #tpu.memory_space<vmem>>, vector<1x640xf32>
    %412 = vector.broadcast %411 : vector<1x640xf32> to vector<2x640xf32>
    %413 = arith.addf %410, %412 : vector<2x640xf32>
    %cst_73 = arith.constant dense<0.000000e+00> : vector<2xf32>
    %414 = vector.multi_reduction <add>, %413, %cst_73 [1] : vector<2x640xf32> to vector<2xf32>
    %415 = vector.shape_cast %414 : vector<2xf32> to vector<2x1xf32>
    %416 = arith.mulf %413, %413 : vector<2x640xf32>
    %cst_74 = arith.constant dense<0.000000e+00> : vector<2xf32>
    %417 = vector.multi_reduction <add>, %416, %cst_74 [1] : vector<2x640xf32> to vector<2xf32>
    %418 = vector.shape_cast %417 : vector<2xf32> to vector<2x1xf32>
    %cst_75 = arith.constant 1.562500e-03 : f32
    %419 = vector.broadcast %cst_75 : f32 to vector<2x1xf32>
    %420 = arith.mulf %415, %419 : vector<2x1xf32>
    %cst_76 = arith.constant 1.562500e-03 : f32
    %421 = vector.broadcast %cst_76 : f32 to vector<2x1xf32>
    %422 = arith.mulf %418, %421 : vector<2x1xf32>
    %423 = arith.mulf %420, %420 : vector<2x1xf32>
    %424 = arith.subf %422, %423 : vector<2x1xf32>
    %cst_77 = arith.constant 0.000000e+00 : f32
    %425 = vector.broadcast %cst_77 : f32 to vector<2x1xf32>
    %426 = arith.maximumf %424, %425 : vector<2x1xf32>
    %427 = vector.broadcast %420 : vector<2x1xf32> to vector<2x640xf32>
    %428 = arith.subf %413, %427 : vector<2x640xf32>
    %cst_78 = arith.constant 9.99999974E-6 : f32
    %429 = vector.broadcast %cst_78 : f32 to vector<2x1xf32>
    %430 = arith.addf %426, %429 : vector<2x1xf32>
    %431 = math.rsqrt %430 : vector<2x1xf32>
    %432 = vector.broadcast %431 : vector<2x1xf32> to vector<2x640xf32>
    %433 = arith.mulf %428, %432 : vector<2x640xf32>
    %c1_79 = arith.constant 1 : index
    %c0_80 = arith.constant 0 : index
    %434 = vector.load %arg8[%c1_79, %c0_80] : memref<3x640xf32, #tpu.memory_space<vmem>>, vector<1x640xf32>
    %435 = vector.broadcast %434 : vector<1x640xf32> to vector<2x640xf32>
    %436 = arith.mulf %433, %435 : vector<2x640xf32>
    %c2_81 = arith.constant 2 : index
    %c0_82 = arith.constant 0 : index
    %437 = vector.load %arg8[%c2_81, %c0_82] : memref<3x640xf32, #tpu.memory_space<vmem>>, vector<1x640xf32>
    %438 = vector.broadcast %437 : vector<1x640xf32> to vector<2x640xf32>
    %439 = arith.addf %436, %438 : vector<2x640xf32>
    %cst_83 = arith.constant 0.000000e+00 : f32
    %440 = vector.broadcast %cst_83 : f32 to vector<2x640xf32>
    %441 = arith.subf %440, %439 : vector<2x640xf32>
    %442 = math.exp %441 : vector<2x640xf32>
    %cst_84 = arith.constant 1.000000e+00 : f32
    %443 = vector.broadcast %cst_84 : f32 to vector<2x640xf32>
    %444 = arith.addf %443, %442 : vector<2x640xf32>
    %445 = tpu.reciprocal %444 : vector<2x640xf32> -> vector<2x640xf32>
    %446 = arith.mulf %439, %445 : vector<2x640xf32>
    %447 = vector.extract_strided_slice %446 {offsets = [0, 512], sizes = [2, 64], strides = [1, 1]} : vector<2x640xf32> to vector<2x64xf32>
    %448 = vector.extract_strided_slice %446 {offsets = [0, 576], sizes = [2, 64], strides = [1, 1]} : vector<2x640xf32> to vector<2x64xf32>
    %449 = vector.broadcast %22 : f32 to vector<2x64xf32>
    %450 = arith.mulf %449, %447 : vector<2x64xf32>
    %451 = vector.broadcast %23 : f32 to vector<2x64xf32>
    %452 = arith.mulf %451, %448 : vector<2x64xf32>
    %453 = arith.addf %450, %452 : vector<2x64xf32>
    %454 = vector.broadcast %38 : f32 to vector<2x64xf32>
    %455 = arith.addf %453, %454 : vector<2x64xf32>
    %456 = vector.broadcast %24 : f32 to vector<2x64xf32>
    %457 = arith.mulf %456, %447 : vector<2x64xf32>
    %458 = vector.broadcast %25 : f32 to vector<2x64xf32>
    %459 = arith.mulf %458, %448 : vector<2x64xf32>
    %460 = arith.addf %457, %459 : vector<2x64xf32>
    %461 = vector.broadcast %39 : f32 to vector<2x64xf32>
    %462 = arith.addf %460, %461 : vector<2x64xf32>
    %cst_85 = arith.constant dense<0.000000e+00> : vector<2xf32>
    %463 = vector.multi_reduction <add>, %455, %cst_85 [1] : vector<2x64xf32> to vector<2xf32>
    %464 = vector.shape_cast %463 : vector<2xf32> to vector<2x1xf32>
    %cst_86 = arith.constant dense<0.000000e+00> : vector<2xf32>
    %465 = vector.multi_reduction <add>, %462, %cst_86 [1] : vector<2x64xf32> to vector<2xf32>
    %466 = vector.shape_cast %465 : vector<2xf32> to vector<2x1xf32>
    %467 = arith.addf %464, %466 : vector<2x1xf32>
    %468 = arith.mulf %455, %455 : vector<2x64xf32>
    %cst_87 = arith.constant dense<0.000000e+00> : vector<2xf32>
    %469 = vector.multi_reduction <add>, %468, %cst_87 [1] : vector<2x64xf32> to vector<2xf32>
    %470 = vector.shape_cast %469 : vector<2xf32> to vector<2x1xf32>
    %471 = arith.mulf %462, %462 : vector<2x64xf32>
    %cst_88 = arith.constant dense<0.000000e+00> : vector<2xf32>
    %472 = vector.multi_reduction <add>, %471, %cst_88 [1] : vector<2x64xf32> to vector<2xf32>
    %473 = vector.shape_cast %472 : vector<2xf32> to vector<2x1xf32>
    %474 = arith.addf %470, %473 : vector<2x1xf32>
    %cst_89 = arith.constant 7.812500e-03 : f32
    %475 = vector.broadcast %cst_89 : f32 to vector<2x1xf32>
    %476 = arith.mulf %467, %475 : vector<2x1xf32>
    %cst_90 = arith.constant 7.812500e-03 : f32
    %477 = vector.broadcast %cst_90 : f32 to vector<2x1xf32>
    %478 = arith.mulf %474, %477 : vector<2x1xf32>
    %479 = arith.mulf %476, %476 : vector<2x1xf32>
    %480 = arith.subf %478, %479 : vector<2x1xf32>
    %cst_91 = arith.constant 0.000000e+00 : f32
    %481 = vector.broadcast %cst_91 : f32 to vector<2x1xf32>
    %482 = arith.maximumf %480, %481 : vector<2x1xf32>
    %cst_92 = arith.constant 9.99999974E-6 : f32
    %483 = vector.broadcast %cst_92 : f32 to vector<2x1xf32>
    %484 = arith.addf %482, %483 : vector<2x1xf32>
    %485 = math.rsqrt %484 : vector<2x1xf32>
    %486 = vector.broadcast %476 : vector<2x1xf32> to vector<2x64xf32>
    %487 = arith.subf %455, %486 : vector<2x64xf32>
    %488 = vector.broadcast %485 : vector<2x1xf32> to vector<2x64xf32>
    %489 = arith.mulf %487, %488 : vector<2x64xf32>
    %490 = vector.broadcast %46 : f32 to vector<2x64xf32>
    %491 = arith.mulf %489, %490 : vector<2x64xf32>
    %492 = vector.broadcast %52 : f32 to vector<2x64xf32>
    %493 = arith.addf %491, %492 : vector<2x64xf32>
    %cst_93 = arith.constant 0.000000e+00 : f32
    %494 = vector.broadcast %cst_93 : f32 to vector<2x64xf32>
    %495 = arith.subf %494, %493 : vector<2x64xf32>
    %496 = math.exp %495 : vector<2x64xf32>
    %cst_94 = arith.constant 1.000000e+00 : f32
    %497 = vector.broadcast %cst_94 : f32 to vector<2x64xf32>
    %498 = arith.addf %497, %496 : vector<2x64xf32>
    %499 = tpu.reciprocal %498 : vector<2x64xf32> -> vector<2x64xf32>
    %500 = arith.mulf %493, %499 : vector<2x64xf32>
    %501 = vector.broadcast %476 : vector<2x1xf32> to vector<2x64xf32>
    %502 = arith.subf %462, %501 : vector<2x64xf32>
    %503 = vector.broadcast %485 : vector<2x1xf32> to vector<2x64xf32>
    %504 = arith.mulf %502, %503 : vector<2x64xf32>
    %505 = vector.broadcast %47 : f32 to vector<2x64xf32>
    %506 = arith.mulf %504, %505 : vector<2x64xf32>
    %507 = vector.broadcast %53 : f32 to vector<2x64xf32>
    %508 = arith.addf %506, %507 : vector<2x64xf32>
    %cst_95 = arith.constant 0.000000e+00 : f32
    %509 = vector.broadcast %cst_95 : f32 to vector<2x64xf32>
    %510 = arith.subf %509, %508 : vector<2x64xf32>
    %511 = math.exp %510 : vector<2x64xf32>
    %cst_96 = arith.constant 1.000000e+00 : f32
    %512 = vector.broadcast %cst_96 : f32 to vector<2x64xf32>
    %513 = arith.addf %512, %511 : vector<2x64xf32>
    %514 = tpu.reciprocal %513 : vector<2x64xf32> -> vector<2x64xf32>
    %515 = arith.mulf %508, %514 : vector<2x64xf32>
    %516 = vector.broadcast %26 : f32 to vector<2x64xf32>
    %517 = arith.mulf %516, %500 : vector<2x64xf32>
    %518 = vector.broadcast %27 : f32 to vector<2x64xf32>
    %519 = arith.mulf %518, %515 : vector<2x64xf32>
    %520 = arith.addf %517, %519 : vector<2x64xf32>
    %521 = vector.broadcast %40 : f32 to vector<2x64xf32>
    %522 = arith.addf %520, %521 : vector<2x64xf32>
    %523 = vector.broadcast %28 : f32 to vector<2x64xf32>
    %524 = arith.mulf %523, %500 : vector<2x64xf32>
    %525 = vector.broadcast %29 : f32 to vector<2x64xf32>
    %526 = arith.mulf %525, %515 : vector<2x64xf32>
    %527 = arith.addf %524, %526 : vector<2x64xf32>
    %528 = vector.broadcast %41 : f32 to vector<2x64xf32>
    %529 = arith.addf %527, %528 : vector<2x64xf32>
    %cst_97 = arith.constant dense<0.000000e+00> : vector<2xf32>
    %530 = vector.multi_reduction <add>, %522, %cst_97 [1] : vector<2x64xf32> to vector<2xf32>
    %531 = vector.shape_cast %530 : vector<2xf32> to vector<2x1xf32>
    %cst_98 = arith.constant dense<0.000000e+00> : vector<2xf32>
    %532 = vector.multi_reduction <add>, %529, %cst_98 [1] : vector<2x64xf32> to vector<2xf32>
    %533 = vector.shape_cast %532 : vector<2xf32> to vector<2x1xf32>
    %534 = arith.addf %531, %533 : vector<2x1xf32>
    %535 = arith.mulf %522, %522 : vector<2x64xf32>
    %cst_99 = arith.constant dense<0.000000e+00> : vector<2xf32>
    %536 = vector.multi_reduction <add>, %535, %cst_99 [1] : vector<2x64xf32> to vector<2xf32>
    %537 = vector.shape_cast %536 : vector<2xf32> to vector<2x1xf32>
    %538 = arith.mulf %529, %529 : vector<2x64xf32>
    %cst_100 = arith.constant dense<0.000000e+00> : vector<2xf32>
    %539 = vector.multi_reduction <add>, %538, %cst_100 [1] : vector<2x64xf32> to vector<2xf32>
    %540 = vector.shape_cast %539 : vector<2xf32> to vector<2x1xf32>
    %541 = arith.addf %537, %540 : vector<2x1xf32>
    %cst_101 = arith.constant 7.812500e-03 : f32
    %542 = vector.broadcast %cst_101 : f32 to vector<2x1xf32>
    %543 = arith.mulf %534, %542 : vector<2x1xf32>
    %cst_102 = arith.constant 7.812500e-03 : f32
    %544 = vector.broadcast %cst_102 : f32 to vector<2x1xf32>
    %545 = arith.mulf %541, %544 : vector<2x1xf32>
    %546 = arith.mulf %543, %543 : vector<2x1xf32>
    %547 = arith.subf %545, %546 : vector<2x1xf32>
    %cst_103 = arith.constant 0.000000e+00 : f32
    %548 = vector.broadcast %cst_103 : f32 to vector<2x1xf32>
    %549 = arith.maximumf %547, %548 : vector<2x1xf32>
    %cst_104 = arith.constant 9.99999974E-6 : f32
    %550 = vector.broadcast %cst_104 : f32 to vector<2x1xf32>
    %551 = arith.addf %549, %550 : vector<2x1xf32>
    %552 = math.rsqrt %551 : vector<2x1xf32>
    %553 = vector.broadcast %543 : vector<2x1xf32> to vector<2x64xf32>
    %554 = arith.subf %522, %553 : vector<2x64xf32>
    %555 = vector.broadcast %552 : vector<2x1xf32> to vector<2x64xf32>
    %556 = arith.mulf %554, %555 : vector<2x64xf32>
    %557 = vector.broadcast %48 : f32 to vector<2x64xf32>
    %558 = arith.mulf %556, %557 : vector<2x64xf32>
    %559 = vector.broadcast %54 : f32 to vector<2x64xf32>
    %560 = arith.addf %558, %559 : vector<2x64xf32>
    %cst_105 = arith.constant 0.000000e+00 : f32
    %561 = vector.broadcast %cst_105 : f32 to vector<2x64xf32>
    %562 = arith.subf %561, %560 : vector<2x64xf32>
    %563 = math.exp %562 : vector<2x64xf32>
    %cst_106 = arith.constant 1.000000e+00 : f32
    %564 = vector.broadcast %cst_106 : f32 to vector<2x64xf32>
    %565 = arith.addf %564, %563 : vector<2x64xf32>
    %566 = tpu.reciprocal %565 : vector<2x64xf32> -> vector<2x64xf32>
    %567 = arith.mulf %560, %566 : vector<2x64xf32>
    %568 = vector.broadcast %543 : vector<2x1xf32> to vector<2x64xf32>
    %569 = arith.subf %529, %568 : vector<2x64xf32>
    %570 = vector.broadcast %552 : vector<2x1xf32> to vector<2x64xf32>
    %571 = arith.mulf %569, %570 : vector<2x64xf32>
    %572 = vector.broadcast %49 : f32 to vector<2x64xf32>
    %573 = arith.mulf %571, %572 : vector<2x64xf32>
    %574 = vector.broadcast %55 : f32 to vector<2x64xf32>
    %575 = arith.addf %573, %574 : vector<2x64xf32>
    %cst_107 = arith.constant 0.000000e+00 : f32
    %576 = vector.broadcast %cst_107 : f32 to vector<2x64xf32>
    %577 = arith.subf %576, %575 : vector<2x64xf32>
    %578 = math.exp %577 : vector<2x64xf32>
    %cst_108 = arith.constant 1.000000e+00 : f32
    %579 = vector.broadcast %cst_108 : f32 to vector<2x64xf32>
    %580 = arith.addf %579, %578 : vector<2x64xf32>
    %581 = tpu.reciprocal %580 : vector<2x64xf32> -> vector<2x64xf32>
    %582 = arith.mulf %575, %581 : vector<2x64xf32>
    %583 = vector.broadcast %30 : f32 to vector<2x64xf32>
    %584 = arith.mulf %583, %567 : vector<2x64xf32>
    %585 = vector.broadcast %31 : f32 to vector<2x64xf32>
    %586 = arith.mulf %585, %582 : vector<2x64xf32>
    %587 = arith.addf %584, %586 : vector<2x64xf32>
    %588 = vector.broadcast %42 : f32 to vector<2x64xf32>
    %589 = arith.addf %587, %588 : vector<2x64xf32>
    %590 = vector.broadcast %32 : f32 to vector<2x64xf32>
    %591 = arith.mulf %590, %567 : vector<2x64xf32>
    %592 = vector.broadcast %33 : f32 to vector<2x64xf32>
    %593 = arith.mulf %592, %582 : vector<2x64xf32>
    %594 = arith.addf %591, %593 : vector<2x64xf32>
    %595 = vector.broadcast %43 : f32 to vector<2x64xf32>
    %596 = arith.addf %594, %595 : vector<2x64xf32>
    %cst_109 = arith.constant dense<0.000000e+00> : vector<2xf32>
    %597 = vector.multi_reduction <add>, %589, %cst_109 [1] : vector<2x64xf32> to vector<2xf32>
    %598 = vector.shape_cast %597 : vector<2xf32> to vector<2x1xf32>
    %cst_110 = arith.constant dense<0.000000e+00> : vector<2xf32>
    %599 = vector.multi_reduction <add>, %596, %cst_110 [1] : vector<2x64xf32> to vector<2xf32>
    %600 = vector.shape_cast %599 : vector<2xf32> to vector<2x1xf32>
    %601 = arith.addf %598, %600 : vector<2x1xf32>
    %602 = arith.mulf %589, %589 : vector<2x64xf32>
    %cst_111 = arith.constant dense<0.000000e+00> : vector<2xf32>
    %603 = vector.multi_reduction <add>, %602, %cst_111 [1] : vector<2x64xf32> to vector<2xf32>
    %604 = vector.shape_cast %603 : vector<2xf32> to vector<2x1xf32>
    %605 = arith.mulf %596, %596 : vector<2x64xf32>
    %cst_112 = arith.constant dense<0.000000e+00> : vector<2xf32>
    %606 = vector.multi_reduction <add>, %605, %cst_112 [1] : vector<2x64xf32> to vector<2xf32>
    %607 = vector.shape_cast %606 : vector<2xf32> to vector<2x1xf32>
    %608 = arith.addf %604, %607 : vector<2x1xf32>
    %cst_113 = arith.constant 7.812500e-03 : f32
    %609 = vector.broadcast %cst_113 : f32 to vector<2x1xf32>
    %610 = arith.mulf %601, %609 : vector<2x1xf32>
    %cst_114 = arith.constant 7.812500e-03 : f32
    %611 = vector.broadcast %cst_114 : f32 to vector<2x1xf32>
    %612 = arith.mulf %608, %611 : vector<2x1xf32>
    %613 = arith.mulf %610, %610 : vector<2x1xf32>
    %614 = arith.subf %612, %613 : vector<2x1xf32>
    %cst_115 = arith.constant 0.000000e+00 : f32
    %615 = vector.broadcast %cst_115 : f32 to vector<2x1xf32>
    %616 = arith.maximumf %614, %615 : vector<2x1xf32>
    %cst_116 = arith.constant 9.99999974E-6 : f32
    %617 = vector.broadcast %cst_116 : f32 to vector<2x1xf32>
    %618 = arith.addf %616, %617 : vector<2x1xf32>
    %619 = math.rsqrt %618 : vector<2x1xf32>
    %620 = vector.broadcast %610 : vector<2x1xf32> to vector<2x64xf32>
    %621 = arith.subf %589, %620 : vector<2x64xf32>
    %622 = vector.broadcast %619 : vector<2x1xf32> to vector<2x64xf32>
    %623 = arith.mulf %621, %622 : vector<2x64xf32>
    %624 = vector.broadcast %50 : f32 to vector<2x64xf32>
    %625 = arith.mulf %623, %624 : vector<2x64xf32>
    %626 = vector.broadcast %56 : f32 to vector<2x64xf32>
    %627 = arith.addf %625, %626 : vector<2x64xf32>
    %cst_117 = arith.constant 0.000000e+00 : f32
    %628 = vector.broadcast %cst_117 : f32 to vector<2x64xf32>
    %629 = arith.subf %628, %627 : vector<2x64xf32>
    %630 = math.exp %629 : vector<2x64xf32>
    %cst_118 = arith.constant 1.000000e+00 : f32
    %631 = vector.broadcast %cst_118 : f32 to vector<2x64xf32>
    %632 = arith.addf %631, %630 : vector<2x64xf32>
    %633 = tpu.reciprocal %632 : vector<2x64xf32> -> vector<2x64xf32>
    %634 = arith.mulf %627, %633 : vector<2x64xf32>
    %635 = vector.broadcast %610 : vector<2x1xf32> to vector<2x64xf32>
    %636 = arith.subf %596, %635 : vector<2x64xf32>
    %637 = vector.broadcast %619 : vector<2x1xf32> to vector<2x64xf32>
    %638 = arith.mulf %636, %637 : vector<2x64xf32>
    %639 = vector.broadcast %51 : f32 to vector<2x64xf32>
    %640 = arith.mulf %638, %639 : vector<2x64xf32>
    %641 = vector.broadcast %57 : f32 to vector<2x64xf32>
    %642 = arith.addf %640, %641 : vector<2x64xf32>
    %cst_119 = arith.constant 0.000000e+00 : f32
    %643 = vector.broadcast %cst_119 : f32 to vector<2x64xf32>
    %644 = arith.subf %643, %642 : vector<2x64xf32>
    %645 = math.exp %644 : vector<2x64xf32>
    %cst_120 = arith.constant 1.000000e+00 : f32
    %646 = vector.broadcast %cst_120 : f32 to vector<2x64xf32>
    %647 = arith.addf %646, %645 : vector<2x64xf32>
    %648 = tpu.reciprocal %647 : vector<2x64xf32> -> vector<2x64xf32>
    %649 = arith.mulf %642, %648 : vector<2x64xf32>
    %650 = vector.broadcast %34 : f32 to vector<2x64xf32>
    %651 = arith.mulf %650, %634 : vector<2x64xf32>
    %652 = vector.broadcast %35 : f32 to vector<2x64xf32>
    %653 = arith.mulf %652, %649 : vector<2x64xf32>
    %654 = arith.addf %651, %653 : vector<2x64xf32>
    %655 = vector.broadcast %44 : f32 to vector<2x64xf32>
    %656 = arith.addf %654, %655 : vector<2x64xf32>
    %657 = vector.broadcast %36 : f32 to vector<2x64xf32>
    %658 = arith.mulf %657, %634 : vector<2x64xf32>
    %659 = vector.broadcast %37 : f32 to vector<2x64xf32>
    %660 = arith.mulf %659, %649 : vector<2x64xf32>
    %661 = arith.addf %658, %660 : vector<2x64xf32>
    %662 = vector.broadcast %45 : f32 to vector<2x64xf32>
    %663 = arith.addf %661, %662 : vector<2x64xf32>
    %664 = vector.extract_strided_slice %446 {offsets = [0, 0], sizes = [2, 512], strides = [1, 1]} : vector<2x640xf32> to vector<2x512xf32>
    %c0_121 = arith.constant 0 : index
    %c0_122 = arith.constant 0 : index
    %665 = vector.load %arg9[%c0_121, %c0_122] : memref<512x160xf32, #tpu.memory_space<vmem>>, vector<512x160xf32>
    %cst_123 = arith.constant dense<0.000000e+00> : vector<2x160xf32>
    %666 = tpu.matmul %664, %665, %cst_123 {dimension_numbers = #tpu.dot_dimension_numbers<[1], [0], [0], [1], [0, 0, 1, 1], [], []>} : vector<2x512xf32>, vector<512x160xf32>, vector<2x160xf32> -> vector<2x160xf32>
    %c0_124 = arith.constant 0 : index
    %c0_125 = arith.constant 0 : index
    %667 = vector.load %arg10[%c0_124, %c0_125] : memref<3x160xf32, #tpu.memory_space<vmem>>, vector<1x160xf32>
    %668 = vector.broadcast %667 : vector<1x160xf32> to vector<2x160xf32>
    %669 = arith.addf %666, %668 : vector<2x160xf32>
    %cst_126 = arith.constant dense<0.000000e+00> : vector<2xf32>
    %670 = vector.multi_reduction <add>, %669, %cst_126 [1] : vector<2x160xf32> to vector<2xf32>
    %671 = vector.shape_cast %670 : vector<2xf32> to vector<2x1xf32>
    %672 = arith.mulf %669, %669 : vector<2x160xf32>
    %cst_127 = arith.constant dense<0.000000e+00> : vector<2xf32>
    %673 = vector.multi_reduction <add>, %672, %cst_127 [1] : vector<2x160xf32> to vector<2xf32>
    %674 = vector.shape_cast %673 : vector<2xf32> to vector<2x1xf32>
    %cst_128 = arith.constant 6.250000e-03 : f32
    %675 = vector.broadcast %cst_128 : f32 to vector<2x1xf32>
    %676 = arith.mulf %671, %675 : vector<2x1xf32>
    %cst_129 = arith.constant 6.250000e-03 : f32
    %677 = vector.broadcast %cst_129 : f32 to vector<2x1xf32>
    %678 = arith.mulf %674, %677 : vector<2x1xf32>
    %679 = arith.mulf %676, %676 : vector<2x1xf32>
    %680 = arith.subf %678, %679 : vector<2x1xf32>
    %cst_130 = arith.constant 0.000000e+00 : f32
    %681 = vector.broadcast %cst_130 : f32 to vector<2x1xf32>
    %682 = arith.maximumf %680, %681 : vector<2x1xf32>
    %683 = vector.broadcast %676 : vector<2x1xf32> to vector<2x160xf32>
    %684 = arith.subf %669, %683 : vector<2x160xf32>
    %cst_131 = arith.constant 9.99999974E-6 : f32
    %685 = vector.broadcast %cst_131 : f32 to vector<2x1xf32>
    %686 = arith.addf %682, %685 : vector<2x1xf32>
    %687 = math.rsqrt %686 : vector<2x1xf32>
    %688 = vector.broadcast %687 : vector<2x1xf32> to vector<2x160xf32>
    %689 = arith.mulf %684, %688 : vector<2x160xf32>
    %c1_132 = arith.constant 1 : index
    %c0_133 = arith.constant 0 : index
    %690 = vector.load %arg10[%c1_132, %c0_133] : memref<3x160xf32, #tpu.memory_space<vmem>>, vector<1x160xf32>
    %691 = vector.broadcast %690 : vector<1x160xf32> to vector<2x160xf32>
    %692 = arith.mulf %689, %691 : vector<2x160xf32>
    %c2_134 = arith.constant 2 : index
    %c0_135 = arith.constant 0 : index
    %693 = vector.load %arg10[%c2_134, %c0_135] : memref<3x160xf32, #tpu.memory_space<vmem>>, vector<1x160xf32>
    %694 = vector.broadcast %693 : vector<1x160xf32> to vector<2x160xf32>
    %695 = arith.addf %692, %694 : vector<2x160xf32>
    %cst_136 = arith.constant 0.000000e+00 : f32
    %696 = vector.broadcast %cst_136 : f32 to vector<2x160xf32>
    %697 = arith.subf %696, %695 : vector<2x160xf32>
    %698 = math.exp %697 : vector<2x160xf32>
    %cst_137 = arith.constant 1.000000e+00 : f32
    %699 = vector.broadcast %cst_137 : f32 to vector<2x160xf32>
    %700 = arith.addf %699, %698 : vector<2x160xf32>
    %701 = tpu.reciprocal %700 : vector<2x160xf32> -> vector<2x160xf32>
    %702 = arith.mulf %695, %701 : vector<2x160xf32>
    %703 = vector.extract_strided_slice %702 {offsets = [0, 128], sizes = [2, 16], strides = [1, 1]} : vector<2x160xf32> to vector<2x16xf32>
    %704 = vector.extract_strided_slice %702 {offsets = [0, 144], sizes = [2, 16], strides = [1, 1]} : vector<2x160xf32> to vector<2x16xf32>
    %705 = vector.broadcast %22 : f32 to vector<2x16xf32>
    %706 = arith.mulf %705, %703 : vector<2x16xf32>
    %707 = vector.broadcast %23 : f32 to vector<2x16xf32>
    %708 = arith.mulf %707, %704 : vector<2x16xf32>
    %709 = arith.addf %706, %708 : vector<2x16xf32>
    %710 = vector.broadcast %38 : f32 to vector<2x16xf32>
    %711 = arith.addf %709, %710 : vector<2x16xf32>
    %712 = vector.broadcast %24 : f32 to vector<2x16xf32>
    %713 = arith.mulf %712, %703 : vector<2x16xf32>
    %714 = vector.broadcast %25 : f32 to vector<2x16xf32>
    %715 = arith.mulf %714, %704 : vector<2x16xf32>
    %716 = arith.addf %713, %715 : vector<2x16xf32>
    %717 = vector.broadcast %39 : f32 to vector<2x16xf32>
    %718 = arith.addf %716, %717 : vector<2x16xf32>
    %cst_138 = arith.constant dense<0.000000e+00> : vector<2xf32>
    %719 = vector.multi_reduction <add>, %711, %cst_138 [1] : vector<2x16xf32> to vector<2xf32>
    %720 = vector.shape_cast %719 : vector<2xf32> to vector<2x1xf32>
    %cst_139 = arith.constant dense<0.000000e+00> : vector<2xf32>
    %721 = vector.multi_reduction <add>, %718, %cst_139 [1] : vector<2x16xf32> to vector<2xf32>
    %722 = vector.shape_cast %721 : vector<2xf32> to vector<2x1xf32>
    %723 = arith.addf %720, %722 : vector<2x1xf32>
    %724 = arith.mulf %711, %711 : vector<2x16xf32>
    %cst_140 = arith.constant dense<0.000000e+00> : vector<2xf32>
    %725 = vector.multi_reduction <add>, %724, %cst_140 [1] : vector<2x16xf32> to vector<2xf32>
    %726 = vector.shape_cast %725 : vector<2xf32> to vector<2x1xf32>
    %727 = arith.mulf %718, %718 : vector<2x16xf32>
    %cst_141 = arith.constant dense<0.000000e+00> : vector<2xf32>
    %728 = vector.multi_reduction <add>, %727, %cst_141 [1] : vector<2x16xf32> to vector<2xf32>
    %729 = vector.shape_cast %728 : vector<2xf32> to vector<2x1xf32>
    %730 = arith.addf %726, %729 : vector<2x1xf32>
    %cst_142 = arith.constant 3.125000e-02 : f32
    %731 = vector.broadcast %cst_142 : f32 to vector<2x1xf32>
    %732 = arith.mulf %723, %731 : vector<2x1xf32>
    %cst_143 = arith.constant 3.125000e-02 : f32
    %733 = vector.broadcast %cst_143 : f32 to vector<2x1xf32>
    %734 = arith.mulf %730, %733 : vector<2x1xf32>
    %735 = arith.mulf %732, %732 : vector<2x1xf32>
    %736 = arith.subf %734, %735 : vector<2x1xf32>
    %cst_144 = arith.constant 0.000000e+00 : f32
    %737 = vector.broadcast %cst_144 : f32 to vector<2x1xf32>
    %738 = arith.maximumf %736, %737 : vector<2x1xf32>
    %cst_145 = arith.constant 9.99999974E-6 : f32
    %739 = vector.broadcast %cst_145 : f32 to vector<2x1xf32>
    %740 = arith.addf %738, %739 : vector<2x1xf32>
    %741 = math.rsqrt %740 : vector<2x1xf32>
    %742 = vector.broadcast %732 : vector<2x1xf32> to vector<2x16xf32>
    %743 = arith.subf %711, %742 : vector<2x16xf32>
    %744 = vector.broadcast %741 : vector<2x1xf32> to vector<2x16xf32>
    %745 = arith.mulf %743, %744 : vector<2x16xf32>
    %746 = vector.broadcast %46 : f32 to vector<2x16xf32>
    %747 = arith.mulf %745, %746 : vector<2x16xf32>
    %748 = vector.broadcast %52 : f32 to vector<2x16xf32>
    %749 = arith.addf %747, %748 : vector<2x16xf32>
    %cst_146 = arith.constant 0.000000e+00 : f32
    %750 = vector.broadcast %cst_146 : f32 to vector<2x16xf32>
    %751 = arith.subf %750, %749 : vector<2x16xf32>
    %752 = math.exp %751 : vector<2x16xf32>
    %cst_147 = arith.constant 1.000000e+00 : f32
    %753 = vector.broadcast %cst_147 : f32 to vector<2x16xf32>
    %754 = arith.addf %753, %752 : vector<2x16xf32>
    %755 = tpu.reciprocal %754 : vector<2x16xf32> -> vector<2x16xf32>
    %756 = arith.mulf %749, %755 : vector<2x16xf32>
    %757 = vector.broadcast %732 : vector<2x1xf32> to vector<2x16xf32>
    %758 = arith.subf %718, %757 : vector<2x16xf32>
    %759 = vector.broadcast %741 : vector<2x1xf32> to vector<2x16xf32>
    %760 = arith.mulf %758, %759 : vector<2x16xf32>
    %761 = vector.broadcast %47 : f32 to vector<2x16xf32>
    %762 = arith.mulf %760, %761 : vector<2x16xf32>
    %763 = vector.broadcast %53 : f32 to vector<2x16xf32>
    %764 = arith.addf %762, %763 : vector<2x16xf32>
    %cst_148 = arith.constant 0.000000e+00 : f32
    %765 = vector.broadcast %cst_148 : f32 to vector<2x16xf32>
    %766 = arith.subf %765, %764 : vector<2x16xf32>
    %767 = math.exp %766 : vector<2x16xf32>
    %cst_149 = arith.constant 1.000000e+00 : f32
    %768 = vector.broadcast %cst_149 : f32 to vector<2x16xf32>
    %769 = arith.addf %768, %767 : vector<2x16xf32>
    %770 = tpu.reciprocal %769 : vector<2x16xf32> -> vector<2x16xf32>
    %771 = arith.mulf %764, %770 : vector<2x16xf32>
    %772 = vector.broadcast %26 : f32 to vector<2x16xf32>
    %773 = arith.mulf %772, %756 : vector<2x16xf32>
    %774 = vector.broadcast %27 : f32 to vector<2x16xf32>
    %775 = arith.mulf %774, %771 : vector<2x16xf32>
    %776 = arith.addf %773, %775 : vector<2x16xf32>
    %777 = vector.broadcast %40 : f32 to vector<2x16xf32>
    %778 = arith.addf %776, %777 : vector<2x16xf32>
    %779 = vector.broadcast %28 : f32 to vector<2x16xf32>
    %780 = arith.mulf %779, %756 : vector<2x16xf32>
    %781 = vector.broadcast %29 : f32 to vector<2x16xf32>
    %782 = arith.mulf %781, %771 : vector<2x16xf32>
    %783 = arith.addf %780, %782 : vector<2x16xf32>
    %784 = vector.broadcast %41 : f32 to vector<2x16xf32>
    %785 = arith.addf %783, %784 : vector<2x16xf32>
    %cst_150 = arith.constant dense<0.000000e+00> : vector<2xf32>
    %786 = vector.multi_reduction <add>, %778, %cst_150 [1] : vector<2x16xf32> to vector<2xf32>
    %787 = vector.shape_cast %786 : vector<2xf32> to vector<2x1xf32>
    %cst_151 = arith.constant dense<0.000000e+00> : vector<2xf32>
    %788 = vector.multi_reduction <add>, %785, %cst_151 [1] : vector<2x16xf32> to vector<2xf32>
    %789 = vector.shape_cast %788 : vector<2xf32> to vector<2x1xf32>
    %790 = arith.addf %787, %789 : vector<2x1xf32>
    %791 = arith.mulf %778, %778 : vector<2x16xf32>
    %cst_152 = arith.constant dense<0.000000e+00> : vector<2xf32>
    %792 = vector.multi_reduction <add>, %791, %cst_152 [1] : vector<2x16xf32> to vector<2xf32>
    %793 = vector.shape_cast %792 : vector<2xf32> to vector<2x1xf32>
    %794 = arith.mulf %785, %785 : vector<2x16xf32>
    %cst_153 = arith.constant dense<0.000000e+00> : vector<2xf32>
    %795 = vector.multi_reduction <add>, %794, %cst_153 [1] : vector<2x16xf32> to vector<2xf32>
    %796 = vector.shape_cast %795 : vector<2xf32> to vector<2x1xf32>
    %797 = arith.addf %793, %796 : vector<2x1xf32>
    %cst_154 = arith.constant 3.125000e-02 : f32
    %798 = vector.broadcast %cst_154 : f32 to vector<2x1xf32>
    %799 = arith.mulf %790, %798 : vector<2x1xf32>
    %cst_155 = arith.constant 3.125000e-02 : f32
    %800 = vector.broadcast %cst_155 : f32 to vector<2x1xf32>
    %801 = arith.mulf %797, %800 : vector<2x1xf32>
    %802 = arith.mulf %799, %799 : vector<2x1xf32>
    %803 = arith.subf %801, %802 : vector<2x1xf32>
    %cst_156 = arith.constant 0.000000e+00 : f32
    %804 = vector.broadcast %cst_156 : f32 to vector<2x1xf32>
    %805 = arith.maximumf %803, %804 : vector<2x1xf32>
    %cst_157 = arith.constant 9.99999974E-6 : f32
    %806 = vector.broadcast %cst_157 : f32 to vector<2x1xf32>
    %807 = arith.addf %805, %806 : vector<2x1xf32>
    %808 = math.rsqrt %807 : vector<2x1xf32>
    %809 = vector.broadcast %799 : vector<2x1xf32> to vector<2x16xf32>
    %810 = arith.subf %778, %809 : vector<2x16xf32>
    %811 = vector.broadcast %808 : vector<2x1xf32> to vector<2x16xf32>
    %812 = arith.mulf %810, %811 : vector<2x16xf32>
    %813 = vector.broadcast %48 : f32 to vector<2x16xf32>
    %814 = arith.mulf %812, %813 : vector<2x16xf32>
    %815 = vector.broadcast %54 : f32 to vector<2x16xf32>
    %816 = arith.addf %814, %815 : vector<2x16xf32>
    %cst_158 = arith.constant 0.000000e+00 : f32
    %817 = vector.broadcast %cst_158 : f32 to vector<2x16xf32>
    %818 = arith.subf %817, %816 : vector<2x16xf32>
    %819 = math.exp %818 : vector<2x16xf32>
    %cst_159 = arith.constant 1.000000e+00 : f32
    %820 = vector.broadcast %cst_159 : f32 to vector<2x16xf32>
    %821 = arith.addf %820, %819 : vector<2x16xf32>
    %822 = tpu.reciprocal %821 : vector<2x16xf32> -> vector<2x16xf32>
    %823 = arith.mulf %816, %822 : vector<2x16xf32>
    %824 = vector.broadcast %799 : vector<2x1xf32> to vector<2x16xf32>
    %825 = arith.subf %785, %824 : vector<2x16xf32>
    %826 = vector.broadcast %808 : vector<2x1xf32> to vector<2x16xf32>
    %827 = arith.mulf %825, %826 : vector<2x16xf32>
    %828 = vector.broadcast %49 : f32 to vector<2x16xf32>
    %829 = arith.mulf %827, %828 : vector<2x16xf32>
    %830 = vector.broadcast %55 : f32 to vector<2x16xf32>
    %831 = arith.addf %829, %830 : vector<2x16xf32>
    %cst_160 = arith.constant 0.000000e+00 : f32
    %832 = vector.broadcast %cst_160 : f32 to vector<2x16xf32>
    %833 = arith.subf %832, %831 : vector<2x16xf32>
    %834 = math.exp %833 : vector<2x16xf32>
    %cst_161 = arith.constant 1.000000e+00 : f32
    %835 = vector.broadcast %cst_161 : f32 to vector<2x16xf32>
    %836 = arith.addf %835, %834 : vector<2x16xf32>
    %837 = tpu.reciprocal %836 : vector<2x16xf32> -> vector<2x16xf32>
    %838 = arith.mulf %831, %837 : vector<2x16xf32>
    %839 = vector.broadcast %30 : f32 to vector<2x16xf32>
    %840 = arith.mulf %839, %823 : vector<2x16xf32>
    %841 = vector.broadcast %31 : f32 to vector<2x16xf32>
    %842 = arith.mulf %841, %838 : vector<2x16xf32>
    %843 = arith.addf %840, %842 : vector<2x16xf32>
    %844 = vector.broadcast %42 : f32 to vector<2x16xf32>
    %845 = arith.addf %843, %844 : vector<2x16xf32>
    %846 = vector.broadcast %32 : f32 to vector<2x16xf32>
    %847 = arith.mulf %846, %823 : vector<2x16xf32>
    %848 = vector.broadcast %33 : f32 to vector<2x16xf32>
    %849 = arith.mulf %848, %838 : vector<2x16xf32>
    %850 = arith.addf %847, %849 : vector<2x16xf32>
    %851 = vector.broadcast %43 : f32 to vector<2x16xf32>
    %852 = arith.addf %850, %851 : vector<2x16xf32>
    %cst_162 = arith.constant dense<0.000000e+00> : vector<2xf32>
    %853 = vector.multi_reduction <add>, %845, %cst_162 [1] : vector<2x16xf32> to vector<2xf32>
    %854 = vector.shape_cast %853 : vector<2xf32> to vector<2x1xf32>
    %cst_163 = arith.constant dense<0.000000e+00> : vector<2xf32>
    %855 = vector.multi_reduction <add>, %852, %cst_163 [1] : vector<2x16xf32> to vector<2xf32>
    %856 = vector.shape_cast %855 : vector<2xf32> to vector<2x1xf32>
    %857 = arith.addf %854, %856 : vector<2x1xf32>
    %858 = arith.mulf %845, %845 : vector<2x16xf32>
    %cst_164 = arith.constant dense<0.000000e+00> : vector<2xf32>
    %859 = vector.multi_reduction <add>, %858, %cst_164 [1] : vector<2x16xf32> to vector<2xf32>
    %860 = vector.shape_cast %859 : vector<2xf32> to vector<2x1xf32>
    %861 = arith.mulf %852, %852 : vector<2x16xf32>
    %cst_165 = arith.constant dense<0.000000e+00> : vector<2xf32>
    %862 = vector.multi_reduction <add>, %861, %cst_165 [1] : vector<2x16xf32> to vector<2xf32>
    %863 = vector.shape_cast %862 : vector<2xf32> to vector<2x1xf32>
    %864 = arith.addf %860, %863 : vector<2x1xf32>
    %cst_166 = arith.constant 3.125000e-02 : f32
    %865 = vector.broadcast %cst_166 : f32 to vector<2x1xf32>
    %866 = arith.mulf %857, %865 : vector<2x1xf32>
    %cst_167 = arith.constant 3.125000e-02 : f32
    %867 = vector.broadcast %cst_167 : f32 to vector<2x1xf32>
    %868 = arith.mulf %864, %867 : vector<2x1xf32>
    %869 = arith.mulf %866, %866 : vector<2x1xf32>
    %870 = arith.subf %868, %869 : vector<2x1xf32>
    %cst_168 = arith.constant 0.000000e+00 : f32
    %871 = vector.broadcast %cst_168 : f32 to vector<2x1xf32>
    %872 = arith.maximumf %870, %871 : vector<2x1xf32>
    %cst_169 = arith.constant 9.99999974E-6 : f32
    %873 = vector.broadcast %cst_169 : f32 to vector<2x1xf32>
    %874 = arith.addf %872, %873 : vector<2x1xf32>
    %875 = math.rsqrt %874 : vector<2x1xf32>
    %876 = vector.broadcast %866 : vector<2x1xf32> to vector<2x16xf32>
    %877 = arith.subf %845, %876 : vector<2x16xf32>
    %878 = vector.broadcast %875 : vector<2x1xf32> to vector<2x16xf32>
    %879 = arith.mulf %877, %878 : vector<2x16xf32>
    %880 = vector.broadcast %50 : f32 to vector<2x16xf32>
    %881 = arith.mulf %879, %880 : vector<2x16xf32>
    %882 = vector.broadcast %56 : f32 to vector<2x16xf32>
    %883 = arith.addf %881, %882 : vector<2x16xf32>
    %cst_170 = arith.constant 0.000000e+00 : f32
    %884 = vector.broadcast %cst_170 : f32 to vector<2x16xf32>
    %885 = arith.subf %884, %883 : vector<2x16xf32>
    %886 = math.exp %885 : vector<2x16xf32>
    %cst_171 = arith.constant 1.000000e+00 : f32
    %887 = vector.broadcast %cst_171 : f32 to vector<2x16xf32>
    %888 = arith.addf %887, %886 : vector<2x16xf32>
    %889 = tpu.reciprocal %888 : vector<2x16xf32> -> vector<2x16xf32>
    %890 = arith.mulf %883, %889 : vector<2x16xf32>
    %891 = vector.broadcast %866 : vector<2x1xf32> to vector<2x16xf32>
    %892 = arith.subf %852, %891 : vector<2x16xf32>
    %893 = vector.broadcast %875 : vector<2x1xf32> to vector<2x16xf32>
    %894 = arith.mulf %892, %893 : vector<2x16xf32>
    %895 = vector.broadcast %51 : f32 to vector<2x16xf32>
    %896 = arith.mulf %894, %895 : vector<2x16xf32>
    %897 = vector.broadcast %57 : f32 to vector<2x16xf32>
    %898 = arith.addf %896, %897 : vector<2x16xf32>
    %cst_172 = arith.constant 0.000000e+00 : f32
    %899 = vector.broadcast %cst_172 : f32 to vector<2x16xf32>
    %900 = arith.subf %899, %898 : vector<2x16xf32>
    %901 = math.exp %900 : vector<2x16xf32>
    %cst_173 = arith.constant 1.000000e+00 : f32
    %902 = vector.broadcast %cst_173 : f32 to vector<2x16xf32>
    %903 = arith.addf %902, %901 : vector<2x16xf32>
    %904 = tpu.reciprocal %903 : vector<2x16xf32> -> vector<2x16xf32>
    %905 = arith.mulf %898, %904 : vector<2x16xf32>
    %906 = vector.broadcast %34 : f32 to vector<2x16xf32>
    %907 = arith.mulf %906, %890 : vector<2x16xf32>
    %908 = vector.broadcast %35 : f32 to vector<2x16xf32>
    %909 = arith.mulf %908, %905 : vector<2x16xf32>
    %910 = arith.addf %907, %909 : vector<2x16xf32>
    %911 = vector.broadcast %44 : f32 to vector<2x16xf32>
    %912 = arith.addf %910, %911 : vector<2x16xf32>
    %913 = vector.broadcast %36 : f32 to vector<2x16xf32>
    %914 = arith.mulf %913, %890 : vector<2x16xf32>
    %915 = vector.broadcast %37 : f32 to vector<2x16xf32>
    %916 = arith.mulf %915, %905 : vector<2x16xf32>
    %917 = arith.addf %914, %916 : vector<2x16xf32>
    %918 = vector.broadcast %45 : f32 to vector<2x16xf32>
    %919 = arith.addf %917, %918 : vector<2x16xf32>
    %920 = vector.extract_strided_slice %702 {offsets = [0, 0], sizes = [2, 128], strides = [1, 1]} : vector<2x160xf32> to vector<2x128xf32>
    %c0_174 = arith.constant 0 : index
    %c0_175 = arith.constant 0 : index
    %921 = vector.load %arg11[%c0_174, %c0_175] : memref<128x32xf32, #tpu.memory_space<vmem>>, vector<128x32xf32>
    %cst_176 = arith.constant dense<0.000000e+00> : vector<2x32xf32>
    %922 = tpu.matmul %920, %921, %cst_176 {dimension_numbers = #tpu.dot_dimension_numbers<[1], [0], [0], [1], [0, 0, 1, 1], [], []>} : vector<2x128xf32>, vector<128x32xf32>, vector<2x32xf32> -> vector<2x32xf32>
    %c0_177 = arith.constant 0 : index
    %c0_178 = arith.constant 0 : index
    %923 = vector.load %arg12[%c0_177, %c0_178] : memref<1x32xf32, #tpu.memory_space<vmem>>, vector<1x32xf32>
    %924 = vector.broadcast %923 : vector<1x32xf32> to vector<2x32xf32>
    %925 = arith.addf %922, %924 : vector<2x32xf32>
    %926 = vector.extract_strided_slice %925 {offsets = [0, 0], sizes = [2, 16], strides = [1, 1]} : vector<2x32xf32> to vector<2x16xf32>
    %927 = vector.extract_strided_slice %925 {offsets = [0, 16], sizes = [2, 16], strides = [1, 1]} : vector<2x32xf32> to vector<2x16xf32>
    %cst_179 = arith.constant 0.000000e+00 : f32
    %928 = vector.broadcast %cst_179 : f32 to vector<2x64xf32>
    %929 = tpu.concatenate %400, %407, %656, %663, %912, %919, %926, %927, %928 in 1 : vector<2x256xf32>, vector<2x256xf32>, vector<2x64xf32>, vector<2x64xf32>, vector<2x16xf32>, vector<2x16xf32>, vector<2x16xf32>, vector<2x16xf32>, vector<2x64xf32> -> vector<2x768xf32>
    %c0_180 = arith.constant 0 : index
    %c0_181 = arith.constant 0 : index
    %930 = vector.load %arg14[%c0_180, %c0_181] : memref<2x768xf32, #tpu.memory_space<vmem>>, vector<2x768xf32>
    tpu.vector_store %arg14[%c0_180, %c0_181], %929 {strides = array<i32>} : memref<2x768xf32, #tpu.memory_space<vmem>>, vector<2x768xf32>,
    return
  }
  func.func @transform_0(%arg0: i32) -> (i32, i32) {
    %c0_i32 = arith.constant 0 : i32
    %c0_i32_0 = arith.constant 0 : i32
    %c0_i32_1 = arith.constant 0 : i32
    return %c0_i32, %c0_i32_0 : i32, i32
  }
  func.func @transform_1(%arg0: i32) -> (i32, i32) {
    %c0_i32 = arith.constant 0 : i32
    %c0_i32_0 = arith.constant 0 : i32
    %c0_i32_1 = arith.constant 0 : i32
    return %c0_i32, %c0_i32_0 : i32, i32
  }
  func.func @transform_2(%arg0: i32) -> (i32, i32) {
    %c0_i32 = arith.constant 0 : i32
    %c0_i32_0 = arith.constant 0 : i32
    %c0_i32_1 = arith.constant 0 : i32
    return %c0_i32, %c0_i32_0 : i32, i32
  }
  func.func @transform_3(%arg0: i32) -> (i32, i32) {
    %c0_i32 = arith.constant 0 : i32
    %c0_i32_0 = arith.constant 0 : i32
    %c0_i32_1 = arith.constant 0 : i32
    return %c0_i32, %c0_i32_0 : i32, i32
  }
  func.func @transform_4(%arg0: i32) -> (i32, i32) {
    %c0_i32 = arith.constant 0 : i32
    %c0_i32_0 = arith.constant 0 : i32
    %c0_i32_1 = arith.constant 0 : i32
    return %c0_i32, %c0_i32_0 : i32, i32
  }
  func.func @transform_5(%arg0: i32) -> (i32, i32) {
    %c0_i32 = arith.constant 0 : i32
    %c0_i32_0 = arith.constant 0 : i32
    %c0_i32_1 = arith.constant 0 : i32
    return %c0_i32, %c0_i32_0 : i32, i32
  }
  func.func @transform_6(%arg0: i32) -> (i32, i32) {
    %c0_i32 = arith.constant 0 : i32
    %c0_i32_0 = arith.constant 0 : i32
    %c0_i32_1 = arith.constant 0 : i32
    return %c0_i32, %c0_i32_0 : i32, i32
  }
  func.func @transform_7(%arg0: i32) -> (i32, i32) {
    %c0_i32 = arith.constant 0 : i32
    %c0_i32_0 = arith.constant 0 : i32
    %c0_i32_1 = arith.constant 0 : i32
    return %c0_i32, %c0_i32_0 : i32, i32
  }
  func.func @transform_8(%arg0: i32) -> (i32, i32) {
    %c0_i32 = arith.constant 0 : i32
    %c0_i32_0 = arith.constant 0 : i32
    %c0_i32_1 = arith.constant 0 : i32
    return %c0_i32, %c0_i32_0 : i32, i32
  }
  func.func @transform_9(%arg0: i32) -> (i32, i32) {
    %c0_i32 = arith.constant 0 : i32
    %c0_i32_0 = arith.constant 0 : i32
    %c0_i32_1 = arith.constant 0 : i32
    return %c0_i32, %c0_i32_0 : i32, i32
  }
  func.func @transform_10(%arg0: i32) -> (i32, i32) {
    %c0_i32 = arith.constant 0 : i32
    %c0_i32_0 = arith.constant 0 : i32
    %c0_i32_1 = arith.constant 0 : i32
    return %c0_i32, %c0_i32_0 : i32, i32
  }
  func.func @transform_11(%arg0: i32) -> (i32, i32) {
    %c0_i32 = arith.constant 0 : i32
    %c0_i32_0 = arith.constant 0 : i32
    %c0_i32_1 = arith.constant 0 : i32
    return %c0_i32, %c0_i32_0 : i32, i32
  }
  func.func @transform_12(%arg0: i32) -> i32 {
    %c0_i32 = arith.constant 0 : i32
    %c0_i32_0 = arith.constant 0 : i32
    return %c0_i32 : i32
  }
  func.func @transform_13(%arg0: i32) -> (i32, i32) {
    %c0_i32 = arith.constant 0 : i32
    %c0_i32_0 = arith.constant 0 : i32
    %c0_i32_1 = arith.constant 0 : i32
    return %c0_i32, %c0_i32_0 : i32, i32
  }
}

</mosaic_0001>

<bundles_post_ra>
// kernel: zs_encoder_forward.1
= control target key start
LH: loop header
LB: loop body
LE: loop exit
PB: predicated region body
PF: predicated region fallthrough
CT: control target
= control target key end

     0   :  { %18 = vsyncpa [#allocation3], 0  ;;  %s5986_s0 = inlined_call_operand.vmem [shape: f32[2,8], index: 0, kind: input, shape index: {}]   ;;  %s5987_s1 = inlined_call_operand.hbm [shape: f32[8,256], index: 1, kind: input, shape index: {}]   ;;  %s5988_s2 = inlined_call_operand.hbm [shape: f32[256,256], index: 2, kind: input, shape index: {}]   ;;  %s5989_s3 = inlined_call_operand.hbm [shape: f32[2,256], index: 3, kind: input, shape index: {}]   ;;  %s5990_s4 = inlined_call_operand.vmem [shape: f32[2,512], index: 4, kind: input, shape index: {}]   ;;  %s5991_s5 = inlined_call_operand.vmem [shape: f32[2,512], index: 5, kind: input, shape index: {}]   ;;  %s5992_s6 = inlined_call_operand.hbm [shape: f32[1280,640], index: 6, kind: input, shape index: {}]   ;;  %s5993_s7 = inlined_call_operand.hbm [shape: f32[3,640], index: 7, kind: input, shape index: {}]   ;;  %s5994_s8 = inlined_call_operand.vmem [shape: f32[512,160], index: 8, kind: input, shape index: {}]   ;;  %s5995_s9 = inlined_call_operand.hbm [shape: f32[3,160], index: 9, kind: input, shape index: {}]   ;;  %s5996_s10 = inlined_call_operand.vmem [shape: f32[128,32], index: 10, kind: input, shape index: {}]   ;;  %s5997_s11 = inlined_call_operand.hbm [shape: f32[1,32], index: 11, kind: input, shape index: {}]   ;;  %s5998_s12 = inlined_call_operand.hbm [shape: f32[58], index: 12, kind: input, shape index: {}]   ;;  %s5999_s13 = inlined_call_operand.vmem [shape: f32[2,768], index: 13, kind: output, shape index: {}]  }
   0x1   :  { %19 = vsyncpa [#allocation6], 0 }
   0x2   :  { %20 = vsyncpa [#allocation9], 0 }
   0x3   :  { %21 = vsyncpa [#allocation12], 0  ;;  %s40_s27 = sshll.u32 %s5988_s2, 4  ;;  %s41_s27 = int_to_ptr.hbm [resolvable:$true] %s40_s27 }
   0x4   :  { %22 = vsyncpa [#allocation4], 0  ;;  %s4545_s28 = smov [#allocation5]   ;;  %s68_s15 = sshll.u32 %s5992_s6, 4  ;;  %s69_s15 = int_to_ptr.hbm [resolvable:$true] %s68_s15 }
   0x5   :  { %s42_s29 = sshll.u32 %s4545_s28, 4  ;;  %s4546_s16 = smov 256   ;;  %s43_s29 = int_to_ptr.vmem [resolvable:$true] %s42_s29 }
   0x6   :  { %s4547_s17 = smov 16   ;;  %s4548_s18 = smov [#allocation8]  }
   0x7   :  { %48 = dma.hbm_to_vmem [thread:$0]  %s41_s27, 8192, %s43_s29, [#allocation6], %s4546_s16, %s4546_s16, %s4547_s17  }
   0x8   :  { %s70_s19 = sshll.u32 %s4548_s18, 4  ;;  %s4549_s20 = smov 640   ;;  %s71_s19 = int_to_ptr.vmem [resolvable:$true] %s70_s19 }
   0x9   :  { %s4550_s21 = smov 40   ;;  %s95_s23 = sshll.u32 %s5995_s9, 4  ;;  %s96_s23 = int_to_ptr.hbm [resolvable:$true] %s95_s23 }
   0xa   :  { %76 = dma.hbm_to_vmem [thread:$0]  %s69_s15, 102400, %s71_s19, [#allocation9], %s4549_s20, %s4549_s20, %s4550_s21  }
   0xb   :  { %s4551_s24 = smov [#allocation11]   ;;  %s30_s28 = sshll.u32 %s5987_s1, 4  ;;  %s31_s28 = int_to_ptr.hbm [resolvable:$true] %s30_s28 }
   0xc   :  { %s97_s25 = sshll.u32 %s4551_s24, 4  ;;  %s4552_s27 = smov [#allocation2]   ;;  %s98_s25 = int_to_ptr.vmem [resolvable:$true] %s97_s25 }
   0xd   :  { %100 = dma.hbm_to_vmem [thread:$0]  %s96_s23, 128, %s98_s25, [#allocation12]  }
   0xe   :  { %s32_s29 = sshll.u32 %s4552_s27, 4  ;;  %s54_s15 = sshll.u32 %s5989_s3, 4  ;;  %s33_s29 = int_to_ptr.vmem [resolvable:$true] %s32_s29  ;;  %s55_s15 = int_to_ptr.hbm [resolvable:$true] %s54_s15 }
   0xf   :  { %35 = dma.hbm_to_vmem [thread:$0]  %s31_s28, 256, %s33_s29, [#allocation3]  }
  0x10   :  { %s82_s18 = sshll.u32 %s5993_s7, 4  ;;  %s4553_s19 = smov [#allocation7]   ;;  %s83_s18 = int_to_ptr.hbm [resolvable:$true] %s82_s18 }
  0x11   :  { %s56_s20 = sshll.u32 %s4553_s19, 4  ;;  %s4554_s1 = smov [#allocation10]   ;;  %s57_s20 = int_to_ptr.vmem [resolvable:$true] %s56_s20 }
  0x12   :  { %59 = dma.hbm_to_vmem [thread:$0]  %s55_s15, 64, %s57_s20, [#allocation6]  }
  0x13   :  { %s84_s21 = sshll.u32 %s4554_s1, 4  ;;  %s108_s23 = sshll.u32 %s5997_s11, 4  ;;  %s85_s21 = int_to_ptr.vmem [resolvable:$true] %s84_s21  ;;  %s109_s23 = int_to_ptr.hbm [resolvable:$true] %s108_s23 }
  0x14   :  { %87 = dma.hbm_to_vmem [thread:$0]  %s83_s18, 320, %s85_s21, [#allocation9]  }
  0x15   :  { %s119_s25 = sshll.u32 %s5998_s12, 4  ;;  %s4555_s6 = smov [#allocation13]   ;;  %s120_s25 = int_to_ptr.hbm [resolvable:$true] %s119_s25 }
  0x16   :  { %s110_s7 = sshll.u32 %s4555_s6, 4  ;;  %s4556_s26 = smov [#allocation14]   ;;  %s111_s7 = int_to_ptr.vmem [resolvable:$true] %s110_s7 }
  0x17   :  { %113 = dma.hbm_to_vmem [thread:$0]  %s109_s23, 16, %s111_s7, [#allocation12]  }
  0x18   :  { %122 = dma.hbm_to_smem %s120_s25, 16, %s4556_s26, [#allocation4]  }
  0x19   :  { %4535 = dma.done.wait [#allocation3], 256  }
  0x1a   :  { %4536 = vsyncadd [#allocation3], 4294967040 }
  0x1b   :  { %4537 = dma.done.wait [#allocation6], 8256  }
  0x1c   :  { %4538 = vsyncadd [#allocation6], 4294959040 }
  0x1d   :  { %4539 = dma.done.wait [#allocation9], 102720  }
  0x1e   :  { %4540 = vsyncadd [#allocation9], 4294864576 }
  0x1f   :  { %4541 = dma.done.wait [#allocation12], 144  }
  0x20   :  { %4542 = vsyncadd [#allocation12], 4294967152 }
  0x21   :  { %4543 = dma.done.wait [#allocation4], 16  }
  0x22   :  { %4544 = vsyncadd [#allocation4], 4294967280 }
  0x23   :  { %155 = sfence }
  0x24   :  { %v215_v0 = vld [vmem:[#allocation2] sm:$0xff]  ;;  %v214_v1 = vld [vmem:[%s5986_s0] sm:$0x3]  ;;  %vm223_vm0 = vcmask 64512   ;;  %v216_v2 = vld [vmem:[#allocation2 + $0x8] sm:$0xff]  ;;  %s156_s0 = sld [smem:[#allocation14]] }
  0x25   :  { %242 = vmatpush.msra.mxu1 %v215_v0  ;;  %v335_v3 = vld [vmem:[#allocation5 + $0xf0] sm:$0xff]  ;;  %v336_v4 = vld [vmem:[#allocation5 + $0xf8] sm:$0xff]  ;;  %v333_v5 = vld [vmem:[#allocation5 + $0xe0] sm:$0xff]  ;;  %s4134_s28 = sld [smem:[#allocation14 + $0x1]]  ;;  %vm510_vm9 = vcmask 1041408  }
  0x26   :  { %4191 = vmatmul.msk.f32.vlgmr.msra.gmra.mxu1 %vm223_vm0, %v214_v1  ;;  %376 = vmatpush.msra.mxu2 %v335_v3  ;;  %v334_v6 = vld [vmem:[#allocation5 + $0xe8] sm:$0xff]  ;;  %v331_v7 = vld [vmem:[#allocation5 + $0xd0] sm:$0xff]  ;;  %v332_v8 = vld [vmem:[#allocation5 + $0xd8] sm:$0xff]  ;;  %s4663_s27 = sld [smem:[#allocation14 + $0x2]] }
  0x27   :  { %262 = vmatpush.msrb.mxu1 %v216_v2  ;;  %416 = vmatpush.msra.mxu0 %v336_v4  ;;  %v329_v9 = vld [vmem:[#allocation5 + $0xc0] sm:$0xff]  ;;  %v330_v10 = vld [vmem:[#allocation5 + $0xc8] sm:$0xff]  ;;  %v327_v11 = vld [vmem:[#allocation5 + $0xb0] sm:$0xff]  ;;  %s4665_s29 = sld [smem:[#allocation14 + $0x3]] }
  0x28   :  { %377 = vmatpush.msra.mxu2 %v333_v5  ;;  %v367_v12 = vld [vmem:[#allocation5 + $0x1f0] sm:$0xff]  ;;  %v328_v13 = vld [vmem:[#allocation5 + $0xb8] sm:$0xff]  ;;  %v325_v15 = vld [vmem:[#allocation5 + $0xa0] sm:$0xff]  ;;  %s4667_s30 = sld [smem:[#allocation14 + $0x4]] }
  0x29   :  { %417 = vmatpush.msra.mxu0 %v334_v6  ;;  %396 = vmatpush.msra.mxu3 %v367_v12  ;;  %v368_v14 = vld [vmem:[#allocation5 + $0x1f8] sm:$0xff]  ;;  %v365_v16 = vld [vmem:[#allocation5 + $0x1e0] sm:$0xff]  ;;  %v326_v17 = vld [vmem:[#allocation5 + $0xa8] sm:$0xff]  ;;  %s4675_s18 = sld [smem:[#allocation14 + $0x5]] }
  0x2a   :  { %378 = vmatpush.msra.mxu2 %v331_v7  ;;  %436 = vmatpush.msra.mxu1 %v368_v14  ;;  %v366_v18 = vld [vmem:[#allocation5 + $0x1e8] sm:$0xff]  ;;  %v323_v19 = vld [vmem:[#allocation5 + $0x90] sm:$0xff]  ;;  %v324_v21 = vld [vmem:[#allocation5 + $0x98] sm:$0xff]  ;;  %s4139_s19 = sld [smem:[#allocation14 + $0x6]] }
  0x2b   :  { %418 = vmatpush.msra.mxu0 %v332_v8  ;;  %397 = vmatpush.msra.mxu3 %v365_v16  ;;  %v363_v20 = vld [vmem:[#allocation5 + $0x1d0] sm:$0xff]  ;;  %v364_v22 = vld [vmem:[#allocation5 + $0x1d8] sm:$0xff]  ;;  %v321_v23 = vld [vmem:[#allocation5 + $0x80] sm:$0xff]  ;;  %s4140_s20 = sld [smem:[#allocation14 + $0x7]] }
  0x2c   :  { %379 = vmatpush.msra.mxu2 %v329_v9  ;;  %437 = vmatpush.msra.mxu1 %v366_v18  ;;  %v361_v24 = vld [vmem:[#allocation5 + $0x1c0] sm:$0xff]  ;;  %v322_v25 = vld [vmem:[#allocation5 + $0x88] sm:$0xff]  ;;  %v319_v27 = vld [vmem:[#allocation5 + $0x70] sm:$0xff]  ;;  %s4687_s23 = sld [smem:[#allocation14 + $0xb]] }
  0x2d   :  { %419 = vmatpush.msra.mxu0 %v330_v10  ;;  %398 = vmatpush.msra.mxu3 %v363_v20  ;;  %v362_v26 = vld [vmem:[#allocation5 + $0x1c8] sm:$0xff]  ;;  %v359_v28 = vld [vmem:[#allocation5 + $0x1b0] sm:$0xff]  ;;  %v320_v29 = vld [vmem:[#allocation5 + $0x78] sm:$0xff]  ;;  %s4689_s3 = sld [smem:[#allocation14 + $0xc]] }
  0x2e   :  { %4192 = vmatmul.msk.f32.vlgmr.msrb.gmra.mxu1 %vm223_vm0, %v214_v1  ;;  %380 = vmatpush.msra.mxu2 %v327_v11  ;;  %v360_v30 = vld [vmem:[#allocation5 + $0x1b8] sm:$0xff]  ;;  %v317_v31 = vld [vmem:[#allocation5 + $0x60] sm:$0xff]  ;;  %v318_v33 = vld [vmem:[#allocation5 + $0x68] sm:$0xff]  ;;  %s4697_s24 = sld [smem:[#allocation14 + $0xa]] }
  0x2f   :  { %420 = vmatpush.msra.mxu0 %v328_v13  ;;  %438 = vmatpush.msra.mxu1 %v364_v22  ;;  %v357_v32 = vld [vmem:[#allocation5 + $0x1a0] sm:$0xff]  ;;  %v358_v34 = vld [vmem:[#allocation5 + $0x1a8] sm:$0xff]  ;;  %v315_v35 = vld [vmem:[#allocation5 + $0x50] sm:$0xff]  ;;  %s4699_s25 = sld [smem:[#allocation14 + $0xd]] }
  0x30   :  { %381 = vmatpush.msra.mxu2 %v325_v15  ;;  %399 = vmatpush.msra.mxu3 %v361_v24  ;;  %v355_v36 = vld [vmem:[#allocation5 + $0x190] sm:$0xff]  ;;  %v316_v37 = vld [vmem:[#allocation5 + $0x58] sm:$0xff]  ;;  %v4659_v38 = vld [vmem:[#allocation7] ss:$2 sm:$0x3]  ;;  %s4705_s6 = sld [smem:[#allocation14 + $0xf]] }
  0x31   :  { %421 = vmatpush.msra.mxu0 %v326_v17  ;;  %439 = vmatpush.msra.mxu1 %v362_v26  ;;  %v356_v39 = vld [vmem:[#allocation5 + $0x198] sm:$0xff]  ;;  %v313_v40 = vld [vmem:[#allocation5 + $0x40] sm:$0xff]  ;;  %v314_v42 = vld [vmem:[#allocation5 + $0x48] sm:$0xff]  ;;  %v219_v52 = vperm.slane %v4659_v38, 0  ;;  %v220_v5 = vperm.slane %v4659_v38, 1  ;;  %s4707_s7 = sld [smem:[#allocation14 + $0xe]] }
  0x32   :  { %382 = vmatpush.msra.mxu2 %v323_v19  ;;  %400 = vmatpush.msra.mxu3 %v359_v28  ;;  %v353_v41 = vld [vmem:[#allocation5 + $0x180] sm:$0xff]  ;;  %v354_v43 = vld [vmem:[#allocation5 + $0x188] sm:$0xff]  ;;  %v311_v44 = vld [vmem:[#allocation5 + $0x30] sm:$0xff]  ;;  %s4149_s26 = sld [smem:[#allocation14 + $0x10]] }
  0x33   :  { %422 = vmatpush.msra.mxu0 %v324_v21  ;;  %440 = vmatpush.msra.mxu1 %v360_v30  ;;  %v351_v45 = vld [vmem:[#allocation5 + $0x170] sm:$0xff]  ;;  %v312_v46 = vld [vmem:[#allocation5 + $0x38] sm:$0xff]  ;;  %v309_v48 = vld [vmem:[#allocation5 + $0x20] sm:$0xff]  ;;  %s4150_s11 = sld [smem:[#allocation14 + $0x11]] }
  0x34   :  { %383 = vmatpush.msra.mxu2 %v321_v23  ;;  %401 = vmatpush.msra.mxu3 %v357_v32  ;;  %v352_v47 = vld [vmem:[#allocation5 + $0x178] sm:$0xff]  ;;  %v349_v49 = vld [vmem:[#allocation5 + $0x160] sm:$0xff]  ;;  %v310_v50 = vld [vmem:[#allocation5 + $0x28] sm:$0xff]  ;;  %s4151_s12 = sld [smem:[#allocation14 + $0x12]] }
  0x35   :  { %423 = vmatpush.msra.mxu0 %v322_v25  ;;  %441 = vmatpush.msra.mxu1 %v358_v34  ;;  %v350_v51 = vld [vmem:[#allocation5 + $0x168] sm:$0xff]  ;;  %v307_v53 = vld [vmem:[#allocation5 + $0x10] sm:$0xff]  ;;  %v308_v55 = vld [vmem:[#allocation5 + $0x18] sm:$0xff]  ;;  %s4758_s14 = sld [smem:[#allocation14 + $0x18]] }
  0x36   :  { %384 = vmatpush.msra.mxu2 %v319_v27  ;;  %402 = vmatpush.msra.mxu3 %v355_v36  ;;  %v347_v54 = vld [vmem:[#allocation5 + $0x150] sm:$0xff]  ;;  %v348_v56 = vld [vmem:[#allocation5 + $0x158] sm:$0xff]  ;;  %v305_v57 = vld [vmem:[#allocation5] sm:$0xff]  ;;  %s4158_s15 = sld [smem:[#allocation14 + $0x19]] }
  0x37   :  { %424 = vmatpush.msra.mxu0 %v320_v29  ;;  %442 = vmatpush.msra.mxu1 %v356_v39  ;;  %v345_v58 = vld [vmem:[#allocation5 + $0x140] sm:$0xff]  ;;  %v306_v60 = vld [vmem:[#allocation5 + $0x8] sm:$0xff]  ;;  %v343_v0 = vld [vmem:[#allocation5 + $0x130] sm:$0xff]  ;;  %s4171_s9 = sld [smem:[#allocation14 + $0x26]] }
  0x38   :  { %385 = vmatpush.msra.mxu2 %v317_v31  ;;  %403 = vmatpush.msra.mxu3 %v353_v41  ;;  %v346_v61 = vld [vmem:[#allocation5 + $0x148] sm:$0xff]  ;;  %v344_v1 = vld [vmem:[#allocation5 + $0x138] sm:$0xff]  ;;  %v341_v2 = vld [vmem:[#allocation5 + $0x120] sm:$0xff]  ;;  %s4172_s16 = sld [smem:[#allocation14 + $0x27]] }
  0x39   :  { %425 = vmatpush.msra.mxu0 %v318_v33  ;;  %443 = vmatpush.msra.mxu1 %v354_v43  ;;  %v342_v3 = vld [vmem:[#allocation5 + $0x128] sm:$0xff]  ;;  %v339_v6 = vld [vmem:[#allocation5 + $0x110] sm:$0xff]  ;;  %v340_v7 = vld [vmem:[#allocation5 + $0x118] sm:$0xff]  ;;  %v462_v43 = vstv %s4134_s28  ;;  %s4153_s28 = sld [smem:[#allocation14 + $0x14]] }
  0x3a   :  { %386 = vmatpush.msra.mxu2 %v315_v35  ;;  %404 = vmatpush.msra.mxu3 %v351_v45  ;;  %v337_v8 = vld [vmem:[#allocation5 + $0x100] sm:$0xff]  ;;  %v338_v10 = vld [vmem:[#allocation5 + $0x108] sm:$0xff]  ;;  %v469_v45 = vstv %s4665_s29  ;;  %s4155_s29 = sld [smem:[#allocation14 + $0x16]] }
  0x3b   :  { %426 = vmatpush.msra.mxu0 %v316_v37  ;;  %444 = vmatpush.msra.mxu1 %v352_v47  ;;  %v457_v41 = vld [vmem:[%s5990_s4 + $0x4] sm:$0xf]  ;;  %s4186_s1 = sld [smem:[#allocation14 + $0x35]] }
  0x3c   :  { %387 = vmatpush.msra.mxu2 %v313_v40  ;;  %405 = vmatpush.msra.mxu3 %v349_v49  ;;  %v456_v40 = vld [vmem:[%s5990_s4] sm:$0xf]  ;;  %v463_v47 = vmul.f32 %v462_v43, %v457_v41  ;;  %v470_v49 = vmul.f32 %v469_v45, %v457_v41  ;;  %s4141_s4 = sld [smem:[#allocation14 + $0x8]] }
  0x3d   :  { %427 = vmatpush.msra.mxu0 %v314_v42  ;;  %445 = vmatpush.msra.mxu1 %v350_v51  ;;  %v460_v42 = vstv %s156_s0  ;;  %v459_v51 = vld [vmem:[%s5991_s5 + $0x4] sm:$0xf]  ;;  %s4152_s0 = sld [smem:[#allocation14 + $0x13]] }
  0x3e   :  { %388 = vmatpush.msra.mxu2 %v311_v44  ;;  %406 = vmatpush.msra.mxu3 %v347_v54  ;;  %v467_v44 = vstv %s4663_s27  ;;  %s4154_s27 = sld [smem:[#allocation14 + $0x15]] }
  0x3f   :  { %428 = vmatpush.msra.mxu0 %v312_v46  ;;  %446 = vmatpush.msra.mxu1 %v348_v56  ;;  %v461_v46 = vmul.f32 %v460_v42, %v456_v40  ;;  %v475_v56 = vmul.f32 %v462_v43, %v459_v51  ;;  %s4159_s21 = sld [smem:[#allocation14 + $0x1a]] }
  0x40   :  { %389 = vmatpush.msra.mxu2 %v309_v48  ;;  %407 = vmatpush.msra.mxu3 %v345_v58  ;;  %v468_v48 = vmul.f32 %v467_v44, %v456_v40  ;;  %s4160_s2 = sld [smem:[#allocation14 + $0x1b]] }
  0x41   :  { %429 = vmatpush.msra.mxu0 %v310_v50  ;;  %447 = vmatpush.msra.mxu1 %v346_v61  ;;  %v458_v50 = vld [vmem:[%s5991_s5] sm:$0xf]  ;;  %s4695_s5 = sld [smem:[#allocation14 + $0x9]] }
  0x42   :  { %390 = vmatpush.msra.mxu2 %v307_v53  ;;  %408 = vmatpush.msra.mxu3 %v343_v0  ;;  %v465_v53 = vstv %s4667_s30  ;;  %v471_v54 = vadd.f32 %v470_v49, %v468_v48  ;;  %v482_v0 = vstv %s4139_s19  ;;  %v525_v49 = vstv %s4150_s11  ;;  %s4156_s30 = sld [smem:[#allocation14 + $0x17]] }
  0x43   :  { %430 = vmatpush.msra.mxu0 %v308_v55  ;;  %448 = vmatpush.msra.mxu1 %v344_v1  ;;  %v474_v55 = vmul.f32 %v460_v42, %v458_v50  ;;  %v486_v1 = vstv %s4140_s20  ;;  %v523_v42 = vstv %s4149_s26  ;;  %s4180_s19 = sld [smem:[#allocation14 + $0x2f]] }
  0x44   :  { %391 = vmatpush.msra.mxu2 %v305_v57  ;;  %409 = vmatpush.msra.mxu3 %v341_v2  ;;  %v472_v57 = vstv %s4675_s18  ;;  %s4179_s18 = sld [smem:[#allocation14 + $0x2e]] }
  0x45   :  { %431 = vmatpush.msra.mxu0 %v306_v60  ;;  %449 = vmatpush.msra.mxu1 %v342_v3  ;;  %v4693_v60 = vadd.f32 %v472_v57, %v471_v54  ;;  %v476_v61 = vadd.f32 %v475_v56, %v474_v55  ;;  %s4185_s20 = sld [smem:[#allocation14 + $0x34]] }
  0x46   :  { %410 = vmatpush.msra.mxu3 %v339_v6  ;;  %s4813_s22 = sld [smem:[#allocation14 + $0x1c]] }
  0x47   :  { %450 = vmatpush.msra.mxu1 %v340_v7  ;;  %v487_v7 = vmul.f32 %v486_v1, %v4693_v60  ;;  %s4902_s26 = sld [smem:[#allocation14 + $0x1f]] }
  0x48   :  { %411 = vmatpush.msra.mxu3 %v337_v8  ;;  %v492_v8 = vstv %s4141_s4  ;;  %s4162_s4 = sld [smem:[#allocation14 + $0x1d]] }
  0x49   :  { %451 = vmatpush.msra.mxu1 %v338_v10  ;;  %v484_v10 = vstv %s4687_s23  ;;  %s4173_s23 = sld [smem:[#allocation14 + $0x28]] }
  0x4a   :  { %s4904_s11 = sld [smem:[#allocation14 + $0x20]] }
  0xa3   :  { %v244_v59 = vpop.f32.mrf.mxu1 }
  0xa4   :  { %v245_v62 = vadd.f32 %v244_v59, %v219_v52  ;;  %v464_v52 = vadd.f32 %v463_v47, %v461_v46  ;;  %v370_v59 = vld [vmem:[#allocation7 + $0x1] ss:$2 sm:$0x3] }
  0xa5   :  { %v373_v2 = vperm.slane %v370_v59, 1 }
  0xa6   :  { %v267_v63 = vsub.f32 0.0, %v245_v62  ;;  %v4691_v58 = vadd.f32 %v465_v53, %v464_v52 }
  0xa8   :  { %v269_v4 = vmul.f32 1.442695, %v267_v63  ;;  %v479_v63 = vmul.f32 %v469_v45, %v459_v51  ;;  %v483_v6 = vmul.f32 %v482_v0, %v4691_v58 }
  0xaa   :  { %4210 = vpow2.f32 %v269_v4  ;;  %v4701_v4 = vadd.f32 %v476_v61, %v465_v53 }
  0xab   :  { %v264_v9 = vpop.f32.mrf.mxu1 }
  0xac   :  { %v265_v11 = vadd.f32 %v264_v9, %v220_v5 }
  0xae   :  { %v268_v12 = vsub.f32 0.0, %v265_v11 }
  0xb0   :  { %v4211_v13 = vpop.eup %4210  ;;  %v271_v14 = vmul.f32 1.442695, %v268_v12 }
  0xb1   :  { %v273_v15 = vadd.f32 1.0, %v4211_v13 }
  0xb2   :  { %4212 = vpow2.f32 %v271_v14  ;;  %v488_v14 = vadd.f32 %v487_v7, %v483_v6 }
  0xb3   :  { %4214 = vrcp.f32 %v273_v15  ;;  %v286_v21 = vand.u32 2147483648, %v273_v15  ;;  %v284_v23 = vand.u32 2147483647, %v273_v15  ;;  %vm280_vm2 = vweird.f32 %v273_v15 }
  0xb5   :  { %v287_v26 = vor.u32 1.1754944e-38, %v286_v21  ;;  %vm285_vm4 = vcmp.eq.f32.partialorder %v284_v23, 8.507059e+37  ;;  %v485_v21 = vmul.f32 %v484_v10, %v4691_v58  ;;  %v495_v23 = vstv %s4699_s25  ;;  %s4856_s25 = sld [smem:[#allocation14 + $0x36]] }
  0xb8   :  { %v4213_v16 = vpop.eup %4212 }
  0xb9   :  { %v4215_v17 = vpop.eup %4214  ;;  %v274_v18 = vadd.f32 1.0, %v4213_v16  ;;  %v372_v16 = vperm.slane %v370_v59, 0 }
  0xba   :  { %v276_v19 = vmul.f32 %v4215_v17, %v273_v15  ;;  %vm281_vm1 = vweird.f32 %v4215_v17  ;;  %v493_v15 = vmul.f32 %v492_v8, %v4701_v4 }
  0xbb   :  { %4216 = vrcp.f32 %v274_v18  ;;  %vm282_vm3 = vmor %vm280_vm2, %vm281_vm1  ;;  %v300_v32 = vand.u32 2147483648, %v274_v18  ;;  %v298_v34 = vand.u32 2147483647, %v274_v18  ;;  %vm294_vm6 = vweird.f32 %v274_v18 }
  0xbc   :  { %v277_v20 = vsub.f32 1.0, %v276_v19 }
  0xbd   :  { %v301_v36 = vor.u32 1.1754944e-38, %v300_v32  ;;  %vm299_vm8 = vcmp.eq.f32.partialorder %v298_v34, 8.507059e+37 }
  0xbe   :  { %v278_v22 = vmul.f32 %v4215_v17, %v277_v20  ;;  %v504_v20 = vstv %s4697_s24  ;;  %s4854_s24 = sld [smem:[#allocation14 + $0x31]] }
  0xc0   :  { %v279_v24 = vadd.f32 %v4215_v17, %v278_v22 }
  0xc1   :  { %v4217_v25 = vpop.eup %4216 }
  0xc2   :  { %v283_v27 = vsel %vm282_vm3, %v4215_v17, %v279_v24  ;;  %v290_v28 = vmul.f32 %v4217_v25, %v274_v18  ;;  %vm295_vm5 = vweird.f32 %v4217_v25  ;;  %v498_v18 = vstv %s4695_s5  ;;  %s4852_s5 = sld [smem:[#allocation14 + $0x30]] }
  0xc3   :  { %v288_v29 = vsel %vm285_vm4, %v287_v26, %v283_v27  ;;  %vm296_vm7 = vmor %vm294_vm6, %vm295_vm5  ;;  %v494_v24 = vadd.f32 %v493_v15, %v488_v14 }
  0xc4   :  { %v303_v30 = vmul.f32 %v288_v29, %v245_v62  ;;  %v291_v31 = vsub.f32 1.0, %v290_v28  ;;  %v478_v62 = vmul.f32 %v467_v44, %v458_v50  ;;  %v514_v28 = vstv %s4705_s6  ;;  %s4858_s6 = sld [smem:[#allocation14 + $0x37]] }
  0xc6   :  { %392 = vmatmul.f32.vlgmr.msra.gmra.mxu2 %v303_v30  ;;  %432 = vmatmul.f32.vlgmr.msra.gmra.mxu0 %v303_v30  ;;  %v292_v33 = vmul.f32 %v4217_v25, %v291_v31  ;;  %v480_v5 = vadd.f32 %v479_v63, %v478_v62  ;;  %v496_v31 = vmul.f32 %v495_v23, %v4701_v4 }
  0xc8   :  { %v293_v35 = vadd.f32 %v4217_v25, %v292_v33  ;;  %v4711_v13 = vadd.f32 %v480_v5, %v472_v57  ;;  %v501_v33 = vstv %s4707_s7  ;;  %s4898_s7 = sld [smem:[#allocation14 + $0x1e]] }
  0xca   :  { %v297_v37 = vsel %vm296_vm7, %v4217_v25, %v293_v35  ;;  %v499_v25 = vmul.f32 %v498_v18, %v4711_v13 }
  0xcb   :  { %v302_v38 = vsel %vm299_vm8, %v301_v36, %v297_v37 }
  0xcc   :  { %v304_v39 = vmul.f32 %v302_v38, %v265_v11  ;;  %v489_v11 = vstv %s4689_s3  ;;  %v500_v34 = vadd.f32 %v499_v25, %v494_v24  ;;  %s4174_s3 = sld [smem:[#allocation14 + $0x29]] }
  0xcd   :  { %v490_v22 = vmul.f32 %v489_v11, %v4693_v60 }
  0xce   :  { %412 = vmatmul.f32.vlgmr.msra.gmra.mxu3 %v304_v39  ;;  %452 = vmatmul.f32.vlgmr.msra.gmra.mxu1 %v304_v39  ;;  %v502_v39 = vmul.f32 %v501_v33, %v4711_v13 }
  0xcf   :  { %v491_v30 = vadd.f32 %v490_v22, %v485_v21 }
  0xd1   :  { %v497_v38 = vadd.f32 %v496_v31, %v491_v30 }
  0xd3   :  { %v503_v45 = vadd.f32 %v502_v39, %v497_v38 }
 0x143   :  { %v433_v3 = vpop.f32.mrf.mxu0 }
 0x144   :  { %v434_v9 = vadd.f32 %v433_v3, %v373_v2 }
 0x149   :  { %v393_v19 = vpop.f32.mrf.mxu2 }
 0x14a   :  { %v394_v26 = vadd.f32 %v393_v19, %v372_v16 }
 0x14b   :  { %v453_v12 = vpop.f32.mrf.mxu1 }
 0x14c   :  { %v4714_v17 = vadd.f32 %v453_v12, %v434_v9 }
 0x14e   :  { %v506_v27 = vmul.f32 %v504_v20, %v4714_v17  ;;  %v516_v36 = vmul.f32 %v514_v28, %v4714_v17 }
 0x150   :  { %v509_v35 = vrot.slane %v506_v27, 6  ;;  %v519_v44 = vrot.slane %v516_v36, 6  ;;  %v4557_v27 = vmov 269488144  }
 0x151   :  { %v413_v29 = vpop.f32.mrf.mxu3 }
 0x152   :  { %v4725_v32 = vadd.f32 %v413_v29, %v394_v26 }
 0x154   :  { %v505_v37 = vmul.f32 %v504_v20, %v4725_v32  ;;  %v515_v41 = vmul.f32 %v514_v28, %v4725_v32  ;;  %v593_v28 = vunpack.c.l.s4 %v4557_v27  ;;  %v4769_v27 = vstv %s4758_s14 }
 0x156   :  { %v511_v40 = vsel %vm510_vm9, %v505_v37, %v509_v35  ;;  %v520_v47 = vsel %vm510_vm9, %v515_v41, %v519_v44  ;;  %v4752_v31 = vunpack.c.0.s8 %v593_v28  ;;  %v605_v41 = vstv %s4151_s12  ;;  %s4911_s12 = sld [smem:[#allocation14 + $0x21]] }
 0x157   :  { %v513_v43 = vadd.f32 %v511_v40, %v500_v34  ;;  %v522_v48 = vadd.f32 %v520_v47, %v503_v45  ;;  %v607_v45 = vstv %s4153_s28  ;;  %v632_v47 = vstv %s4154_s27  ;;  %s4950_s28 = sld [smem:[#allocation14 + $0x2b]] }
 0x158   :  { %6026 = vst [vmem:[#allocation20_spill] sm:$0xff] %v4752_v31  ;;  %v4771_v28 = vstv %s4158_s15  ;;  %s4170_s27 = sld [smem:[#allocation14 + $0x25]] }
 0x159   :  { %v4733_v46 = vadd.f32 %v523_v42, %v513_v43  ;;  %v4737_v50 = vadd.f32 %v525_v49, %v522_v48  ;;  %v630_v42 = vstv %s4152_s0  ;;  %s4916_s0 = sld [smem:[#allocation14 + $0x2a]] }
 0x15b   :  { %528 = vst [vmem:[#allocation1] ss:$4 sm:$0xff] %v4733_v46  ;;  %v550_v56 = vmul.f32 %v4733_v46, %v4733_v46  ;;  %v562_v0 = vmul.f32 %v4737_v50, %v4737_v50 }
 0x162   :  { %v529_v51 = vld.sshfl [vmem:[#allocation1] sm:$0xff pattern:$0x73625140]  ;;  %v530_v52 = vld.sshfl [vmem:[#allocation1 + $0x8] sm:$0xff pattern:$0x73625140] }
 0x163   :  { %539 = vst [vmem:[#allocation1] ss:$4 sm:$0xff] %v4737_v50  ;;  %v533_v53 = vsel %vm510_vm9, %v529_v51, 0.0  ;;  %v534_v54 = vsel %vm510_vm9, %v530_v52, 0.0 }
 0x164   :  { %v535_v55 = vadd.f32 %v534_v54, %v533_v53 }
 0x166   :  { %536 = vadd.xlane.f32.xlu0 %v535_v55 }
 0x16a   :  { %v540_v57 = vld.sshfl [vmem:[#allocation1] sm:$0xff pattern:$0x73625140]  ;;  %v541_v59 = vld.sshfl [vmem:[#allocation1 + $0x8] sm:$0xff pattern:$0x73625140] }
 0x16b   :  { %552 = vst [vmem:[#allocation1] ss:$4 sm:$0xff] %v550_v56  ;;  %v544_v61 = vsel %vm510_vm9, %v540_v57, 0.0  ;;  %v545_v62 = vsel %vm510_vm9, %v541_v59, 0.0 }
 0x16c   :  { %v546_v63 = vadd.f32 %v545_v62, %v544_v61 }
 0x16e   :  { %547 = vadd.xlane.f32.xlu0 %v546_v63 }
 0x172   :  { %v553_v1 = vld.sshfl [vmem:[#allocation1] sm:$0xff pattern:$0x73625140]  ;;  %v554_v2 = vld.sshfl [vmem:[#allocation1 + $0x8] sm:$0xff pattern:$0x73625140] }
 0x173   :  { %564 = vst [vmem:[#allocation1] ss:$4 sm:$0xff] %v562_v0  ;;  %v557_v3 = vsel %vm510_vm9, %v553_v1, 0.0  ;;  %v558_v5 = vsel %vm510_vm9, %v554_v2, 0.0 }
 0x174   :  { %v559_v6 = vadd.f32 %v558_v5, %v557_v3 }
 0x176   :  { %560 = vadd.xlane.f32.xlu1 %v559_v6 }
 0x17a   :  { %v565_v7 = vld.sshfl [vmem:[#allocation1] sm:$0xff pattern:$0x73625140]  ;;  %v566_v8 = vld.sshfl [vmem:[#allocation1 + $0x8] sm:$0xff pattern:$0x73625140] }
 0x17b   :  { %v569_v9 = vsel %vm510_vm9, %v565_v7, 0.0  ;;  %v570_v10 = vsel %vm510_vm9, %v566_v8, 0.0 }
 0x17c   :  { %v571_v11 = vadd.f32 %v570_v10, %v569_v9 }
 0x17e   :  { %572 = vadd.xlane.f32.xlu1 %v571_v11 }
 0x1d9   :  { %v537_v12 = vpop.xlane.xlu0 %536 }
 0x1e1   :  { %v548_v14 = vpop.xlane.xlu0 %547 }
 0x1e2   :  { %v549_v16 = vadd.f32 %v548_v14, %v537_v12 }
 0x1e4   :  { %v575_v18 = vmul.f32 0.001953125, %v549_v16  ;;  %v4760_v16 = vstv %s4155_s29  ;;  %s4178_s29 = sld [smem:[#allocation14 + $0x2d]] }
 0x1e6   :  { %v577_v21 = vmul.f32 %v575_v18, %v575_v18  ;;  %v595_v35 = vperm.slane %v575_v18, %v4752_v31 }
 0x1e8   :  { %v597_v38 = vsub.f32 %v4733_v46, %v595_v35  ;;  %v628_v39 = vsub.f32 %v4737_v50, %v595_v35 }
 0x1e9   :  { %v561_v15 = vpop.xlane.xlu1 %560 }
 0x1f1   :  { %v573_v19 = vpop.xlane.xlu1 %572 }
 0x1f2   :  { %v574_v20 = vadd.f32 %v573_v19, %v561_v15 }
 0x1f4   :  { %v576_v22 = vmul.f32 0.001953125, %v574_v20  ;;  %v4762_v20 = vstv %s4156_s30 }
 0x1f6   :  { %v578_v23 = vsub.f32 %v576_v22, %v577_v21 }
 0x1f8   :  { %v579_v24 = vmax.f32 %v578_v23, 0.0 }
 0x1fa   :  { %v580_v25 = vadd.f32 1e-05, %v579_v24 }
 0x1fc   :  { %4218 = vrsqrt.f32 %v580_v25  ;;  %vm587_vm11 = vweird.f32 %v580_v25 }
 0x202   :  { %v4219_v26 = vpop.eup %4218 }
 0x203   :  { %v582_v29 = vmul.f32 %v4219_v26, %v580_v25  ;;  %vm588_vm10 = vweird.f32 %v4219_v26 }
 0x204   :  { %vm589_vm12 = vmor %vm587_vm11, %vm588_vm10 }
 0x205   :  { %v583_v30 = vmul.f32 %v4219_v26, %v582_v29 }
 0x207   :  { %v584_v33 = vmul.f32 0.5, %v583_v30 }
 0x209   :  { %v585_v34 = vsub.f32 1.5, %v584_v33 }
 0x20b   :  { %v586_v36 = vmul.f32 %v4219_v26, %v585_v34 }
 0x20d   :  { %v590_v37 = vsel %vm589_vm12, %v4219_v26, %v586_v36  ;;  %v4766_v26 = vstv %s4171_s9  ;;  %v4779_v36 = vstv %s4172_s16 }
 0x20e   :  { %v602_v40 = vperm.slane %v590_v37, %v4752_v31 }
 0x210   :  { %v604_v43 = vmul.f32 %v602_v40, %v597_v38  ;;  %v629_v44 = vmul.f32 %v628_v39, %v602_v40 }
 0x212   :  { %v606_v48 = vmul.f32 %v605_v41, %v604_v43  ;;  %v631_v49 = vmul.f32 %v630_v42, %v629_v44 }
 0x214   :  { %v608_v51 = vadd.f32 %v607_v45, %v606_v48  ;;  %v633_v52 = vadd.f32 %v632_v47, %v631_v49 }
 0x216   :  { %v609_v53 = vsub.f32 0.0, %v608_v51  ;;  %v634_v54 = vsub.f32 0.0, %v633_v52 }
 0x218   :  { %v610_v55 = vmul.f32 1.442695, %v609_v53  ;;  %v635_v56 = vmul.f32 1.442695, %v634_v54 }
 0x21a   :  { %4220 = vpow2.f32 %v610_v55 }
 0x21b   :  { %4222 = vpow2.f32 %v635_v56 }
 0x220   :  { %v4221_v46 = vpop.eup %4220 }
 0x221   :  { %v4223_v50 = vpop.eup %4222  ;;  %v612_v57 = vadd.f32 1.0, %v4221_v46 }
 0x222   :  { %v637_v59 = vadd.f32 1.0, %v4223_v50 }
 0x223   :  { %4224 = vrcp.f32 %v612_v57  ;;  %v624_v2 = vand.u32 2147483648, %v612_v57  ;;  %v622_v6 = vand.u32 2147483647, %v612_v57  ;;  %vm618_vm15 = vweird.f32 %v612_v57 }
 0x224   :  { %4226 = vrcp.f32 %v637_v59  ;;  %v649_v7 = vand.u32 2147483648, %v637_v59  ;;  %v647_v9 = vand.u32 2147483647, %v637_v59  ;;  %vm643_vm1 = vweird.f32 %v637_v59 }
 0x225   :  { %v625_v11 = vor.u32 1.1754944e-38, %v624_v2  ;;  %vm623_vm2 = vcmp.eq.f32.partialorder %v622_v6, 8.507059e+37 }
 0x226   :  { %v650_v15 = vor.u32 1.1754944e-38, %v649_v7  ;;  %vm648_vm4 = vcmp.eq.f32.partialorder %v647_v9, 8.507059e+37 }
 0x229   :  { %v4225_v61 = vpop.eup %4224 }
 0x22a   :  { %v4227_v62 = vpop.eup %4226  ;;  %v614_v63 = vmul.f32 %v4225_v61, %v612_v57  ;;  %vm619_vm13 = vweird.f32 %v4225_v61 }
 0x22b   :  { %v639_v0 = vmul.f32 %v4227_v62, %v637_v59  ;;  %vm644_vm14 = vweird.f32 %v4227_v62  ;;  %vm620_vm0 = vmor %vm618_vm15, %vm619_vm13 }
 0x22c   :  { %v615_v1 = vsub.f32 1.0, %v614_v63  ;;  %vm645_vm3 = vmor %vm643_vm1, %vm644_vm14 }
 0x22d   :  { %v640_v3 = vsub.f32 1.0, %v639_v0 }
 0x22e   :  { %v616_v5 = vmul.f32 %v4225_v61, %v615_v1 }
 0x22f   :  { %v641_v8 = vmul.f32 %v4227_v62, %v640_v3 }
 0x230   :  { %v617_v10 = vadd.f32 %v4225_v61, %v616_v5 }
 0x231   :  { %v642_v12 = vadd.f32 %v4227_v62, %v641_v8 }
 0x232   :  { %v621_v14 = vsel %vm620_vm0, %v4225_v61, %v617_v10 }
 0x233   :  { %v626_v18 = vsel %vm623_vm2, %v625_v11, %v621_v14  ;;  %v646_v19 = vsel %vm645_vm3, %v4227_v62, %v642_v12 }
 0x234   :  { %v627_v21 = vmul.f32 %v626_v18, %v608_v51  ;;  %v651_v22 = vsel %vm648_vm4, %v650_v15, %v646_v19 }
 0x235   :  { %v652_v23 = vmul.f32 %v651_v22, %v633_v52 }
 0x236   :  { %v654_v24 = vmul.f32 %v4760_v16, %v627_v21  ;;  %v661_v33 = vmul.f32 %v4769_v27, %v627_v21 }
 0x237   :  { %v656_v25 = vmul.f32 %v4762_v20, %v652_v23  ;;  %v663_v34 = vmul.f32 %v4771_v28, %v652_v23 }
 0x239   :  { %v657_v29 = vadd.f32 %v656_v25, %v654_v24  ;;  %v664_v35 = vadd.f32 %v663_v34, %v661_v33  ;;  %v4803_v33 = vstv %s4180_s19 }
 0x23b   :  { %v4774_v30 = vadd.f32 %v4766_v26, %v657_v29  ;;  %v4782_v37 = vadd.f32 %v4779_v36, %v664_v35  ;;  %v4801_v29 = vstv %s4179_s18 }
 0x23d   :  { %668 = vst [vmem:[#allocation1] ss:$4 sm:$0xff] %v4774_v30  ;;  %v690_v43 = vmul.f32 %v4774_v30, %v4774_v30  ;;  %v702_v51 = vmul.f32 %v4782_v37, %v4782_v37 }
 0x244   :  { %v669_v38 = vld.sshfl [vmem:[#allocation1] sm:$0xff pattern:$0x73625140]  ;;  %v670_v39 = vld.sshfl [vmem:[#allocation1 + $0x8] sm:$0xff pattern:$0x73625140] }
 0x245   :  { %v673_v40 = vsel %vm510_vm9, %v669_v38, 0.0  ;;  %v674_v41 = vsel %vm510_vm9, %v670_v39, 0.0  ;;  %679 = vst [vmem:[#allocation1] ss:$4 sm:$0xff] %v4782_v37  ;;  %v4805_v38 = vstv %s4185_s20  ;;  %v4807_v39 = vstv %s4186_s1 }
 0x246   :  { %v675_v42 = vadd.f32 %v674_v41, %v673_v40 }
 0x248   :  { %676 = vadd.xlane.f32.xlu2 %v675_v42 }
 0x24c   :  { %v680_v44 = vld.sshfl [vmem:[#allocation1] sm:$0xff pattern:$0x73625140]  ;;  %v681_v45 = vld.sshfl [vmem:[#allocation1 + $0x8] sm:$0xff pattern:$0x73625140] }
 0x24d   :  { %v684_v47 = vsel %vm510_vm9, %v680_v44, 0.0  ;;  %v685_v48 = vsel %vm510_vm9, %v681_v45, 0.0  ;;  %692 = vst [vmem:[#allocation1] ss:$4 sm:$0xff] %v690_v43 }
 0x24e   :  { %v686_v49 = vadd.f32 %v685_v48, %v684_v47 }
 0x250   :  { %687 = vadd.xlane.f32.xlu2 %v686_v49 }
 0x254   :  { %v693_v52 = vld.sshfl [vmem:[#allocation1] sm:$0xff pattern:$0x73625140]  ;;  %v694_v53 = vld.sshfl [vmem:[#allocation1 + $0x8] sm:$0xff pattern:$0x73625140] }
 0x255   :  { %v697_v54 = vsel %vm510_vm9, %v693_v52, 0.0  ;;  %v698_v55 = vsel %vm510_vm9, %v694_v53, 0.0  ;;  %704 = vst [vmem:[#allocation1] ss:$4 sm:$0xff] %v702_v51 }
 0x256   :  { %v699_v56 = vadd.f32 %v698_v55, %v697_v54 }
 0x258   :  { %700 = vadd.xlane.f32.xlu0 %v699_v56 }
 0x25c   :  { %v705_v46 = vld.sshfl [vmem:[#allocation1] sm:$0xff pattern:$0x73625140]  ;;  %v706_v50 = vld.sshfl [vmem:[#allocation1 + $0x8] sm:$0xff pattern:$0x73625140] }
 0x25d   :  { %v709_v57 = vsel %vm510_vm9, %v705_v46, 0.0  ;;  %v710_v59 = vsel %vm510_vm9, %v706_v50, 0.0 }
 0x25e   :  { %v711_v61 = vadd.f32 %v710_v59, %v709_v57 }
 0x260   :  { %712 = vadd.xlane.f32.xlu1 %v711_v61 }
 0x2bb   :  { %v677_v62 = vpop.xlane.xlu2 %676 }
 0x2c3   :  { %v688_v63 = vpop.xlane.xlu2 %687 }
 0x2c4   :  { %v689_v0 = vadd.f32 %v688_v63, %v677_v62 }
 0x2c6   :  { %v715_v1 = vmul.f32 0.001953125, %v689_v0 }
 0x2c8   :  { %v717_v6 = vmul.f32 %v715_v1, %v715_v1  ;;  %v735_v19 = vperm.slane %v715_v1, %v4752_v31 }
 0x2ca   :  { %v737_v23 = vsub.f32 %v4774_v30, %v735_v19  ;;  %v768_v24 = vsub.f32 %v4782_v37, %v735_v19  ;;  %v4824_v19 = vstv %s4813_s22 }
 0x2cb   :  { %v701_v2 = vpop.xlane.xlu0 %700 }
 0x2d3   :  { %v713_v3 = vpop.xlane.xlu1 %712 }
 0x2d4   :  { %v714_v5 = vadd.f32 %v713_v3, %v701_v2 }
 0x2d6   :  { %v716_v7 = vmul.f32 0.001953125, %v714_v5 }
 0x2d8   :  { %v718_v8 = vsub.f32 %v716_v7, %v717_v6  ;;  %v4815_v6 = vstv %s4159_s21 }
 0x2da   :  { %v719_v9 = vmax.f32 %v718_v8, 0.0 }
 0x2dc   :  { %v720_v10 = vadd.f32 1e-05, %v719_v9  ;;  %v4817_v9 = vstv %s4160_s2 }
 0x2de   :  { %4228 = vrsqrt.f32 %v720_v10  ;;  %vm727_vm6 = vweird.f32 %v720_v10 }
 0x2e4   :  { %v4229_v11 = vpop.eup %4228 }
 0x2e5   :  { %v722_v12 = vmul.f32 %v4229_v11, %v720_v10  ;;  %vm728_vm5 = vweird.f32 %v4229_v11 }
 0x2e6   :  { %vm729_vm7 = vmor %vm727_vm6, %vm728_vm5 }
 0x2e7   :  { %v723_v14 = vmul.f32 %v4229_v11, %v722_v12 }
 0x2e9   :  { %v724_v15 = vmul.f32 0.5, %v723_v14 }
 0x2eb   :  { %v725_v18 = vsub.f32 1.5, %v724_v15 }
 0x2ed   :  { %v726_v21 = vmul.f32 %v4229_v11, %v725_v18  ;;  %v4821_v18 = vstv %s4173_s23 }
 0x2ef   :  { %v730_v22 = vsel %vm729_vm7, %v4229_v11, %v726_v21  ;;  %v4826_v21 = vstv %s4162_s4 }
 0x2f0   :  { %v742_v25 = vperm.slane %v730_v22, %v4752_v31 }
 0x2f2   :  { %v744_v34 = vmul.f32 %v742_v25, %v737_v23  ;;  %v769_v35 = vmul.f32 %v768_v24, %v742_v25 }
 0x2f4   :  { %v746_v40 = vmul.f32 %v4801_v29, %v744_v34  ;;  %v771_v41 = vmul.f32 %v4803_v33, %v769_v35  ;;  %v4834_v35 = vstv %s4174_s3 }
 0x2f5   :  { %6027 = vst [vmem:[#allocation21_spill] sm:$0xff] %v4834_v35 }
 0x2f6   :  { %v748_v30 = vadd.f32 %v4805_v38, %v746_v40  ;;  %v773_v37 = vadd.f32 %v4807_v39, %v771_v41 }
 0x2f8   :  { %v749_v42 = vsub.f32 0.0, %v748_v30  ;;  %v774_v43 = vsub.f32 0.0, %v773_v37 }
 0x2fa   :  { %v750_v44 = vmul.f32 1.442695, %v749_v42  ;;  %v775_v45 = vmul.f32 1.442695, %v774_v43 }
 0x2fc   :  { %4230 = vpow2.f32 %v750_v44 }
 0x2fd   :  { %4232 = vpow2.f32 %v775_v45 }
 0x302   :  { %v4231_v47 = vpop.eup %4230 }
 0x303   :  { %v4233_v48 = vpop.eup %4232  ;;  %v752_v49 = vadd.f32 1.0, %v4231_v47 }
 0x304   :  { %v777_v51 = vadd.f32 1.0, %v4233_v48 }
 0x305   :  { %4234 = vrcp.f32 %v752_v49  ;;  %v764_v46 = vand.u32 2147483648, %v752_v49  ;;  %v762_v59 = vand.u32 2147483647, %v752_v49  ;;  %vm758_vm11 = vweird.f32 %v752_v49 }
 0x306   :  { %4236 = vrcp.f32 %v777_v51  ;;  %v789_v61 = vand.u32 2147483648, %v777_v51  ;;  %v787_v63 = vand.u32 2147483647, %v777_v51  ;;  %vm783_vm13 = vweird.f32 %v777_v51 }
 0x307   :  { %v765_v1 = vor.u32 1.1754944e-38, %v764_v46  ;;  %vm763_vm14 = vcmp.eq.f32.partialorder %v762_v59, 8.507059e+37 }
 0x308   :  { %v790_v5 = vor.u32 1.1754944e-38, %v789_v61  ;;  %vm788_vm0 = vcmp.eq.f32.partialorder %v787_v63, 8.507059e+37 }
 0x30b   :  { %v4235_v52 = vpop.eup %4234 }
 0x30c   :  { %v4237_v53 = vpop.eup %4236  ;;  %v754_v54 = vmul.f32 %v4235_v52, %v752_v49  ;;  %vm759_vm8 = vweird.f32 %v4235_v52 }
 0x30d   :  { %v779_v55 = vmul.f32 %v4237_v53, %v777_v51  ;;  %vm784_vm10 = vweird.f32 %v4237_v53  ;;  %vm760_vm12 = vmor %vm758_vm11, %vm759_vm8 }
 0x30e   :  { %v755_v56 = vsub.f32 1.0, %v754_v54  ;;  %vm785_vm15 = vmor %vm783_vm13, %vm784_vm10 }
 0x30f   :  { %v780_v50 = vsub.f32 1.0, %v779_v55 }
 0x310   :  { %v756_v57 = vmul.f32 %v4235_v52, %v755_v56 }
 0x311   :  { %v781_v62 = vmul.f32 %v4237_v53, %v780_v50 }
 0x312   :  { %v757_v0 = vadd.f32 %v4235_v52, %v756_v57 }
 0x313   :  { %v782_v2 = vadd.f32 %v4237_v53, %v781_v62 }
 0x314   :  { %v761_v3 = vsel %vm760_vm12, %v4235_v52, %v757_v0 }
 0x315   :  { %v766_v7 = vsel %vm763_vm14, %v765_v1, %v761_v3  ;;  %v786_v8 = vsel %vm785_vm15, %v4237_v53, %v782_v2 }
 0x316   :  { %v767_v10 = vmul.f32 %v766_v7, %v748_v30  ;;  %v791_v11 = vsel %vm788_vm0, %v790_v5, %v786_v8 }
 0x317   :  { %v792_v12 = vmul.f32 %v791_v11, %v773_v37 }
 0x318   :  { %v794_v14 = vmul.f32 %v4815_v6, %v767_v10  ;;  %v801_v24 = vmul.f32 %v4824_v19, %v767_v10 }
 0x319   :  { %v796_v15 = vmul.f32 %v4817_v9, %v792_v12  ;;  %v803_v25 = vmul.f32 %v4826_v21, %v792_v12 }
 0x31b   :  { %v797_v22 = vadd.f32 %v796_v15, %v794_v14  ;;  %v804_v34 = vadd.f32 %v803_v25, %v801_v24  ;;  %v1186_v25 = vld [vmem:[#allocation8 + $0x258] sm:$0xff] }
 0x31c   :  { %1923 = vmatpush.msrb.mxu2 %v1186_v25  ;;  %v1411_v25 = vld [vmem:[#allocation8 + $0x960] sm:$0xff] }
 0x31d   :  { %v4829_v23 = vadd.f32 %v4821_v18, %v797_v22  ;;  %v4837_v40 = vadd.f32 %v4834_v35, %v804_v34  ;;  %v1266_v34 = vld [vmem:[#allocation8 + $0x4d8] sm:$0xff] }
 0x31e   :  { %1943 = vmatpush.msrb.mxu3 %v1266_v34 }
 0x31f   :  { %808 = vst [vmem:[#allocation1] ss:$4 sm:$0xff] %v4829_v23  ;;  %v830_v44 = vmul.f32 %v4829_v23, %v4829_v23  ;;  %v842_v52 = vmul.f32 %v4837_v40, %v4837_v40 }
 0x326   :  { %v809_v41 = vld.sshfl [vmem:[#allocation1] sm:$0xff pattern:$0x73625140]  ;;  %v810_v30 = vld.sshfl [vmem:[#allocation1 + $0x8] sm:$0xff pattern:$0x73625140] }
 0x327   :  { %v813_v37 = vsel %vm510_vm9, %v809_v41, 0.0  ;;  %v814_v42 = vsel %vm510_vm9, %v810_v30, 0.0  ;;  %819 = vst [vmem:[#allocation1] ss:$4 sm:$0xff] %v4837_v40  ;;  %v1181_v30 = vld [vmem:[#allocation8 + $0x230] sm:$0xff] }
 0x328   :  { %v815_v43 = vadd.f32 %v814_v42, %v813_v37  ;;  %v1261_v37 = vld [vmem:[#allocation8 + $0x4b0] sm:$0xff]  ;;  %1924 = vmatpush.msrb.mxu2 %v1181_v30  ;;  %v1146_v30 = vld [vmem:[#allocation8 + $0x118] sm:$0xff] }
 0x329   :  { %1944 = vmatpush.msrb.mxu3 %v1261_v37  ;;  %v1226_v37 = vld [vmem:[#allocation8 + $0x398] sm:$0xff] }
 0x32a   :  { %816 = vadd.xlane.f32.xlu2 %v815_v43 }
 0x32e   :  { %v820_v45 = vld.sshfl [vmem:[#allocation1] sm:$0xff pattern:$0x73625140]  ;;  %v821_v47 = vld.sshfl [vmem:[#allocation1 + $0x8] sm:$0xff pattern:$0x73625140] }
 0x32f   :  { %v824_v48 = vsel %vm510_vm9, %v820_v45, 0.0  ;;  %v825_v49 = vsel %vm510_vm9, %v821_v47, 0.0  ;;  %832 = vst [vmem:[#allocation1] ss:$4 sm:$0xff] %v830_v44  ;;  %v1176_v44 = vld [vmem:[#allocation8 + $0x208] sm:$0xff] }
 0x330   :  { %v826_v51 = vadd.f32 %v825_v49, %v824_v48  ;;  %v1256_v45 = vld [vmem:[#allocation8 + $0x488] sm:$0xff]  ;;  %1925 = vmatpush.msrb.mxu2 %v1176_v44  ;;  %v1171_v48 = vld [vmem:[#allocation8 + $0x1e0] sm:$0xff] }
 0x331   :  { %1945 = vmatpush.msrb.mxu3 %v1256_v45  ;;  %v1251_v49 = vld [vmem:[#allocation8 + $0x460] sm:$0xff] }
 0x332   :  { %827 = vadd.xlane.f32.xlu0 %v826_v51  ;;  %1926 = vmatpush.msrb.mxu2 %v1171_v48  ;;  %v1221_v48 = vld [vmem:[#allocation8 + $0x370] sm:$0xff] }
 0x333   :  { %1946 = vmatpush.msrb.mxu3 %v1251_v49  ;;  %v1321_v49 = vld [vmem:[#allocation8 + $0x690] sm:$0xff] }
 0x336   :  { %v833_v53 = vld.sshfl [vmem:[#allocation1] sm:$0xff pattern:$0x73625140]  ;;  %v834_v54 = vld.sshfl [vmem:[#allocation1 + $0x8] sm:$0xff pattern:$0x73625140] }
 0x337   :  { %v837_v55 = vsel %vm510_vm9, %v833_v53, 0.0  ;;  %v838_v56 = vsel %vm510_vm9, %v834_v54, 0.0  ;;  %844 = vst [vmem:[#allocation1] ss:$4 sm:$0xff] %v842_v52 }
 0x338   :  { %v839_v46 = vadd.f32 %v838_v56, %v837_v55  ;;  %v1166_v55 = vld [vmem:[#allocation8 + $0x1b8] sm:$0xff] }
 0x339   :  { %v1246_v56 = vld [vmem:[#allocation8 + $0x438] sm:$0xff]  ;;  %1927 = vmatpush.msrb.mxu2 %v1166_v55  ;;  %v1396_v55 = vld [vmem:[#allocation8 + $0x8e8] sm:$0xff] }
 0x33a   :  { %840 = vadd.xlane.f32.xlu1 %v839_v46  ;;  %v1346_v46 = vld [vmem:[#allocation8 + $0x758] sm:$0xff]  ;;  %1947 = vmatpush.msrb.mxu3 %v1246_v56  ;;  %v1131_v56 = vld [vmem:[#allocation8 + $0xa0] sm:$0xff] }
 0x33b   :  { %1963 = vmatpush.msrb.mxu0 %v1346_v46  ;;  %v1211_v46 = vld [vmem:[#allocation8 + $0x320] sm:$0xff] }
 0x33e   :  { %v845_v50 = vld.sshfl [vmem:[#allocation1] sm:$0xff pattern:$0x73625140]  ;;  %v846_v57 = vld.sshfl [vmem:[#allocation1 + $0x8] sm:$0xff pattern:$0x73625140] }
 0x33f   :  { %v849_v59 = vsel %vm510_vm9, %v845_v50, 0.0  ;;  %v850_v61 = vsel %vm510_vm9, %v846_v57, 0.0  ;;  %v4865_v50 = vstv %s4852_s5  ;;  %v4868_v57 = vstv %s4854_s24  ;;  %s4560_s24 = smov 32  }
 0x340   :  { %v851_v62 = vadd.f32 %v850_v61, %v849_v59  ;;  %6028 = vst [vmem:[#allocation22_spill] sm:$0xff] %v4865_v50  ;;  %v1426_v59 = vld [vmem:[#allocation8 + $0x9d8] sm:$0xff] }
 0x341   :  { %6029 = vst [vmem:[#allocation23_spill] sm:$0xff] %v4868_v57  ;;  %1983 = vmatpush.msrb.mxu1 %v1426_v59  ;;  %v1311_v59 = vld [vmem:[#allocation8 + $0x640] sm:$0xff] }
 0x342   :  { %852 = vadd.xlane.f32.xlu2 %v851_v62 }
 0x39d   :  { %v817_v63 = vpop.xlane.xlu2 %816 }
 0x3a5   :  { %v828_v0 = vpop.xlane.xlu0 %827 }
 0x3a6   :  { %v829_v1 = vadd.f32 %v828_v0, %v817_v63  ;;  %v1341_v63 = vld [vmem:[#allocation8 + $0x730] sm:$0xff]  ;;  %v4871_v0 = vstv %s4856_s25  ;;  %s4183_s25 = sld [smem:[#allocation14 + $0x32]] }
 0x3a7   :  { %6030 = vst [vmem:[#allocation24_spill] sm:$0xff] %v4871_v0  ;;  %1964 = vmatpush.msrb.mxu0 %v1341_v63  ;;  %v1386_v63 = vld [vmem:[#allocation8 + $0x898] sm:$0xff] }
 0x3a8   :  { %v855_v2 = vmul.f32 0.001953125, %v829_v1  ;;  %v4874_v1 = vstv %s4858_s6  ;;  %s4184_s6 = sld [smem:[#allocation14 + $0x33]] }
 0x3a9   :  { %6031 = vst [vmem:[#allocation25_spill] sm:$0xff] %v4874_v1 }
 0x3aa   :  { %v857_v8 = vmul.f32 %v855_v2, %v855_v2  ;;  %v875_v43 = vperm.slane %v855_v2, %v4752_v31  ;;  %v1421_v2 = vld [vmem:[#allocation8 + $0x9b0] sm:$0xff] }
 0x3ab   :  { %1984 = vmatpush.msrb.mxu1 %v1421_v2  ;;  %v1121_v2 = vld [vmem:[#allocation8 + $0x50] sm:$0xff] }
 0x3ac   :  { %v877_v52 = vsub.f32 %v4829_v23, %v875_v43  ;;  %v908_v53 = vsub.f32 %v4837_v40, %v875_v43  ;;  %v1161_v23 = vld [vmem:[#allocation8 + $0x190] sm:$0xff]  ;;  %v1406_v43 = vld [vmem:[#allocation8 + $0x938] sm:$0xff] }
 0x3ad   :  { %v841_v3 = vpop.xlane.xlu1 %840  ;;  %v1241_v40 = vld [vmem:[#allocation8 + $0x410] sm:$0xff]  ;;  %1928 = vmatpush.msrb.mxu2 %v1161_v23  ;;  %v1206_v23 = vld [vmem:[#allocation8 + $0x2f8] sm:$0xff] }
 0x3ae   :  { %1948 = vmatpush.msrb.mxu3 %v1241_v40  ;;  %v1306_v40 = vld [vmem:[#allocation8 + $0x618] sm:$0xff] }
 0x3b5   :  { %v853_v5 = vpop.xlane.xlu2 %852 }
 0x3b6   :  { %v854_v7 = vadd.f32 %v853_v5, %v841_v3 }
 0x3b8   :  { %v856_v10 = vmul.f32 0.001953125, %v854_v7  ;;  %v1156_v7 = vld [vmem:[#allocation8 + $0x168] sm:$0xff] }
 0x3b9   :  { %1929 = vmatpush.msrb.mxu2 %v1156_v7  ;;  %v1381_v7 = vld [vmem:[#allocation8 + $0x870] sm:$0xff] }
 0x3ba   :  { %v858_v11 = vsub.f32 %v856_v10, %v857_v8  ;;  %v1236_v8 = vld [vmem:[#allocation8 + $0x3e8] sm:$0xff] }
 0x3bb   :  { %v1336_v10 = vld [vmem:[#allocation8 + $0x708] sm:$0xff]  ;;  %1949 = vmatpush.msrb.mxu3 %v1236_v8 }
 0x3bc   :  { %v859_v12 = vmax.f32 %v858_v11, 0.0  ;;  %v1416_v11 = vld [vmem:[#allocation8 + $0x988] sm:$0xff]  ;;  %1965 = vmatpush.msrb.mxu0 %v1336_v10 }
 0x3bd   :  { %1985 = vmatpush.msrb.mxu1 %v1416_v11  ;;  %v1116_v10 = vld [vmem:[#allocation8 + $0x28] sm:$0xff] }
 0x3be   :  { %v860_v14 = vadd.f32 1e-05, %v859_v12  ;;  %v1196_v11 = vld [vmem:[#allocation8 + $0x2a8] sm:$0xff] }
 0x3bf   :  { %1986 = vmatpush.msrb.mxu1 %v1411_v25  ;;  %v1376_v25 = vld [vmem:[#allocation8 + $0x848] sm:$0xff] }
 0x3c0   :  { %4238 = vrsqrt.f32 %v860_v14  ;;  %vm867_vm2 = vweird.f32 %v860_v14 }
 0x3c1   :  { %1987 = vmatpush.msrb.mxu1 %v1406_v43  ;;  %v1506_v43 = vld [vmem:[#allocation8 + $0xc58] sm:$0xff] }
 0x3c6   :  { %v4239_v15 = vpop.eup %4238 }
 0x3c7   :  { %v862_v22 = vmul.f32 %v4239_v15, %v860_v14  ;;  %vm868_vm1 = vweird.f32 %v4239_v15 }
 0x3c8   :  { %vm869_vm3 = vmor %vm867_vm2, %vm868_vm1 }
 0x3c9   :  { %v863_v24 = vmul.f32 %v4239_v15, %v862_v22  ;;  %v1231_v22 = vld [vmem:[#allocation8 + $0x3c0] sm:$0xff] }
 0x3ca   :  { %1950 = vmatpush.msrb.mxu3 %v1231_v22 }
 0x3cb   :  { %v864_v41 = vmul.f32 0.5, %v863_v24  ;;  %v1331_v24 = vld [vmem:[#allocation8 + $0x6e0] sm:$0xff] }
 0x3cc   :  { %1966 = vmatpush.msrb.mxu0 %v1331_v24  ;;  %1951 = vmatpush.msrb.mxu3 %v1226_v37  ;;  %v1296_v24 = vld [vmem:[#allocation8 + $0x5c8] sm:$0xff]  ;;  %v1291_v37 = vld [vmem:[#allocation8 + $0x5a0] sm:$0xff] }
 0x3cd   :  { %v865_v42 = vsub.f32 1.5, %v864_v41 }
 0x3ce   :  { %1952 = vmatpush.msrb.mxu3 %v1221_v48  ;;  %v1501_v48 = vld [vmem:[#allocation8 + $0xc30] sm:$0xff] }
 0x3cf   :  { %v866_v47 = vmul.f32 %v4239_v15, %v865_v42  ;;  %v1326_v42 = vld [vmem:[#allocation8 + $0x6b8] sm:$0xff] }
 0x3d0   :  { %1967 = vmatpush.msrb.mxu0 %v1326_v42  ;;  %v1371_v42 = vld [vmem:[#allocation8 + $0x820] sm:$0xff] }
 0x3d1   :  { %v870_v51 = vsel %vm869_vm3, %v4239_v15, %v866_v47  ;;  %v1151_v15 = vld [vmem:[#allocation8 + $0x140] sm:$0xff]  ;;  %v1141_v47 = vld [vmem:[#allocation8 + $0xf0] sm:$0xff] }
 0x3d2   :  { %v882_v54 = vperm.slane %v870_v51, %v4752_v31  ;;  %1930 = vmatpush.msrb.mxu2 %v1151_v15  ;;  %v1401_v51 = vld [vmem:[#allocation8 + $0x910] sm:$0xff]  ;;  %1968 = vmatpush.msrb.mxu0 %v1321_v49 }
 0x3d3   :  { %1988 = vmatpush.msrb.mxu1 %v1401_v51  ;;  %v1581_v49 = vld [vmem:[#allocation8 + $0xeb0] sm:$0xff] }
 0x3d4   :  { %v884_v61 = vmul.f32 %v882_v54, %v877_v52  ;;  %v909_v62 = vmul.f32 %v908_v53, %v882_v54  ;;  %1931 = vmatpush.msrb.mxu2 %v1146_v30  ;;  %v1136_v52 = vld [vmem:[#allocation8 + $0xc8] sm:$0xff]  ;;  %v1191_v30 = vld [vmem:[#allocation8 + $0x280] sm:$0xff]  ;;  %v1281_v51 = vld [vmem:[#allocation8 + $0x550] sm:$0xff] }
 0x3d5   :  { %v1216_v53 = vld [vmem:[#allocation8 + $0x348] sm:$0xff]  ;;  %1989 = vmatpush.msrb.mxu1 %v1396_v55 }
 0x3d6   :  { %v886_v3 = vmul.f32 %v4865_v50, %v884_v61  ;;  %v911_v5 = vmul.f32 %v4868_v57, %v909_v62  ;;  %1932 = vmatpush.msrb.mxu2 %v1141_v47  ;;  %v1316_v54 = vld [vmem:[#allocation8 + $0x668] sm:$0xff]  ;;  %1953 = vmatpush.msrb.mxu3 %v1216_v53  ;;  %v1391_v61 = vld [vmem:[#allocation8 + $0x8c0] sm:$0xff]  ;;  %v1126_v62 = vld [vmem:[#allocation8 + $0x78] sm:$0xff] }
 0x3d7   :  { %1969 = vmatpush.msrb.mxu0 %v1316_v54  ;;  %1990 = vmatpush.msrb.mxu1 %v1391_v61  ;;  %v1366_v47 = vld [vmem:[#allocation8 + $0x7f8] sm:$0xff]  ;;  %v1496_v53 = vld [vmem:[#allocation8 + $0xc08] sm:$0xff] }
 0x3d8   :  { %v4879_v12 = vadd.f32 %v4871_v0, %v886_v3  ;;  %v4882_v14 = vadd.f32 %v4874_v1, %v911_v5  ;;  %1933 = vmatpush.msrb.mxu2 %v1136_v52  ;;  %1954 = vmatpush.msrb.mxu3 %v1211_v46  ;;  %v1201_v3 = vld [vmem:[#allocation8 + $0x2d0] sm:$0xff]  ;;  %v1576_v54 = vld [vmem:[#allocation8 + $0xe88] sm:$0xff] }
 0x3d9   :  { %1970 = vmatpush.msrb.mxu0 %v1311_v59  ;;  %v1301_v5 = vld [vmem:[#allocation8 + $0x5f0] sm:$0xff]  ;;  %1991 = vmatpush.msrb.mxu1 %v1386_v63  ;;  %v1356_v46 = vld [vmem:[#allocation8 + $0x7a8] sm:$0xff]  ;;  %v1271_v63 = vld [vmem:[#allocation8 + $0x500] sm:$0xff] }
 0x3da   :  { %v889_v34 = vsub.f32 0.0, %v4879_v12  ;;  %v914_v41 = vsub.f32 0.0, %v4882_v14  ;;  %1934 = vmatpush.msrb.mxu2 %v1131_v56  ;;  %1955 = vmatpush.msrb.mxu3 %v1206_v23  ;;  %v1361_v52 = vld [vmem:[#allocation8 + $0x7d0] sm:$0xff]  ;;  %v1276_v56 = vld [vmem:[#allocation8 + $0x528] sm:$0xff]  ;;  %v1571_v23 = vld [vmem:[#allocation8 + $0xe60] sm:$0xff] }
 0x3db   :  { %1971 = vmatpush.msrb.mxu0 %v1306_v40  ;;  %1992 = vmatpush.msrb.mxu1 %v1381_v7  ;;  %v1566_v7 = vld [vmem:[#allocation8 + $0xe38] sm:$0xff] }
 0x3dc   :  { %v890_v44 = vmul.f32 1.442695, %v889_v34  ;;  %v915_v45 = vmul.f32 1.442695, %v914_v41  ;;  %1935 = vmatpush.msrb.mxu2 %v1126_v62  ;;  %1956 = vmatpush.msrb.mxu3 %v1201_v3  ;;  %v1111_v41 = vld [vmem:[#allocation8] sm:$0xff] }
 0x3dd   :  { %1972 = vmatpush.msrb.mxu0 %v1301_v5  ;;  %1993 = vmatpush.msrb.mxu1 %v1376_v25  ;;  %v1491_v62 = vld [vmem:[#allocation8 + $0xbe0] sm:$0xff]  ;;  %v1486_v5 = vld [vmem:[#allocation8 + $0xbb8] sm:$0xff] }
 0x3de   :  { %4240 = vpow2.f32 %v890_v44  ;;  %1936 = vmatpush.msrb.mxu2 %v1121_v2  ;;  %1957 = vmatpush.msrb.mxu3 %v1196_v11  ;;  %v1586_v44 = vld [vmem:[#allocation8 + $0xed8] sm:$0xff]  ;;  %v1351_v2 = vld [vmem:[#allocation8 + $0x780] sm:$0xff] }
 0x3df   :  { %4242 = vpow2.f32 %v915_v45  ;;  %1973 = vmatpush.msrb.mxu0 %v1296_v24  ;;  %v1286_v45 = vld [vmem:[#allocation8 + $0x578] sm:$0xff]  ;;  %1994 = vmatpush.msrb.mxu1 %v1371_v42 }
 0x3e0   :  { %1937 = vmatpush.msrb.mxu2 %v1116_v10  ;;  %1958 = vmatpush.msrb.mxu3 %v1191_v30  ;;  %v1666_v11 = vld [vmem:[#allocation8 + $0x1158] sm:$0xff]  ;;  %v1481_v30 = vld [vmem:[#allocation8 + $0xb90] sm:$0xff] }
 0x3e1   :  { %1974 = vmatpush.msrb.mxu0 %v1291_v37  ;;  %1995 = vmatpush.msrb.mxu1 %v1366_v47  ;;  %v1561_v37 = vld [vmem:[#allocation8 + $0xe10] sm:$0xff] }
 0x3e2   :  { %1938 = vmatpush.msrb.mxu2 %v1111_v41  ;;  %2023 = vmatpush.msra.mxu3 %v1586_v44  ;;  %v1661_v44 = vld [vmem:[#allocation8 + $0x1130] sm:$0xff] }
 0x3e3   :  { %1975 = vmatpush.msrb.mxu0 %v1286_v45  ;;  %1996 = vmatpush.msrb.mxu1 %v1361_v52  ;;  %v1741_v45 = vld [vmem:[#allocation8 + $0x13b0] sm:$0xff] }
 0x3e4   :  { %v4241_v8 = vpop.eup %4240  ;;  %2003 = vmatpush.msra.mxu2 %v1506_v43  ;;  %2024 = vmatpush.msra.mxu3 %v1581_v49  ;;  %v1556_v49 = vld [vmem:[#allocation8 + $0xde8] sm:$0xff] }
 0x3e5   :  { %v4243_v15 = vpop.eup %4242  ;;  %v4886_v22 = vadd.f32 1.0, %v4241_v8  ;;  %1976 = vmatpush.msrb.mxu0 %v1281_v51  ;;  %1997 = vmatpush.msrb.mxu1 %v1356_v46  ;;  %v1451_v51 = vld [vmem:[#allocation8 + $0xaa0] sm:$0xff] }
 0x3e6   :  { %v4888_v34 = vadd.f32 1.0, %v4243_v15  ;;  %2004 = vmatpush.msra.mxu2 %v1501_v48  ;;  %2025 = vmatpush.msra.mxu3 %v1576_v54  ;;  %v1746_v15 = vld [vmem:[#allocation8 + $0x13d8] sm:$0xff]  ;;  %v1476_v48 = vld [vmem:[#allocation8 + $0xb68] sm:$0xff]  ;;  %v1711_v46 = vld [vmem:[#allocation8 + $0x12c0] sm:$0xff] }
 0x3e7   :  { %4244 = vrcp.f32 %v4886_v22  ;;  %1977 = vmatpush.msrb.mxu0 %v1276_v56  ;;  %v904_v8 = vand.u32 2147483648, %v4886_v22  ;;  %v902_v25 = vand.u32 2147483647, %v4886_v22  ;;  %1998 = vmatpush.msrb.mxu1 %v1351_v2  ;;  %vm898_vm6 = vweird.f32 %v4886_v22  ;;  %v1656_v54 = vld [vmem:[#allocation8 + $0x1108] sm:$0xff]  ;;  %v1731_v2 = vld [vmem:[#allocation8 + $0x1360] sm:$0xff] }
 0x3e8   :  { %4246 = vrcp.f32 %v4888_v34  ;;  %2005 = vmatpush.msra.mxu2 %v1496_v53  ;;  %2026 = vmatpush.msra.mxu3 %v1571_v23  ;;  %v929_v41 = vand.u32 2147483648, %v4888_v34  ;;  %v927_v43 = vand.u32 2147483647, %v4888_v34  ;;  %vm923_vm8 = vweird.f32 %v4888_v34 }
 0x3e9   :  { %1978 = vmatpush.msrb.mxu0 %v1271_v63  ;;  %2063 = vmatpush.msra.mxu1 %v1746_v15  ;;  %v905_v52 = vor.u32 1.1754944e-38, %v904_v8  ;;  %vm903_vm10 = vcmp.eq.f32.partialorder %v902_v25, 8.507059e+37  ;;  %v4938_v23 = vstv %s4898_s7  ;;  %v1651_v63 = vld [vmem:[#allocation8 + $0x10e0] sm:$0xff]  ;;  %v1466_v8 = vld [vmem:[#allocation8 + $0xb18] sm:$0xff]  ;;  %v1461_v25 = vld [vmem:[#allocation8 + $0xaf0] sm:$0xff]  ;;  %s4189_s7 = sld [smem:[#allocation14 + $0x38]] }
 0x3ea   :  { %2006 = vmatpush.msra.mxu2 %v1491_v62  ;;  %2027 = vmatpush.msra.mxu3 %v1566_v7  ;;  %v1551_v62 = vld [vmem:[#allocation8 + $0xdc0] sm:$0xff]  ;;  %6036 = vst [vmem:[#allocation26_spill] sm:$0xff] %v4938_v23  ;;  %vm928_vm12 = vcmp.eq.f32.partialorder %v927_v43, 8.507059e+37  ;;  %v1726_v15 = vld [vmem:[#allocation8 + $0x1338] sm:$0xff]  ;;  %v4959_v43 = vstv %s4911_s12  ;;  %s4168_s12 = sld [smem:[#allocation14 + $0x23]] }
 0x3eb   :  { %2043 = vmatpush.msra.mxu0 %v1666_v11  ;;  %2064 = vmatpush.msra.mxu1 %v1741_v45  ;;  %6040 = vst [vmem:[#allocation30_spill] sm:$0xff] %v4959_v43  ;;  %v1536_v45 = vld [vmem:[#allocation8 + $0xd48] sm:$0xff] }
 0x3ec   :  { %2007 = vmatpush.msra.mxu2 %v1486_v5  ;;  %2028 = vmatpush.msra.mxu3 %v1561_v37  ;;  %v1721_v37 = vld [vmem:[#allocation8 + $0x1310] sm:$0xff] }
 0x3ed   :  { %v4892_v55 = vpop.eup %4244  ;;  %2044 = vmatpush.msra.mxu0 %v1661_v44  ;;  %v1456_v44 = vld [vmem:[#allocation8 + $0xac8] sm:$0xff] }
 0x3ee   :  { %v4894_v59 = vpop.eup %4246  ;;  %v894_v61 = vmul.f32 %v4892_v55, %v4886_v22  ;;  %vm899_vm4 = vweird.f32 %v4892_v55  ;;  %2008 = vmatpush.msra.mxu2 %v1481_v30  ;;  %v1736_v22 = vld [vmem:[#allocation8 + $0x1388] sm:$0xff]  ;;  %2029 = vmatpush.msra.mxu3 %v1556_v49  ;;  %v1641_v30 = vld [vmem:[#allocation8 + $0x1090] sm:$0xff] }
 0x3ef   :  { %v919_v40 = vmul.f32 %v4894_v59, %v4888_v34  ;;  %vm924_vm5 = vweird.f32 %v4894_v59  ;;  %vm4922_vm7 = vmor %vm898_vm6, %vm899_vm4  ;;  %v1471_v34 = vld [vmem:[#allocation8 + $0xb40] sm:$0xff]  ;;  %2045 = vmatpush.msra.mxu0 %v1656_v54  ;;  %2065 = vmatpush.msra.mxu1 %v1736_v22  ;;  %v1716_v49 = vld [vmem:[#allocation8 + $0x12e8] sm:$0xff] }
 0x3f0   :  { %v895_v3 = vsub.f32 1.0, %v894_v61  ;;  %vm4933_vm11 = vmor %vm923_vm8, %vm924_vm5  ;;  %v930_v61 = vor.u32 1.1754944e-38, %v929_v41  ;;  %2009 = vmatpush.msra.mxu2 %v1476_v48  ;;  %2030 = vmatpush.msra.mxu3 %v1551_v62  ;;  %v1636_v48 = vld [vmem:[#allocation8 + $0x1068] sm:$0xff]  ;;  %v1626_v62 = vld [vmem:[#allocation8 + $0x1018] sm:$0xff] }
 0x3f1   :  { %v920_v10 = vsub.f32 1.0, %v919_v40  ;;  %2046 = vmatpush.msra.mxu0 %v1651_v63  ;;  %2066 = vmatpush.msra.mxu1 %v1731_v2  ;;  %v1521_v63 = vld [vmem:[#allocation8 + $0xcd0] sm:$0xff] }
 0x3f2   :  { %v896_v24 = vmul.f32 %v4892_v55, %v895_v3  ;;  %v4944_v3 = vstv %s4902_s26  ;;  %2010 = vmatpush.msra.mxu2 %v1471_v34  ;;  %v1526_v34 = vld [vmem:[#allocation8 + $0xcf8] sm:$0xff]  ;;  %s4190_s26 = sld [smem:[#allocation14 + $0x39]] }
 0x3f3   :  { %v921_v42 = vmul.f32 %v4894_v59, %v920_v10  ;;  %6037 = vst [vmem:[#allocation27_spill] sm:$0xff] %v4944_v3  ;;  %v1546_v10 = vld [vmem:[#allocation8 + $0xd98] sm:$0xff]  ;;  %2067 = vmatpush.msra.mxu1 %v1726_v15  ;;  %v1696_v15 = vld [vmem:[#allocation8 + $0x1248] sm:$0xff] }
 0x3f4   :  { %v897_v47 = vadd.f32 %v4892_v55, %v896_v24  ;;  %2011 = vmatpush.msra.mxu2 %v1466_v8  ;;  %2031 = vmatpush.msra.mxu3 %v1546_v10  ;;  %v4968_v8 = vstv %s4950_s28  ;;  %v1436_v10 = vld [vmem:[#allocation8 + $0xa28] sm:$0xff]  ;;  %s4177_s28 = sld [smem:[#allocation14 + $0x2c]] }
 0x3f5   :  { %v922_v53 = vadd.f32 %v4894_v59, %v921_v42  ;;  %v4956_v42 = vstv %s4904_s11  ;;  %2068 = vmatpush.msra.mxu1 %v1721_v37  ;;  %6042 = vst [vmem:[#allocation32_spill] sm:$0xff] %v4968_v8  ;;  %s4167_s11 = sld [smem:[#allocation14 + $0x22]] }
 0x3f6   :  { %v901_v56 = vsel %vm4922_vm7, %v4892_v55, %v897_v47  ;;  %6039 = vst [vmem:[#allocation29_spill] sm:$0xff] %v4956_v42  ;;  %2012 = vmatpush.msra.mxu2 %v1461_v25  ;;  %v1511_v25 = vld [vmem:[#allocation8 + $0xc80] sm:$0xff] }
 0x3f7   :  { %v906_v40 = vsel %vm903_vm10, %v905_v52, %v901_v56  ;;  %v926_v55 = vsel %vm4933_vm11, %v4894_v59, %v922_v53  ;;  %v1646_v59 = vld [vmem:[#allocation8 + $0x10b8] sm:$0xff]  ;;  %v1531_v52 = vld [vmem:[#allocation8 + $0xd20] sm:$0xff]  ;;  %2069 = vmatpush.msra.mxu1 %v1716_v49  ;;  %v1681_v49 = vld [vmem:[#allocation8 + $0x11d0] sm:$0xff] }
 0x3f8   :  { %v907_v5 = vmul.f32 %v906_v40, %v4879_v12  ;;  %v931_v7 = vsel %vm928_vm12, %v930_v61, %v926_v55  ;;  %v1541_v12 = vld [vmem:[#allocation8 + $0xd70] sm:$0xff]  ;;  %2047 = vmatpush.msra.mxu0 %v1646_v59  ;;  %2013 = vmatpush.msra.mxu2 %v1456_v44  ;;  %v1631_v56 = vld [vmem:[#allocation8 + $0x1040] sm:$0xff]  ;;  %v1446_v61 = vld [vmem:[#allocation8 + $0xa78] sm:$0xff] }
 0x3f9   :  { %v932_v11 = vmul.f32 %v931_v7, %v4882_v14  ;;  %v4953_v14 = vstv %s4916_s0  ;;  %2032 = vmatpush.msra.mxu3 %v1541_v12  ;;  %v1706_v40 = vld [vmem:[#allocation8 + $0x1298] sm:$0xff]  ;;  %2070 = vmatpush.msra.mxu1 %v1711_v46  ;;  %v1441_v55 = vld [vmem:[#allocation8 + $0xa50] sm:$0xff]  ;;  %v1616_v59 = vld [vmem:[#allocation8 + $0xfc8] sm:$0xff]  ;;  %s4169_s0 = sld [smem:[#allocation14 + $0x24]] }
 0x3fa   :  { %v934_v24 = vmul.f32 %v4938_v23, %v907_v5  ;;  %6038 = vst [vmem:[#allocation28_spill] sm:$0xff] %v4953_v14  ;;  %2048 = vmatpush.msra.mxu0 %v1641_v30  ;;  %v941_v54 = vmul.f32 %v4956_v42, %v907_v5  ;;  %2014 = vmatpush.msra.mxu2 %v1451_v51  ;;  %v1621_v5 = vld [vmem:[#allocation8 + $0xff0] sm:$0xff]  ;;  %v1691_v30 = vld [vmem:[#allocation8 + $0x1220] sm:$0xff]  ;;  %v1596_v51 = vld [vmem:[#allocation8 + $0xf28] sm:$0xff] }
 0x3fb   :  { %v936_v41 = vmul.f32 %v4944_v3, %v932_v11  ;;  %v943_v22 = vmul.f32 %v4959_v43, %v932_v11  ;;  %2033 = vmatpush.msra.mxu3 %v1536_v45  ;;  %v1701_v7 = vld [vmem:[#allocation8 + $0x1270] sm:$0xff]  ;;  %2071 = vmatpush.msra.mxu1 %v1706_v40  ;;  %v1516_v11 = vld [vmem:[#allocation8 + $0xca8] sm:$0xff]  ;;  %v1606_v45 = vld [vmem:[#allocation8 + $0xf78] sm:$0xff] }
 0x3fc   :  { %2049 = vmatpush.msra.mxu0 %v1636_v48  ;;  %2015 = vmatpush.msra.mxu2 %v1446_v61  ;;  %v1601_v48 = vld [vmem:[#allocation8 + $0xf50] sm:$0xff]  ;;  %v1591_v46 = vld [vmem:[#allocation8 + $0xf00] sm:$0xff] }
 0x3fd   :  { %v937_v47 = vadd.f32 %v936_v41, %v934_v24  ;;  %2034 = vmatpush.msra.mxu3 %v1531_v52  ;;  %v944_v2 = vadd.f32 %v943_v22, %v941_v54  ;;  %2072 = vmatpush.msra.mxu1 %v1701_v7  ;;  %v1431_v24 = vld [vmem:[#allocation8 + $0xa00] sm:$0xff]  ;;  %v1676_v52 = vld [vmem:[#allocation8 + $0x11a8] sm:$0xff] }
 0x3fe   :  { %2050 = vmatpush.msra.mxu0 %v1631_v56  ;;  %2016 = vmatpush.msra.mxu2 %v1441_v55  ;;  %v1611_v41 = vld [vmem:[#allocation8 + $0xfa0] sm:$0xff] }
 0x3ff   :  { %v4962_v53 = vadd.f32 %v4953_v14, %v937_v47  ;;  %2035 = vmatpush.msra.mxu3 %v1526_v34  ;;  %v4971_v12 = vadd.f32 %v4968_v8, %v944_v2  ;;  %2073 = vmatpush.msra.mxu1 %v1696_v15  ;;  %v1686_v47 = vld [vmem:[#allocation8 + $0x11f8] sm:$0xff]  ;;  %v1671_v61 = vld [vmem:[#allocation8 + $0x1180] sm:$0xff]  ;;  %v1816_v15 = vld [vmem:[#allocation8 + $0x1608] sm:$0xff] }
 0x400   :  { %2051 = vmatpush.msra.mxu0 %v1626_v62  ;;  %2017 = vmatpush.msra.mxu2 %v1436_v10  ;;  %v1826_v2 = vld [vmem:[#allocation8 + $0x1658] sm:$0xff] }
 0x401   :  { %6041 = vst [vmem:[#allocation31_spill] sm:$0xff] %v4962_v53  ;;  %2036 = vmatpush.msra.mxu3 %v1521_v63  ;;  %2074 = vmatpush.msra.mxu1 %v1691_v30  ;;  %v970_v54 = vmul.f32 %v4962_v53, %v4962_v53  ;;  %v982_v34 = vmul.f32 %v4971_v12, %v4971_v12  ;;  %v1886_v30 = vld [vmem:[#allocation8 + $0x1838] sm:$0xff] }
 0x402   :  { %948 = vst [vmem:[#allocation1] ss:$4 sm:$0xff] %v4962_v53  ;;  %2052 = vmatpush.msra.mxu0 %v1621_v5  ;;  %2018 = vmatpush.msra.mxu2 %v1431_v24  ;;  %v1906_v5 = vld [vmem:[#allocation8 + $0x18d8] sm:$0xff]  ;;  %v1896_v24 = vld [vmem:[#allocation8 + $0x1888] sm:$0xff] }
 0x403   :  { %6043 = vst [vmem:[#allocation33_spill] sm:$0xff] %v4971_v12  ;;  %2037 = vmatpush.msra.mxu3 %v1516_v11  ;;  %2075 = vmatpush.msra.mxu1 %v1686_v47  ;;  %v1821_v11 = vld [vmem:[#allocation8 + $0x1630] sm:$0xff]  ;;  %v1267_v47 = vld [vmem:[#allocation8 + $0x4e0] sm:$0xff] }
 0x404   :  { %2053 = vmatpush.msra.mxu0 %v1616_v59  ;;  %v1901_v59 = vld [vmem:[#allocation8 + $0x18b0] sm:$0xff] }
 0x405   :  { %2038 = vmatpush.msra.mxu3 %v1511_v25  ;;  %2076 = vmatpush.msra.mxu1 %v1681_v49  ;;  %v1891_v25 = vld [vmem:[#allocation8 + $0x1860] sm:$0xff]  ;;  %v1801_v49 = vld [vmem:[#allocation8 + $0x1590] sm:$0xff] }
 0x406   :  { %2054 = vmatpush.msra.mxu0 %v1611_v41  ;;  %v1806_v41 = vld [vmem:[#allocation8 + $0x15b8] sm:$0xff] }
 0x407   :  { %2077 = vmatpush.msra.mxu1 %v1676_v52  ;;  %v1182_v52 = vld [vmem:[#allocation8 + $0x238] sm:$0xff] }
 0x408   :  { %2055 = vmatpush.msra.mxu0 %v1606_v45  ;;  %v1187_v45 = vld [vmem:[#allocation8 + $0x260] sm:$0xff] }
 0x409   :  { %v4973_v37 = vld.sshfl [vmem:[#allocation1] sm:$0xff pattern:$0x73625140]  ;;  %v4975_v44 = vld.sshfl [vmem:[#allocation1 + $0x8] sm:$0xff pattern:$0x73625140]  ;;  %2078 = vmatpush.msra.mxu1 %v1671_v61 }
 0x40a   :  { %6044 = vst [vmem:[#allocation34_spill] sm:$0xff] %v4973_v37  ;;  %2056 = vmatpush.msra.mxu0 %v1601_v48  ;;  %v1876_v61 = vld [vmem:[#allocation8 + $0x17e8] sm:$0xff] }
 0x40b   :  { %6045 = vst [vmem:[#allocation35_spill] sm:$0xff] %v4975_v44 }
 0x40c   :  { %959 = vst [vmem:[#allocation1] ss:$4 sm:$0xff] %v4971_v12  ;;  %2057 = vmatpush.msra.mxu0 %v1596_v51  ;;  %v1881_v51 = vld [vmem:[#allocation8 + $0x1810] sm:$0xff]  ;;  %v1368_v12 = vld [vmem:[#allocation8 + $0x808] sm:$0xff] }
 0x40e   :  { %2058 = vmatpush.msra.mxu0 %v1591_v46  ;;  %v1796_v46 = vld [vmem:[#allocation8 + $0x1568] sm:$0xff] }
 0x413   :  { %v4980_v22 = vld.sshfl [vmem:[#allocation1] sm:$0xff pattern:$0x73625140]  ;;  %v4982_v56 = vld.sshfl [vmem:[#allocation1 + $0x8] sm:$0xff pattern:$0x73625140] }
 0x414   :  { %6046 = vst [vmem:[#allocation36_spill] sm:$0xff] %v4980_v22 }
 0x415   :  { %6047 = vst [vmem:[#allocation37_spill] sm:$0xff] %v4982_v56 }
 0x416   :  { %972 = vst [vmem:[#allocation1] ss:$4 sm:$0xff] %v970_v54  ;;  %v1262_v54 = vld [vmem:[#allocation8 + $0x4b8] sm:$0xff] }
 0x41d   :  { %v4986_v62 = vld.sshfl [vmem:[#allocation1] sm:$0xff pattern:$0x73625140]  ;;  %v4988_v40 = vld.sshfl [vmem:[#allocation1 + $0x8] sm:$0xff pattern:$0x73625140] }
 0x41e   :  { %6048 = vst [vmem:[#allocation38_spill] sm:$0xff] %v4986_v62 }
 0x41f   :  { %6049 = vst [vmem:[#allocation39_spill] sm:$0xff] %v4988_v40 }
 0x420   :  { %984 = vst [vmem:[#allocation1] ss:$4 sm:$0xff] %v982_v34  ;;  %v1177_v34 = vld [vmem:[#allocation8 + $0x210] sm:$0xff] }
 0x427   :  { %v4990_v55 = vld.sshfl [vmem:[#allocation1] sm:$0xff pattern:$0x73625140]  ;;  %v4992_v63 = vld.sshfl [vmem:[#allocation1 + $0x8] sm:$0xff pattern:$0x73625140] }
 0x428   :  { %6050 = vst [vmem:[#allocation40_spill] sm:$0xff] %v4990_v55 }
 0x429   :  { %6051 = vst [vmem:[#allocation41_spill] sm:$0xff] %v4992_v63 }
 0x42a   :  { %1088 = vst [vmem:[#allocation1] ss:$4 sm:$0xff] %v4691_v58  ;;  %v1811_v58 = vld [vmem:[#allocation8 + $0x15e0] sm:$0xff] }
 0x431   :  { %v4995_v7 = vld.sshfl [vmem:[#allocation1] sm:$0xff pattern:$0x73625140]  ;;  %v4997_v10 = vld.sshfl [vmem:[#allocation1 + $0x8] sm:$0xff pattern:$0x73625140] }
 0x432   :  { %1939 = vmatmul.f32.vlgmr.msrb.gmra.mxu2 %v4995_v7  ;;  %1959 = vmatmul.f32.vlgmr.msrb.gmra.mxu3 %v4997_v10  ;;  %1094 = vst [vmem:[#allocation1] ss:$4 sm:$0xff] %v4693_v60 }
 0x433   :  { %2083 = vmatpush.msrb.mxu2 %v1826_v2  ;;  %2103 = vmatpush.msrb.mxu3 %v1906_v5  ;;  %v1257_v2 = vld [vmem:[#allocation8 + $0x490] sm:$0xff]  ;;  %v1791_v5 = vld [vmem:[#allocation8 + $0x1540] sm:$0xff] }
 0x435   :  { %2084 = vmatpush.msrb.mxu2 %v1821_v11  ;;  %2104 = vmatpush.msrb.mxu3 %v1901_v59  ;;  %v1871_v11 = vld [vmem:[#allocation8 + $0x17c0] sm:$0xff]  ;;  %v1252_v59 = vld [vmem:[#allocation8 + $0x468] sm:$0xff] }
 0x437   :  { %2085 = vmatpush.msrb.mxu2 %v1816_v15  ;;  %2105 = vmatpush.msrb.mxu3 %v1896_v24  ;;  %v1786_v15 = vld [vmem:[#allocation8 + $0x1518] sm:$0xff] }
 0x438   :  { %v1866_v24 = vld [vmem:[#allocation8 + $0x1798] sm:$0xff] }
 0x439   :  { %2086 = vmatpush.msrb.mxu2 %v1811_v58  ;;  %2106 = vmatpush.msrb.mxu3 %v1891_v25  ;;  %v5002_v48 = vld.sshfl [vmem:[#allocation1] sm:$0xff pattern:$0x73625140]  ;;  %v5004_v60 = vld.sshfl [vmem:[#allocation1 + $0x8] sm:$0xff pattern:$0x73625140] }
 0x43a   :  { %1979 = vmatmul.f32.vlgmr.msrb.gmra.mxu0 %v5002_v48  ;;  %1999 = vmatmul.f32.vlgmr.msrb.gmra.mxu1 %v5004_v60  ;;  %1100 = vst [vmem:[#allocation1] ss:$4 sm:$0xff] %v4701_v4  ;;  %v1172_v4 = vld [vmem:[#allocation8 + $0x1e8] sm:$0xff]  ;;  %v1167_v58 = vld [vmem:[#allocation8 + $0x1c0] sm:$0xff] }
 0x43b   :  { %2087 = vmatpush.msrb.mxu2 %v1806_v41  ;;  %2107 = vmatpush.msrb.mxu3 %v1886_v30  ;;  %v1247_v30 = vld [vmem:[#allocation8 + $0x440] sm:$0xff] }
 0x43c   :  { %2123 = vmatpush.msrb.mxu0 %v1187_v45  ;;  %2143 = vmatpush.msrb.mxu1 %v1267_v47  ;;  %v1781_v45 = vld [vmem:[#allocation8 + $0x14f0] sm:$0xff] }
 0x43d   :  { %2088 = vmatpush.msrb.mxu2 %v1801_v49  ;;  %2108 = vmatpush.msrb.mxu3 %v1881_v51  ;;  %v1861_v47 = vld [vmem:[#allocation8 + $0x1770] sm:$0xff]  ;;  %v1162_v49 = vld [vmem:[#allocation8 + $0x198] sm:$0xff] }
 0x43e   :  { %2124 = vmatpush.msrb.mxu0 %v1182_v52  ;;  %2144 = vmatpush.msrb.mxu1 %v1262_v54  ;;  %v1242_v51 = vld [vmem:[#allocation8 + $0x418] sm:$0xff]  ;;  %v1776_v52 = vld [vmem:[#allocation8 + $0x14c8] sm:$0xff] }
 0x43f   :  { %2089 = vmatpush.msrb.mxu2 %v1796_v46  ;;  %2109 = vmatpush.msrb.mxu3 %v1876_v61  ;;  %v1856_v54 = vld [vmem:[#allocation8 + $0x1748] sm:$0xff]  ;;  %v1157_v46 = vld [vmem:[#allocation8 + $0x170] sm:$0xff] }
 0x440   :  { %2125 = vmatpush.msrb.mxu0 %v1177_v34  ;;  %2145 = vmatpush.msrb.mxu1 %v1257_v2  ;;  %v1237_v61 = vld [vmem:[#allocation8 + $0x3f0] sm:$0xff]  ;;  %v1851_v34 = vld [vmem:[#allocation8 + $0x1720] sm:$0xff]  ;;  %v1152_v2 = vld [vmem:[#allocation8 + $0x148] sm:$0xff] }
 0x441   :  { %2090 = vmatpush.msrb.mxu2 %v1791_v5  ;;  %2110 = vmatpush.msrb.mxu3 %v1871_v11  ;;  %v5009_v25 = vld.sshfl [vmem:[#allocation1] sm:$0xff pattern:$0x73625140]  ;;  %v5011_v41 = vld.sshfl [vmem:[#allocation1 + $0x8] sm:$0xff pattern:$0x73625140] }
 0x442   :  { %2126 = vmatpush.msrb.mxu0 %v1172_v4  ;;  %2146 = vmatpush.msrb.mxu1 %v1252_v59  ;;  %1106 = vst [vmem:[#allocation1] ss:$4 sm:$0xff] %v4711_v13  ;;  %v1771_v13 = vld [vmem:[#allocation8 + $0x14a0] sm:$0xff]  ;;  %v1232_v5 = vld [vmem:[#allocation8 + $0x3c8] sm:$0xff]  ;;  %v1766_v11 = vld [vmem:[#allocation8 + $0x1478] sm:$0xff] }
 0x443   :  { %2019 = vmatmul.f32.vlgmr.msra.gmra.mxu2 %v5009_v25  ;;  %2111 = vmatpush.msrb.mxu3 %v1866_v24  ;;  %v1846_v4 = vld [vmem:[#allocation8 + $0x16f8] sm:$0xff]  ;;  %v1147_v59 = vld [vmem:[#allocation8 + $0x120] sm:$0xff] }
 0x444   :  { %2091 = vmatpush.msrb.mxu2 %v1786_v15  ;;  %2127 = vmatpush.msrb.mxu0 %v1167_v58  ;;  %v1227_v15 = vld [vmem:[#allocation8 + $0x3a0] sm:$0xff]  ;;  %v1761_v58 = vld [vmem:[#allocation8 + $0x1450] sm:$0xff] }
 0x445   :  { %2147 = vmatpush.msrb.mxu1 %v1247_v30  ;;  %2039 = vmatmul.f32.vlgmr.msra.gmra.mxu3 %v5011_v41  ;;  %v1841_v30 = vld [vmem:[#allocation8 + $0x16d0] sm:$0xff] }
 0x446   :  { %2092 = vmatpush.msrb.mxu2 %v1781_v45  ;;  %2112 = vmatpush.msrb.mxu3 %v1861_v47  ;;  %v1142_v45 = vld [vmem:[#allocation8 + $0xf8] sm:$0xff] }
 0x447   :  { %2128 = vmatpush.msrb.mxu0 %v1162_v49  ;;  %2148 = vmatpush.msrb.mxu1 %v1242_v51  ;;  %v1222_v47 = vld [vmem:[#allocation8 + $0x378] sm:$0xff]  ;;  %v1756_v49 = vld [vmem:[#allocation8 + $0x1428] sm:$0xff] }
 0x448   :  { %2093 = vmatpush.msrb.mxu2 %v1776_v52  ;;  %2113 = vmatpush.msrb.mxu3 %v1856_v54  ;;  %v1836_v52 = vld [vmem:[#allocation8 + $0x16a8] sm:$0xff]  ;;  %v1137_v54 = vld [vmem:[#allocation8 + $0xd0] sm:$0xff] }
 0x449   :  { %2129 = vmatpush.msrb.mxu0 %v1157_v46  ;;  %2149 = vmatpush.msrb.mxu1 %v1237_v61  ;;  %v5016_v24 = vld.sshfl [vmem:[#allocation1] sm:$0xff pattern:$0x73625140]  ;;  %v5019_v51 = vld.sshfl [vmem:[#allocation1 + $0x8] sm:$0xff pattern:$0x73625140] }
 0x44a   :  { %2094 = vmatpush.msrb.mxu2 %v1771_v13  ;;  %2114 = vmatpush.msrb.mxu3 %v1851_v34  ;;  %v1217_v46 = vld [vmem:[#allocation8 + $0x350] sm:$0xff]  ;;  %v1751_v61 = vld [vmem:[#allocation8 + $0x1400] sm:$0xff]  ;;  %v1132_v34 = vld [vmem:[#allocation8 + $0xa8] sm:$0xff] }
 0x44b   :  { %2130 = vmatpush.msrb.mxu0 %v1152_v2  ;;  %2150 = vmatpush.msrb.mxu1 %v1232_v5  ;;  %v1831_v13 = vld [vmem:[#allocation8 + $0x1680] sm:$0xff]  ;;  %v1212_v2 = vld [vmem:[#allocation8 + $0x328] sm:$0xff] }
 0x44c   :  { %2095 = vmatpush.msrb.mxu2 %v1766_v11  ;;  %2115 = vmatpush.msrb.mxu3 %v1846_v4  ;;  %v1347_v5 = vld [vmem:[#allocation8 + $0x760] sm:$0xff] }
 0x44d   :  { %2131 = vmatpush.msrb.mxu0 %v1147_v59  ;;  %2151 = vmatpush.msrb.mxu1 %v1227_v15  ;;  %v1427_v11 = vld [vmem:[#allocation8 + $0x9e0] sm:$0xff]  ;;  %v1342_v15 = vld [vmem:[#allocation8 + $0x738] sm:$0xff] }
 0x44e   :  { %2059 = vmatmul.f32.vlgmr.msra.gmra.mxu0 %v5016_v24  ;;  %2096 = vmatpush.msrb.mxu2 %v1761_v58  ;;  %v1127_v4 = vld [vmem:[#allocation8 + $0x80] sm:$0xff]  ;;  %v1422_v58 = vld [vmem:[#allocation8 + $0x9b8] sm:$0xff] }
 0x44f   :  { %2116 = vmatpush.msrb.mxu3 %v1841_v30  ;;  %2132 = vmatpush.msrb.mxu0 %v1142_v45  ;;  %v1207_v59 = vld [vmem:[#allocation8 + $0x300] sm:$0xff]  ;;  %v1122_v30 = vld [vmem:[#allocation8 + $0x58] sm:$0xff] }
 0x450   :  { %2152 = vmatpush.msrb.mxu1 %v1222_v47  ;;  %2097 = vmatpush.msrb.mxu2 %v1756_v49  ;;  %v1202_v45 = vld [vmem:[#allocation8 + $0x2d8] sm:$0xff]  ;;  %v1337_v47 = vld [vmem:[#allocation8 + $0x710] sm:$0xff] }
 0x451   :  { %2079 = vmatmul.f32.vlgmr.msra.gmra.mxu1 %v5019_v51  ;;  %2117 = vmatpush.msrb.mxu3 %v1836_v52  ;;  %v1417_v49 = vld [vmem:[#allocation8 + $0x990] sm:$0xff] }
 0x452   :  { %2133 = vmatpush.msrb.mxu0 %v1137_v54  ;;  %2153 = vmatpush.msrb.mxu1 %v1217_v46  ;;  %v1117_v52 = vld [vmem:[#allocation8 + $0x30] sm:$0xff]  ;;  %v1332_v46 = vld [vmem:[#allocation8 + $0x6e8] sm:$0xff] }
 0x453   :  { %2098 = vmatpush.msrb.mxu2 %v1751_v61  ;;  %2118 = vmatpush.msrb.mxu3 %v1831_v13  ;;  %v1197_v54 = vld [vmem:[#allocation8 + $0x2b0] sm:$0xff]  ;;  %v1412_v61 = vld [vmem:[#allocation8 + $0x968] sm:$0xff] }
 0x454   :  { %2134 = vmatpush.msrb.mxu0 %v1132_v34  ;;  %2154 = vmatpush.msrb.mxu1 %v1212_v2  ;;  %v1112_v13 = vld [vmem:[#allocation8 + $0x8] sm:$0xff]  ;;  %v1327_v2 = vld [vmem:[#allocation8 + $0x6c0] sm:$0xff] }
 0x455   :  { %2099 = vmatmul.f32.vlgmr.msrb.gmra.mxu2 %v4725_v32  ;;  %2119 = vmatmul.f32.vlgmr.msrb.gmra.mxu3 %v4714_v17  ;;  %v1192_v34 = vld [vmem:[#allocation8 + $0x288] sm:$0xff] }
 0x456   :  { %2163 = vmatpush.msra.mxu2 %v1347_v5  ;;  %2183 = vmatpush.msra.mxu3 %v1427_v11  ;;  %v1407_v5 = vld [vmem:[#allocation8 + $0x940] sm:$0xff] }
 0x457   :  { %2135 = vmatpush.msrb.mxu0 %v1127_v4  ;;  %2155 = vmatpush.msrb.mxu1 %v1207_v59  ;;  %v1507_v11 = vld [vmem:[#allocation8 + $0xc60] sm:$0xff]  ;;  %v1322_v59 = vld [vmem:[#allocation8 + $0x698] sm:$0xff] }
 0x458   :  { %2164 = vmatpush.msra.mxu2 %v1342_v15  ;;  %2184 = vmatpush.msra.mxu3 %v1422_v58  ;;  %v1587_v4 = vld [vmem:[#allocation8 + $0xee0] sm:$0xff]  ;;  %v1402_v15 = vld [vmem:[#allocation8 + $0x918] sm:$0xff] }
 0x459   :  { %2136 = vmatpush.msrb.mxu0 %v1122_v30  ;;  %2156 = vmatpush.msrb.mxu1 %v1202_v45  ;;  %v1502_v58 = vld [vmem:[#allocation8 + $0xc38] sm:$0xff]  ;;  %v1317_v45 = vld [vmem:[#allocation8 + $0x670] sm:$0xff] }
 0x45a   :  { %2165 = vmatpush.msra.mxu2 %v1337_v47  ;;  %2185 = vmatpush.msra.mxu3 %v1417_v49  ;;  %v1582_v30 = vld [vmem:[#allocation8 + $0xeb8] sm:$0xff]  ;;  %v1397_v47 = vld [vmem:[#allocation8 + $0x8f0] sm:$0xff] }
 0x45b   :  { %2137 = vmatpush.msrb.mxu0 %v1117_v52  ;;  %2157 = vmatpush.msrb.mxu1 %v1197_v54  ;;  %v1497_v49 = vld [vmem:[#allocation8 + $0xc10] sm:$0xff]  ;;  %v1312_v54 = vld [vmem:[#allocation8 + $0x648] sm:$0xff] }
 0x45c   :  { %2166 = vmatpush.msra.mxu2 %v1332_v46  ;;  %2186 = vmatpush.msra.mxu3 %v1412_v61  ;;  %v1577_v52 = vld [vmem:[#allocation8 + $0xe90] sm:$0xff]  ;;  %v1392_v46 = vld [vmem:[#allocation8 + $0x8c8] sm:$0xff] }
 0x45d   :  { %2138 = vmatpush.msrb.mxu0 %v1112_v13  ;;  %2158 = vmatpush.msrb.mxu1 %v1192_v34  ;;  %v1492_v61 = vld [vmem:[#allocation8 + $0xbe8] sm:$0xff]  ;;  %v1307_v34 = vld [vmem:[#allocation8 + $0x620] sm:$0xff] }
 0x45e   :  { %2167 = vmatpush.msra.mxu2 %v1327_v2  ;;  %2187 = vmatpush.msra.mxu3 %v1407_v5  ;;  %v1572_v13 = vld [vmem:[#allocation8 + $0xe68] sm:$0xff]  ;;  %v1387_v2 = vld [vmem:[#allocation8 + $0x8a0] sm:$0xff] }
 0x45f   :  { %2203 = vmatpush.msra.mxu0 %v1507_v11  ;;  %2223 = vmatpush.msra.mxu1 %v1587_v4  ;;  %v1487_v5 = vld [vmem:[#allocation8 + $0xbc0] sm:$0xff]  ;;  %v1302_v4 = vld [vmem:[#allocation8 + $0x5f8] sm:$0xff] }
 0x460   :  { %2168 = vmatpush.msra.mxu2 %v1322_v59  ;;  %2188 = vmatpush.msra.mxu3 %v1402_v15  ;;  %v1567_v11 = vld [vmem:[#allocation8 + $0xe40] sm:$0xff]  ;;  %v1382_v59 = vld [vmem:[#allocation8 + $0x878] sm:$0xff] }
 0x461   :  { %2204 = vmatpush.msra.mxu0 %v1502_v58  ;;  %2224 = vmatpush.msra.mxu1 %v1582_v30  ;;  %v1482_v15 = vld [vmem:[#allocation8 + $0xb98] sm:$0xff]  ;;  %v1297_v30 = vld [vmem:[#allocation8 + $0x5d0] sm:$0xff] }
 0x462   :  { %2169 = vmatpush.msra.mxu2 %v1317_v45  ;;  %2189 = vmatpush.msra.mxu3 %v1397_v47  ;;  %v1562_v58 = vld [vmem:[#allocation8 + $0xe18] sm:$0xff]  ;;  %v1377_v45 = vld [vmem:[#allocation8 + $0x850] sm:$0xff] }
 0x463   :  { %2205 = vmatpush.msra.mxu0 %v1497_v49  ;;  %2225 = vmatpush.msra.mxu1 %v1577_v52  ;;  %v1477_v47 = vld [vmem:[#allocation8 + $0xb70] sm:$0xff]  ;;  %v1292_v52 = vld [vmem:[#allocation8 + $0x5a8] sm:$0xff] }
 0x464   :  { %2170 = vmatpush.msra.mxu2 %v1312_v54  ;;  %2190 = vmatpush.msra.mxu3 %v1392_v46  ;;  %v1557_v49 = vld [vmem:[#allocation8 + $0xdf0] sm:$0xff]  ;;  %v1372_v54 = vld [vmem:[#allocation8 + $0x828] sm:$0xff] }
 0x465   :  { %2206 = vmatpush.msra.mxu0 %v1492_v61  ;;  %2226 = vmatpush.msra.mxu1 %v1572_v13  ;;  %v1472_v46 = vld [vmem:[#allocation8 + $0xb48] sm:$0xff]  ;;  %v1287_v13 = vld [vmem:[#allocation8 + $0x580] sm:$0xff] }
 0x466   :  { %2171 = vmatpush.msra.mxu2 %v1307_v34  ;;  %2191 = vmatpush.msra.mxu3 %v1387_v2  ;;  %v1552_v61 = vld [vmem:[#allocation8 + $0xdc8] sm:$0xff]  ;;  %v1367_v34 = vld [vmem:[#allocation8 + $0x800] sm:$0xff] }
 0x467   :  { %2207 = vmatpush.msra.mxu0 %v1487_v5  ;;  %2227 = vmatpush.msra.mxu1 %v1567_v11  ;;  %v1467_v2 = vld [vmem:[#allocation8 + $0xb20] sm:$0xff]  ;;  %v1282_v11 = vld [vmem:[#allocation8 + $0x558] sm:$0xff] }
 0x468   :  { %2172 = vmatpush.msra.mxu2 %v1302_v4  ;;  %2192 = vmatpush.msra.mxu3 %v1382_v59  ;;  %v1547_v5 = vld [vmem:[#allocation8 + $0xda0] sm:$0xff]  ;;  %v1362_v4 = vld [vmem:[#allocation8 + $0x7d8] sm:$0xff] }
 0x469   :  { %2208 = vmatpush.msra.mxu0 %v1482_v15  ;;  %2228 = vmatpush.msra.mxu1 %v1562_v58  ;;  %v1462_v59 = vld [vmem:[#allocation8 + $0xaf8] sm:$0xff]  ;;  %v1277_v58 = vld [vmem:[#allocation8 + $0x530] sm:$0xff] }
 0x46a   :  { %2173 = vmatpush.msra.mxu2 %v1297_v30  ;;  %2193 = vmatpush.msra.mxu3 %v1377_v45  ;;  %v1542_v15 = vld [vmem:[#allocation8 + $0xd78] sm:$0xff]  ;;  %v1357_v30 = vld [vmem:[#allocation8 + $0x7b0] sm:$0xff] }
 0x46b   :  { %2209 = vmatpush.msra.mxu0 %v1477_v47  ;;  %2229 = vmatpush.msra.mxu1 %v1557_v49  ;;  %v1457_v45 = vld [vmem:[#allocation8 + $0xad0] sm:$0xff]  ;;  %v1272_v49 = vld [vmem:[#allocation8 + $0x508] sm:$0xff] }
 0x46c   :  { %2174 = vmatpush.msra.mxu2 %v1292_v52  ;;  %2194 = vmatpush.msra.mxu3 %v1372_v54  ;;  %v1537_v47 = vld [vmem:[#allocation8 + $0xd50] sm:$0xff]  ;;  %v1352_v52 = vld [vmem:[#allocation8 + $0x788] sm:$0xff] }
 0x46d   :  { %2210 = vmatpush.msra.mxu0 %v1472_v46  ;;  %2230 = vmatpush.msra.mxu1 %v1552_v61  ;;  %v1452_v54 = vld [vmem:[#allocation8 + $0xaa8] sm:$0xff]  ;;  %v1667_v61 = vld [vmem:[#allocation8 + $0x1160] sm:$0xff] }
 0x46e   :  { %2175 = vmatpush.msra.mxu2 %v1287_v13  ;;  %2195 = vmatpush.msra.mxu3 %v1367_v34  ;;  %v1532_v46 = vld [vmem:[#allocation8 + $0xd28] sm:$0xff]  ;;  %v1747_v13 = vld [vmem:[#allocation8 + $0x13e0] sm:$0xff] }
 0x46f   :  { %2211 = vmatpush.msra.mxu0 %v1467_v2  ;;  %2231 = vmatpush.msra.mxu1 %v1547_v5  ;;  %v1447_v34 = vld [vmem:[#allocation8 + $0xa80] sm:$0xff]  ;;  %v1662_v5 = vld [vmem:[#allocation8 + $0x1138] sm:$0xff] }
 0x470   :  { %2176 = vmatpush.msra.mxu2 %v1282_v11  ;;  %2196 = vmatpush.msra.mxu3 %v1362_v4  ;;  %v1527_v2 = vld [vmem:[#allocation8 + $0xd00] sm:$0xff]  ;;  %v1742_v11 = vld [vmem:[#allocation8 + $0x13b8] sm:$0xff] }
 0x471   :  { %2212 = vmatpush.msra.mxu0 %v1462_v59  ;;  %2232 = vmatpush.msra.mxu1 %v1542_v15  ;;  %v1442_v4 = vld [vmem:[#allocation8 + $0xa58] sm:$0xff]  ;;  %v1657_v15 = vld [vmem:[#allocation8 + $0x1110] sm:$0xff] }
 0x472   :  { %2177 = vmatpush.msra.mxu2 %v1277_v58  ;;  %2197 = vmatpush.msra.mxu3 %v1357_v30  ;;  %v1522_v59 = vld [vmem:[#allocation8 + $0xcd8] sm:$0xff]  ;;  %v1737_v58 = vld [vmem:[#allocation8 + $0x1390] sm:$0xff] }
 0x473   :  { %2213 = vmatpush.msra.mxu0 %v1457_v45  ;;  %2233 = vmatpush.msra.mxu1 %v1537_v47  ;;  %v1437_v30 = vld [vmem:[#allocation8 + $0xa30] sm:$0xff]  ;;  %v1652_v47 = vld [vmem:[#allocation8 + $0x10e8] sm:$0xff] }
 0x474   :  { %2178 = vmatpush.msra.mxu2 %v1272_v49  ;;  %2198 = vmatpush.msra.mxu3 %v1352_v52  ;;  %v1517_v45 = vld [vmem:[#allocation8 + $0xcb0] sm:$0xff]  ;;  %v1732_v49 = vld [vmem:[#allocation8 + $0x1368] sm:$0xff] }
 0x475   :  { %2214 = vmatpush.msra.mxu0 %v1452_v54  ;;  %2234 = vmatpush.msra.mxu1 %v1532_v46  ;;  %v1432_v52 = vld [vmem:[#allocation8 + $0xa08] sm:$0xff]  ;;  %v1647_v46 = vld [vmem:[#allocation8 + $0x10c0] sm:$0xff] }
 0x476   :  { %2243 = vmatpush.msrb.mxu2 %v1667_v61  ;;  %2263 = vmatpush.msrb.mxu3 %v1747_v13  ;;  %v1512_v54 = vld [vmem:[#allocation8 + $0xc88] sm:$0xff]  ;;  %v1727_v61 = vld [vmem:[#allocation8 + $0x1340] sm:$0xff] }
 0x477   :  { %2215 = vmatpush.msra.mxu0 %v1447_v34  ;;  %2235 = vmatpush.msra.mxu1 %v1527_v2  ;;  %v1827_v13 = vld [vmem:[#allocation8 + $0x1660] sm:$0xff]  ;;  %v1642_v2 = vld [vmem:[#allocation8 + $0x1098] sm:$0xff] }
 0x478   :  { %2244 = vmatpush.msrb.mxu2 %v1662_v5  ;;  %2264 = vmatpush.msrb.mxu3 %v1742_v11  ;;  %v1907_v34 = vld [vmem:[#allocation8 + $0x18e0] sm:$0xff]  ;;  %v1722_v5 = vld [vmem:[#allocation8 + $0x1318] sm:$0xff] }
 0x479   :  { %2216 = vmatpush.msra.mxu0 %v1442_v4  ;;  %2236 = vmatpush.msra.mxu1 %v1522_v59  ;;  %v1822_v11 = vld [vmem:[#allocation8 + $0x1638] sm:$0xff]  ;;  %v1637_v59 = vld [vmem:[#allocation8 + $0x1070] sm:$0xff] }
 0x47a   :  { %2245 = vmatpush.msrb.mxu2 %v1657_v15  ;;  %2265 = vmatpush.msrb.mxu3 %v1737_v58  ;;  %v1902_v4 = vld [vmem:[#allocation8 + $0x18b8] sm:$0xff]  ;;  %v1717_v15 = vld [vmem:[#allocation8 + $0x12f0] sm:$0xff] }
 0x47b   :  { %2217 = vmatpush.msra.mxu0 %v1437_v30  ;;  %2237 = vmatpush.msra.mxu1 %v1517_v45  ;;  %v1817_v58 = vld [vmem:[#allocation8 + $0x1610] sm:$0xff]  ;;  %v1632_v45 = vld [vmem:[#allocation8 + $0x1048] sm:$0xff] }
 0x47c   :  { %2246 = vmatpush.msrb.mxu2 %v1652_v47  ;;  %2266 = vmatpush.msrb.mxu3 %v1732_v49  ;;  %v1897_v30 = vld [vmem:[#allocation8 + $0x1890] sm:$0xff]  ;;  %v1712_v47 = vld [vmem:[#allocation8 + $0x12c8] sm:$0xff] }
 0x47d   :  { %2218 = vmatpush.msra.mxu0 %v1432_v52  ;;  %2238 = vmatpush.msra.mxu1 %v1512_v54  ;;  %v1812_v49 = vld [vmem:[#allocation8 + $0x15e8] sm:$0xff]  ;;  %v1627_v54 = vld [vmem:[#allocation8 + $0x1020] sm:$0xff] }
 0x47e   :  { %2139 = vmatmul.f32.vlgmr.msrb.gmra.mxu0 %v4995_v7  ;;  %2159 = vmatmul.f32.vlgmr.msrb.gmra.mxu1 %v4997_v10  ;;  %v1892_v52 = vld [vmem:[#allocation8 + $0x1868] sm:$0xff] }
 0x47f   :  { %2247 = vmatpush.msrb.mxu2 %v1647_v46  ;;  %2267 = vmatpush.msrb.mxu3 %v1727_v61  ;;  %v1707_v46 = vld [vmem:[#allocation8 + $0x12a0] sm:$0xff] }
 0x480   :  { %2283 = vmatpush.msrb.mxu0 %v1827_v13  ;;  %2303 = vmatpush.msrb.mxu1 %v1907_v34  ;;  %v1807_v61 = vld [vmem:[#allocation8 + $0x15c0] sm:$0xff]  ;;  %v1622_v34 = vld [vmem:[#allocation8 + $0xff8] sm:$0xff] }
 0x481   :  { %2248 = vmatpush.msrb.mxu2 %v1642_v2  ;;  %2268 = vmatpush.msrb.mxu3 %v1722_v5  ;;  %v1887_v13 = vld [vmem:[#allocation8 + $0x1840] sm:$0xff]  ;;  %v1702_v2 = vld [vmem:[#allocation8 + $0x1278] sm:$0xff] }
 0x482   :  { %2284 = vmatpush.msrb.mxu0 %v1822_v11  ;;  %2304 = vmatpush.msrb.mxu1 %v1902_v4  ;;  %v1802_v5 = vld [vmem:[#allocation8 + $0x1598] sm:$0xff]  ;;  %v1617_v4 = vld [vmem:[#allocation8 + $0xfd0] sm:$0xff] }
 0x483   :  { %2249 = vmatpush.msrb.mxu2 %v1637_v59  ;;  %2269 = vmatpush.msrb.mxu3 %v1717_v15  ;;  %v1882_v11 = vld [vmem:[#allocation8 + $0x1818] sm:$0xff]  ;;  %v1697_v59 = vld [vmem:[#allocation8 + $0x1250] sm:$0xff] }
 0x484   :  { %2285 = vmatpush.msrb.mxu0 %v1817_v58  ;;  %2305 = vmatpush.msrb.mxu1 %v1897_v30  ;;  %v1797_v15 = vld [vmem:[#allocation8 + $0x1570] sm:$0xff]  ;;  %v1612_v30 = vld [vmem:[#allocation8 + $0xfa8] sm:$0xff] }
 0x485   :  { %2250 = vmatpush.msrb.mxu2 %v1632_v45  ;;  %2270 = vmatpush.msrb.mxu3 %v1712_v47  ;;  %v1877_v58 = vld [vmem:[#allocation8 + $0x17f0] sm:$0xff]  ;;  %v1692_v45 = vld [vmem:[#allocation8 + $0x1228] sm:$0xff] }
 0x486   :  { %2286 = vmatpush.msrb.mxu0 %v1812_v49  ;;  %2306 = vmatpush.msrb.mxu1 %v1892_v52  ;;  %v1792_v47 = vld [vmem:[#allocation8 + $0x1548] sm:$0xff]  ;;  %v1687_v52 = vld [vmem:[#allocation8 + $0x1200] sm:$0xff] }
 0x487   :  { %2251 = vmatpush.msrb.mxu2 %v1627_v54  ;;  %2271 = vmatpush.msrb.mxu3 %v1707_v46  ;;  %v1872_v49 = vld [vmem:[#allocation8 + $0x17c8] sm:$0xff]  ;;  %v1607_v54 = vld [vmem:[#allocation8 + $0xf80] sm:$0xff] }
 0x488   :  { %2287 = vmatpush.msrb.mxu0 %v1807_v61  ;;  %2307 = vmatpush.msrb.mxu1 %v1887_v13  ;;  %v1787_v46 = vld [vmem:[#allocation8 + $0x1520] sm:$0xff]  ;;  %v1602_v13 = vld [vmem:[#allocation8 + $0xf58] sm:$0xff] }
 0x489   :  { %2252 = vmatpush.msrb.mxu2 %v1622_v34  ;;  %2272 = vmatpush.msrb.mxu3 %v1702_v2  ;;  %v1867_v61 = vld [vmem:[#allocation8 + $0x17a0] sm:$0xff]  ;;  %v1682_v34 = vld [vmem:[#allocation8 + $0x11d8] sm:$0xff] }
 0x48a   :  { %2288 = vmatpush.msrb.mxu0 %v1802_v5  ;;  %2308 = vmatpush.msrb.mxu1 %v1882_v11  ;;  %v1782_v2 = vld [vmem:[#allocation8 + $0x14f8] sm:$0xff]  ;;  %v1597_v11 = vld [vmem:[#allocation8 + $0xf30] sm:$0xff] }
 0x48b   :  { %2253 = vmatpush.msrb.mxu2 %v1617_v4  ;;  %2273 = vmatpush.msrb.mxu3 %v1697_v59  ;;  %v1862_v5 = vld [vmem:[#allocation8 + $0x1778] sm:$0xff]  ;;  %v1677_v4 = vld [vmem:[#allocation8 + $0x11b0] sm:$0xff] }
 0x48c   :  { %2289 = vmatpush.msrb.mxu0 %v1797_v15  ;;  %2309 = vmatpush.msrb.mxu1 %v1877_v58  ;;  %v1777_v59 = vld [vmem:[#allocation8 + $0x14d0] sm:$0xff]  ;;  %v1592_v58 = vld [vmem:[#allocation8 + $0xf08] sm:$0xff] }
 0x48d   :  { %2254 = vmatpush.msrb.mxu2 %v1612_v30  ;;  %2274 = vmatpush.msrb.mxu3 %v1692_v45  ;;  %v1857_v15 = vld [vmem:[#allocation8 + $0x1750] sm:$0xff]  ;;  %v1672_v30 = vld [vmem:[#allocation8 + $0x1188] sm:$0xff] }
 0x48e   :  { %2290 = vmatpush.msrb.mxu0 %v1792_v47  ;;  %2310 = vmatpush.msrb.mxu1 %v1872_v49  ;;  %v1772_v45 = vld [vmem:[#allocation8 + $0x14a8] sm:$0xff] }
 0x48f   :  { %2179 = vmatmul.f32.vlgmr.msra.gmra.mxu2 %v5002_v48  ;;  %2275 = vmatpush.msrb.mxu3 %v1687_v52  ;;  %v1852_v47 = vld [vmem:[#allocation8 + $0x1728] sm:$0xff] }
 0x490   :  { %2255 = vmatpush.msrb.mxu2 %v1607_v54  ;;  %2291 = vmatpush.msrb.mxu0 %v1787_v46  ;;  %v1268_v49 = vld [vmem:[#allocation8 + $0x4e8] sm:$0xff]  ;;  %v1767_v54 = vld [vmem:[#allocation8 + $0x1480] sm:$0xff] }
 0x491   :  { %2311 = vmatpush.msrb.mxu1 %v1867_v61  ;;  %2199 = vmatmul.f32.vlgmr.msra.gmra.mxu3 %v5004_v60  ;;  %v1188_v52 = vld [vmem:[#allocation8 + $0x268] sm:$0xff]  ;;  %v1847_v46 = vld [vmem:[#allocation8 + $0x1700] sm:$0xff] }
 0x492   :  { %2256 = vmatpush.msrb.mxu2 %v1602_v13  ;;  %2276 = vmatpush.msrb.mxu3 %v1682_v34  ;;  %v1183_v61 = vld [vmem:[#allocation8 + $0x240] sm:$0xff]  ;;  %v1762_v34 = vld [vmem:[#allocation8 + $0x1458] sm:$0xff] }
 0x493   :  { %2292 = vmatpush.msrb.mxu0 %v1782_v2  ;;  %2312 = vmatpush.msrb.mxu1 %v1862_v5  ;;  %v1263_v13 = vld [vmem:[#allocation8 + $0x4c0] sm:$0xff]  ;;  %v1842_v2 = vld [vmem:[#allocation8 + $0x16d8] sm:$0xff] }
 0x494   :  { %2257 = vmatpush.msrb.mxu2 %v1597_v11  ;;  %2277 = vmatpush.msrb.mxu3 %v1677_v4  ;;  %v1178_v5 = vld [vmem:[#allocation8 + $0x218] sm:$0xff]  ;;  %v1757_v4 = vld [vmem:[#allocation8 + $0x1430] sm:$0xff] }
 0x495   :  { %2293 = vmatpush.msrb.mxu0 %v1777_v59  ;;  %2313 = vmatpush.msrb.mxu1 %v1857_v15  ;;  %v1258_v11 = vld [vmem:[#allocation8 + $0x498] sm:$0xff]  ;;  %v1837_v59 = vld [vmem:[#allocation8 + $0x16b0] sm:$0xff] }
 0x496   :  { %2258 = vmatpush.msrb.mxu2 %v1592_v58  ;;  %2278 = vmatpush.msrb.mxu3 %v1672_v30  ;;  %v1173_v15 = vld [vmem:[#allocation8 + $0x1f0] sm:$0xff]  ;;  %v1752_v58 = vld [vmem:[#allocation8 + $0x1408] sm:$0xff] }
 0x497   :  { %2294 = vmatpush.msrb.mxu0 %v1772_v45  ;;  %2314 = vmatpush.msrb.mxu1 %v1852_v47  ;;  %v1832_v30 = vld [vmem:[#allocation8 + $0x1688] sm:$0xff] }
 0x498   :  { %2219 = vmatmul.f32.vlgmr.msra.gmra.mxu0 %v5009_v25  ;;  %2239 = vmatmul.f32.vlgmr.msra.gmra.mxu1 %v5011_v41  ;;  %v1168_v45 = vld [vmem:[#allocation8 + $0x1c8] sm:$0xff] }
 0x499   :  { %2259 = vmatmul.f32.vlgmr.msrb.gmra.mxu2 %v5016_v24  ;;  %2343 = vmatpush.msra.mxu3 %v1268_v49  ;;  %v1253_v24 = vld [vmem:[#allocation8 + $0x470] sm:$0xff]  ;;  %v1348_v47 = vld [vmem:[#allocation8 + $0x768] sm:$0xff] }
 0x49a   :  { %2323 = vmatpush.msra.mxu2 %v1188_v52  ;;  %2295 = vmatpush.msrb.mxu0 %v1767_v54  ;;  %v1428_v49 = vld [vmem:[#allocation8 + $0x9e8] sm:$0xff]  ;;  %v1163_v52 = vld [vmem:[#allocation8 + $0x1a0] sm:$0xff] }
 0x49b   :  { %2315 = vmatpush.msrb.mxu1 %v1847_v46  ;;  %2279 = vmatmul.f32.vlgmr.msrb.gmra.mxu3 %v5019_v51  ;;  %v1248_v51 = vld [vmem:[#allocation8 + $0x448] sm:$0xff]  ;;  %v1243_v54 = vld [vmem:[#allocation8 + $0x420] sm:$0xff] }
 0x49c   :  { %2324 = vmatpush.msra.mxu2 %v1183_v61  ;;  %2344 = vmatpush.msra.mxu3 %v1263_v13  ;;  %v1343_v46 = vld [vmem:[#allocation8 + $0x740] sm:$0xff]  ;;  %v1158_v13 = vld [vmem:[#allocation8 + $0x178] sm:$0xff] }
 0x49d   :  { %2296 = vmatpush.msrb.mxu0 %v1762_v34  ;;  %2316 = vmatpush.msrb.mxu1 %v1842_v2  ;;  %v1423_v61 = vld [vmem:[#allocation8 + $0x9c0] sm:$0xff]  ;;  %v1238_v34 = vld [vmem:[#allocation8 + $0x3f8] sm:$0xff] }
 0x49e   :  { %2325 = vmatpush.msra.mxu2 %v1178_v5  ;;  %2345 = vmatpush.msra.mxu3 %v1258_v11  ;;  %v1338_v2 = vld [vmem:[#allocation8 + $0x718] sm:$0xff]  ;;  %v1153_v11 = vld [vmem:[#allocation8 + $0x150] sm:$0xff] }
 0x49f   :  { %2297 = vmatpush.msrb.mxu0 %v1757_v4  ;;  %2317 = vmatpush.msrb.mxu1 %v1837_v59  ;;  %v1418_v5 = vld [vmem:[#allocation8 + $0x998] sm:$0xff]  ;;  %v1233_v4 = vld [vmem:[#allocation8 + $0x3d0] sm:$0xff] }
 0x4a0   :  { %2326 = vmatpush.msra.mxu2 %v1173_v15  ;;  %2346 = vmatpush.msra.mxu3 %v1253_v24  ;;  %v1333_v59 = vld [vmem:[#allocation8 + $0x6f0] sm:$0xff]  ;;  %v1148_v24 = vld [vmem:[#allocation8 + $0x128] sm:$0xff] }
 0x4a1   :  { %2298 = vmatpush.msrb.mxu0 %v1752_v58  ;;  %2318 = vmatpush.msrb.mxu1 %v1832_v30  ;;  %v1413_v15 = vld [vmem:[#allocation8 + $0x970] sm:$0xff]  ;;  %v1228_v58 = vld [vmem:[#allocation8 + $0x3a8] sm:$0xff] }
 0x4a2   :  { %2299 = vmatmul.f32.vlgmr.msrb.gmra.mxu0 %v4725_v32  ;;  %2319 = vmatmul.f32.vlgmr.msrb.gmra.mxu1 %v4714_v17  ;;  %v1328_v30 = vld [vmem:[#allocation8 + $0x6c8] sm:$0xff] }
 0x4a3   :  { %2327 = vmatpush.msra.mxu2 %v1168_v45  ;;  %2347 = vmatpush.msra.mxu3 %v1248_v51  ;;  %v1408_v45 = vld [vmem:[#allocation8 + $0x948] sm:$0xff]  ;;  %v1143_v51 = vld [vmem:[#allocation8 + $0x100] sm:$0xff] }
 0x4a4   :  { %2363 = vmatpush.msra.mxu0 %v1348_v47  ;;  %2383 = vmatpush.msra.mxu1 %v1428_v49  ;;  %v1223_v47 = vld [vmem:[#allocation8 + $0x380] sm:$0xff] }
 0x4a5   :  { %2328 = vmatpush.msra.mxu2 %v1163_v52  ;;  %2348 = vmatpush.msra.mxu3 %v1243_v54  ;;  %v1323_v49 = vld [vmem:[#allocation8 + $0x6a0] sm:$0xff]  ;;  %v1138_v54 = vld [vmem:[#allocation8 + $0xd8] sm:$0xff] }
 0x4a6   :  { %2364 = vmatpush.msra.mxu0 %v1343_v46  ;;  %2384 = vmatpush.msra.mxu1 %v1423_v61  ;;  %v1403_v52 = vld [vmem:[#allocation8 + $0x920] sm:$0xff]  ;;  %v1218_v46 = vld [vmem:[#allocation8 + $0x358] sm:$0xff] }
 0x4a7   :  { %2329 = vmatpush.msra.mxu2 %v1158_v13  ;;  %2349 = vmatpush.msra.mxu3 %v1238_v34  ;;  %v1318_v61 = vld [vmem:[#allocation8 + $0x678] sm:$0xff]  ;;  %v1133_v34 = vld [vmem:[#allocation8 + $0xb0] sm:$0xff] }
 0x4a8   :  { %2365 = vmatpush.msra.mxu0 %v1338_v2  ;;  %2385 = vmatpush.msra.mxu1 %v1418_v5  ;;  %v1398_v13 = vld [vmem:[#allocation8 + $0x8f8] sm:$0xff]  ;;  %v1213_v2 = vld [vmem:[#allocation8 + $0x330] sm:$0xff] }
 0x4a9   :  { %2330 = vmatpush.msra.mxu2 %v1153_v11  ;;  %2350 = vmatpush.msra.mxu3 %v1233_v4  ;;  %v1313_v5 = vld [vmem:[#allocation8 + $0x650] sm:$0xff] }
 0x4aa   :  { %2366 = vmatpush.msra.mxu0 %v1333_v59  ;;  %2386 = vmatpush.msra.mxu1 %v1413_v15  ;;  %v1393_v11 = vld [vmem:[#allocation8 + $0x8d0] sm:$0xff]  ;;  %v1128_v59 = vld [vmem:[#allocation8 + $0x88] sm:$0xff] }
 0x4ab   :  { %2331 = vmatpush.msra.mxu2 %v1148_v24  ;;  %2351 = vmatpush.msra.mxu3 %v1228_v58  ;;  %v1911_v4 = vld [vmem:[#allocation10] ss:$4 sm:$0x1f] }
 0x4ac   :  { %2367 = vmatpush.msra.mxu0 %v1328_v30  ;;  %2387 = vmatpush.msra.mxu1 %v1408_v45  ;;  %v1208_v15 = vld [vmem:[#allocation8 + $0x308] sm:$0xff]  ;;  %v1123_v30 = vld [vmem:[#allocation8 + $0x60] sm:$0xff] }
 0x4ad   :  { %2332 = vmatpush.msra.mxu2 %v1143_v51  ;;  %2352 = vmatpush.msra.mxu3 %v1223_v47  ;;  %v1308_v24 = vld [vmem:[#allocation8 + $0x628] sm:$0xff]  ;;  %v1203_v45 = vld [vmem:[#allocation8 + $0x2e0] sm:$0xff]  ;;  %v1913_v51 = vperm.slane %v1911_v4, 0  ;;  %v1293_v4 = vld [vmem:[#allocation8 + $0x5b0] sm:$0xff] }
 0x4ae   :  { %2368 = vmatpush.msra.mxu0 %v1323_v49  ;;  %2388 = vmatpush.msra.mxu1 %v1403_v52  ;;  %v1388_v58 = vld [vmem:[#allocation8 + $0x8a8] sm:$0xff]  ;;  %v1303_v47 = vld [vmem:[#allocation8 + $0x600] sm:$0xff]  ;;  %v1118_v52 = vld [vmem:[#allocation8 + $0x38] sm:$0xff] }
 0x4af   :  { %2333 = vmatpush.msra.mxu2 %v1138_v54  ;;  %2353 = vmatpush.msra.mxu3 %v1218_v46  ;;  %v1383_v49 = vld [vmem:[#allocation8 + $0x880] sm:$0xff]  ;;  %v1198_v54 = vld [vmem:[#allocation8 + $0x2b8] sm:$0xff] }
 0x4b0   :  { %2369 = vmatpush.msra.mxu0 %v1318_v61  ;;  %2389 = vmatpush.msra.mxu1 %v1398_v13  ;;  %v1298_v46 = vld [vmem:[#allocation8 + $0x5d8] sm:$0xff] }
 0x4b1   :  { %2334 = vmatpush.msra.mxu2 %v1133_v34  ;;  %2354 = vmatpush.msra.mxu3 %v1213_v2  ;;  %v1378_v61 = vld [vmem:[#allocation8 + $0x858] sm:$0xff]  ;;  %v1113_v2 = vld [vmem:[#allocation8 + $0x10] sm:$0xff] }
 0x4b2   :  { %2370 = vmatpush.msra.mxu0 %v1313_v5  ;;  %2390 = vmatpush.msra.mxu1 %v1393_v11  ;;  %v1193_v5 = vld [vmem:[#allocation8 + $0x290] sm:$0xff] }
 0x4b3   :  { %2335 = vmatpush.msra.mxu2 %v1128_v59  ;;  %2355 = vmatpush.msra.mxu3 %v1208_v15  ;;  %v1373_v59 = vld [vmem:[#allocation8 + $0x830] sm:$0xff] }
 0x4b4   :  { %2371 = vmatpush.msra.mxu0 %v1308_v24  ;;  %2391 = vmatpush.msra.mxu1 %v1388_v58  ;;  %v1508_v24 = vld [vmem:[#allocation8 + $0xc68] sm:$0xff] }
 0x4b5   :  { %2336 = vmatpush.msra.mxu2 %v1123_v30  ;;  %2356 = vmatpush.msra.mxu3 %v1203_v45  ;;  %v1940_v13 = vpop.f32.mrf.mxu2  ;;  %v1960_v34 = vpop.f32.mrf.mxu3  ;;  %v1588_v58 = vld [vmem:[#allocation8 + $0xee8] sm:$0xff] }
 0x4b6   :  { %2372 = vmatpush.msra.mxu0 %v1303_v47  ;;  %2392 = vmatpush.msra.mxu1 %v1383_v49  ;;  %v1941_v11 = vadd.f32 %v1940_v13, %v1913_v51  ;;  %v1288_v45 = vld [vmem:[#allocation8 + $0x588] sm:$0xff]  ;;  %v1503_v47 = vld [vmem:[#allocation8 + $0xc40] sm:$0xff] }
 0x4b7   :  { %2337 = vmatpush.msra.mxu2 %v1118_v52  ;;  %2357 = vmatpush.msra.mxu3 %v1198_v54  ;;  %v1980_v15 = vpop.f32.mrf.mxu0  ;;  %v2000_v53 = vpop.f32.mrf.mxu1  ;;  %v1583_v49 = vld [vmem:[#allocation8 + $0xec0] sm:$0xff] }
 0x4b8   :  { %2373 = vmatpush.msra.mxu0 %v1298_v46  ;;  %2393 = vmatpush.msra.mxu1 %v1378_v61  ;;  %v1961_v30 = vadd.f32 %v1960_v34, %v1941_v11  ;;  %v1283_v52 = vld [vmem:[#allocation8 + $0x560] sm:$0xff]  ;;  %v1498_v46 = vld [vmem:[#allocation8 + $0xc18] sm:$0xff]  ;;  %v1573_v11 = vld [vmem:[#allocation8 + $0xe70] sm:$0xff] }
 0x4b9   :  { %2338 = vmatpush.msra.mxu2 %v1113_v2  ;;  %2358 = vmatpush.msra.mxu3 %v1193_v5  ;;  %v1363_v54 = vld [vmem:[#allocation8 + $0x7e0] sm:$0xff]  ;;  %v1578_v61 = vld [vmem:[#allocation8 + $0xe98] sm:$0xff]  ;;  %v1493_v5 = vld [vmem:[#allocation8 + $0xbf0] sm:$0xff] }
 0x4ba   :  { %2374 = vmatpush.msra.mxu0 %v1293_v4  ;;  %2394 = vmatpush.msra.mxu1 %v1373_v59  ;;  %v1981_v51 = vadd.f32 %v1980_v15, %v1961_v30  ;;  %v1278_v34 = vld [vmem:[#allocation8 + $0x538] sm:$0xff]  ;;  %v1273_v4 = vld [vmem:[#allocation8 + $0x510] sm:$0xff]  ;;  %v1488_v15 = vld [vmem:[#allocation8 + $0xbc8] sm:$0xff] }
 0x4bb   :  { %2403 = vmatpush.msrb.mxu2 %v1508_v24  ;;  %2423 = vmatpush.msrb.mxu3 %v1588_v58  ;;  %v1358_v2 = vld [vmem:[#allocation8 + $0x7b8] sm:$0xff]  ;;  %v1353_v59 = vld [vmem:[#allocation8 + $0x790] sm:$0xff]  ;;  %v1568_v24 = vld [vmem:[#allocation8 + $0xe48] sm:$0xff] }
 0x4bc   :  { %2375 = vmatpush.msra.mxu0 %v1288_v45  ;;  %2395 = vmatpush.msra.mxu1 %v1368_v12  ;;  %v2001_v13 = vadd.f32 %v2000_v53, %v1981_v51  ;;  %v1668_v12 = vld [vmem:[#allocation8 + $0x1168] sm:$0xff]  ;;  %v1483_v58 = vld [vmem:[#allocation8 + $0xba0] sm:$0xff]  ;;  %v1558_v51 = vld [vmem:[#allocation8 + $0xdf8] sm:$0xff] }
 0x4bd   :  { %2404 = vmatpush.msrb.mxu2 %v1503_v47  ;;  %2424 = vmatpush.msrb.mxu3 %v1583_v49  ;;  %v1748_v53 = vld [vmem:[#allocation8 + $0x13e8] sm:$0xff]  ;;  %v1563_v30 = vld [vmem:[#allocation8 + $0xe20] sm:$0xff]  ;;  %v1478_v49 = vld [vmem:[#allocation8 + $0xb78] sm:$0xff] }
 0x4be   :  { %2376 = vmatpush.msra.mxu0 %v1283_v52  ;;  %2396 = vmatpush.msra.mxu1 %v1363_v54  ;;  %v1663_v45 = vld [vmem:[#allocation8 + $0x1140] sm:$0xff]  ;;  %v1658_v52 = vld [vmem:[#allocation8 + $0x1118] sm:$0xff] }
 0x4bf   :  { %2405 = vmatpush.msrb.mxu2 %v1498_v46  ;;  %2425 = vmatpush.msrb.mxu3 %v1578_v61  ;;  %v1743_v47 = vld [vmem:[#allocation8 + $0x13c0] sm:$0xff]  ;;  %v1738_v54 = vld [vmem:[#allocation8 + $0x1398] sm:$0xff]  ;;  %v1473_v46 = vld [vmem:[#allocation8 + $0xb50] sm:$0xff] }
 0x4c0   :  { %2377 = vmatpush.msra.mxu0 %v1278_v34  ;;  %2397 = vmatpush.msra.mxu1 %v1358_v2  ;;  %v1553_v61 = vld [vmem:[#allocation8 + $0xdd0] sm:$0xff] }
 0x4c1   :  { %2406 = vmatpush.msrb.mxu2 %v1493_v5  ;;  %2426 = vmatpush.msrb.mxu3 %v1573_v11  ;;  %v1653_v2 = vld [vmem:[#allocation8 + $0x10f0] sm:$0xff] }
 0x4c2   :  { %2378 = vmatpush.msra.mxu0 %v1273_v4  ;;  %2398 = vmatpush.msra.mxu1 %v1353_v59  ;;  %v1733_v5 = vld [vmem:[#allocation8 + $0x1370] sm:$0xff]  ;;  %v1468_v4 = vld [vmem:[#allocation8 + $0xb28] sm:$0xff] }
 0x4c3   :  { %2407 = vmatpush.msrb.mxu2 %v1488_v15  ;;  %2427 = vmatpush.msrb.mxu3 %v1568_v24  ;;  %v1548_v59 = vld [vmem:[#allocation8 + $0xda8] sm:$0xff] }
 0x4c4   :  { %2443 = vmatpush.msrb.mxu0 %v1668_v12  ;;  %2463 = vmatpush.msrb.mxu1 %v1748_v53  ;;  %v1648_v24 = vld [vmem:[#allocation8 + $0x10c8] sm:$0xff] }
 0x4c5   :  { %2408 = vmatpush.msrb.mxu2 %v1483_v58  ;;  %2428 = vmatpush.msrb.mxu3 %v1563_v30  ;;  %v1728_v12 = vld [vmem:[#allocation8 + $0x1348] sm:$0xff]  ;;  %v1463_v58 = vld [vmem:[#allocation8 + $0xb00] sm:$0xff] }
 0x4c6   :  { %2444 = vmatpush.msrb.mxu0 %v1663_v45  ;;  %2464 = vmatpush.msrb.mxu1 %v1743_v47  ;;  %v2020_v34 = vpop.f32.mrf.mxu2  ;;  %v1543_v30 = vld [vmem:[#allocation8 + $0xd80] sm:$0xff] }
 0x4c7   :  { %2409 = vmatpush.msrb.mxu2 %v1478_v49  ;;  %2429 = vmatpush.msrb.mxu3 %v1558_v51  ;;  %v2021_v11 = vadd.f32 %v2020_v34, %v2001_v13  ;;  %v1643_v45 = vld [vmem:[#allocation8 + $0x10a0] sm:$0xff]  ;;  %v1458_v13 = vld [vmem:[#allocation8 + $0xad8] sm:$0xff]  ;;  %v1533_v34 = vld [vmem:[#allocation8 + $0xd30] sm:$0xff] }
 0x4c8   :  { %2445 = vmatpush.msrb.mxu0 %v1658_v52  ;;  %2465 = vmatpush.msrb.mxu1 %v1738_v54  ;;  %v2040_v15 = vpop.f32.mrf.mxu3  ;;  %v1723_v47 = vld [vmem:[#allocation8 + $0x1320] sm:$0xff]  ;;  %v1538_v51 = vld [vmem:[#allocation8 + $0xd58] sm:$0xff] }
 0x4c9   :  { %2410 = vmatpush.msrb.mxu2 %v1473_v46  ;;  %2430 = vmatpush.msrb.mxu3 %v1553_v61  ;;  %v2041_v53 = vadd.f32 %v2040_v15, %v2021_v11  ;;  %v1638_v54 = vld [vmem:[#allocation8 + $0x1078] sm:$0xff]  ;;  %v1453_v61 = vld [vmem:[#allocation8 + $0xab0] sm:$0xff]  ;;  %v1528_v15 = vld [vmem:[#allocation8 + $0xd08] sm:$0xff] }
 0x4ca   :  { %2446 = vmatpush.msrb.mxu0 %v1653_v2  ;;  %2466 = vmatpush.msrb.mxu1 %v1733_v5  ;;  %v1718_v46 = vld [vmem:[#allocation8 + $0x12f8] sm:$0xff]  ;;  %v1633_v5 = vld [vmem:[#allocation8 + $0x1050] sm:$0xff] }
 0x4cb   :  { %2411 = vmatpush.msrb.mxu2 %v1468_v4  ;;  %2431 = vmatpush.msrb.mxu3 %v1548_v59  ;;  %v2060_v49 = vpop.f32.mrf.mxu0  ;;  %v1713_v11 = vld [vmem:[#allocation8 + $0x12d0] sm:$0xff]  ;;  %v1448_v59 = vld [vmem:[#allocation8 + $0xa88] sm:$0xff] }
 0x4cc   :  { %2447 = vmatpush.msrb.mxu0 %v1648_v24  ;;  %2467 = vmatpush.msrb.mxu1 %v1728_v12  ;;  %v2061_v52 = vadd.f32 %v2060_v49, %v2041_v53  ;;  %v1628_v24 = vld [vmem:[#allocation8 + $0x1028] sm:$0xff]  ;;  %v1443_v53 = vld [vmem:[#allocation8 + $0xa60] sm:$0xff]  ;;  %v1518_v49 = vld [vmem:[#allocation8 + $0xcb8] sm:$0xff] }
 0x4cd   :  { %2412 = vmatpush.msrb.mxu2 %v1463_v58  ;;  %2432 = vmatpush.msrb.mxu3 %v1543_v30  ;;  %v1708_v12 = vld [vmem:[#allocation8 + $0x12a8] sm:$0xff]  ;;  %v1523_v58 = vld [vmem:[#allocation8 + $0xce0] sm:$0xff] }
 0x4ce   :  { %2448 = vmatpush.msrb.mxu0 %v1643_v45  ;;  %2468 = vmatpush.msrb.mxu1 %v1723_v47  ;;  %v2080_v2 = vpop.f32.mrf.mxu1  ;;  %v1623_v30 = vld [vmem:[#allocation8 + $0x1000] sm:$0xff]  ;;  %v1438_v47 = vld [vmem:[#allocation8 + $0xa38] sm:$0xff] }
 0x4cf   :  { %2413 = vmatpush.msrb.mxu2 %v1458_v13  ;;  %2433 = vmatpush.msrb.mxu3 %v1538_v51  ;;  %v2081_v4 = vadd.f32 %v2080_v2, %v2061_v52  ;;  %v1703_v45 = vld [vmem:[#allocation8 + $0x1280] sm:$0xff]  ;;  %v1618_v13 = vld [vmem:[#allocation8 + $0xfd8] sm:$0xff]  ;;  %v1433_v52 = vld [vmem:[#allocation8 + $0xa10] sm:$0xff] }
 0x4d0   :  { %2449 = vmatpush.msrb.mxu0 %v1638_v54  ;;  %2469 = vmatpush.msrb.mxu1 %v1718_v46  ;;  %v1698_v51 = vld [vmem:[#allocation8 + $0x1258] sm:$0xff]  ;;  %v1513_v54 = vld [vmem:[#allocation8 + $0xc90] sm:$0xff]  ;;  %v1828_v2 = vld [vmem:[#allocation8 + $0x1668] sm:$0xff] }
 0x4d1   :  { %2414 = vmatpush.msrb.mxu2 %v1453_v61  ;;  %2434 = vmatpush.msrb.mxu3 %v1533_v34  ;;  %v1613_v46 = vld [vmem:[#allocation8 + $0xfb0] sm:$0xff] }
 0x4d2   :  { %2450 = vmatpush.msrb.mxu0 %v1633_v5  ;;  %2470 = vmatpush.msrb.mxu1 %v1713_v11  ;;  %v1693_v61 = vld [vmem:[#allocation8 + $0x1230] sm:$0xff]  ;;  %v1908_v5 = vld [vmem:[#allocation8 + $0x18e8] sm:$0xff] }
 0x4d3   :  { %2415 = vmatpush.msrb.mxu2 %v1448_v59  ;;  %2435 = vmatpush.msrb.mxu3 %v1528_v15  ;;  %v1608_v59 = vld [vmem:[#allocation8 + $0xf88] sm:$0xff] }
 0x4d4   :  { %2451 = vmatpush.msrb.mxu0 %v1628_v24  ;;  %2471 = vmatpush.msrb.mxu1 %v1708_v12  ;;  %v1688_v15 = vld [vmem:[#allocation8 + $0x1208] sm:$0xff]  ;;  %v1823_v12 = vld [vmem:[#allocation8 + $0x1640] sm:$0xff] }
 0x4d5   :  { %2416 = vmatpush.msrb.mxu2 %v1443_v53  ;;  %2436 = vmatpush.msrb.mxu3 %v1523_v58  ;;  %v1903_v53 = vld [vmem:[#allocation8 + $0x18c0] sm:$0xff] }
 0x4d6   :  { %2452 = vmatpush.msrb.mxu0 %v1623_v30  ;;  %2472 = vmatpush.msrb.mxu1 %v1703_v45  ;;  %v1603_v30 = vld [vmem:[#allocation8 + $0xf60] sm:$0xff] }
 0x4d7   :  { %2417 = vmatpush.msrb.mxu2 %v1438_v47  ;;  %2437 = vmatpush.msrb.mxu3 %v1518_v49  ;;  %v1683_v45 = vld [vmem:[#allocation8 + $0x11e0] sm:$0xff]  ;;  %v1898_v47 = vld [vmem:[#allocation8 + $0x1898] sm:$0xff] }
 0x4d8   :  { %2453 = vmatpush.msrb.mxu0 %v1618_v13  ;;  %2473 = vmatpush.msrb.mxu1 %v1698_v51  ;;  %v2100_v34 = vpop.f32.mrf.mxu2  ;;  %v2120_v24 = vpop.f32.mrf.mxu3  ;;  %v1598_v49 = vld [vmem:[#allocation8 + $0xf38] sm:$0xff]  ;;  %v1813_v51 = vld [vmem:[#allocation8 + $0x15f0] sm:$0xff] }
 0x4d9   :  { %2418 = vmatpush.msrb.mxu2 %v1433_v52  ;;  %2438 = vmatpush.msrb.mxu3 %v1513_v54  ;;  %v2101_v11 = vadd.f32 %v2100_v34, %v2081_v4  ;;  %v1818_v4 = vld [vmem:[#allocation8 + $0x1618] sm:$0xff]  ;;  %v1893_v52 = vld [vmem:[#allocation8 + $0x1870] sm:$0xff]  ;;  %v1808_v34 = vld [vmem:[#allocation8 + $0x15c8] sm:$0xff] }
 0x4da   :  { %2454 = vmatpush.msrb.mxu0 %v1613_v46  ;;  %2474 = vmatpush.msrb.mxu1 %v1693_v61  ;;  %v1678_v13 = vld [vmem:[#allocation8 + $0x11b8] sm:$0xff]  ;;  %v1593_v54 = vld [vmem:[#allocation8 + $0xf10] sm:$0xff]  ;;  %v1888_v61 = vld [vmem:[#allocation8 + $0x1848] sm:$0xff] }
 0x4db   :  { %2339 = vmatmul.f32.vlgmr.msra.gmra.mxu2 %v4995_v7  ;;  %2359 = vmatmul.f32.vlgmr.msra.gmra.mxu3 %v4997_v10  ;;  %v5036_v58 = vadd.f32 %v2120_v24, %v2101_v11  ;;  %v1673_v46 = vld [vmem:[#allocation8 + $0x1190] sm:$0xff]  ;;  %v1803_v11 = vld [vmem:[#allocation8 + $0x15a0] sm:$0xff]  ;;  %v1264_v24 = vld [vmem:[#allocation8 + $0x4c8] sm:$0xff] }
 0x4dc   :  { %2483 = vmatpush.msra.mxu2 %v1828_v2  ;;  %2503 = vmatpush.msra.mxu3 %v1908_v5  ;;  %v1189_v2 = vld [vmem:[#allocation8 + $0x270] sm:$0xff] }
 0x4dd   :  { %2455 = vmatpush.msrb.mxu0 %v1608_v59  ;;  %2475 = vmatpush.msrb.mxu1 %v1688_v15  ;;  %v1269_v5 = vld [vmem:[#allocation8 + $0x4f0] sm:$0xff]  ;;  %v1883_v59 = vld [vmem:[#allocation8 + $0x1820] sm:$0xff]  ;;  %v1184_v15 = vld [vmem:[#allocation8 + $0x248] sm:$0xff] }
 0x4de   :  { %2484 = vmatpush.msra.mxu2 %v1823_v12  ;;  %2504 = vmatpush.msra.mxu3 %v1903_v53  ;;  %v1798_v12 = vld [vmem:[#allocation8 + $0x1578] sm:$0xff] }
 0x4df   :  { %2456 = vmatpush.msrb.mxu0 %v1603_v30  ;;  %2476 = vmatpush.msrb.mxu1 %v1683_v45  ;;  %v1878_v53 = vld [vmem:[#allocation8 + $0x17f8] sm:$0xff]  ;;  %v1179_v30 = vld [vmem:[#allocation8 + $0x220] sm:$0xff] }
 0x4e0   :  { %2485 = vmatpush.msra.mxu2 %v1818_v4  ;;  %2505 = vmatpush.msra.mxu3 %v1898_v47  ;;  %v1259_v45 = vld [vmem:[#allocation8 + $0x4a0] sm:$0xff]  ;;  %v1793_v4 = vld [vmem:[#allocation8 + $0x1550] sm:$0xff] }
 0x4e1   :  { %2457 = vmatpush.msrb.mxu0 %v1598_v49  ;;  %2477 = vmatpush.msrb.mxu1 %v1678_v13  ;;  %v1873_v47 = vld [vmem:[#allocation8 + $0x17d0] sm:$0xff]  ;;  %v1174_v49 = vld [vmem:[#allocation8 + $0x1f8] sm:$0xff] }
 0x4e2   :  { %2486 = vmatpush.msra.mxu2 %v1813_v51  ;;  %2506 = vmatpush.msra.mxu3 %v1893_v52  ;;  %v1254_v13 = vld [vmem:[#allocation8 + $0x478] sm:$0xff]  ;;  %v1788_v51 = vld [vmem:[#allocation8 + $0x1528] sm:$0xff] }
 0x4e3   :  { %2458 = vmatpush.msrb.mxu0 %v1593_v54  ;;  %2478 = vmatpush.msrb.mxu1 %v1673_v46  ;;  %v1868_v52 = vld [vmem:[#allocation8 + $0x17a8] sm:$0xff]  ;;  %v1169_v54 = vld [vmem:[#allocation8 + $0x1d0] sm:$0xff] }
 0x4e4   :  { %2379 = vmatmul.f32.vlgmr.msra.gmra.mxu0 %v5002_v48  ;;  %2399 = vmatmul.f32.vlgmr.msra.gmra.mxu1 %v5004_v60  ;;  %v1249_v46 = vld [vmem:[#allocation8 + $0x450] sm:$0xff] }
 0x4e5   :  { %2419 = vmatmul.f32.vlgmr.msrb.gmra.mxu2 %v5009_v25  ;;  %2507 = vmatpush.msra.mxu3 %v1888_v61  ;;  %v1783_v61 = vld [vmem:[#allocation8 + $0x1500] sm:$0xff] }
 0x4e6   :  { %2487 = vmatpush.msra.mxu2 %v1808_v34  ;;  %2523 = vmatpush.msra.mxu0 %v1189_v2  ;;  %v1863_v34 = vld [vmem:[#allocation8 + $0x1780] sm:$0xff]  ;;  %v1164_v2 = vld [vmem:[#allocation8 + $0x1a8] sm:$0xff] }
 0x4e7   :  { %2543 = vmatpush.msra.mxu1 %v1269_v5  ;;  %2439 = vmatmul.f32.vlgmr.msrb.gmra.mxu3 %v5011_v41  ;;  %v1244_v5 = vld [vmem:[#allocation8 + $0x428] sm:$0xff] }
 0x4e8   :  { %2488 = vmatpush.msra.mxu2 %v1803_v11  ;;  %2508 = vmatpush.msra.mxu3 %v1883_v59  ;;  %v1778_v11 = vld [vmem:[#allocation8 + $0x14d8] sm:$0xff]  ;;  %v5042_v59 = vld.sshfl [vmem:[#allocation1] sm:$0xff pattern:$0x73625140] }
 0x4e9   :  { %2524 = vmatpush.msra.mxu0 %v1184_v15  ;;  %2544 = vmatpush.msra.mxu1 %v1264_v24  ;;  %v1858_v15 = vld [vmem:[#allocation8 + $0x1758] sm:$0xff]  ;;  %v1159_v24 = vld [vmem:[#allocation8 + $0x180] sm:$0xff] }
 0x4ea   :  { %2489 = vmatpush.msra.mxu2 %v1798_v12  ;;  %2509 = vmatpush.msra.mxu3 %v1878_v53  ;;  %v1239_v12 = vld [vmem:[#allocation8 + $0x400] sm:$0xff]  ;;  %v1773_v53 = vld [vmem:[#allocation8 + $0x14b0] sm:$0xff] }
 0x4eb   :  { %2525 = vmatpush.msra.mxu0 %v1179_v30  ;;  %2545 = vmatpush.msra.mxu1 %v1259_v45  ;;  %v1853_v30 = vld [vmem:[#allocation8 + $0x1730] sm:$0xff] }
 0x4ec   :  { %2490 = vmatpush.msra.mxu2 %v1793_v4  ;;  %2510 = vmatpush.msra.mxu3 %v1873_v47  ;;  %v5045_v45 = vld.sshfl [vmem:[#allocation1 + $0x8] sm:$0xff pattern:$0x73625140]  ;;  %v1154_v4 = vld [vmem:[#allocation8 + $0x158] sm:$0xff] }
 0x4ed   :  { %2526 = vmatpush.msra.mxu0 %v1174_v49  ;;  %2546 = vmatpush.msra.mxu1 %v1254_v13  ;;  %v1234_v47 = vld [vmem:[#allocation8 + $0x3d8] sm:$0xff]  ;;  %v1768_v49 = vld [vmem:[#allocation8 + $0x1488] sm:$0xff] }
 0x4ee   :  { %2491 = vmatpush.msra.mxu2 %v1788_v51  ;;  %2511 = vmatpush.msra.mxu3 %v1868_v52  ;;  %v1848_v13 = vld [vmem:[#allocation8 + $0x1708] sm:$0xff]  ;;  %v1149_v51 = vld [vmem:[#allocation8 + $0x130] sm:$0xff] }
 0x4ef   :  { %2527 = vmatpush.msra.mxu0 %v1169_v54  ;;  %2547 = vmatpush.msra.mxu1 %v1249_v46  ;;  %v1229_v52 = vld [vmem:[#allocation8 + $0x3b0] sm:$0xff]  ;;  %v1763_v54 = vld [vmem:[#allocation8 + $0x1460] sm:$0xff] }
 0x4f0   :  { %2459 = vmatmul.f32.vlgmr.msrb.gmra.mxu0 %v5042_v59  ;;  %2492 = vmatpush.msra.mxu2 %v1783_v61  ;;  %v1843_v46 = vld [vmem:[#allocation8 + $0x16e0] sm:$0xff]  ;;  %v1144_v61 = vld [vmem:[#allocation8 + $0x108] sm:$0xff] }
 0x4f1   :  { %2512 = vmatpush.msra.mxu3 %v1863_v34  ;;  %2528 = vmatpush.msra.mxu0 %v1164_v2  ;;  %v1224_v34 = vld [vmem:[#allocation8 + $0x388] sm:$0xff]  ;;  %v1758_v2 = vld [vmem:[#allocation8 + $0x1438] sm:$0xff] }
 0x4f2   :  { %2548 = vmatpush.msra.mxu1 %v1244_v5  ;;  %2493 = vmatpush.msra.mxu2 %v1778_v11  ;;  %v1838_v5 = vld [vmem:[#allocation8 + $0x16b8] sm:$0xff]  ;;  %v1139_v11 = vld [vmem:[#allocation8 + $0xe0] sm:$0xff] }
 0x4f3   :  { %2479 = vmatmul.f32.vlgmr.msrb.gmra.mxu1 %v5045_v45  ;;  %2513 = vmatpush.msra.mxu3 %v1858_v15  ;;  %v1219_v15 = vld [vmem:[#allocation8 + $0x360] sm:$0xff] }
 0x4f4   :  { %2529 = vmatpush.msra.mxu0 %v1159_v24  ;;  %2549 = vmatpush.msra.mxu1 %v1239_v12  ;;  %v1753_v24 = vld [vmem:[#allocation8 + $0x1410] sm:$0xff] }
 0x4f5   :  { %2494 = vmatpush.msra.mxu2 %v1773_v53  ;;  %2514 = vmatpush.msra.mxu3 %v1853_v30  ;;  %v1833_v12 = vld [vmem:[#allocation8 + $0x1690] sm:$0xff]  ;;  %v1134_v53 = vld [vmem:[#allocation8 + $0xb8] sm:$0xff] }
 0x4f6   :  { %2530 = vmatpush.msra.mxu0 %v1154_v4  ;;  %2550 = vmatpush.msra.mxu1 %v1234_v47  ;;  %v1214_v30 = vld [vmem:[#allocation8 + $0x338] sm:$0xff]  ;;  %v1349_v4 = vld [vmem:[#allocation8 + $0x770] sm:$0xff] }
 0x4f7   :  { %2495 = vmatpush.msra.mxu2 %v1768_v49  ;;  %2515 = vmatpush.msra.mxu3 %v1848_v13  ;;  %v1429_v47 = vld [vmem:[#allocation8 + $0x9f0] sm:$0xff] }
 0x4f8   :  { %2531 = vmatpush.msra.mxu0 %v1149_v51  ;;  %2551 = vmatpush.msra.mxu1 %v1229_v52  ;;  %v1129_v49 = vld [vmem:[#allocation8 + $0x90] sm:$0xff]  ;;  %v1344_v51 = vld [vmem:[#allocation8 + $0x748] sm:$0xff] }
 0x4f9   :  { %2496 = vmatpush.msra.mxu2 %v1763_v54  ;;  %2516 = vmatpush.msra.mxu3 %v1843_v46  ;;  %v1209_v13 = vld [vmem:[#allocation8 + $0x310] sm:$0xff]  ;;  %v1424_v52 = vld [vmem:[#allocation8 + $0x9c8] sm:$0xff] }
 0x4fa   :  { %2532 = vmatpush.msra.mxu0 %v1144_v61  ;;  %2552 = vmatpush.msra.mxu1 %v1224_v34  ;;  %v1124_v54 = vld [vmem:[#allocation8 + $0x68] sm:$0xff]  ;;  %v1339_v61 = vld [vmem:[#allocation8 + $0x720] sm:$0xff] }
 0x4fb   :  { %2497 = vmatpush.msra.mxu2 %v1758_v2  ;;  %2517 = vmatpush.msra.mxu3 %v1838_v5  ;;  %v1204_v46 = vld [vmem:[#allocation8 + $0x2e8] sm:$0xff]  ;;  %v1419_v34 = vld [vmem:[#allocation8 + $0x9a0] sm:$0xff] }
 0x4fc   :  { %2533 = vmatpush.msra.mxu0 %v1139_v11  ;;  %2553 = vmatpush.msra.mxu1 %v1219_v15  ;;  %v1119_v2 = vld [vmem:[#allocation8 + $0x40] sm:$0xff]  ;;  %v1334_v11 = vld [vmem:[#allocation8 + $0x6f8] sm:$0xff] }
 0x4fd   :  { %2498 = vmatpush.msra.mxu2 %v1753_v24  ;;  %2518 = vmatpush.msra.mxu3 %v1833_v12  ;;  %v1199_v5 = vld [vmem:[#allocation8 + $0x2c0] sm:$0xff]  ;;  %v1414_v15 = vld [vmem:[#allocation8 + $0x978] sm:$0xff] }
 0x4fe   :  { %2534 = vmatpush.msra.mxu0 %v1134_v53  ;;  %2554 = vmatpush.msra.mxu1 %v1214_v30  ;;  %v1114_v24 = vld [vmem:[#allocation8 + $0x18] sm:$0xff]  ;;  %v1329_v53 = vld [vmem:[#allocation8 + $0x6d0] sm:$0xff] }
 0x4ff   :  { %2499 = vmatmul.f32.vlgmr.msra.gmra.mxu2 %v4725_v32  ;;  %2519 = vmatmul.f32.vlgmr.msra.gmra.mxu3 %v4714_v17  ;;  %v1194_v12 = vld [vmem:[#allocation8 + $0x298] sm:$0xff]  ;;  %v1409_v30 = vld [vmem:[#allocation8 + $0x950] sm:$0xff] }
 0x500   :  { %2563 = vmatpush.msrb.mxu2 %v1349_v4  ;;  %2583 = vmatpush.msrb.mxu3 %v1429_v47  ;;  %v1509_v4 = vld [vmem:[#allocation8 + $0xc70] sm:$0xff] }
 0x501   :  { %2535 = vmatpush.msra.mxu0 %v1129_v49  ;;  %2555 = vmatpush.msra.mxu1 %v1209_v13  ;;  %v1589_v47 = vld [vmem:[#allocation8 + $0xef0] sm:$0xff]  ;;  %v1324_v49 = vld [vmem:[#allocation8 + $0x6a8] sm:$0xff] }
 0x502   :  { %2564 = vmatpush.msrb.mxu2 %v1344_v51  ;;  %2584 = vmatpush.msrb.mxu3 %v1424_v52  ;;  %v1404_v13 = vld [vmem:[#allocation8 + $0x928] sm:$0xff] }
 0x503   :  { %2536 = vmatpush.msra.mxu0 %v1124_v54  ;;  %2556 = vmatpush.msra.mxu1 %v1204_v46  ;;  %v1504_v51 = vld [vmem:[#allocation8 + $0xc48] sm:$0xff]  ;;  %v1319_v54 = vld [vmem:[#allocation8 + $0x680] sm:$0xff] }
 0x504   :  { %2565 = vmatpush.msrb.mxu2 %v1339_v61  ;;  %2585 = vmatpush.msrb.mxu3 %v1419_v34  ;;  %v1584_v52 = vld [vmem:[#allocation8 + $0xec8] sm:$0xff]  ;;  %v1399_v46 = vld [vmem:[#allocation8 + $0x900] sm:$0xff] }
 0x505   :  { %2537 = vmatpush.msra.mxu0 %v1119_v2  ;;  %2557 = vmatpush.msra.mxu1 %v1199_v5  ;;  %v1499_v61 = vld [vmem:[#allocation8 + $0xc20] sm:$0xff]  ;;  %v1314_v2 = vld [vmem:[#allocation8 + $0x658] sm:$0xff] }
 0x506   :  { %2566 = vmatpush.msrb.mxu2 %v1334_v11  ;;  %2586 = vmatpush.msrb.mxu3 %v1414_v15  ;;  %v1579_v34 = vld [vmem:[#allocation8 + $0xea0] sm:$0xff]  ;;  %v1394_v5 = vld [vmem:[#allocation8 + $0x8d8] sm:$0xff] }
 0x507   :  { %2538 = vmatpush.msra.mxu0 %v1114_v24  ;;  %2558 = vmatpush.msra.mxu1 %v1194_v12  ;;  %v1494_v11 = vld [vmem:[#allocation8 + $0xbf8] sm:$0xff]  ;;  %v1309_v24 = vld [vmem:[#allocation8 + $0x630] sm:$0xff] }
 0x508   :  { %2567 = vmatpush.msrb.mxu2 %v1329_v53  ;;  %2587 = vmatpush.msrb.mxu3 %v1409_v30  ;;  %v1574_v15 = vld [vmem:[#allocation8 + $0xe78] sm:$0xff]  ;;  %v1389_v12 = vld [vmem:[#allocation8 + $0x8b0] sm:$0xff] }
 0x509   :  { %2603 = vmatpush.msrb.mxu0 %v1509_v4  ;;  %2623 = vmatpush.msrb.mxu1 %v1589_v47  ;;  %v1489_v53 = vld [vmem:[#allocation8 + $0xbd0] sm:$0xff]  ;;  %v1304_v4 = vld [vmem:[#allocation8 + $0x608] sm:$0xff] }
 0x50a   :  { %2568 = vmatpush.msrb.mxu2 %v1324_v49  ;;  %2588 = vmatpush.msrb.mxu3 %v1404_v13  ;;  %v1569_v30 = vld [vmem:[#allocation8 + $0xe50] sm:$0xff]  ;;  %v1384_v47 = vld [vmem:[#allocation8 + $0x888] sm:$0xff] }
 0x50b   :  { %2604 = vmatpush.msrb.mxu0 %v1504_v51  ;;  %2624 = vmatpush.msrb.mxu1 %v1584_v52  ;;  %v1484_v49 = vld [vmem:[#allocation8 + $0xba8] sm:$0xff]  ;;  %v1299_v51 = vld [vmem:[#allocation8 + $0x5e0] sm:$0xff] }
 0x50c   :  { %2569 = vmatpush.msrb.mxu2 %v1319_v54  ;;  %2589 = vmatpush.msrb.mxu3 %v1399_v46  ;;  %v1564_v13 = vld [vmem:[#allocation8 + $0xe28] sm:$0xff]  ;;  %v1379_v52 = vld [vmem:[#allocation8 + $0x860] sm:$0xff] }
 0x50d   :  { %2605 = vmatpush.msrb.mxu0 %v1499_v61  ;;  %2625 = vmatpush.msrb.mxu1 %v1579_v34  ;;  %v1479_v54 = vld [vmem:[#allocation8 + $0xb80] sm:$0xff]  ;;  %v1294_v61 = vld [vmem:[#allocation8 + $0x5b8] sm:$0xff] }
 0x50e   :  { %2570 = vmatpush.msrb.mxu2 %v1314_v2  ;;  %2590 = vmatpush.msrb.mxu3 %v1394_v5  ;;  %v1559_v46 = vld [vmem:[#allocation8 + $0xe00] sm:$0xff]  ;;  %v1374_v34 = vld [vmem:[#allocation8 + $0x838] sm:$0xff] }
 0x50f   :  { %2606 = vmatpush.msrb.mxu0 %v1494_v11  ;;  %2626 = vmatpush.msrb.mxu1 %v1574_v15  ;;  %v1474_v2 = vld [vmem:[#allocation8 + $0xb58] sm:$0xff]  ;;  %v1289_v11 = vld [vmem:[#allocation8 + $0x590] sm:$0xff] }
 0x510   :  { %2571 = vmatpush.msrb.mxu2 %v1309_v24  ;;  %2591 = vmatpush.msrb.mxu3 %v1389_v12  ;;  %v1554_v5 = vld [vmem:[#allocation8 + $0xdd8] sm:$0xff]  ;;  %v1369_v15 = vld [vmem:[#allocation8 + $0x810] sm:$0xff] }
 0x511   :  { %2607 = vmatpush.msrb.mxu0 %v1489_v53  ;;  %2627 = vmatpush.msrb.mxu1 %v1569_v30  ;;  %v1469_v24 = vld [vmem:[#allocation8 + $0xb30] sm:$0xff]  ;;  %v1284_v53 = vld [vmem:[#allocation8 + $0x568] sm:$0xff] }
 0x512   :  { %2572 = vmatpush.msrb.mxu2 %v1304_v4  ;;  %2592 = vmatpush.msrb.mxu3 %v1384_v47  ;;  %v1549_v12 = vld [vmem:[#allocation8 + $0xdb0] sm:$0xff]  ;;  %v1364_v30 = vld [vmem:[#allocation8 + $0x7e8] sm:$0xff] }
 0x513   :  { %2608 = vmatpush.msrb.mxu0 %v1484_v49  ;;  %2628 = vmatpush.msrb.mxu1 %v1564_v13  ;;  %v1464_v4 = vld [vmem:[#allocation8 + $0xb08] sm:$0xff]  ;;  %v1279_v49 = vld [vmem:[#allocation8 + $0x540] sm:$0xff] }
 0x514   :  { %2573 = vmatpush.msrb.mxu2 %v1299_v51  ;;  %2593 = vmatpush.msrb.mxu3 %v1379_v52  ;;  %v1544_v47 = vld [vmem:[#allocation8 + $0xd88] sm:$0xff]  ;;  %v1359_v13 = vld [vmem:[#allocation8 + $0x7c0] sm:$0xff] }
 0x515   :  { %2609 = vmatpush.msrb.mxu0 %v1479_v54  ;;  %2629 = vmatpush.msrb.mxu1 %v1559_v46  ;;  %v1459_v51 = vld [vmem:[#allocation8 + $0xae0] sm:$0xff]  ;;  %v1274_v54 = vld [vmem:[#allocation8 + $0x518] sm:$0xff] }
 0x516   :  { %2574 = vmatpush.msrb.mxu2 %v1294_v61  ;;  %2594 = vmatpush.msrb.mxu3 %v1374_v34  ;;  %v1539_v52 = vld [vmem:[#allocation8 + $0xd60] sm:$0xff]  ;;  %v1354_v46 = vld [vmem:[#allocation8 + $0x798] sm:$0xff] }
 0x517   :  { %2610 = vmatpush.msrb.mxu0 %v1474_v2  ;;  %2630 = vmatpush.msrb.mxu1 %v1554_v5  ;;  %v1454_v61 = vld [vmem:[#allocation8 + $0xab8] sm:$0xff]  ;;  %v1669_v2 = vld [vmem:[#allocation8 + $0x1170] sm:$0xff] }
 0x518   :  { %2575 = vmatpush.msrb.mxu2 %v1289_v11  ;;  %2595 = vmatpush.msrb.mxu3 %v1369_v15  ;;  %v1534_v34 = vld [vmem:[#allocation8 + $0xd38] sm:$0xff]  ;;  %v1749_v5 = vld [vmem:[#allocation8 + $0x13f0] sm:$0xff] }
 0x519   :  { %2611 = vmatpush.msrb.mxu0 %v1469_v24  ;;  %2631 = vmatpush.msrb.mxu1 %v1549_v12  ;;  %v1449_v11 = vld [vmem:[#allocation8 + $0xa90] sm:$0xff]  ;;  %v1664_v24 = vld [vmem:[#allocation8 + $0x1148] sm:$0xff] }
 0x51a   :  { %2576 = vmatpush.msrb.mxu2 %v1284_v53  ;;  %2596 = vmatpush.msrb.mxu3 %v1364_v30  ;;  %v1529_v15 = vld [vmem:[#allocation8 + $0xd10] sm:$0xff]  ;;  %v1744_v12 = vld [vmem:[#allocation8 + $0x13c8] sm:$0xff] }
 0x51b   :  { %2612 = vmatpush.msrb.mxu0 %v1464_v4  ;;  %2632 = vmatpush.msrb.mxu1 %v1544_v47  ;;  %v1444_v53 = vld [vmem:[#allocation8 + $0xa68] sm:$0xff]  ;;  %v1659_v4 = vld [vmem:[#allocation8 + $0x1120] sm:$0xff] }
 0x51c   :  { %2577 = vmatpush.msrb.mxu2 %v1279_v49  ;;  %2597 = vmatpush.msrb.mxu3 %v1359_v13  ;;  %v1524_v30 = vld [vmem:[#allocation8 + $0xce8] sm:$0xff]  ;;  %v1739_v47 = vld [vmem:[#allocation8 + $0x13a0] sm:$0xff] }
 0x51d   :  { %2613 = vmatpush.msrb.mxu0 %v1459_v51  ;;  %2633 = vmatpush.msrb.mxu1 %v1539_v52  ;;  %v1439_v49 = vld [vmem:[#allocation8 + $0xa40] sm:$0xff]  ;;  %v1654_v51 = vld [vmem:[#allocation8 + $0x10f8] sm:$0xff] }
 0x51e   :  { %2578 = vmatpush.msrb.mxu2 %v1274_v54  ;;  %2598 = vmatpush.msrb.mxu3 %v1354_v46  ;;  %v1519_v13 = vld [vmem:[#allocation8 + $0xcc0] sm:$0xff]  ;;  %v1734_v52 = vld [vmem:[#allocation8 + $0x1378] sm:$0xff] }
 0x51f   :  { %2614 = vmatpush.msrb.mxu0 %v1454_v61  ;;  %2634 = vmatpush.msrb.mxu1 %v1534_v34  ;;  %v1434_v54 = vld [vmem:[#allocation8 + $0xa18] sm:$0xff]  ;;  %v1649_v61 = vld [vmem:[#allocation8 + $0x10d0] sm:$0xff] }
 0x520   :  { %2643 = vmatpush.msra.mxu2 %v1669_v2  ;;  %2663 = vmatpush.msra.mxu3 %v1749_v5  ;;  %v1514_v46 = vld [vmem:[#allocation8 + $0xc98] sm:$0xff]  ;;  %v1729_v34 = vld [vmem:[#allocation8 + $0x1350] sm:$0xff] }
 0x521   :  { %2615 = vmatpush.msrb.mxu0 %v1449_v11  ;;  %2635 = vmatpush.msrb.mxu1 %v1529_v15  ;;  %v1829_v2 = vld [vmem:[#allocation8 + $0x1670] sm:$0xff]  ;;  %v1644_v11 = vld [vmem:[#allocation8 + $0x10a8] sm:$0xff] }
 0x522   :  { %2644 = vmatpush.msra.mxu2 %v1664_v24  ;;  %2664 = vmatpush.msra.mxu3 %v1744_v12  ;;  %v1909_v5 = vld [vmem:[#allocation8 + $0x18f0] sm:$0xff]  ;;  %v1724_v15 = vld [vmem:[#allocation8 + $0x1328] sm:$0xff] }
 0x523   :  { %2616 = vmatpush.msrb.mxu0 %v1444_v53  ;;  %2636 = vmatpush.msrb.mxu1 %v1524_v30  ;;  %v1824_v24 = vld [vmem:[#allocation8 + $0x1648] sm:$0xff]  ;;  %v1639_v53 = vld [vmem:[#allocation8 + $0x1080] sm:$0xff] }
 0x524   :  { %2645 = vmatpush.msra.mxu2 %v1659_v4  ;;  %2665 = vmatpush.msra.mxu3 %v1739_v47  ;;  %v1904_v12 = vld [vmem:[#allocation8 + $0x18c8] sm:$0xff]  ;;  %v1719_v30 = vld [vmem:[#allocation8 + $0x1300] sm:$0xff] }
 0x525   :  { %2617 = vmatpush.msrb.mxu0 %v1439_v49  ;;  %2637 = vmatpush.msrb.mxu1 %v1519_v13  ;;  %v1819_v4 = vld [vmem:[#allocation8 + $0x1620] sm:$0xff]  ;;  %v1634_v49 = vld [vmem:[#allocation8 + $0x1058] sm:$0xff] }
 0x526   :  { %2646 = vmatpush.msra.mxu2 %v1654_v51  ;;  %2666 = vmatpush.msra.mxu3 %v1734_v52  ;;  %v1899_v47 = vld [vmem:[#allocation8 + $0x18a0] sm:$0xff]  ;;  %v1714_v13 = vld [vmem:[#allocation8 + $0x12d8] sm:$0xff] }
 0x527   :  { %2618 = vmatpush.msrb.mxu0 %v1434_v54  ;;  %2638 = vmatpush.msrb.mxu1 %v1514_v46  ;;  %v1814_v51 = vld [vmem:[#allocation8 + $0x15f8] sm:$0xff]  ;;  %v1629_v54 = vld [vmem:[#allocation8 + $0x1030] sm:$0xff] }
 0x528   :  { %2539 = vmatmul.f32.vlgmr.msra.gmra.mxu0 %v4995_v7  ;;  %2559 = vmatmul.f32.vlgmr.msra.gmra.mxu1 %v4997_v10  ;;  %v1894_v52 = vld [vmem:[#allocation8 + $0x1878] sm:$0xff]  ;;  %v1709_v46 = vld [vmem:[#allocation8 + $0x12b0] sm:$0xff] }
 0x529   :  { %2647 = vmatpush.msra.mxu2 %v1649_v61  ;;  %2667 = vmatpush.msra.mxu3 %v1729_v34  ;;  %v1809_v61 = vld [vmem:[#allocation8 + $0x15d0] sm:$0xff] }
 0x52a   :  { %2683 = vmatpush.msra.mxu0 %v1829_v2  ;;  %2703 = vmatpush.msra.mxu1 %v1909_v5  ;;  %v1889_v34 = vld [vmem:[#allocation8 + $0x1850] sm:$0xff]  ;;  %v1624_v2 = vld [vmem:[#allocation8 + $0x1008] sm:$0xff] }
 0x52b   :  { %2648 = vmatpush.msra.mxu2 %v1644_v11  ;;  %2668 = vmatpush.msra.mxu3 %v1724_v15  ;;  %v1704_v5 = vld [vmem:[#allocation8 + $0x1288] sm:$0xff] }
 0x52c   :  { %2684 = vmatpush.msra.mxu0 %v1824_v24  ;;  %2704 = vmatpush.msra.mxu1 %v1904_v12  ;;  %v1804_v11 = vld [vmem:[#allocation8 + $0x15a8] sm:$0xff]  ;;  %v1619_v24 = vld [vmem:[#allocation8 + $0xfe0] sm:$0xff] }
 0x52d   :  { %2649 = vmatpush.msra.mxu2 %v1639_v53  ;;  %2669 = vmatpush.msra.mxu3 %v1719_v30  ;;  %v1884_v15 = vld [vmem:[#allocation8 + $0x1828] sm:$0xff]  ;;  %v1699_v12 = vld [vmem:[#allocation8 + $0x1260] sm:$0xff] }
 0x52e   :  { %2685 = vmatpush.msra.mxu0 %v1819_v4  ;;  %2705 = vmatpush.msra.mxu1 %v1899_v47  ;;  %v1799_v53 = vld [vmem:[#allocation8 + $0x1580] sm:$0xff]  ;;  %v1614_v4 = vld [vmem:[#allocation8 + $0xfb8] sm:$0xff] }
 0x52f   :  { %2650 = vmatpush.msra.mxu2 %v1634_v49  ;;  %2670 = vmatpush.msra.mxu3 %v1714_v13  ;;  %v1879_v30 = vld [vmem:[#allocation8 + $0x1800] sm:$0xff]  ;;  %v1694_v47 = vld [vmem:[#allocation8 + $0x1238] sm:$0xff] }
 0x530   :  { %2686 = vmatpush.msra.mxu0 %v1814_v51  ;;  %2706 = vmatpush.msra.mxu1 %v1894_v52  ;;  %v1794_v49 = vld [vmem:[#allocation8 + $0x1558] sm:$0xff]  ;;  %v1689_v51 = vld [vmem:[#allocation8 + $0x1210] sm:$0xff] }
 0x531   :  { %2651 = vmatpush.msra.mxu2 %v1629_v54  ;;  %2671 = vmatpush.msra.mxu3 %v1709_v46  ;;  %v1874_v13 = vld [vmem:[#allocation8 + $0x17d8] sm:$0xff]  ;;  %v1609_v52 = vld [vmem:[#allocation8 + $0xf90] sm:$0xff] }
 0x532   :  { %2687 = vmatpush.msra.mxu0 %v1809_v61  ;;  %2707 = vmatpush.msra.mxu1 %v1889_v34  ;;  %v1789_v54 = vld [vmem:[#allocation8 + $0x1530] sm:$0xff]  ;;  %v1604_v61 = vld [vmem:[#allocation8 + $0xf68] sm:$0xff] }
 0x533   :  { %2652 = vmatpush.msra.mxu2 %v1624_v2  ;;  %2672 = vmatpush.msra.mxu3 %v1704_v5  ;;  %v1869_v46 = vld [vmem:[#allocation8 + $0x17b0] sm:$0xff]  ;;  %v1684_v34 = vld [vmem:[#allocation8 + $0x11e8] sm:$0xff] }
 0x534   :  { %2688 = vmatpush.msra.mxu0 %v1804_v11  ;;  %2708 = vmatpush.msra.mxu1 %v1884_v15  ;;  %v1784_v2 = vld [vmem:[#allocation8 + $0x1508] sm:$0xff]  ;;  %v1599_v11 = vld [vmem:[#allocation8 + $0xf40] sm:$0xff] }
 0x535   :  { %2653 = vmatpush.msra.mxu2 %v1619_v24  ;;  %2673 = vmatpush.msra.mxu3 %v1699_v12  ;;  %v1864_v5 = vld [vmem:[#allocation8 + $0x1788] sm:$0xff]  ;;  %v1679_v15 = vld [vmem:[#allocation8 + $0x11c0] sm:$0xff] }
 0x536   :  { %2689 = vmatpush.msra.mxu0 %v1799_v53  ;;  %2709 = vmatpush.msra.mxu1 %v1879_v30  ;;  %v1779_v24 = vld [vmem:[#allocation8 + $0x14e0] sm:$0xff]  ;;  %v1594_v53 = vld [vmem:[#allocation8 + $0xf18] sm:$0xff] }
 0x537   :  { %2654 = vmatpush.msra.mxu2 %v1614_v4  ;;  %2674 = vmatpush.msra.mxu3 %v1694_v47  ;;  %v1859_v12 = vld [vmem:[#allocation8 + $0x1760] sm:$0xff]  ;;  %v1674_v30 = vld [vmem:[#allocation8 + $0x1198] sm:$0xff] }
 0x538   :  { %2690 = vmatpush.msra.mxu0 %v1794_v49  ;;  %2710 = vmatpush.msra.mxu1 %v1874_v13  ;;  %v1774_v4 = vld [vmem:[#allocation8 + $0x14b8] sm:$0xff] }
 0x539   :  { %2579 = vmatmul.f32.vlgmr.msrb.gmra.mxu2 %v5002_v48  ;;  %2675 = vmatpush.msra.mxu3 %v1689_v51  ;;  %v1854_v47 = vld [vmem:[#allocation8 + $0x1738] sm:$0xff]  ;;  %v1769_v51 = vld [vmem:[#allocation8 + $0x1490] sm:$0xff] }
 0x53a   :  { %2655 = vmatpush.msra.mxu2 %v1609_v52  ;;  %2691 = vmatpush.msra.mxu0 %v1789_v54  ;;  %v1270_v49 = vld [vmem:[#allocation8 + $0x4f8] sm:$0xff]  ;;  %v1849_v52 = vld [vmem:[#allocation8 + $0x1710] sm:$0xff] }
 0x53b   :  { %2711 = vmatpush.msra.mxu1 %v1869_v46  ;;  %2599 = vmatmul.f32.vlgmr.msrb.gmra.mxu3 %v5004_v60  ;;  %v1190_v13 = vld [vmem:[#allocation8 + $0x278] sm:$0xff]  ;;  %v1185_v54 = vld [vmem:[#allocation8 + $0x250] sm:$0xff] }
 0x53c   :  { %2656 = vmatpush.msra.mxu2 %v1604_v61  ;;  %2676 = vmatpush.msra.mxu3 %v1684_v34  ;;  %v1265_v46 = vld [vmem:[#allocation8 + $0x4d0] sm:$0xff]  ;;  %v1764_v61 = vld [vmem:[#allocation8 + $0x1468] sm:$0xff] }
 0x53d   :  { %2692 = vmatpush.msra.mxu0 %v1784_v2  ;;  %2712 = vmatpush.msra.mxu1 %v1864_v5  ;;  %v1844_v34 = vld [vmem:[#allocation8 + $0x16e8] sm:$0xff] }
 0x53e   :  { %2657 = vmatpush.msra.mxu2 %v1599_v11  ;;  %2677 = vmatpush.msra.mxu3 %v1679_v15  ;;  %v1180_v2 = vld [vmem:[#allocation8 + $0x228] sm:$0xff]  ;;  %v1759_v11 = vld [vmem:[#allocation8 + $0x1440] sm:$0xff] }
 0x53f   :  { %2693 = vmatpush.msra.mxu0 %v1779_v24  ;;  %2713 = vmatpush.msra.mxu1 %v1859_v12  ;;  %v1260_v5 = vld [vmem:[#allocation8 + $0x4a8] sm:$0xff]  ;;  %v1839_v15 = vld [vmem:[#allocation8 + $0x16c0] sm:$0xff]  ;;  %v1754_v12 = vld [vmem:[#allocation8 + $0x1418] sm:$0xff] }
 0x540   :  { %2658 = vmatpush.msra.mxu2 %v1594_v53  ;;  %2678 = vmatpush.msra.mxu3 %v1674_v30  ;;  %v1175_v24 = vld [vmem:[#allocation8 + $0x200] sm:$0xff]  ;;  %v1834_v53 = vld [vmem:[#allocation8 + $0x1698] sm:$0xff] }
 0x541   :  { %2694 = vmatpush.msra.mxu0 %v1774_v4  ;;  %2714 = vmatpush.msra.mxu1 %v1854_v47  ;;  %v1170_v30 = vld [vmem:[#allocation8 + $0x1d8] sm:$0xff] }
 0x542   :  { %2619 = vmatmul.f32.vlgmr.msrb.gmra.mxu0 %v5009_v25  ;;  %2639 = vmatmul.f32.vlgmr.msrb.gmra.mxu1 %v5011_v41  ;;  %v1350_v4 = vld [vmem:[#allocation8 + $0x778] sm:$0xff] }
 0x543   :  { %2659 = vmatmul.f32.vlgmr.msra.gmra.mxu2 %v5042_v59  ;;  %2743 = vmatpush.msrb.mxu3 %v1270_v49  ;;  %v1255_v59 = vld [vmem:[#allocation8 + $0x480] sm:$0xff]  ;;  %v1430_v47 = vld [vmem:[#allocation8 + $0x9f8] sm:$0xff]  ;;  %v1165_v49 = vld [vmem:[#allocation8 + $0x1b0] sm:$0xff] }
 0x544   :  { %2723 = vmatpush.msrb.mxu2 %v1190_v13  ;;  %2695 = vmatpush.msra.mxu0 %v1769_v51  ;;  %v1245_v13 = vld [vmem:[#allocation8 + $0x430] sm:$0xff] }
 0x545   :  { %2715 = vmatpush.msra.mxu1 %v1849_v52  ;;  %2679 = vmatmul.f32.vlgmr.msra.gmra.mxu3 %v5045_v45  ;;  %v1250_v45 = vld [vmem:[#allocation8 + $0x458] sm:$0xff]  ;;  %v1345_v51 = vld [vmem:[#allocation8 + $0x750] sm:$0xff] }
 0x546   :  { %2724 = vmatpush.msrb.mxu2 %v1185_v54  ;;  %2744 = vmatpush.msrb.mxu3 %v1265_v46  ;;  %v1425_v52 = vld [vmem:[#allocation8 + $0x9d0] sm:$0xff]  ;;  %v1160_v54 = vld [vmem:[#allocation8 + $0x188] sm:$0xff] }
 0x547   :  { %2696 = vmatpush.msra.mxu0 %v1764_v61  ;;  %2716 = vmatpush.msra.mxu1 %v1844_v34  ;;  %v1240_v46 = vld [vmem:[#allocation8 + $0x408] sm:$0xff] }
 0x548   :  { %2725 = vmatpush.msrb.mxu2 %v1180_v2  ;;  %2745 = vmatpush.msrb.mxu3 %v1260_v5  ;;  %v1340_v61 = vld [vmem:[#allocation8 + $0x728] sm:$0xff]  ;;  %v1155_v2 = vld [vmem:[#allocation8 + $0x160] sm:$0xff] }
 0x549   :  { %2697 = vmatpush.msra.mxu0 %v1759_v11  ;;  %2717 = vmatpush.msra.mxu1 %v1839_v15  ;;  %v1420_v34 = vld [vmem:[#allocation8 + $0x9a8] sm:$0xff]  ;;  %v1235_v5 = vld [vmem:[#allocation8 + $0x3e0] sm:$0xff] }
 0x54a   :  { %2726 = vmatpush.msrb.mxu2 %v1175_v24  ;;  %2746 = vmatpush.msrb.mxu3 %v1255_v59  ;;  %v1335_v11 = vld [vmem:[#allocation8 + $0x700] sm:$0xff]  ;;  %v1150_v24 = vld [vmem:[#allocation8 + $0x138] sm:$0xff] }
 0x54b   :  { %2698 = vmatpush.msra.mxu0 %v1754_v12  ;;  %2718 = vmatpush.msra.mxu1 %v1834_v53  ;;  %v1415_v15 = vld [vmem:[#allocation8 + $0x980] sm:$0xff]  ;;  %v1230_v59 = vld [vmem:[#allocation8 + $0x3b8] sm:$0xff] }
 0x54c   :  { %2699 = vmatmul.f32.vlgmr.msra.gmra.mxu0 %v4725_v32  ;;  %2719 = vmatmul.f32.vlgmr.msra.gmra.mxu1 %v4714_v17  ;;  %v1330_v12 = vld [vmem:[#allocation8 + $0x6d8] sm:$0xff] }
 0x54d   :  { %2727 = vmatpush.msrb.mxu2 %v1170_v30  ;;  %2747 = vmatpush.msrb.mxu3 %v1250_v45  ;;  %v1410_v53 = vld [vmem:[#allocation8 + $0x958] sm:$0xff]  ;;  %v1145_v30 = vld [vmem:[#allocation8 + $0x110] sm:$0xff] }
 0x54e   :  { %2763 = vmatpush.msrb.mxu0 %v1350_v4  ;;  %2783 = vmatpush.msrb.mxu1 %v1430_v47  ;;  %v1225_v45 = vld [vmem:[#allocation8 + $0x390] sm:$0xff] }
 0x54f   :  { %2728 = vmatpush.msrb.mxu2 %v1165_v49  ;;  %2748 = vmatpush.msrb.mxu3 %v1245_v13  ;;  %v1325_v4 = vld [vmem:[#allocation8 + $0x6b0] sm:$0xff]  ;;  %v1140_v49 = vld [vmem:[#allocation8 + $0xe8] sm:$0xff] }
 0x550   :  { %2764 = vmatpush.msrb.mxu0 %v1345_v51  ;;  %2784 = vmatpush.msrb.mxu1 %v1425_v52  ;;  %v1405_v47 = vld [vmem:[#allocation8 + $0x930] sm:$0xff]  ;;  %v1220_v13 = vld [vmem:[#allocation8 + $0x368] sm:$0xff] }
 0x551   :  { %2729 = vmatpush.msrb.mxu2 %v1160_v54  ;;  %2749 = vmatpush.msrb.mxu3 %v1240_v46  ;;  %v1320_v51 = vld [vmem:[#allocation8 + $0x688] sm:$0xff]  ;;  %v1135_v54 = vld [vmem:[#allocation8 + $0xc0] sm:$0xff] }
 0x552   :  { %2765 = vmatpush.msrb.mxu0 %v1340_v61  ;;  %2785 = vmatpush.msrb.mxu1 %v1420_v34  ;;  %v1400_v52 = vld [vmem:[#allocation8 + $0x908] sm:$0xff]  ;;  %v1215_v46 = vld [vmem:[#allocation8 + $0x340] sm:$0xff] }
 0x553   :  { %2730 = vmatpush.msrb.mxu2 %v1155_v2  ;;  %2750 = vmatpush.msrb.mxu3 %v1235_v5  ;;  %v1315_v61 = vld [vmem:[#allocation8 + $0x660] sm:$0xff]  ;;  %v1130_v2 = vld [vmem:[#allocation8 + $0x98] sm:$0xff] }
 0x554   :  { %2766 = vmatpush.msrb.mxu0 %v1335_v11  ;;  %2786 = vmatpush.msrb.mxu1 %v1415_v15  ;;  %v1395_v34 = vld [vmem:[#allocation8 + $0x8e0] sm:$0xff]  ;;  %v1210_v5 = vld [vmem:[#allocation8 + $0x318] sm:$0xff] }
 0x555   :  { %2731 = vmatpush.msrb.mxu2 %v1150_v24  ;;  %2751 = vmatpush.msrb.mxu3 %v1230_v59  ;;  %v1310_v11 = vld [vmem:[#allocation8 + $0x638] sm:$0xff]  ;;  %v1125_v24 = vld [vmem:[#allocation8 + $0x70] sm:$0xff] }
 0x556   :  { %2767 = vmatpush.msrb.mxu0 %v1330_v12  ;;  %2787 = vmatpush.msrb.mxu1 %v1410_v53  ;;  %v1390_v15 = vld [vmem:[#allocation8 + $0x8b8] sm:$0xff]  ;;  %v1205_v59 = vld [vmem:[#allocation8 + $0x2f0] sm:$0xff] }
 0x557   :  { %2732 = vmatpush.msrb.mxu2 %v1145_v30  ;;  %2752 = vmatpush.msrb.mxu3 %v1225_v45  ;;  %v1305_v12 = vld [vmem:[#allocation8 + $0x610] sm:$0xff]  ;;  %v1120_v30 = vld [vmem:[#allocation8 + $0x48] sm:$0xff] }
 0x558   :  { %2768 = vmatpush.msrb.mxu0 %v1325_v4  ;;  %2788 = vmatpush.msrb.mxu1 %v1405_v47  ;;  %v1385_v53 = vld [vmem:[#allocation8 + $0x890] sm:$0xff]  ;;  %v1200_v45 = vld [vmem:[#allocation8 + $0x2c8] sm:$0xff] }
 0x559   :  { %2733 = vmatpush.msrb.mxu2 %v1140_v49  ;;  %2753 = vmatpush.msrb.mxu3 %v1220_v13  ;;  %v1300_v4 = vld [vmem:[#allocation8 + $0x5e8] sm:$0xff]  ;;  %v1115_v49 = vld [vmem:[#allocation8 + $0x20] sm:$0xff] }
 0x55a   :  { %2769 = vmatpush.msrb.mxu0 %v1320_v51  ;;  %2789 = vmatpush.msrb.mxu1 %v1400_v52  ;;  %v1380_v47 = vld [vmem:[#allocation8 + $0x868] sm:$0xff]  ;;  %v1195_v13 = vld [vmem:[#allocation8 + $0x2a0] sm:$0xff]  ;;  %v1510_v51 = vld [vmem:[#allocation8 + $0xc78] sm:$0xff] }
 0x55b   :  { %2734 = vmatpush.msrb.mxu2 %v1135_v54  ;;  %2754 = vmatpush.msrb.mxu3 %v1215_v46  ;;  %v1590_v52 = vld [vmem:[#allocation8 + $0xef8] sm:$0xff]  ;;  %v1295_v54 = vld [vmem:[#allocation8 + $0x5c0] sm:$0xff] }
 0x55c   :  { %2770 = vmatpush.msrb.mxu0 %v1315_v61  ;;  %2790 = vmatpush.msrb.mxu1 %v1395_v34  ;;  %v1375_v46 = vld [vmem:[#allocation8 + $0x840] sm:$0xff]  ;;  %v1505_v61 = vld [vmem:[#allocation8 + $0xc50] sm:$0xff] }
 0x55d   :  { %2735 = vmatpush.msrb.mxu2 %v1130_v2  ;;  %2755 = vmatpush.msrb.mxu3 %v1210_v5  ;;  %v1585_v34 = vld [vmem:[#allocation8 + $0xed0] sm:$0xff]  ;;  %v1290_v2 = vld [vmem:[#allocation8 + $0x598] sm:$0xff] }
 0x55e   :  { %2771 = vmatpush.msrb.mxu0 %v1310_v11  ;;  %2791 = vmatpush.msrb.mxu1 %v1390_v15  ;;  %v1370_v5 = vld [vmem:[#allocation8 + $0x818] sm:$0xff]  ;;  %v1500_v11 = vld [vmem:[#allocation8 + $0xc28] sm:$0xff] }
 0x55f   :  { %2736 = vmatpush.msrb.mxu2 %v1125_v24  ;;  %2756 = vmatpush.msrb.mxu3 %v1205_v59  ;;  %v1580_v15 = vld [vmem:[#allocation8 + $0xea8] sm:$0xff]  ;;  %v1285_v24 = vld [vmem:[#allocation8 + $0x570] sm:$0xff] }
 0x560   :  { %2772 = vmatpush.msrb.mxu0 %v1305_v12  ;;  %2792 = vmatpush.msrb.mxu1 %v1385_v53  ;;  %v1365_v59 = vld [vmem:[#allocation8 + $0x7f0] sm:$0xff]  ;;  %v1495_v12 = vld [vmem:[#allocation8 + $0xc00] sm:$0xff] }
 0x561   :  { %2737 = vmatpush.msrb.mxu2 %v1120_v30  ;;  %2757 = vmatpush.msrb.mxu3 %v1200_v45  ;;  %v1575_v53 = vld [vmem:[#allocation8 + $0xe80] sm:$0xff]  ;;  %v1280_v30 = vld [vmem:[#allocation8 + $0x548] sm:$0xff] }
 0x562   :  { %2773 = vmatpush.msrb.mxu0 %v1300_v4  ;;  %2793 = vmatpush.msrb.mxu1 %v1380_v47  ;;  %v1360_v45 = vld [vmem:[#allocation8 + $0x7c8] sm:$0xff]  ;;  %v1490_v4 = vld [vmem:[#allocation8 + $0xbd8] sm:$0xff] }
 0x563   :  { %2738 = vmatpush.msrb.mxu2 %v1115_v49  ;;  %2758 = vmatpush.msrb.mxu3 %v1195_v13  ;;  %v1570_v47 = vld [vmem:[#allocation8 + $0xe58] sm:$0xff]  ;;  %v1275_v49 = vld [vmem:[#allocation8 + $0x520] sm:$0xff] }
 0x564   :  { %2774 = vmatpush.msrb.mxu0 %v1295_v54  ;;  %2794 = vmatpush.msrb.mxu1 %v1375_v46  ;;  %v1355_v13 = vld [vmem:[#allocation8 + $0x7a0] sm:$0xff]  ;;  %v1670_v54 = vld [vmem:[#allocation8 + $0x1178] sm:$0xff] }
 0x565   :  { %2803 = vmatpush.msra.mxu2 %v1510_v51  ;;  %2823 = vmatpush.msra.mxu3 %v1590_v52  ;;  %v1485_v51 = vld [vmem:[#allocation8 + $0xbb0] sm:$0xff]  ;;  %v1750_v46 = vld [vmem:[#allocation8 + $0x13f8] sm:$0xff] }
 0x566   :  { %2775 = vmatpush.msrb.mxu0 %v1290_v2  ;;  %2795 = vmatpush.msrb.mxu1 %v1370_v5  ;;  %v1565_v52 = vld [vmem:[#allocation8 + $0xe30] sm:$0xff] }
 0x567   :  { %2804 = vmatpush.msra.mxu2 %v1505_v61  ;;  %2824 = vmatpush.msra.mxu3 %v1585_v34  ;;  %v1480_v61 = vld [vmem:[#allocation8 + $0xb88] sm:$0xff]  ;;  %v1665_v2 = vld [vmem:[#allocation8 + $0x1150] sm:$0xff] }
 0x568   :  { %2776 = vmatpush.msrb.mxu0 %v1285_v24  ;;  %2796 = vmatpush.msrb.mxu1 %v1365_v59  ;;  %v1560_v34 = vld [vmem:[#allocation8 + $0xe08] sm:$0xff]  ;;  %v1745_v5 = vld [vmem:[#allocation8 + $0x13d0] sm:$0xff] }
 0x569   :  { %2805 = vmatpush.msra.mxu2 %v1500_v11  ;;  %2825 = vmatpush.msra.mxu3 %v1580_v15  ;;  %v1475_v11 = vld [vmem:[#allocation8 + $0xb60] sm:$0xff]  ;;  %v1660_v24 = vld [vmem:[#allocation8 + $0x1128] sm:$0xff] }
 0x56a   :  { %2777 = vmatpush.msrb.mxu0 %v1280_v30  ;;  %2797 = vmatpush.msrb.mxu1 %v1360_v45  ;;  %v1555_v15 = vld [vmem:[#allocation8 + $0xde0] sm:$0xff]  ;;  %v1740_v59 = vld [vmem:[#allocation8 + $0x13a8] sm:$0xff] }
 0x56b   :  { %2806 = vmatpush.msra.mxu2 %v1495_v12  ;;  %2826 = vmatpush.msra.mxu3 %v1575_v53  ;;  %v1470_v12 = vld [vmem:[#allocation8 + $0xb38] sm:$0xff]  ;;  %v1655_v30 = vld [vmem:[#allocation8 + $0x1100] sm:$0xff] }
 0x56c   :  { %2778 = vmatpush.msrb.mxu0 %v1275_v49  ;;  %2798 = vmatpush.msrb.mxu1 %v1355_v13  ;;  %v1550_v53 = vld [vmem:[#allocation8 + $0xdb8] sm:$0xff]  ;;  %v1735_v45 = vld [vmem:[#allocation8 + $0x1380] sm:$0xff] }
 0x56d   :  { %2807 = vmatpush.msra.mxu2 %v1490_v4  ;;  %2827 = vmatpush.msra.mxu3 %v1570_v47  ;;  %v1465_v4 = vld [vmem:[#allocation8 + $0xb10] sm:$0xff]  ;;  %v1650_v49 = vld [vmem:[#allocation8 + $0x10d8] sm:$0xff] }
 0x56e   :  { %2843 = vmatpush.msra.mxu0 %v1670_v54  ;;  %2863 = vmatpush.msra.mxu1 %v1750_v46  ;;  %v1545_v47 = vld [vmem:[#allocation8 + $0xd90] sm:$0xff]  ;;  %v1730_v13 = vld [vmem:[#allocation8 + $0x1358] sm:$0xff] }
 0x56f   :  { %2808 = vmatpush.msra.mxu2 %v1485_v51  ;;  %2828 = vmatpush.msra.mxu3 %v1565_v52  ;;  %v1460_v51 = vld [vmem:[#allocation8 + $0xae8] sm:$0xff]  ;;  %v1645_v54 = vld [vmem:[#allocation8 + $0x10b0] sm:$0xff] }
 0x570   :  { %2844 = vmatpush.msra.mxu0 %v1665_v2  ;;  %2864 = vmatpush.msra.mxu1 %v1745_v5  ;;  %v1540_v52 = vld [vmem:[#allocation8 + $0xd68] sm:$0xff]  ;;  %v1725_v46 = vld [vmem:[#allocation8 + $0x1330] sm:$0xff]  ;;  %v1450_v5 = vld [vmem:[#allocation8 + $0xa98] sm:$0xff] }
 0x571   :  { %2809 = vmatpush.msra.mxu2 %v1480_v61  ;;  %2829 = vmatpush.msra.mxu3 %v1560_v34  ;;  %v1455_v61 = vld [vmem:[#allocation8 + $0xac0] sm:$0xff]  ;;  %v1640_v2 = vld [vmem:[#allocation8 + $0x1088] sm:$0xff] }
 0x572   :  { %2845 = vmatpush.msra.mxu0 %v1660_v24  ;;  %2865 = vmatpush.msra.mxu1 %v1740_v59  ;;  %v1535_v34 = vld [vmem:[#allocation8 + $0xd40] sm:$0xff]  ;;  %v1445_v24 = vld [vmem:[#allocation8 + $0xa70] sm:$0xff] }
 0x573   :  { %2810 = vmatpush.msra.mxu2 %v1475_v11  ;;  %2830 = vmatpush.msra.mxu3 %v1555_v15  ;;  %v1530_v11 = vld [vmem:[#allocation8 + $0xd18] sm:$0xff]  ;;  %v1635_v15 = vld [vmem:[#allocation8 + $0x1060] sm:$0xff]  ;;  %v1525_v59 = vld [vmem:[#allocation8 + $0xcf0] sm:$0xff] }
 0x574   :  { %2846 = vmatpush.msra.mxu0 %v1655_v30  ;;  %2866 = vmatpush.msra.mxu1 %v1735_v45  ;;  %v1440_v30 = vld [vmem:[#allocation8 + $0xa48] sm:$0xff] }
 0x575   :  { %2811 = vmatpush.msra.mxu2 %v1470_v12  ;;  %2831 = vmatpush.msra.mxu3 %v1550_v53  ;;  %v1720_v12 = vld [vmem:[#allocation8 + $0x1308] sm:$0xff]  ;;  %v1630_v53 = vld [vmem:[#allocation8 + $0x1038] sm:$0xff] }
 0x576   :  { %2847 = vmatpush.msra.mxu0 %v1650_v49  ;;  %2867 = vmatpush.msra.mxu1 %v1730_v13  ;;  %v1520_v45 = vld [vmem:[#allocation8 + $0xcc8] sm:$0xff]  ;;  %v1435_v49 = vld [vmem:[#allocation8 + $0xa20] sm:$0xff] }
 0x577   :  { %2812 = vmatpush.msra.mxu2 %v1465_v4  ;;  %2832 = vmatpush.msra.mxu3 %v1545_v47  ;;  %v1715_v4 = vld [vmem:[#allocation8 + $0x12e0] sm:$0xff]  ;;  %v1625_v47 = vld [vmem:[#allocation8 + $0x1010] sm:$0xff] }
 0x578   :  { %2848 = vmatpush.msra.mxu0 %v1645_v54  ;;  %2868 = vmatpush.msra.mxu1 %v1725_v46  ;;  %v1515_v13 = vld [vmem:[#allocation8 + $0xca0] sm:$0xff]  ;;  %v1620_v54 = vld [vmem:[#allocation8 + $0xfe8] sm:$0xff]  ;;  %v1905_v46 = vld [vmem:[#allocation8 + $0x18d0] sm:$0xff] }
 0x579   :  { %2813 = vmatpush.msra.mxu2 %v1460_v51  ;;  %2833 = vmatpush.msra.mxu3 %v1540_v52  ;;  %v1910_v51 = vld [vmem:[#allocation8 + $0x18f8] sm:$0xff] }
 0x57a   :  { %2849 = vmatpush.msra.mxu0 %v1640_v2  ;;  %2739 = vmatmul.f32.vlgmr.msrb.gmra.mxu2 %v4995_v7  ;;  %v1830_v7 = vld [vmem:[#allocation8 + $0x1678] sm:$0xff]  ;;  %v1900_v2 = vld [vmem:[#allocation8 + $0x18a8] sm:$0xff] }
 0x57b   :  { %2814 = vmatpush.msra.mxu2 %v1455_v61  ;;  %2834 = vmatpush.msra.mxu3 %v1535_v34  ;;  %v1710_v52 = vld [vmem:[#allocation8 + $0x12b8] sm:$0xff]  ;;  %v1705_v61 = vld [vmem:[#allocation8 + $0x1290] sm:$0xff]  ;;  %v1820_v34 = vld [vmem:[#allocation8 + $0x1628] sm:$0xff] }
 0x57c   :  { %2759 = vmatmul.f32.vlgmr.msrb.gmra.mxu3 %v4997_v10  ;;  %2850 = vmatpush.msra.mxu0 %v1635_v15  ;;  %v1825_v10 = vld [vmem:[#allocation8 + $0x1650] sm:$0xff]  ;;  %v1815_v15 = vld [vmem:[#allocation8 + $0x1600] sm:$0xff] }
 0x57d   :  { %2815 = vmatpush.msra.mxu2 %v1450_v5  ;;  %2835 = vmatpush.msra.mxu3 %v1530_v11  ;;  %v1615_v5 = vld [vmem:[#allocation8 + $0xfc0] sm:$0xff]  ;;  %v1700_v11 = vld [vmem:[#allocation8 + $0x1268] sm:$0xff] }
 0x57e   :  { %2869 = vmatpush.msra.mxu1 %v1720_v12  ;;  %2851 = vmatpush.msra.mxu0 %v1630_v53  ;;  %v1890_v12 = vld [vmem:[#allocation8 + $0x1858] sm:$0xff] }
 0x57f   :  { %2816 = vmatpush.msra.mxu2 %v1445_v24  ;;  %2836 = vmatpush.msra.mxu3 %v1525_v59  ;;  %v1895_v24 = vld [vmem:[#allocation8 + $0x1880] sm:$0xff]  ;;  %v1810_v59 = vld [vmem:[#allocation8 + $0x15d8] sm:$0xff] }
 0x580   :  { %2870 = vmatpush.msra.mxu1 %v1715_v4  ;;  %2852 = vmatpush.msra.mxu0 %v1625_v47  ;;  %v1610_v53 = vld [vmem:[#allocation8 + $0xf98] sm:$0xff]  ;;  %v1885_v4 = vld [vmem:[#allocation8 + $0x1830] sm:$0xff] }
 0x581   :  { %2817 = vmatpush.msra.mxu2 %v1440_v30  ;;  %2837 = vmatpush.msra.mxu3 %v1520_v45  ;;  %v1695_v30 = vld [vmem:[#allocation8 + $0x1240] sm:$0xff]  ;;  %v1805_v45 = vld [vmem:[#allocation8 + $0x15b0] sm:$0xff] }
 0x582   :  { %2871 = vmatpush.msra.mxu1 %v1710_v52  ;;  %2853 = vmatpush.msra.mxu0 %v1620_v54  ;;  %v1605_v47 = vld [vmem:[#allocation8 + $0xf70] sm:$0xff]  ;;  %v1595_v52 = vld [vmem:[#allocation8 + $0xf20] sm:$0xff]  ;;  %v1790_v54 = vld [vmem:[#allocation8 + $0x1538] sm:$0xff] }
 0x583   :  { %2818 = vmatpush.msra.mxu2 %v1435_v49  ;;  %2838 = vmatpush.msra.mxu3 %v1515_v13  ;;  %v1880_v49 = vld [vmem:[#allocation8 + $0x1808] sm:$0xff]  ;;  %v1690_v13 = vld [vmem:[#allocation8 + $0x1218] sm:$0xff] }
 0x584   :  { %2872 = vmatpush.msra.mxu1 %v1705_v61  ;;  %2819 = vmatmul.f32.vlgmr.msra.gmra.mxu2 %v5009_v25  ;;  %v1800_v25 = vld [vmem:[#allocation8 + $0x1588] sm:$0xff]  ;;  %v1785_v61 = vld [vmem:[#allocation8 + $0x1510] sm:$0xff] }
 0x585   :  { %2883 = vmatpush.msrb.mxu2 %v1830_v7  ;;  %2903 = vmatpush.msrb.mxu3 %v1910_v51  ;;  %v1600_v7 = vld [vmem:[#allocation8 + $0xf48] sm:$0xff]  ;;  %v1795_v51 = vld [vmem:[#allocation8 + $0x1560] sm:$0xff] }
 0x586   :  { %2854 = vmatpush.msra.mxu0 %v1615_v5  ;;  %2873 = vmatpush.msra.mxu1 %v1700_v11  ;;  %v1780_v5 = vld [vmem:[#allocation8 + $0x14e8] sm:$0xff] }
 0x587   :  { %2884 = vmatpush.msrb.mxu2 %v1825_v10  ;;  %2904 = vmatpush.msrb.mxu3 %v1905_v46  ;;  %v1870_v10 = vld [vmem:[#allocation8 + $0x17b8] sm:$0xff]  ;;  %v1680_v46 = vld [vmem:[#allocation8 + $0x11c8] sm:$0xff] }
 0x588   :  { %2779 = vmatmul.f32.vlgmr.msrb.gmra.mxu0 %v5002_v48  ;;  %2839 = vmatmul.f32.vlgmr.msra.gmra.mxu3 %v5011_v41  ;;  %v1875_v48 = vld [vmem:[#allocation8 + $0x17e0] sm:$0xff]  ;;  %v1685_v41 = vld [vmem:[#allocation8 + $0x11f0] sm:$0xff]  ;;  %v1860_v11 = vld [vmem:[#allocation8 + $0x1768] sm:$0xff] }
 0x589   :  { %2885 = vmatpush.msrb.mxu2 %v1820_v34  ;;  %2905 = vmatpush.msrb.mxu3 %v1900_v2  ;;  %v1865_v34 = vld [vmem:[#allocation8 + $0x1790] sm:$0xff]  ;;  %v4352_v2 = vld.sshfl [vmem:[#allocation1] sm:$0xff pattern:$0x73625140] }
 0x58a   :  { %2855 = vmatpush.msra.mxu0 %v1610_v53  ;;  %2874 = vmatpush.msra.mxu1 %v1695_v30  ;;  %v1850_v53 = vld [vmem:[#allocation8 + $0x1718] sm:$0xff]  ;;  %v1765_v30 = vld [vmem:[#allocation8 + $0x1470] sm:$0xff] }
 0x58b   :  { %2886 = vmatpush.msrb.mxu2 %v1815_v15  ;;  %2906 = vmatpush.msrb.mxu3 %v1895_v24  ;;  %v1775_v15 = vld [vmem:[#allocation8 + $0x14c0] sm:$0xff]  ;;  %v4353_v24 = vld.sshfl [vmem:[#allocation1 + $0x8] sm:$0xff pattern:$0x73625140] }
 0x58c   :  { %2799 = vmatmul.f32.vlgmr.msrb.gmra.mxu1 %v5004_v60  ;;  %2856 = vmatpush.msra.mxu0 %v1605_v47  ;;  %v1675_v60 = vld [vmem:[#allocation8 + $0x11a0] sm:$0xff]  ;;  %v1840_v47 = vld [vmem:[#allocation8 + $0x16c8] sm:$0xff] }
 0x58d   :  { %2887 = vmatpush.msrb.mxu2 %v1810_v59  ;;  %2907 = vmatpush.msrb.mxu3 %v1890_v12  ;;  %v1855_v59 = vld [vmem:[#allocation8 + $0x1740] sm:$0xff]  ;;  %v1770_v12 = vld [vmem:[#allocation8 + $0x1498] sm:$0xff] }
 0x58e   :  { %2875 = vmatpush.msra.mxu1 %v1690_v13  ;;  %2857 = vmatpush.msra.mxu0 %v1600_v7  ;;  %v2140_v13 = vpop.f32.mrf.mxu0  ;;  %v2160_v7 = vpop.f32.mrf.mxu1 }
 0x58f   :  { %2888 = vmatpush.msrb.mxu2 %v1805_v45  ;;  %2908 = vmatpush.msrb.mxu3 %v1885_v4  ;;  %v1845_v45 = vld [vmem:[#allocation8 + $0x16f0] sm:$0xff]  ;;  %v1760_v4 = vld [vmem:[#allocation8 + $0x1448] sm:$0xff] }
 0x590   :  { %2876 = vmatpush.msra.mxu1 %v1685_v41  ;;  %2858 = vmatpush.msra.mxu0 %v1595_v52 }
 0x591   :  { %2889 = vmatpush.msrb.mxu2 %v1800_v25  ;;  %2909 = vmatpush.msrb.mxu3 %v1880_v49  ;;  %v1755_v25 = vld [vmem:[#allocation8 + $0x1420] sm:$0xff] }
 0x592   :  { %2877 = vmatpush.msra.mxu1 %v1680_v46  ;;  %2859 = vmatmul.f32.vlgmr.msra.gmra.mxu0 %v4352_v2  ;;  %v1835_v49 = vld [vmem:[#allocation8 + $0x16a0] sm:$0xff] }
 0x593   :  { %2890 = vmatpush.msrb.mxu2 %v1795_v51  ;;  %2910 = vmatpush.msrb.mxu3 %v1875_v48  ;;  %v2180_v51 = vpop.f32.mrf.mxu2  ;;  %v2200_v48 = vpop.f32.mrf.mxu3 }
 0x594   :  { %2878 = vmatpush.msra.mxu1 %v1675_v60 }
 0x595   :  { %2891 = vmatpush.msrb.mxu2 %v1790_v54  ;;  %2911 = vmatpush.msrb.mxu3 %v1870_v10 }
 0x596   :  { %2879 = vmatmul.f32.vlgmr.msra.gmra.mxu1 %v4353_v24  ;;  %v2220_v41 = vpop.f32.mrf.mxu0  ;;  %v2240_v52 = vpop.f32.mrf.mxu1 }
 0x597   :  { %2892 = vmatpush.msrb.mxu2 %v1785_v61  ;;  %2912 = vmatpush.msrb.mxu3 %v1865_v34 }
 0x599   :  { %2893 = vmatpush.msrb.mxu2 %v1780_v5  ;;  %2913 = vmatpush.msrb.mxu3 %v1860_v11 }
 0x59b   :  { %2894 = vmatpush.msrb.mxu2 %v1775_v15  ;;  %2914 = vmatpush.msrb.mxu3 %v1855_v59  ;;  %v2260_v54 = vpop.f32.mrf.mxu2  ;;  %v2280_v10 = vpop.f32.mrf.mxu3 }
 0x59d   :  { %2895 = vmatpush.msrb.mxu2 %v1770_v12  ;;  %2915 = vmatpush.msrb.mxu3 %v1850_v53 }
 0x59e   :  { %v2300_v46 = vpop.f32.mrf.mxu0  ;;  %v2320_v34 = vpop.f32.mrf.mxu1 }
 0x59f   :  { %2896 = vmatpush.msrb.mxu2 %v1765_v30  ;;  %2916 = vmatpush.msrb.mxu3 %v1845_v45  ;;  %v4354_v30 = vld [vmem:[#allocation10] ss:$4 sm:$0x1f] }
 0x5a0   :  { %v1914_v45 = vperm.slane %v4354_v30, 1  ;;  %v1916_v31 = vperm.slane %v4354_v30, 3  ;;  %v1917_v23 = vperm.slane %v4354_v30, 4 }
 0x5a1   :  { %2897 = vmatpush.msrb.mxu2 %v1760_v4  ;;  %2917 = vmatpush.msrb.mxu3 %v1840_v47 }
 0x5a3   :  { %2898 = vmatpush.msrb.mxu2 %v1755_v25  ;;  %2918 = vmatpush.msrb.mxu3 %v1835_v49  ;;  %v2340_v61 = vpop.f32.mrf.mxu2  ;;  %v2360_v60 = vpop.f32.mrf.mxu3  ;;  %v2141_v25 = vadd.f32 %v2140_v13, %v1914_v45  ;;  %v1915_v49 = vperm.slane %v4354_v30, 2 }
 0x5a4   :  { %2899 = vmatmul.f32.vlgmr.msrb.gmra.mxu2 %v4725_v32  ;;  %2919 = vmatmul.f32.vlgmr.msrb.gmra.mxu3 %v4714_v17 }
 0x5a5   :  { %v2161_v62 = vadd.f32 %v2160_v7, %v2141_v25  ;;  %v2341_v63 = vadd.f32 %v2340_v61, %v1915_v49 }
 0x5a6   :  { %v2380_v2 = vpop.f32.mrf.mxu0  ;;  %v2400_v5 = vpop.f32.mrf.mxu1 }
 0x5a7   :  { %v2181_v44 = vadd.f32 %v2180_v51, %v2161_v62  ;;  %v2361_v37 = vadd.f32 %v2360_v60, %v2341_v63 }
 0x5a9   :  { %v2201_v43 = vadd.f32 %v2200_v48, %v2181_v44  ;;  %v2381_v3 = vadd.f32 %v2380_v2, %v2361_v37 }
 0x5ab   :  { %v2420_v11 = vpop.f32.mrf.mxu2  ;;  %v2440_v15 = vpop.f32.mrf.mxu3  ;;  %v2221_v57 = vadd.f32 %v2220_v41, %v2201_v43  ;;  %v2401_v13 = vadd.f32 %v2400_v5, %v2381_v3 }
 0x5ad   :  { %v2241_v61 = vadd.f32 %v2240_v52, %v2221_v57 }
 0x5ae   :  { %v2460_v24 = vpop.f32.mrf.mxu0  ;;  %v2480_v59 = vpop.f32.mrf.mxu1 }
 0x5af   :  { %v2261_v63 = vadd.f32 %v2260_v54, %v2241_v61 }
 0x5b3   :  { %v2500_v32 = vpop.f32.mrf.mxu2  ;;  %v2520_v17 = vpop.f32.mrf.mxu3 }
 0x5b6   :  { %v2540_v12 = vpop.f32.mrf.mxu0  ;;  %v2560_v4 = vpop.f32.mrf.mxu1 }
 0x5b7   :  { %v2541_v55 = vadd.f32 %v2540_v12, %v1916_v31  ;;  %v2421_v31 = vadd.f32 %v2420_v11, %v2401_v13 }
 0x5b9   :  { %v2561_v8 = vadd.f32 %v2560_v4, %v2541_v55  ;;  %v2441_v55 = vadd.f32 %v2440_v15, %v2421_v31 }
 0x5bb   :  { %v2461_v48 = vadd.f32 %v2460_v24, %v2441_v55 }
 0x5bc   :  { %v2580_v53 = vpop.f32.mrf.mxu2 }
 0x5bd   :  { %v2581_v42 = vadd.f32 %v2580_v53, %v2561_v8  ;;  %v2281_v8 = vadd.f32 %v2280_v10, %v2261_v63 }
 0x5be   :  { %v2600_v47 = vpop.f32.mrf.mxu3 }
 0x5bf   :  { %v2620_v40 = vpop.f32.mrf.mxu0  ;;  %v2640_v22 = vpop.f32.mrf.mxu1  ;;  %v2601_v45 = vadd.f32 %v2600_v47, %v2581_v42  ;;  %v2301_v3 = vadd.f32 %v2300_v46, %v2281_v8  ;;  %v2481_v42 = vadd.f32 %v2480_v59, %v2461_v48  ;;  %v3444_v8 = vld [vmem:[%s5994_s8 + $0x1f0] sm:$0xff] }
 0x5c0   :  { %v3476_v48 = vld [vmem:[%s5994_s8 + $0x2f0] sm:$0xff]  ;;  %3536 = vmatpush.msrb.mxu1 %v3444_v8 }
 0x5c1   :  { %v2621_v12 = vadd.f32 %v2620_v40, %v2601_v45  ;;  %v2501_v57 = vadd.f32 %v2500_v32, %v2481_v42  ;;  %v5068_v52 = vadd.f32 %v2320_v34, %v2301_v3  ;;  %v2923_v34 = vsel %vm510_vm9, %v5036_v58, 0.0  ;;  %3556 = vmatpush.msra.mxu2 %v3476_v48  ;;  %v3474_v3 = vld [vmem:[%s5994_s8 + $0x2e0] sm:$0xff] }
 0x5c2   :  { %v3506_v42 = vld [vmem:[%s5994_s8 + $0x3e0] sm:$0xff] }
 0x5c3   :  { %v2641_v51 = vadd.f32 %v2640_v22, %v2621_v12  ;;  %v5070_v5 = vadd.f32 %v2520_v17, %v2501_v57  ;;  %v2935_v22 = vmul.f32 %v5068_v52, %v5068_v52  ;;  %v2924_v46 = vsel %vm510_vm9, %v5068_v52, 0.0  ;;  %3557 = vmatpush.msra.mxu2 %v3474_v3  ;;  %v3504_v57 = vld [vmem:[%s5994_s8 + $0x3d0] sm:$0xff]  ;;  %v3390_v48 = vld [vmem:[%s5994_s8 + $0x40] sm:$0xff] }
 0x5c4   :  { %v2925_v59 = vadd.f32 %v2924_v46, %v2923_v34  ;;  %v3500_v46 = vld [vmem:[%s5994_s8 + $0x3b0] sm:$0xff]  ;;  %v3434_v34 = vld [vmem:[%s5994_s8 + $0x1a0] sm:$0xff] }
 0x5c5   :  { %v2940_v15 = vsel %vm510_vm9, %v2935_v22, 0.0  ;;  %v3502_v22 = vld [vmem:[%s5994_s8 + $0x3c0] sm:$0xff] }
 0x5c6   :  { %v2660_v56 = vpop.f32.mrf.mxu2  ;;  %v3486_v3 = vld [vmem:[%s5994_s8 + $0x340] sm:$0xff] }
 0x5c7   :  { %v2661_v60 = vadd.f32 %v2660_v56, %v2641_v51 }
 0x5c8   :  { %v2680_v14 = vpop.f32.mrf.mxu3 }
 0x5c9   :  { %v2700_v1 = vpop.f32.mrf.mxu0  ;;  %v2720_v35 = vpop.f32.mrf.mxu1 }
 0x5fd   :  { %v2740_v0 = vpop.f32.mrf.mxu2 }
 0x5fe   :  { %v2741_v50 = vadd.f32 %v2740_v0, %v1917_v23  ;;  %v2681_v0 = vadd.f32 %v2680_v14, %v2661_v60  ;;  %v2934_v14 = vmul.f32 %v5036_v58, %v5036_v58  ;;  %v3508_v60 = vld [vmem:[%s5994_s8 + $0x3f0] sm:$0xff] }
 0x5ff   :  { %v2760_v7 = vpop.f32.mrf.mxu3  ;;  %3576 = vmatpush.msra.mxu3 %v3508_v60  ;;  %v3422_v60 = vld [vmem:[%s5994_s8 + $0x140] sm:$0xff] }
 0x600   :  { %v2761_v25 = vadd.f32 %v2760_v7, %v2741_v50  ;;  %v2701_v50 = vadd.f32 %v2700_v1, %v2681_v0  ;;  %v2936_v1 = vmul.f32 %v5070_v5, %v5070_v5  ;;  %v2939_v53 = vsel %vm510_vm9, %v2934_v14, 0.0  ;;  %v3408_v0 = vld [vmem:[%s5994_s8 + $0xd0] sm:$0xff] }
 0x601   :  { %v2941_v45 = vadd.f32 %v2940_v15, %v2939_v53  ;;  %3577 = vmatpush.msra.mxu3 %v3506_v42  ;;  %v3468_v14 = vld [vmem:[%s5994_s8 + $0x2b0] sm:$0xff]  ;;  %v3466_v15 = vld [vmem:[%s5994_s8 + $0x2a0] sm:$0xff] }
 0x602   :  { %v5074_v10 = vadd.f32 %v2720_v35, %v2701_v50  ;;  %v2926_v35 = vsel %vm510_vm9, %v5070_v5, 0.0  ;;  %v2942_v47 = vsel %vm510_vm9, %v2936_v1, 0.0  ;;  %v3406_v50 = vld [vmem:[%s5994_s8 + $0xc0] sm:$0xff] }
 0x603   :  { %v2927_v13 = vadd.f32 %v2926_v35, %v2925_v59  ;;  %v2943_v12 = vadd.f32 %v2942_v47, %v2941_v45  ;;  %3578 = vmatpush.msra.mxu3 %v3504_v57  ;;  %v3402_v1 = vld [vmem:[%s5994_s8 + $0xa0] sm:$0xff]  ;;  %v3464_v59 = vld [vmem:[%s5994_s8 + $0x290] sm:$0xff] }
 0x604   :  { %v2937_v24 = vmul.f32 %v5074_v10, %v5074_v10  ;;  %v2928_v4 = vsel %vm510_vm9, %v5074_v10, 0.0  ;;  %v3498_v35 = vld [vmem:[%s5994_s8 + $0x3a0] sm:$0xff]  ;;  %v3460_v45 = vld [vmem:[%s5994_s8 + $0x270] sm:$0xff] }
 0x605   :  { %v2780_v62 = vpop.f32.mrf.mxu0  ;;  %v2929_v31 = vadd.f32 %v2928_v4, %v2927_v13  ;;  %3579 = vmatpush.msra.mxu3 %v3502_v22  ;;  %v3398_v53 = vld [vmem:[%s5994_s8 + $0x80] sm:$0xff]  ;;  %v3428_v13 = vld [vmem:[%s5994_s8 + $0x170] sm:$0xff] }
 0x606   :  { %v2781_v44 = vadd.f32 %v2780_v62, %v2761_v25  ;;  %v2944_v61 = vsel %vm510_vm9, %v2937_v24, 0.0  ;;  %v3400_v24 = vld [vmem:[%s5994_s8 + $0x90] sm:$0xff]  ;;  %v3462_v4 = vld [vmem:[%s5994_s8 + $0x280] sm:$0xff] }
 0x607   :  { %v2820_v43 = vpop.f32.mrf.mxu2  ;;  %v2945_v55 = vadd.f32 %v2944_v61, %v2943_v12  ;;  %3580 = vmatpush.msra.mxu3 %v3500_v46  ;;  %v3494_v47 = vld [vmem:[%s5994_s8 + $0x380] sm:$0xff]  ;;  %v3492_v61 = vld [vmem:[%s5994_s8 + $0x370] sm:$0xff] }
 0x608   :  { %v3426_v12 = vld [vmem:[%s5994_s8 + $0x160] sm:$0xff]  ;;  %v3452_v57 = vld [vmem:[%s5994_s8 + $0x230] sm:$0xff] }
 0x609   :  { %v2800_v37 = vpop.f32.mrf.mxu1  ;;  %3581 = vmatpush.msra.mxu3 %v3498_v35  ;;  %v3418_v22 = vld [vmem:[%s5994_s8 + $0x120] sm:$0xff]  ;;  %v3384_v46 = vld [vmem:[%s5994_s8 + $0x10] sm:$0xff] }
 0x60a   :  { %v2801_v2 = vadd.f32 %v2800_v37, %v2781_v44  ;;  %v3412_v37 = vld [vmem:[%s5994_s8 + $0xf0] sm:$0xff] }
 0x60b   :  { %v2840_v41 = vpop.f32.mrf.mxu3  ;;  %3516 = vmatpush.msrb.mxu0 %v3412_v37  ;;  %v3488_v37 = vld [vmem:[%s5994_s8 + $0x350] sm:$0xff] }
 0x60c   :  { %v2821_v23 = vadd.f32 %v2820_v43, %v2801_v2  ;;  %v3410_v2 = vld [vmem:[%s5994_s8 + $0xe0] sm:$0xff] }
 0x60d   :  { %v3442_v43 = vld [vmem:[%s5994_s8 + $0x1e0] sm:$0xff]  ;;  %3517 = vmatpush.msrb.mxu0 %v3410_v2 }
 0x60e   :  { %v2841_v40 = vadd.f32 %v2840_v41, %v2821_v23  ;;  %3537 = vmatpush.msrb.mxu1 %v3442_v43  ;;  %v3440_v23 = vld [vmem:[%s5994_s8 + $0x1d0] sm:$0xff]  ;;  %v3454_v43 = vld [vmem:[%s5994_s8 + $0x240] sm:$0xff] }
 0x60f   :  { %v2860_v54 = vpop.f32.mrf.mxu0  ;;  %v3472_v41 = vld [vmem:[%s5994_s8 + $0x2d0] sm:$0xff]  ;;  %3518 = vmatpush.msrb.mxu0 %v3408_v0 }
 0x610   :  { %v2861_v56 = vadd.f32 %v2860_v54, %v2841_v40  ;;  %3538 = vmatpush.msrb.mxu1 %v3440_v23  ;;  %3558 = vmatpush.msra.mxu2 %v3472_v41  ;;  %v3438_v40 = vld [vmem:[%s5994_s8 + $0x1c0] sm:$0xff]  ;;  %v3388_v23 = vld [vmem:[%s5994_s8 + $0x30] sm:$0xff] }
 0x611   :  { %v3470_v54 = vld [vmem:[%s5994_s8 + $0x2c0] sm:$0xff]  ;;  %3519 = vmatpush.msrb.mxu0 %v3406_v50  ;;  %v3420_v41 = vld [vmem:[%s5994_s8 + $0x130] sm:$0xff] }
 0x612   :  { %3539 = vmatpush.msrb.mxu1 %v3438_v40  ;;  %3559 = vmatpush.msra.mxu2 %v3470_v54  ;;  %v3484_v50 = vld [vmem:[%s5994_s8 + $0x330] sm:$0xff]  ;;  %v3386_v54 = vld [vmem:[%s5994_s8 + $0x20] sm:$0xff] }
 0x613   :  { %v2880_v11 = vpop.f32.mrf.mxu1 }
 0x614   :  { %v2881_v32 = vadd.f32 %v2880_v11, %v2861_v56  ;;  %v3404_v56 = vld [vmem:[%s5994_s8 + $0xb0] sm:$0xff]  ;;  %3560 = vmatpush.msra.mxu2 %v3468_v14 }
 0x615   :  { %v3436_v11 = vld [vmem:[%s5994_s8 + $0x1b0] sm:$0xff]  ;;  %3520 = vmatpush.msrb.mxu0 %v3404_v56  ;;  %v3450_v56 = vld [vmem:[%s5994_s8 + $0x220] sm:$0xff] }
 0x616   :  { %3540 = vmatpush.msrb.mxu1 %v3436_v11  ;;  %3561 = vmatpush.msra.mxu2 %v3466_v15  ;;  %v3482_v11 = vld [vmem:[%s5994_s8 + $0x320] sm:$0xff]  ;;  %v3480_v15 = vld [vmem:[%s5994_s8 + $0x310] sm:$0xff] }
 0x617   :  { %3521 = vmatpush.msrb.mxu0 %v3402_v1  ;;  %v3416_v1 = vld [vmem:[%s5994_s8 + $0x110] sm:$0xff] }
 0x618   :  { %3541 = vmatpush.msrb.mxu1 %v3434_v34  ;;  %3562 = vmatpush.msra.mxu2 %v3464_v59  ;;  %v3448_v34 = vld [vmem:[%s5994_s8 + $0x210] sm:$0xff]  ;;  %v3446_v59 = vld [vmem:[%s5994_s8 + $0x200] sm:$0xff] }
 0x619   :  { %3522 = vmatpush.msrb.mxu0 %v3400_v24  ;;  %v3382_v24 = vld [vmem:[%s5994_s8] sm:$0xff] }
 0x61a   :  { %3563 = vmatpush.msra.mxu2 %v3462_v4  ;;  %v3477_v4 = vld [vmem:[%s5994_s8 + $0x2f8] sm:$0xff] }
 0x61b   :  { %3523 = vmatpush.msrb.mxu0 %v3398_v53  ;;  %v3413_v53 = vld [vmem:[%s5994_s8 + $0xf8] sm:$0xff] }
 0x61c   :  { %3564 = vmatpush.msra.mxu2 %v3460_v45  ;;  %v3475_v45 = vld [vmem:[%s5994_s8 + $0x2e8] sm:$0xff] }
 0x627   :  { %v2900_v17 = vpop.f32.mrf.mxu2  ;;  %v2920_v49 = vpop.f32.mrf.mxu3 }
 0x628   :  { %v2901_v30 = vadd.f32 %v2900_v17, %v2881_v32  ;;  %v3432_v32 = vld [vmem:[%s5994_s8 + $0x190] sm:$0xff] }
 0x629   :  { %3542 = vmatpush.msrb.mxu1 %v3432_v32  ;;  %v3496_v17 = vld [vmem:[%s5994_s8 + $0x390] sm:$0xff]  ;;  %v3414_v32 = vld [vmem:[%s5994_s8 + $0x100] sm:$0xff] }
 0x62a   :  { %v5093_v7 = vadd.f32 %v2920_v49, %v2901_v30  ;;  %3582 = vmatpush.msra.mxu3 %v3496_v17  ;;  %v3430_v30 = vld [vmem:[%s5994_s8 + $0x180] sm:$0xff]  ;;  %v3396_v49 = vld [vmem:[%s5994_s8 + $0x70] sm:$0xff] }
 0x62b   :  { %3543 = vmatpush.msrb.mxu1 %v3430_v30  ;;  %3524 = vmatpush.msrb.mxu0 %v3396_v49  ;;  %v3478_v17 = vld [vmem:[%s5994_s8 + $0x300] sm:$0xff]  ;;  %v3445_v30 = vld [vmem:[%s5994_s8 + $0x1f8] sm:$0xff]  ;;  %v3411_v49 = vld [vmem:[%s5994_s8 + $0xe8] sm:$0xff] }
 0x62c   :  { %v2930_v25 = vsel %vm510_vm9, %v5093_v7, 0.0  ;;  %v2938_v62 = vmul.f32 %v5093_v7, %v5093_v7  ;;  %3583 = vmatpush.msra.mxu3 %v3494_v47  ;;  %v3509_v47 = vld [vmem:[%s5994_s8 + $0x3f8] sm:$0xff] }
 0x62d   :  { %v2931_v63 = vadd.f32 %v2930_v25, %v2929_v31  ;;  %3544 = vmatpush.msrb.mxu1 %v3428_v13  ;;  %v3394_v31 = vld [vmem:[%s5994_s8 + $0x60] sm:$0xff]  ;;  %v3443_v13 = vld [vmem:[%s5994_s8 + $0x1e8] sm:$0xff] }
 0x62e   :  { %v2946_v51 = vsel %vm510_vm9, %v2938_v62, 0.0  ;;  %3584 = vmatpush.msra.mxu3 %v3492_v61  ;;  %v3458_v25 = vld [vmem:[%s5994_s8 + $0x260] sm:$0xff]  ;;  %3525 = vmatpush.msrb.mxu0 %v3394_v31  ;;  %v3507_v61 = vld [vmem:[%s5994_s8 + $0x3e8] sm:$0xff]  ;;  %v3409_v31 = vld [vmem:[%s5994_s8 + $0xd8] sm:$0xff] }
 0x62f   :  { %2932 = vadd.xlane.f32.xlu0 %v2931_v63  ;;  %v2947_v44 = vadd.f32 %v2946_v51, %v2945_v55  ;;  %v3490_v62 = vld [vmem:[%s5994_s8 + $0x360] sm:$0xff]  ;;  %v3392_v63 = vld [vmem:[%s5994_s8 + $0x50] sm:$0xff]  ;;  %3545 = vmatpush.msrb.mxu1 %v3426_v12  ;;  %v3441_v12 = vld [vmem:[%s5994_s8 + $0x1d8] sm:$0xff] }
 0x630   :  { %v3424_v51 = vld [vmem:[%s5994_s8 + $0x150] sm:$0xff]  ;;  %3565 = vmatpush.msra.mxu2 %v3458_v25  ;;  %3585 = vmatpush.msra.mxu3 %v3490_v62  ;;  %v3473_v25 = vld [vmem:[%s5994_s8 + $0x2d8] sm:$0xff] }
 0x631   :  { %2948 = vadd.xlane.f32.xlu1 %v2947_v44  ;;  %v3456_v44 = vld [vmem:[%s5994_s8 + $0x250] sm:$0xff]  ;;  %3526 = vmatpush.msrb.mxu0 %v3392_v63  ;;  %v3505_v62 = vld [vmem:[%s5994_s8 + $0x3d8] sm:$0xff] }
 0x632   :  { %3546 = vmatpush.msrb.mxu1 %v3424_v51  ;;  %3566 = vmatpush.msra.mxu2 %v3456_v44  ;;  %v3439_v51 = vld [vmem:[%s5994_s8 + $0x1c8] sm:$0xff] }
 0x633   :  { %3586 = vmatpush.msra.mxu3 %v3488_v37  ;;  %3527 = vmatpush.msrb.mxu0 %v3390_v48  ;;  %v3471_v37 = vld [vmem:[%s5994_s8 + $0x2c8] sm:$0xff] }
 0x634   :  { %3547 = vmatpush.msrb.mxu1 %v3422_v60  ;;  %3567 = vmatpush.msra.mxu2 %v3454_v43  ;;  %v3503_v48 = vld [vmem:[%s5994_s8 + $0x3c8] sm:$0xff]  ;;  %v3405_v60 = vld [vmem:[%s5994_s8 + $0xb8] sm:$0xff] }
 0x635   :  { %3587 = vmatpush.msra.mxu3 %v3486_v3  ;;  %3528 = vmatpush.msrb.mxu0 %v3388_v23  ;;  %v3469_v3 = vld [vmem:[%s5994_s8 + $0x2b8] sm:$0xff]  ;;  %v3435_v23 = vld [vmem:[%s5994_s8 + $0x1a8] sm:$0xff] }
 0x636   :  { %3548 = vmatpush.msrb.mxu1 %v3420_v41  ;;  %3568 = vmatpush.msra.mxu2 %v3452_v57  ;;  %v3467_v57 = vld [vmem:[%s5994_s8 + $0x2a8] sm:$0xff] }
 0x637   :  { %3588 = vmatpush.msra.mxu3 %v3484_v50  ;;  %3529 = vmatpush.msrb.mxu0 %v3386_v54  ;;  %v3499_v50 = vld [vmem:[%s5994_s8 + $0x3a8] sm:$0xff]  ;;  %v3433_v54 = vld [vmem:[%s5994_s8 + $0x198] sm:$0xff] }
 0x638   :  { %3549 = vmatpush.msrb.mxu1 %v3418_v22  ;;  %3569 = vmatpush.msra.mxu2 %v3450_v56  ;;  %v3465_v56 = vld [vmem:[%s5994_s8 + $0x298] sm:$0xff] }
 0x639   :  { %3589 = vmatpush.msra.mxu3 %v3482_v11  ;;  %3530 = vmatpush.msrb.mxu0 %v3384_v46  ;;  %v3497_v11 = vld [vmem:[%s5994_s8 + $0x398] sm:$0xff] }
 0x63a   :  { %3550 = vmatpush.msrb.mxu1 %v3416_v1  ;;  %3570 = vmatpush.msra.mxu2 %v3448_v34  ;;  %v3399_v1 = vld [vmem:[%s5994_s8 + $0x88] sm:$0xff] }
 0x63b   :  { %3590 = vmatpush.msra.mxu3 %v3480_v15  ;;  %3531 = vmatpush.msrb.mxu0 %v3382_v24  ;;  %v3431_v34 = vld [vmem:[%s5994_s8 + $0x188] sm:$0xff] }
 0x63c   :  { %3551 = vmatpush.msrb.mxu1 %v3414_v32  ;;  %3571 = vmatpush.msra.mxu2 %v3446_v59  ;;  %v5402_v24 = vld [vmem:[#allocation10 + $0x2] ss:$4 sm:$0x1f] }
 0x63d   :  { %3591 = vmatpush.msra.mxu3 %v3478_v17  ;;  %3596 = vmatpush.msra.mxu0 %v3413_v53  ;;  %v3463_v59 = vld [vmem:[%s5994_s8 + $0x288] sm:$0xff]  ;;  %v3429_v53 = vld [vmem:[%s5994_s8 + $0x178] sm:$0xff] }
 0x63e   :  { %3616 = vmatpush.msra.mxu1 %v3445_v30  ;;  %3636 = vmatpush.msrb.mxu2 %v3477_v4  ;;  %v3495_v17 = vld [vmem:[%s5994_s8 + $0x388] sm:$0xff] }
 0x63f   :  { %3656 = vmatpush.msrb.mxu3 %v3509_v47  ;;  %3597 = vmatpush.msra.mxu0 %v3411_v49  ;;  %v3461_v47 = vld [vmem:[%s5994_s8 + $0x278] sm:$0xff] }
 0x640   :  { %3617 = vmatpush.msra.mxu1 %v3443_v13  ;;  %3637 = vmatpush.msrb.mxu2 %v3475_v45  ;;  %v3493_v49 = vld [vmem:[%s5994_s8 + $0x378] sm:$0xff]  ;;  %v2997_v13 = vperm.slane %v5402_v24, 0  ;;  %v2998_v45 = vperm.slane %v5402_v24, 1 }
 0x641   :  { %3657 = vmatpush.msrb.mxu3 %v3507_v61  ;;  %3598 = vmatpush.msra.mxu0 %v3409_v31 }
 0x642   :  { %3618 = vmatpush.msra.mxu1 %v3441_v12  ;;  %3638 = vmatpush.msrb.mxu2 %v3473_v25  ;;  %v3395_v12 = vld [vmem:[%s5994_s8 + $0x68] sm:$0xff] }
 0x643   :  { %3658 = vmatpush.msrb.mxu3 %v3505_v62  ;;  %v3427_v25 = vld [vmem:[%s5994_s8 + $0x168] sm:$0xff] }
 0x644   :  { %3619 = vmatpush.msra.mxu1 %v3439_v51  ;;  %3639 = vmatpush.msrb.mxu2 %v3471_v37  ;;  %v3459_v51 = vld [vmem:[%s5994_s8 + $0x268] sm:$0xff] }
 0x645   :  { %3659 = vmatpush.msrb.mxu3 %v3503_v48  ;;  %v2999_v48 = vperm.slane %v5402_v24, 2 }
 0x646   :  { %3640 = vmatpush.msrb.mxu2 %v3469_v3  ;;  %v3425_v3 = vld [vmem:[%s5994_s8 + $0x158] sm:$0xff] }
 0x648   :  { %3641 = vmatpush.msrb.mxu2 %v3467_v57  ;;  %v3489_v57 = vld [vmem:[%s5994_s8 + $0x358] sm:$0xff] }
 0x64a   :  { %3642 = vmatpush.msrb.mxu2 %v3465_v56 }
 0x64c   :  { %3643 = vmatpush.msrb.mxu2 %v3463_v59 }
 0x64e   :  { %3644 = vmatpush.msrb.mxu2 %v3461_v47  ;;  %v3451_v47 = vld [vmem:[%s5994_s8 + $0x228] sm:$0xff] }
 0x650   :  { %3645 = vmatpush.msrb.mxu2 %v3459_v51 }
 0x6a2   :  { %v2933_v55 = vpop.xlane.xlu0 %2932 }
 0x6a3   :  { %v5233_v8 = vmul.f32 0.0015625, %v2933_v55  ;;  %v3407_v55 = vld [vmem:[%s5994_s8 + $0xc8] sm:$0xff] }
 0x6a4   :  { %v2949_v2 = vpop.xlane.xlu1 %2948  ;;  %3599 = vmatpush.msra.mxu0 %v3407_v55  ;;  %v3001_v55 = vperm.slane %v5402_v24, 4 }
 0x6a5   :  { %v2951_v42 = vmul.f32 0.0015625, %v2949_v2  ;;  %v2952_v0 = vmul.f32 %v5233_v8, %v5233_v8  ;;  %v3437_v2 = vld [vmem:[%s5994_s8 + $0x1b8] sm:$0xff]  ;;  %v2959_v46 = vsub.f32 %v5093_v7, %v5233_v8  ;;  %v2955_v15 = vsub.f32 %v5036_v58, %v5233_v8 }
 0x6a6   :  { %3600 = vmatpush.msra.mxu0 %v3405_v60  ;;  %3620 = vmatpush.msra.mxu1 %v3437_v2  ;;  %v2956_v32 = vsub.f32 %v5068_v52, %v5233_v8  ;;  %v2957_v58 = vsub.f32 %v5070_v5, %v5233_v8  ;;  %v2958_v52 = vsub.f32 %v5074_v10, %v5233_v8  ;;  %v3000_v2 = vperm.slane %v5402_v24, 3 }
 0x6a7   :  { %v2953_v40 = vsub.f32 %v2951_v42, %v2952_v0  ;;  %v3501_v42 = vld [vmem:[%s5994_s8 + $0x3b8] sm:$0xff]  ;;  %v3403_v0 = vld [vmem:[%s5994_s8 + $0xa8] sm:$0xff] }
 0x6a8   :  { %3660 = vmatpush.msrb.mxu3 %v3501_v42  ;;  %3601 = vmatpush.msra.mxu0 %v3403_v0 }
 0x6a9   :  { %v2954_v14 = vmax.f32 %v2953_v40, 0.0  ;;  %v3401_v40 = vld [vmem:[%s5994_s8 + $0x98] sm:$0xff]  ;;  %3621 = vmatpush.msra.mxu1 %v3435_v23 }
 0x6aa   :  { %3661 = vmatpush.msrb.mxu3 %v3499_v50  ;;  %3602 = vmatpush.msra.mxu0 %v3401_v40 }
 0x6ab   :  { %v5285_v35 = vadd.f32 1e-05, %v2954_v14  ;;  %v5390_v14 = vld [vmem:[#allocation10 + $0x1] ss:$4 sm:$0x1f]  ;;  %3622 = vmatpush.msra.mxu1 %v3433_v54 }
 0x6ac   :  { %3662 = vmatpush.msrb.mxu3 %v3497_v11  ;;  %v2979_v30 = vperm.slane %v5390_v14, 0  ;;  %v2980_v5 = vperm.slane %v5390_v14, 1  ;;  %v2981_v4 = vperm.slane %v5390_v14, 2  ;;  %v2983_v10 = vperm.slane %v5390_v14, 4  ;;  %3603 = vmatpush.msra.mxu0 %v3399_v1  ;;  %v3391_v54 = vld [vmem:[%s5994_s8 + $0x48] sm:$0xff] }
 0x6ad   :  { %4248 = vrsqrt.f32 %v5285_v35  ;;  %vm2967_vm14 = vweird.f32 %v5285_v35  ;;  %3623 = vmatpush.msra.mxu1 %v3431_v34  ;;  %v2982_v61 = vperm.slane %v5390_v14, 3  ;;  %v3487_v1 = vld [vmem:[%s5994_s8 + $0x348] sm:$0xff] }
 0x6ae   :  { %3663 = vmatpush.msrb.mxu3 %v3495_v17 }
 0x6af   :  { %3624 = vmatpush.msra.mxu1 %v3429_v53  ;;  %v3389_v53 = vld [vmem:[%s5994_s8 + $0x38] sm:$0xff] }
 0x6b0   :  { %3664 = vmatpush.msrb.mxu3 %v3493_v49  ;;  %v3483_v49 = vld [vmem:[%s5994_s8 + $0x328] sm:$0xff] }
 0x6b1   :  { %3625 = vmatpush.msra.mxu1 %v3427_v25  ;;  %v3415_v25 = vld [vmem:[%s5994_s8 + $0x108] sm:$0xff] }
 0x6b3   :  { %v5336_v63 = vpop.eup %4248  ;;  %3626 = vmatpush.msra.mxu1 %v3425_v3 }
 0x6b4   :  { %v2962_v44 = vmul.f32 %v5336_v63, %v5285_v35  ;;  %vm2968_vm13 = vweird.f32 %v5336_v63  ;;  %v3397_v35 = vld [vmem:[%s5994_s8 + $0x78] sm:$0xff] }
 0x6b5   :  { %vm2969_vm15 = vmor %vm2967_vm14, %vm2968_vm13  ;;  %3604 = vmatpush.msra.mxu0 %v3397_v35 }
 0x6b6   :  { %v2963_v43 = vmul.f32 %v5336_v63, %v2962_v44  ;;  %v3491_v44 = vld [vmem:[%s5994_s8 + $0x368] sm:$0xff] }
 0x6b7   :  { %3605 = vmatpush.msra.mxu0 %v3395_v12  ;;  %3665 = vmatpush.msrb.mxu3 %v3491_v44  ;;  %v3383_v12 = vld [vmem:[%s5994_s8 + $0x8] sm:$0xff] }
 0x6b8   :  { %v2964_v41 = vmul.f32 0.5, %v2963_v43  ;;  %v3393_v43 = vld [vmem:[%s5994_s8 + $0x58] sm:$0xff] }
 0x6b9   :  { %3606 = vmatpush.msra.mxu0 %v3393_v43  ;;  %3666 = vmatpush.msrb.mxu3 %v3489_v57 }
 0x6ba   :  { %v2965_v22 = vsub.f32 1.5, %v2964_v41  ;;  %v3457_v41 = vld [vmem:[%s5994_s8 + $0x258] sm:$0xff] }
 0x6bb   :  { %3646 = vmatpush.msrb.mxu2 %v3457_v41  ;;  %3607 = vmatpush.msra.mxu0 %v3391_v54 }
 0x6bc   :  { %v2966_v7 = vmul.f32 %v5336_v63, %v2965_v22  ;;  %v3423_v22 = vld [vmem:[%s5994_s8 + $0x148] sm:$0xff]  ;;  %3667 = vmatpush.msrb.mxu3 %v3487_v1 }
 0x6bd   :  { %3627 = vmatpush.msra.mxu1 %v3423_v22  ;;  %3608 = vmatpush.msra.mxu0 %v3389_v53 }
 0x6be   :  { %v2970_v8 = vsel %vm2969_vm15, %v5336_v63, %v2966_v7 }
 0x6bf   :  { %v2975_v31 = vmul.f32 %v2970_v8, %v2959_v46  ;;  %v2971_v62 = vmul.f32 %v2970_v8, %v2955_v15  ;;  %v2972_v63 = vmul.f32 %v2970_v8, %v2956_v32  ;;  %v2973_v37 = vmul.f32 %v2970_v8, %v2957_v58  ;;  %v3455_v46 = vld [vmem:[%s5994_s8 + $0x248] sm:$0xff] }
 0x6c0   :  { %v2974_v60 = vmul.f32 %v2970_v8, %v2958_v52  ;;  %3647 = vmatpush.msrb.mxu2 %v3455_v46  ;;  %v3419_v8 = vld [vmem:[%s5994_s8 + $0x128] sm:$0xff] }
 0x6c1   :  { %v2989_v42 = vmul.f32 %v2979_v30, %v2971_v62  ;;  %v2990_v0 = vmul.f32 %v2980_v5, %v2972_v63  ;;  %v2993_v23 = vmul.f32 %v2983_v10, %v2975_v31  ;;  %v2991_v50 = vmul.f32 %v2981_v4, %v2973_v37  ;;  %v3421_v30 = vld [vmem:[%s5994_s8 + $0x138] sm:$0xff]  ;;  %v3387_v10 = vld [vmem:[%s5994_s8 + $0x28] sm:$0xff] }
 0x6c2   :  { %v2992_v40 = vmul.f32 %v2982_v61, %v2974_v60  ;;  %v3453_v5 = vld [vmem:[%s5994_s8 + $0x238] sm:$0xff]  ;;  %3628 = vmatpush.msra.mxu1 %v3421_v30  ;;  %3609 = vmatpush.msra.mxu0 %v3387_v10  ;;  %v3447_v63 = vld [vmem:[%s5994_s8 + $0x208] sm:$0xff] }
 0x6c3   :  { %v5473_v56 = vadd.f32 %v2997_v13, %v2989_v42  ;;  %v5475_v11 = vadd.f32 %v2998_v45, %v2990_v0  ;;  %v5477_v14 = vadd.f32 %v3001_v55, %v2993_v23  ;;  %v5485_v34 = vadd.f32 %v2999_v48, %v2991_v50  ;;  %v3485_v4 = vld [vmem:[%s5994_s8 + $0x338] sm:$0xff]  ;;  %3648 = vmatpush.msrb.mxu2 %v3453_v5  ;;  %v3479_v55 = vld [vmem:[%s5994_s8 + $0x308] sm:$0xff] }
 0x6c4   :  { %v5487_v15 = vadd.f32 %v3000_v2, %v2992_v40  ;;  %3668 = vmatpush.msrb.mxu3 %v3485_v4  ;;  %v3385_v13 = vld [vmem:[%s5994_s8 + $0x18] sm:$0xff]  ;;  %3629 = vmatpush.msra.mxu1 %v3419_v8 }
 0x6c5   :  { %v3012_v24 = vsub.f32 0.0, %v5473_v56  ;;  %v3013_v32 = vsub.f32 0.0, %v5475_v11  ;;  %v3014_v7 = vsub.f32 0.0, %v5485_v34  ;;  %v3417_v45 = vld [vmem:[%s5994_s8 + $0x118] sm:$0xff]  ;;  %3649 = vmatpush.msrb.mxu2 %v3451_v47  ;;  %3610 = vmatpush.msra.mxu0 %v3385_v13 }
 0x6c6   :  { %v3015_v59 = vsub.f32 0.0, %v5487_v15  ;;  %v3449_v61 = vld [vmem:[%s5994_s8 + $0x218] sm:$0xff]  ;;  %3669 = vmatpush.msrb.mxu3 %v3483_v49  ;;  %3630 = vmatpush.msra.mxu1 %v3417_v45 }
 0x6c7   :  { %v3017_v17 = vmul.f32 1.442695, %v3012_v24  ;;  %v3019_v58 = vmul.f32 1.442695, %v3013_v32  ;;  %v3021_v52 = vmul.f32 1.442695, %v3014_v7  ;;  %3650 = vmatpush.msrb.mxu2 %v3449_v61  ;;  %3611 = vmatpush.msra.mxu0 %v3383_v12 }
 0x6c8   :  { %v3023_v35 = vmul.f32 1.442695, %v3015_v59  ;;  %v3481_v31 = vld [vmem:[%s5994_s8 + $0x318] sm:$0xff]  ;;  %3631 = vmatpush.msra.mxu1 %v3415_v25  ;;  %s4558_s8 = smov 64  }
 0x6c9   :  { %4250 = vpow2.f32 %v3017_v17  ;;  %3670 = vmatpush.msrb.mxu3 %v3481_v31  ;;  %3651 = vmatpush.msrb.mxu2 %v3447_v63 }
 0x6ca   :  { %4252 = vpow2.f32 %v3019_v58 }
 0x6cb   :  { %4254 = vpow2.f32 %v3021_v52  ;;  %3671 = vmatpush.msrb.mxu3 %v3479_v55 }
 0x6cc   :  { %4256 = vpow2.f32 %v3023_v35 }
 0x6cf   :  { %v4251_v62 = vpop.eup %4250 }
 0x6d0   :  { %v4253_v51 = vpop.eup %4252  ;;  %v3027_v44 = vadd.f32 1.0, %v4251_v62 }
 0x6d1   :  { %v4255_v37 = vpop.eup %4254  ;;  %v3028_v48 = vadd.f32 1.0, %v4253_v51 }
 0x6d2   :  { %v4257_v60 = vpop.eup %4256  ;;  %4258 = vrcp.f32 %v3027_v44  ;;  %v3029_v2 = vadd.f32 1.0, %v4255_v37  ;;  %v3041_v42 = vand.u32 2147483647, %v3027_v44  ;;  %v3043_v41 = vand.u32 2147483648, %v3027_v44 }
 0x6d3   :  { %4260 = vrcp.f32 %v3028_v48  ;;  %v3030_v43 = vadd.f32 1.0, %v4257_v60  ;;  %v3055_v50 = vand.u32 2147483647, %v3028_v48  ;;  %v3057_v54 = vand.u32 2147483648, %v3028_v48 }
 0x6d4   :  { %4262 = vrcp.f32 %v3029_v2  ;;  %vm3037_vm0 = vweird.f32 %v3027_v44  ;;  %vm5541_vm1 = vcmp.eq.f32.partialorder %v3041_v42, 8.507059e+37  ;;  %vm3051_vm2 = vweird.f32 %v3028_v48 }
 0x6d5   :  { %4264 = vrcp.f32 %v3030_v43  ;;  %v3044_v7 = vor.u32 1.1754944e-38, %v3043_v41  ;;  %vm5545_vm5 = vcmp.eq.f32.partialorder %v3055_v50, 8.507059e+37  ;;  %v3058_v53 = vor.u32 1.1754944e-38, %v3057_v54 }
 0x6d6   :  { %v3069_v5 = vand.u32 2147483647, %v3029_v2  ;;  %v3071_v10 = vand.u32 2147483648, %v3029_v2  ;;  %v3083_v47 = vand.u32 2147483647, %v3030_v43  ;;  %v3085_v45 = vand.u32 2147483648, %v3030_v43 }
 0x6d7   :  { %vm3065_vm11 = vweird.f32 %v3029_v2  ;;  %vm3079_vm13 = vweird.f32 %v3030_v43 }
 0x6d8   :  { %v4259_v3 = vpop.eup %4258  ;;  %v3072_v51 = vor.u32 1.1754944e-38, %v3071_v10  ;;  %vm3070_vm14 = vcmp.eq.f32.partialorder %v3069_v5, 8.507059e+37 }
 0x6d9   :  { %v4261_v0 = vpop.eup %4260  ;;  %v3033_v23 = vmul.f32 %v4259_v3, %v3027_v44  ;;  %vm3038_vm3 = vweird.f32 %v4259_v3 }
 0x6da   :  { %v3047_v57 = vmul.f32 %v4261_v0, %v3028_v48  ;;  %v4263_v22 = vpop.eup %4262  ;;  %vm3052_vm4 = vweird.f32 %v4261_v0  ;;  %vm3039_vm6 = vmor %vm3037_vm0, %vm3038_vm3  ;;  %v3086_v48 = vor.u32 1.1754944e-38, %v3085_v45  ;;  %vm3084_vm0 = vcmp.eq.f32.partialorder %v3083_v47, 8.507059e+37 }
 0x6db   :  { %v3034_v40 = vsub.f32 1.0, %v3033_v23  ;;  %v4265_v24 = vpop.eup %4264  ;;  %v3061_v59 = vmul.f32 %v4263_v22, %v3029_v2  ;;  %vm3053_vm7 = vmor %vm3051_vm2, %vm3052_vm4  ;;  %vm3066_vm8 = vweird.f32 %v4263_v22 }
 0x6dc   :  { %v3048_v1 = vsub.f32 1.0, %v3047_v57  ;;  %v3075_v52 = vmul.f32 %v4265_v24, %v3030_v43  ;;  %vm3080_vm10 = vweird.f32 %v4265_v24  ;;  %vm3067_vm12 = vmor %vm3065_vm11, %vm3066_vm8 }
 0x6dd   :  { %v3035_v32 = vmul.f32 %v4259_v3, %v3034_v40  ;;  %v3062_v30 = vsub.f32 1.0, %v3061_v59  ;;  %vm3081_vm15 = vmor %vm3079_vm13, %vm3080_vm10 }
 0x6de   :  { %v3049_v17 = vmul.f32 %v4261_v0, %v3048_v1  ;;  %v3076_v8 = vsub.f32 1.0, %v3075_v52 }
 0x6df   :  { %v3036_v35 = vadd.f32 %v4259_v3, %v3035_v32  ;;  %v3063_v13 = vmul.f32 %v4263_v22, %v3062_v30 }
 0x6e0   :  { %v3050_v4 = vadd.f32 %v4261_v0, %v3049_v17  ;;  %v3077_v12 = vmul.f32 %v4265_v24, %v3076_v8 }
 0x6e1   :  { %v3040_v49 = vsel %vm3039_vm6, %v4259_v3, %v3036_v35  ;;  %v3064_v63 = vadd.f32 %v4263_v22, %v3063_v13  ;;  %vm3123_vm6 = vcmask 517120  }
 0x6e2   :  { %v3045_v61 = vsel %vm5541_vm1, %v3044_v7, %v3040_v49  ;;  %v3054_v31 = vsel %vm3053_vm7, %v4261_v0, %v3050_v4  ;;  %v3078_v44 = vadd.f32 %v4265_v24, %v3077_v12  ;;  %v3510_v0 = vld [vmem:[#allocation11] ss:$4 sm:$0x3]  ;;  %vm3677_vm1 = vcmask 254976  }
 0x6e3   :  { %v3102_v25 = vmul.f32 %v3045_v61, %v5473_v56  ;;  %v3059_v62 = vsel %vm5545_vm5, %v3058_v53, %v3054_v31  ;;  %v3068_v37 = vsel %vm3067_vm12, %v4263_v22, %v3064_v63  ;;  %v3512_v41 = vperm.slane %v3510_v0, 0 }
 0x6e4   :  { %v3103_v55 = vmul.f32 %v3059_v62, %v5475_v11  ;;  %v3073_v60 = vsel %vm3070_vm14, %v3072_v51, %v3068_v37  ;;  %v3082_v3 = vsel %vm3081_vm15, %v4265_v24, %v3078_v44  ;;  %v3016_v11 = vsub.f32 0.0, %v5477_v14 }
 0x6e5   :  { %3532 = vmatmul.f32.vlgmr.msrb.gmra.mxu0 %v3102_v25  ;;  %v3104_v56 = vmul.f32 %v3073_v60, %v5485_v34  ;;  %v3087_v42 = vsel %vm3084_vm0, %v3086_v48, %v3082_v3  ;;  %v3513_v54 = vperm.slane %v3510_v0, 1  ;;  %v4055_v60 = vld [vmem:[%s5996_s10 + $0x78] sm:$0xff]  ;;  %v4054_v3 = vld [vmem:[%s5996_s10 + $0x70] sm:$0xff]  ;;  %v4052_v0 = vld [vmem:[%s5996_s10 + $0x60] sm:$0xff] }
 0x6e6   :  { %3552 = vmatmul.f32.vlgmr.msrb.gmra.mxu1 %v3103_v55  ;;  %v3105_v2 = vmul.f32 %v3087_v42, %v5487_v15  ;;  %v3025_v43 = vmul.f32 1.442695, %v3016_v11  ;;  %4060 = vmatpush.msrb.mxu0 %v4055_v60 }
 0x6e7   :  { %3572 = vmatmul.f32.vlgmr.msra.gmra.mxu2 %v3104_v56 }
 0x6e8   :  { %3592 = vmatmul.f32.vlgmr.msra.gmra.mxu3 %v3105_v2  ;;  %4266 = vpow2.f32 %v3025_v43  ;;  %4061 = vmatpush.msrb.mxu0 %v4054_v3 }
 0x6ed   :  { %3612 = vmatmul.f32.vlgmr.msra.gmra.mxu0 %v3102_v25 }
 0x6ee   :  { %3632 = vmatmul.f32.vlgmr.msra.gmra.mxu1 %v3103_v55  ;;  %v4267_v57 = vpop.eup %4266 }
 0x6ef   :  { %3652 = vmatmul.f32.vlgmr.msrb.gmra.mxu2 %v3104_v56  ;;  %v3031_v34 = vadd.f32 1.0, %v4267_v57 }
 0x6f0   :  { %3672 = vmatmul.f32.vlgmr.msrb.gmra.mxu3 %v3105_v2 }
 0x6f1   :  { %4268 = vrcp.f32 %v3031_v34  ;;  %v3099_v62 = vand.u32 2147483648, %v3031_v34  ;;  %vm3093_vm3 = vweird.f32 %v3031_v34  ;;  %v3097_v63 = vand.u32 2147483647, %v3031_v34 }
 0x6f3   :  { %v3100_v51 = vor.u32 1.1754944e-38, %v3099_v62  ;;  %vm3098_vm5 = vcmp.eq.f32.partialorder %v3097_v63, 8.507059e+37 }
 0x6f7   :  { %v4269_v59 = vpop.eup %4268 }
 0x6f8   :  { %v3089_v30 = vmul.f32 %v4269_v59, %v3031_v34  ;;  %vm3094_vm2 = vweird.f32 %v4269_v59  ;;  %v4049_v34 = vld [vmem:[%s5996_s10 + $0x48] sm:$0xff] }
 0x6f9   :  { %vm3095_vm4 = vmor %vm3093_vm3, %vm3094_vm2  ;;  %vm3781_vm3 = vcmask 123904  }
 0x6fa   :  { %v3090_v13 = vsub.f32 1.0, %v3089_v30  ;;  %v4042_v30 = vld [vmem:[%s5996_s10 + $0x10] sm:$0xff] }
 0x6fc   :  { %v3091_v12 = vmul.f32 %v4269_v59, %v3090_v13 }
 0x6fe   :  { %v3092_v25 = vadd.f32 %v4269_v59, %v3091_v12 }
 0x700   :  { %v3096_v55 = vsel %vm3095_vm4, %v4269_v59, %v3092_v25  ;;  %v4040_v25 = vld [vmem:[%s5996_s10] sm:$0xff] }
 0x701   :  { %v3101_v44 = vsel %vm3098_vm5, %v3100_v51, %v3096_v55 }
 0x702   :  { %v5573_v37 = vmul.f32 %v3101_v44, %v5477_v14  ;;  %v4053_v14 = vld [vmem:[%s5996_s10 + $0x68] sm:$0xff] }
 0x703   :  { %4062 = vmatpush.msrb.mxu0 %v4053_v14 }
 0x704   :  { %v3108_v48 = vmul.f32 %v5573_v37, %v4762_v20  ;;  %v3107_v59 = vmul.f32 %v5573_v37, %v4760_v16 }
 0x705   :  { %4063 = vmatpush.msrb.mxu0 %v4052_v0 }
 0x762   :  { %v3533_v23 = vpop.f32.mrf.mxu0 }
 0x763   :  { %v3553_v50 = vpop.f32.mrf.mxu1  ;;  %v3534_v40 = vadd.f32 %v3533_v23, %v3512_v41  ;;  %v4051_v41 = vld [vmem:[%s5996_s10 + $0x58] sm:$0xff] }
 0x764   :  { %4064 = vmatpush.msrb.mxu0 %v4051_v41 }
 0x765   :  { %v3554_v46 = vadd.f32 %v3553_v50, %v3534_v40  ;;  %v4050_v50 = vld [vmem:[%s5996_s10 + $0x50] sm:$0xff] }
 0x766   :  { %4065 = vmatpush.msrb.mxu0 %v4050_v50 }
 0x768   :  { %4066 = vmatpush.msrb.mxu0 %v4049_v34 }
 0x76a   :  { %v3573_v22 = vpop.f32.mrf.mxu2  ;;  %v3613_v15 = vpop.f32.mrf.mxu0 }
 0x76b   :  { %v3593_v1 = vpop.f32.mrf.mxu3  ;;  %v3574_v24 = vadd.f32 %v3573_v22, %v3554_v46  ;;  %v3614_v32 = vadd.f32 %v3613_v15, %v3513_v54  ;;  %v3633_v7 = vpop.f32.mrf.mxu1  ;;  %v4048_v54 = vld [vmem:[%s5996_s10 + $0x40] sm:$0xff]  ;;  %v4047_v22 = vld [vmem:[%s5996_s10 + $0x38] sm:$0xff]  ;;  %v4046_v15 = vld [vmem:[%s5996_s10 + $0x30] sm:$0xff] }
 0x76c   :  { %4067 = vmatpush.msrb.mxu0 %v4048_v54 }
 0x76d   :  { %v5560_v17 = vadd.f32 %v3593_v1, %v3574_v24  ;;  %v3634_v58 = vadd.f32 %v3633_v7, %v3614_v32  ;;  %v4045_v1 = vld [vmem:[%s5996_s10 + $0x28] sm:$0xff]  ;;  %v4044_v32 = vld [vmem:[%s5996_s10 + $0x20] sm:$0xff] }
 0x76e   :  { %4068 = vmatpush.msrb.mxu0 %v4047_v22 }
 0x76f   :  { %v3682_v4 = vmul.f32 %v5560_v17, %v5560_v17  ;;  %v3676_v10 = vsel %vm510_vm9, %v5560_v17, 0.0 }
 0x770   :  { %4069 = vmatpush.msrb.mxu0 %v4046_v15 }
 0x771   :  { %v3684_v45 = vsel %vm510_vm9, %v3682_v4, 0.0  ;;  %v3710_v4 = vld [vmem:[#allocation11 + $0x1] ss:$4 sm:$0x3] }
 0x772   :  { %v3653_v52 = vpop.f32.mrf.mxu2  ;;  %4070 = vmatpush.msrb.mxu0 %v4045_v1  ;;  %v3713_v12 = vperm.slane %v3710_v4, 1  ;;  %v3712_v62 = vperm.slane %v3710_v4, 0 }
 0x773   :  { %v3654_v35 = vadd.f32 %v3653_v52, %v3634_v58  ;;  %v3673_v53 = vpop.f32.mrf.mxu3  ;;  %v4043_v52 = vld [vmem:[%s5996_s10 + $0x18] sm:$0xff] }
 0x774   :  { %4071 = vmatpush.msrb.mxu0 %v4044_v32 }
 0x775   :  { %v5562_v5 = vadd.f32 %v3673_v53, %v3654_v35 }
 0x776   :  { %4072 = vmatpush.msrb.mxu0 %v4043_v52 }
 0x777   :  { %v3678_v8 = vsel %vm3677_vm1, %v5562_v5, 0.0  ;;  %v3683_v47 = vmul.f32 %v5562_v5, %v5562_v5 }
 0x778   :  { %v3679_v49 = vadd.f32 %v3678_v8, %v3676_v10  ;;  %4073 = vmatpush.msrb.mxu0 %v4042_v30 }
 0x779   :  { %v3685_v61 = vsel %vm3677_vm1, %v3683_v47, 0.0  ;;  %v4041_v47 = vld [vmem:[%s5996_s10 + $0x8] sm:$0xff]  ;;  %s4559_s10 = smov 112  }
 0x77a   :  { %3680 = vadd.xlane.f32.xlu2 %v3679_v49  ;;  %v3686_v31 = vadd.f32 %v3685_v61, %v3684_v45  ;;  %v3719_v45 = vld [vmem:[#allocation11 + $0x2] ss:$4 sm:$0x3]  ;;  %4074 = vmatpush.msrb.mxu0 %v4041_v47 }
 0x77b   :  { %v3721_v44 = vperm.slane %v3719_v45, 0 }
 0x77c   :  { %3687 = vadd.xlane.f32.xlu0 %v3686_v31  ;;  %4075 = vmatpush.msrb.mxu0 %v4040_v25 }
 0x790   :  { %3110 = vrot.lane.b32.xlu0 %v3108_v48, %s4558_s8  ;;  %v3722_v48 = vperm.slane %v3719_v45, 1  ;;  %v3116_v45 = vmul.f32 %v5573_v37, %v4771_v28 }
 0x7ed   :  { %v3681_v56 = vpop.xlane.xlu2 %3680 }
 0x7ee   :  { %v3689_v42 = vmul.f32 0.00625, %v3681_v56 }
 0x7ef   :  { %v3688_v2 = vpop.xlane.xlu0 %3687 }
 0x7f0   :  { %v3690_v11 = vmul.f32 0.00625, %v3688_v2  ;;  %v3691_v43 = vmul.f32 %v3689_v42, %v3689_v42  ;;  %v3694_v61 = vsub.f32 %v5560_v17, %v3689_v42  ;;  %v3695_v31 = vsub.f32 %v5562_v5, %v3689_v42 }
 0x7f2   :  { %v3692_v23 = vsub.f32 %v3690_v11, %v3691_v43 }
 0x7f4   :  { %v3693_v57 = vmax.f32 %v3692_v23, 0.0 }
 0x7f6   :  { %v3696_v40 = vadd.f32 1e-05, %v3693_v57 }
 0x7f8   :  { %4270 = vrsqrt.f32 %v3696_v40  ;;  %vm3703_vm8 = vweird.f32 %v3696_v40 }
 0x7fe   :  { %v4271_v46 = vpop.eup %4270 }
 0x7ff   :  { %v3698_v24 = vmul.f32 %v4271_v46, %v3696_v40  ;;  %vm3704_vm7 = vweird.f32 %v4271_v46 }
 0x800   :  { %vm3705_vm10 = vmor %vm3703_vm8, %vm3704_vm7 }
 0x801   :  { %v3699_v7 = vmul.f32 %v4271_v46, %v3698_v24 }
 0x802   :  { %v3111_v58 = vpop.permute.xlu0 %3110 }
 0x803   :  { %v3700_v35 = vmul.f32 0.5, %v3699_v7  ;;  %v3113_v53 = vadd.f32 %v3111_v58, %v3107_v59 }
 0x805   :  { %v3701_v10 = vsub.f32 1.5, %v3700_v35  ;;  %v5623_v8 = vadd.f32 %v3113_v53, %v4766_v26 }
 0x807   :  { %v3702_v49 = vmul.f32 %v4271_v46, %v3701_v10  ;;  %v3124_v13 = vsel %vm3123_vm6, %v5623_v8, 0.0 }
 0x808   :  { %3125 = vadd.xlane.f32.xlu0 %v3124_v13 }
 0x809   :  { %v3706_v63 = vsel %vm3705_vm10, %v4271_v46, %v3702_v49 }
 0x80a   :  { %v3707_v55 = vmul.f32 %v3706_v63, %v3694_v61  ;;  %v3708_v51 = vmul.f32 %v3706_v63, %v3695_v31 }
 0x80c   :  { %v3717_v60 = vmul.f32 %v3713_v12, %v3708_v51  ;;  %v3716_v3 = vmul.f32 %v3712_v62, %v3707_v55 }
 0x80e   :  { %v3725_v17 = vadd.f32 %v3721_v44, %v3716_v3  ;;  %v3726_v56 = vadd.f32 %v3722_v48, %v3717_v60 }
 0x810   :  { %v3727_v5 = vsub.f32 0.0, %v3725_v17  ;;  %v3728_v42 = vsub.f32 0.0, %v3726_v56 }
 0x812   :  { %v3729_v14 = vmul.f32 1.442695, %v3727_v5  ;;  %v3731_v2 = vmul.f32 1.442695, %v3728_v42 }
 0x814   :  { %4272 = vpow2.f32 %v3729_v14 }
 0x815   :  { %4274 = vpow2.f32 %v3731_v2 }
 0x81a   :  { %v4273_v11 = vpop.eup %4272 }
 0x81b   :  { %v4275_v43 = vpop.eup %4274  ;;  %v3733_v0 = vadd.f32 1.0, %v4273_v11 }
 0x81c   :  { %v3734_v23 = vadd.f32 1.0, %v4275_v43 }
 0x81d   :  { %4276 = vrcp.f32 %v3733_v0  ;;  %v3746_v54 = vand.u32 2147483648, %v3733_v0  ;;  %v3744_v46 = vand.u32 2147483647, %v3733_v0  ;;  %vm3740_vm13 = vweird.f32 %v3733_v0 }
 0x81e   :  { %4278 = vrcp.f32 %v3734_v23  ;;  %v3760_v1 = vand.u32 2147483648, %v3734_v23  ;;  %v3758_v32 = vand.u32 2147483647, %v3734_v23  ;;  %vm3754_vm15 = vweird.f32 %v3734_v23 }
 0x81f   :  { %v3747_v59 = vor.u32 1.1754944e-38, %v3746_v54  ;;  %vm3745_vm0 = vcmp.eq.f32.partialorder %v3744_v46, 8.507059e+37 }
 0x820   :  { %v3761_v35 = vor.u32 1.1754944e-38, %v3760_v1  ;;  %vm3759_vm2 = vcmp.eq.f32.partialorder %v3758_v32, 8.507059e+37 }
 0x823   :  { %v4277_v41 = vpop.eup %4276 }
 0x824   :  { %v4279_v57 = vpop.eup %4278  ;;  %v3736_v50 = vmul.f32 %v4277_v41, %v3733_v0  ;;  %vm3741_vm11 = vweird.f32 %v4277_v41 }
 0x825   :  { %v3750_v40 = vmul.f32 %v4279_v57, %v3734_v23  ;;  %vm3755_vm12 = vweird.f32 %v4279_v57  ;;  %vm3742_vm14 = vmor %vm3740_vm13, %vm3741_vm11 }
 0x826   :  { %v3737_v34 = vsub.f32 1.0, %v3736_v50  ;;  %vm3756_vm1 = vmor %vm3754_vm15, %vm3755_vm12 }
 0x827   :  { %v3751_v22 = vsub.f32 1.0, %v3750_v40 }
 0x828   :  { %v3738_v15 = vmul.f32 %v4277_v41, %v3737_v34 }
 0x829   :  { %v3752_v24 = vmul.f32 %v4279_v57, %v3751_v22 }
 0x82a   :  { %v3739_v7 = vadd.f32 %v4277_v41, %v3738_v15 }
 0x82b   :  { %v3753_v58 = vadd.f32 %v4279_v57, %v3752_v24 }
 0x82c   :  { %v3743_v52 = vsel %vm3742_vm14, %v4277_v41, %v3739_v7 }
 0x82d   :  { %v3748_v53 = vsel %vm3745_vm0, %v3747_v59, %v3743_v52  ;;  %v3757_v30 = vsel %vm3756_vm1, %v4279_v57, %v3753_v58 }
 0x82e   :  { %v3763_v4 = vmul.f32 %v3748_v53, %v3725_v17  ;;  %v3762_v10 = vsel %vm3759_vm2, %v3761_v35, %v3757_v30 }
 0x82f   :  { %v3764_v47 = vmul.f32 %v3762_v10, %v3726_v56 }
 0x830   :  { %4076 = vmatmul.f32.vlgmr.msrb.gmra.mxu0 %v3763_v4 }
 0x831   :  { %v3774_v49 = vmul.f32 %v3764_v47, %v4771_v28  ;;  %v3766_v13 = vmul.f32 %v3764_v47, %v4762_v20  ;;  %v3773_v61 = vmul.f32 %v3764_v47, %v4769_v27  ;;  %v3115_v20 = vmul.f32 %v5573_v37, %v4769_v27 }
 0x832   :  { %v3765_v48 = vmul.f32 %v3764_v47, %v4760_v16 }
 0x833   :  { %3776 = vrot.lane.b32.xlu2 %v3774_v49, %s4559_s10  ;;  %3768 = vrot.lane.b32.xlu1 %v3766_v13, %s4559_s10 }
 0x83b   :  { %3118 = vrot.lane.b32.xlu2 %v3116_v45, %s4558_s8 }
 0x87b   :  { %v3126_v14 = vpop.xlane.xlu0 %3125 }
 0x88d   :  { %v3777_v31 = vpop.permute.xlu2 %3776 }
 0x88e   :  { %v3779_v12 = vadd.f32 %v3777_v31, %v3773_v61 }
 0x890   :  { %v5642_v25 = vadd.f32 %v3779_v12, %v4779_v36 }
 0x892   :  { %v3785_v62 = vsel %vm3781_vm3, %v5642_v25, 0.0 }
 0x893   :  { %3786 = vadd.xlane.f32.xlu0 %v3785_v62 }
 0x895   :  { %v3119_v63 = vpop.permute.xlu2 %3118 }
 0x896   :  { %v3121_v55 = vadd.f32 %v3119_v63, %v3115_v20 }
 0x898   :  { %v5649_v28 = vadd.f32 %v3121_v55, %v4779_v36  ;;  %v3793_v36 = vmul.f32 %v5642_v25, %v5642_v25 }
 0x89a   :  { %v3135_v51 = vmul.f32 %v5649_v28, %v5649_v28  ;;  %v3794_v5 = vsel %vm3781_vm3, %v3793_v36, 0.0  ;;  %v3127_v16 = vsel %vm3123_vm6, %v5649_v28, 0.0 }
 0x89c   :  { %v3136_v44 = vsel %vm3123_vm6, %v3135_v51, 0.0 }
 0x89d   :  { %3137 = vadd.xlane.f32.xlu0 %v3136_v44 }
 0x8a5   :  { %v3769_v60 = vpop.permute.xlu1 %3768 }
 0x8a6   :  { %v3771_v3 = vadd.f32 %v3769_v60, %v3765_v48 }
 0x8a8   :  { %v3772_v17 = vadd.f32 %v3771_v3, %v4766_v26  ;;  %v3131_v26 = vmul.f32 %v5623_v8, %v5623_v8 }
 0x8aa   :  { %v3782_v56 = vsel %vm3781_vm3, %v3772_v17, 0.0  ;;  %v3789_v27 = vmul.f32 %v3772_v17, %v3772_v17  ;;  %v3132_v42 = vsel %vm3123_vm6, %v3131_v26, 0.0 }
 0x8ab   :  { %3783 = vadd.xlane.f32.xlu1 %v3782_v56 }
 0x8ac   :  { %v3790_v37 = vsel %vm3781_vm3, %v3789_v27, 0.0 }
 0x8ad   :  { %3791 = vadd.xlane.f32.xlu2 %v3790_v37 }
 0x8b3   :  { %3795 = vadd.xlane.f32.xlu1 %v3794_v5 }
 0x8b5   :  { %3128 = vadd.xlane.f32.xlu2 %v3127_v16 }
 0x8bb   :  { %3133 = vadd.xlane.f32.xlu1 %v3132_v42 }
 0x906   :  { %v3787_v11 = vpop.xlane.xlu0 %3786 }
 0x910   :  { %v3138_v1 = vpop.xlane.xlu0 %3137 }
 0x91e   :  { %v3784_v2 = vpop.xlane.xlu1 %3783 }
 0x91f   :  { %v3788_v0 = vadd.f32 %v3787_v11, %v3784_v2 }
 0x920   :  { %v3792_v43 = vpop.xlane.xlu2 %3791 }
 0x921   :  { %v3798_v23 = vmul.f32 0.03125, %v3788_v0 }
 0x923   :  { %v3800_v40 = vmul.f32 %v3798_v23, %v3798_v23  ;;  %v3814_v31 = vsub.f32 %v3772_v17, %v3798_v23  ;;  %v3837_v12 = vsub.f32 %v5642_v25, %v3798_v23 }
 0x926   :  { %v3796_v41 = vpop.xlane.xlu1 %3795 }
 0x927   :  { %v3797_v57 = vadd.f32 %v3796_v41, %v3792_v43 }
 0x928   :  { %v3129_v50 = vpop.xlane.xlu2 %3128 }
 0x929   :  { %v3799_v34 = vmul.f32 0.03125, %v3797_v57  ;;  %v3130_v54 = vadd.f32 %v3129_v50, %v3126_v14 }
 0x92b   :  { %v3801_v22 = vsub.f32 %v3799_v34, %v3800_v40  ;;  %v3140_v46 = vmul.f32 0.0078125, %v3130_v54 }
 0x92d   :  { %v3802_v15 = vmax.f32 %v3801_v22, 0.0  ;;  %v3142_v59 = vmul.f32 %v3140_v46, %v3140_v46  ;;  %v3156_v25 = vsub.f32 %v5623_v8, %v3140_v46  ;;  %v3179_v27 = vsub.f32 %v5649_v28, %v3140_v46 }
 0x92e   :  { %v3134_v24 = vpop.xlane.xlu1 %3133 }
 0x92f   :  { %v3803_v32 = vadd.f32 1e-05, %v3802_v15  ;;  %v3139_v7 = vadd.f32 %v3138_v1, %v3134_v24 }
 0x931   :  { %4280 = vrsqrt.f32 %v3803_v32  ;;  %v3141_v58 = vmul.f32 0.0078125, %v3139_v7  ;;  %vm3810_vm5 = vweird.f32 %v3803_v32 }
 0x933   :  { %v3143_v52 = vsub.f32 %v3141_v58, %v3142_v59 }
 0x935   :  { %v3144_v35 = vmax.f32 %v3143_v52, 0.0 }
 0x937   :  { %v4281_v53 = vpop.eup %4280  ;;  %v3145_v30 = vadd.f32 1e-05, %v3144_v35 }
 0x938   :  { %v3805_v4 = vmul.f32 %v4281_v53, %v3803_v32  ;;  %vm3811_vm4 = vweird.f32 %v4281_v53 }
 0x939   :  { %4282 = vrsqrt.f32 %v3145_v30  ;;  %vm3812_vm7 = vmor %vm3810_vm5, %vm3811_vm4  ;;  %vm3152_vm10 = vweird.f32 %v3145_v30 }
 0x93a   :  { %v3806_v10 = vmul.f32 %v4281_v53, %v3805_v4 }
 0x93c   :  { %v3807_v47 = vmul.f32 0.5, %v3806_v10 }
 0x93e   :  { %v3808_v49 = vsub.f32 1.5, %v3807_v47 }
 0x93f   :  { %v4283_v13 = vpop.eup %4282 }
 0x940   :  { %v3809_v45 = vmul.f32 %v4281_v53, %v3808_v49  ;;  %v3147_v61 = vmul.f32 %v4283_v13, %v3145_v30  ;;  %vm3153_vm8 = vweird.f32 %v4283_v13 }
 0x941   :  { %vm3154_vm11 = vmor %vm3152_vm10, %vm3153_vm8 }
 0x942   :  { %v3813_v62 = vsel %vm3812_vm7, %v4281_v53, %v3809_v45  ;;  %v3148_v20 = vmul.f32 %v4283_v13, %v3147_v61 }
 0x943   :  { %v3815_v63 = vmul.f32 %v3814_v31, %v3813_v62  ;;  %v3838_v55 = vmul.f32 %v3837_v12, %v3813_v62 }
 0x944   :  { %v3149_v51 = vmul.f32 0.5, %v3148_v20 }
 0x945   :  { %v3816_v44 = vmul.f32 %v3815_v63, %v4801_v29  ;;  %v3839_v48 = vmul.f32 %v3838_v55, %v4803_v33 }
 0x946   :  { %v3150_v60 = vsub.f32 1.5, %v3149_v51 }
 0x947   :  { %v5670_v3 = vadd.f32 %v3816_v44, %v4805_v38  ;;  %v5673_v56 = vadd.f32 %v3839_v48, %v4807_v39 }
 0x948   :  { %v3151_v17 = vmul.f32 %v4283_v13, %v3150_v60 }
 0x949   :  { %v3818_v37 = vsub.f32 0.0, %v5670_v3  ;;  %v3841_v36 = vsub.f32 0.0, %v5673_v56 }
 0x94a   :  { %v3155_v5 = vsel %vm3154_vm11, %v4283_v13, %v3151_v17 }
 0x94b   :  { %v3157_v16 = vmul.f32 %v3156_v25, %v3155_v5  ;;  %v3180_v26 = vmul.f32 %v3179_v27, %v3155_v5  ;;  %v3819_v42 = vmul.f32 1.442695, %v3818_v37  ;;  %v3842_v14 = vmul.f32 1.442695, %v3841_v36 }
 0x94d   :  { %v3158_v2 = vmul.f32 %v3157_v16, %v4801_v29  ;;  %v3181_v11 = vmul.f32 %v3180_v26, %v4803_v33  ;;  %4284 = vpow2.f32 %v3819_v42 }
 0x94e   :  { %4286 = vpow2.f32 %v3842_v14 }
 0x94f   :  { %v5682_v8 = vadd.f32 %v3158_v2, %v4805_v38  ;;  %v5685_v28 = vadd.f32 %v3181_v11, %v4807_v39 }
 0x951   :  { %v3160_v43 = vsub.f32 0.0, %v5682_v8  ;;  %v3183_v0 = vsub.f32 0.0, %v5685_v28 }
 0x953   :  { %v4285_v23 = vpop.eup %4284  ;;  %v3161_v41 = vmul.f32 1.442695, %v3160_v43  ;;  %v3184_v40 = vmul.f32 1.442695, %v3183_v0 }
 0x954   :  { %v4287_v57 = vpop.eup %4286  ;;  %v3821_v50 = vadd.f32 1.0, %v4285_v23 }
 0x955   :  { %v3844_v29 = vadd.f32 1.0, %v4287_v57  ;;  %4288 = vpow2.f32 %v3161_v41 }
 0x956   :  { %4290 = vrcp.f32 %v3821_v50  ;;  %v3831_v24 = vand.u32 2147483647, %v3821_v50  ;;  %v3833_v32 = vand.u32 2147483648, %v3821_v50  ;;  %vm3827_vm14 = vweird.f32 %v3821_v50 }
 0x957   :  { %4292 = vrcp.f32 %v3844_v29  ;;  %v3856_v58 = vand.u32 2147483648, %v3844_v29  ;;  %v3854_v35 = vand.u32 2147483647, %v3844_v29  ;;  %vm3850_vm0 = vweird.f32 %v3844_v29 }
 0x958   :  { %4294 = vpow2.f32 %v3184_v40  ;;  %v3834_v4 = vor.u32 1.1754944e-38, %v3833_v32  ;;  %vm3832_vm1 = vcmp.eq.f32.partialorder %v3831_v24, 8.507059e+37 }
 0x959   :  { %v3857_v49 = vor.u32 1.1754944e-38, %v3856_v58  ;;  %vm3855_vm4 = vcmp.eq.f32.partialorder %v3854_v35, 8.507059e+37 }
 0x95b   :  { %v4289_v33 = vpop.eup %4288 }
 0x95c   :  { %v4291_v38 = vpop.eup %4290  ;;  %v3163_v34 = vadd.f32 1.0, %v4289_v33 }
 0x95d   :  { %v4293_v54 = vpop.eup %4292  ;;  %v3823_v39 = vmul.f32 %v4291_v38, %v3821_v50  ;;  %vm3828_vm12 = vweird.f32 %v4291_v38  ;;  %v6056_v50 = vld [vmem:[#allocation21_spill] sm:$0xff] }
 0x95e   :  { %v4295_v22 = vpop.eup %4294  ;;  %v3846_v15 = vmul.f32 %v4293_v54, %v3844_v29  ;;  %4296 = vrcp.f32 %v3163_v34  ;;  %vm3851_vm13 = vweird.f32 %v4293_v54  ;;  %vm3829_vm15 = vmor %vm3827_vm14, %vm3828_vm12  ;;  %v3175_v63 = vand.u32 2147483648, %v3163_v34 }
 0x95f   :  { %v3824_v46 = vsub.f32 1.0, %v3823_v39  ;;  %v3186_v1 = vadd.f32 1.0, %v4295_v22  ;;  %vm3852_vm2 = vmor %vm3850_vm0, %vm3851_vm13  ;;  %v3173_v51 = vand.u32 2147483647, %v3163_v34  ;;  %vm3169_vm7 = vweird.f32 %v3163_v34 }
 0x960   :  { %v3847_v7 = vsub.f32 1.0, %v3846_v15  ;;  %v3176_v36 = vor.u32 1.1754944e-38, %v3175_v63 }
 0x961   :  { %v3825_v59 = vmul.f32 %v4291_v38, %v3824_v46  ;;  %4298 = vrcp.f32 %v3186_v1  ;;  %v3196_v5 = vand.u32 2147483647, %v3186_v1  ;;  %v3198_v16 = vand.u32 2147483648, %v3186_v1 }
 0x962   :  { %v3848_v52 = vmul.f32 %v4293_v54, %v3847_v7  ;;  %vm3174_vm11 = vcmp.eq.f32.partialorder %v3173_v51, 8.507059e+37  ;;  %vm3192_vm12 = vweird.f32 %v3186_v1 }
 0x963   :  { %v3826_v53 = vadd.f32 %v4291_v38, %v3825_v59  ;;  %vm3197_vm14 = vcmp.eq.f32.partialorder %v3196_v5, 8.507059e+37  ;;  %v3199_v23 = vor.u32 1.1754944e-38, %v3198_v16 }
 0x964   :  { %v4297_v30 = vpop.eup %4296  ;;  %v3849_v10 = vadd.f32 %v4293_v54, %v3848_v52 }
 0x965   :  { %v3830_v47 = vsel %vm3829_vm15, %v4291_v38, %v3826_v53  ;;  %v3165_v13 = vmul.f32 %v4297_v30, %v3163_v34  ;;  %vm3170_vm5 = vweird.f32 %v4297_v30 }
 0x966   :  { %v3835_v45 = vsel %vm3832_vm1, %v3834_v4, %v3830_v47  ;;  %v3853_v61 = vsel %vm3852_vm2, %v4293_v54, %v3849_v10  ;;  %vm3171_vm8 = vmor %vm3169_vm7, %vm3170_vm5 }
 0x967   :  { %v4299_v31 = vpop.eup %4298  ;;  %v3836_v12 = vmul.f32 %v3835_v45, %v5670_v3  ;;  %v3858_v62 = vsel %vm3855_vm4, %v3857_v49, %v3853_v61  ;;  %v3166_v20 = vsub.f32 1.0, %v3165_v13 }
 0x968   :  { %v3859_v55 = vmul.f32 %v3858_v62, %v5673_v56  ;;  %v3188_v44 = vmul.f32 %v4299_v31, %v3186_v1  ;;  %vm3193_vm10 = vweird.f32 %v4299_v31 }
 0x969   :  { %v3860_v48 = vmul.f32 %v3836_v12, %v4815_v6  ;;  %v3864_v60 = vmul.f32 %v3836_v12, %v4824_v19  ;;  %v3167_v17 = vmul.f32 %v4297_v30, %v3166_v20  ;;  %vm3194_vm13 = vmor %vm3192_vm12, %vm3193_vm10 }
 0x96a   :  { %v3861_v25 = vmul.f32 %v3859_v55, %v4817_v9  ;;  %v3865_v27 = vmul.f32 %v3859_v55, %v4826_v21  ;;  %v3189_v37 = vsub.f32 1.0, %v3188_v44 }
 0x96b   :  { %v3168_v3 = vadd.f32 %v4297_v30, %v3167_v17 }
 0x96c   :  { %v3862_v26 = vadd.f32 %v3861_v25, %v3860_v48  ;;  %v3866_v56 = vadd.f32 %v3865_v27, %v3864_v60  ;;  %v3190_v42 = vmul.f32 %v4299_v31, %v3189_v37 }
 0x96d   :  { %v3172_v14 = vsel %vm3171_vm8, %v4297_v30, %v3168_v3 }
 0x96e   :  { %v5696_v2 = vadd.f32 %v3862_v26, %v4821_v18  ;;  %v3177_v11 = vsel %vm3174_vm11, %v3176_v36, %v3172_v14  ;;  %v3191_v43 = vadd.f32 %v4299_v31, %v3190_v42  ;;  %v5704_v40 = vadd.f32 %v3866_v56, %v6056_v50 }
 0x96f   :  { %v3178_v0 = vmul.f32 %v3177_v11, %v5682_v8 }
 0x970   :  { %v3868_v41 = vsel %vm3781_vm3, %v5696_v2, 0.0  ;;  %v3875_v57 = vmul.f32 %v5696_v2, %v5696_v2  ;;  %v3195_v29 = vsel %vm3194_vm13, %v4299_v31, %v3191_v43  ;;  %v3879_v39 = vmul.f32 %v5704_v40, %v5704_v40 }
 0x971   :  { %3869 = vadd.xlane.f32.xlu2 %v3868_v41  ;;  %v3200_v33 = vsel %vm3197_vm14, %v3199_v23, %v3195_v29  ;;  %v3202_v8 = vmul.f32 %v3178_v0, %v4815_v6  ;;  %v3206_v54 = vmul.f32 %v3178_v0, %v4824_v19 }
 0x972   :  { %v3876_v38 = vsel %vm3781_vm3, %v3875_v57, 0.0  ;;  %v3201_v34 = vmul.f32 %v3200_v33, %v5685_v28  ;;  %v3880_v24 = vsel %vm3781_vm3, %v3879_v39, 0.0  ;;  %v6058_v33 = vld [vmem:[#allocation23_spill] sm:$0xff]  ;;  %v6059_v39 = vld [vmem:[#allocation24_spill] sm:$0xff] }
 0x973   :  { %3877 = vadd.xlane.f32.xlu0 %v3876_v38 }
 0x974   :  { %v3203_v22 = vmul.f32 %v3201_v34, %v4817_v9  ;;  %v3207_v15 = vmul.f32 %v3201_v34, %v4826_v21 }
 0x976   :  { %v3204_v46 = vadd.f32 %v3203_v22, %v3202_v8  ;;  %v3208_v1 = vadd.f32 %v3207_v15, %v3206_v54 }
 0x978   :  { %v5716_v32 = vadd.f32 %v3204_v46, %v4821_v18  ;;  %v5719_v28 = vadd.f32 %v3208_v1, %v6056_v50  ;;  %v3871_v18 = vsel %vm3781_vm3, %v5704_v40, 0.0  ;;  %v6057_v50 = vld [vmem:[#allocation22_spill] sm:$0xff] }
 0x979   :  { %3881 = vadd.xlane.f32.xlu2 %v3880_v24 }
 0x97a   :  { %v3210_v6 = vsel %vm3123_vm6, %v5716_v32, 0.0  ;;  %v3213_v19 = vsel %vm3123_vm6, %v5719_v28, 0.0  ;;  %v3217_v9 = vmul.f32 %v5716_v32, %v5716_v32  ;;  %v3221_v7 = vmul.f32 %v5719_v28, %v5719_v28 }
 0x97b   :  { %3211 = vadd.xlane.f32.xlu1 %v3210_v6  ;;  %3214 = vadd.xlane.f32.xlu0 %v3213_v19 }
 0x97c   :  { %v3218_v21 = vsel %vm3123_vm6, %v3217_v9, 0.0  ;;  %v3222_v59 = vsel %vm3123_vm6, %v3221_v7, 0.0 }
 0x981   :  { %3219 = vadd.xlane.f32.xlu2 %v3218_v21 }
 0x983   :  { %3872 = vadd.xlane.f32.xlu1 %v3871_v18 }
 0x98b   :  { %3223 = vadd.xlane.f32.xlu1 %v3222_v59 }
 0x9e4   :  { %v3870_v58 = vpop.xlane.xlu2 %3869 }
 0x9e6   :  { %v3878_v52 = vpop.xlane.xlu0 %3877 }
 0x9ec   :  { %v3882_v53 = vpop.xlane.xlu2 %3881 }
 0x9ed   :  { %v3883_v10 = vadd.f32 %v3882_v53, %v3878_v52 }
 0x9ee   :  { %v3212_v35 = vpop.xlane.xlu1 %3211  ;;  %v3215_v30 = vpop.xlane.xlu0 %3214 }
 0x9ef   :  { %v3216_v49 = vadd.f32 %v3215_v30, %v3212_v35  ;;  %v3885_v45 = vmul.f32 0.03125, %v3883_v10 }
 0x9f1   :  { %v3226_v31 = vmul.f32 0.0078125, %v3216_v49 }
 0x9f3   :  { %v3228_v44 = vmul.f32 %v3226_v31, %v3226_v31  ;;  %v3242_v8 = vsub.f32 %v5716_v32, %v3226_v31  ;;  %v3265_v54 = vsub.f32 %v5719_v28, %v3226_v31 }
 0x9f4   :  { %v3220_v62 = vpop.xlane.xlu2 %3219 }
 0x9f6   :  { %v3873_v4 = vpop.xlane.xlu1 %3872 }
 0x9f7   :  { %v3874_v47 = vadd.f32 %v3873_v4, %v3870_v58 }
 0x9f9   :  { %v3884_v13 = vmul.f32 0.03125, %v3874_v47 }
 0x9fb   :  { %v3886_v61 = vmul.f32 %v3884_v13, %v3884_v13  ;;  %v3900_v14 = vsub.f32 %v5696_v2, %v3884_v13  ;;  %v3923_v11 = vsub.f32 %v5704_v40, %v3884_v13  ;;  %v6060_v40 = vld [vmem:[#allocation25_spill] sm:$0xff] }
 0x9fd   :  { %v3887_v12 = vsub.f32 %v3885_v45, %v3886_v61 }
 0x9fe   :  { %v3224_v20 = vpop.xlane.xlu1 %3223 }
 0x9ff   :  { %v3888_v63 = vmax.f32 %v3887_v12, 0.0  ;;  %v3225_v55 = vadd.f32 %v3224_v20, %v3220_v62 }
 0xa01   :  { %v3889_v51 = vadd.f32 1e-05, %v3888_v63  ;;  %v3227_v48 = vmul.f32 0.0078125, %v3225_v55 }
 0xa03   :  { %4300 = vrsqrt.f32 %v3889_v51  ;;  %v3229_v60 = vsub.f32 %v3227_v48, %v3228_v44  ;;  %vm3896_vm0 = vweird.f32 %v3889_v51 }
 0xa05   :  { %v3230_v17 = vmax.f32 %v3229_v60, 0.0 }
 0xa07   :  { %v3231_v25 = vadd.f32 1e-05, %v3230_v17 }
 0xa09   :  { %v4301_v27 = vpop.eup %4300  ;;  %4302 = vrsqrt.f32 %v3231_v25  ;;  %vm3238_vm4 = vweird.f32 %v3231_v25 }
 0xa0a   :  { %v3891_v37 = vmul.f32 %v4301_v27, %v3889_v51  ;;  %vm3897_vm15 = vweird.f32 %v4301_v27 }
 0xa0b   :  { %vm3898_vm1 = vmor %vm3896_vm0, %vm3897_vm15 }
 0xa0c   :  { %v3892_v3 = vmul.f32 %v4301_v27, %v3891_v37 }
 0xa0e   :  { %v3893_v36 = vmul.f32 0.5, %v3892_v3 }
 0xa0f   :  { %v4303_v5 = vpop.eup %4302 }
 0xa10   :  { %v3894_v16 = vsub.f32 1.5, %v3893_v36  ;;  %v3233_v26 = vmul.f32 %v4303_v5, %v3231_v25  ;;  %vm3239_vm2 = vweird.f32 %v4303_v5 }
 0xa11   :  { %vm3240_vm5 = vmor %vm3238_vm4, %vm3239_vm2 }
 0xa12   :  { %v3895_v56 = vmul.f32 %v4301_v27, %v3894_v16  ;;  %v3234_v42 = vmul.f32 %v4303_v5, %v3233_v26 }
 0xa14   :  { %v3899_v43 = vsel %vm3898_vm1, %v4301_v27, %v3895_v56  ;;  %v3235_v0 = vmul.f32 0.5, %v3234_v42 }
 0xa15   :  { %v3901_v23 = vmul.f32 %v3900_v14, %v3899_v43  ;;  %v3924_v41 = vmul.f32 %v3923_v11, %v3899_v43 }
 0xa16   :  { %v3236_v57 = vsub.f32 1.5, %v3235_v0 }
 0xa17   :  { %v3902_v29 = vmul.f32 %v3901_v23, %v6057_v50  ;;  %v3925_v38 = vmul.f32 %v3924_v41, %v6058_v33 }
 0xa18   :  { %v3237_v34 = vmul.f32 %v4303_v5, %v3236_v57 }
 0xa19   :  { %v5740_v2 = vadd.f32 %v3902_v29, %v6059_v39  ;;  %v5743_v22 = vadd.f32 %v3925_v38, %v6060_v40 }
 0xa1a   :  { %v3241_v15 = vsel %vm3240_vm5, %v4303_v5, %v3237_v34 }
 0xa1b   :  { %v3904_v46 = vsub.f32 0.0, %v5740_v2  ;;  %v3927_v1 = vsub.f32 0.0, %v5743_v22  ;;  %v3243_v24 = vmul.f32 %v3242_v8, %v3241_v15  ;;  %v3266_v6 = vmul.f32 %v3265_v54, %v3241_v15  ;;  %v6065_v54 = vld [vmem:[#allocation26_spill] sm:$0xff]  ;;  %v6066_v15 = vld [vmem:[#allocation29_spill] sm:$0xff] }
 0xa1d   :  { %v3905_v19 = vmul.f32 1.442695, %v3904_v46  ;;  %v3928_v9 = vmul.f32 1.442695, %v3927_v1  ;;  %v3244_v32 = vmul.f32 %v3243_v24, %v6057_v50  ;;  %v3267_v28 = vmul.f32 %v3266_v6, %v6058_v33  ;;  %v6067_v1 = vld [vmem:[#allocation27_spill] sm:$0xff] }
 0xa1f   :  { %4304 = vpow2.f32 %v3905_v19  ;;  %v5750_v21 = vadd.f32 %v3244_v32, %v6059_v39  ;;  %v5753_v18 = vadd.f32 %v3267_v28, %v6060_v40  ;;  %v6068_v19 = vld [vmem:[#allocation30_spill] sm:$0xff] }
 0xa20   :  { %4306 = vpow2.f32 %v3928_v9 }
 0xa21   :  { %v3246_v7 = vsub.f32 0.0, %v5750_v21  ;;  %v3269_v59 = vsub.f32 0.0, %v5753_v18 }
 0xa23   :  { %v3247_v58 = vmul.f32 1.442695, %v3246_v7  ;;  %v3270_v52 = vmul.f32 1.442695, %v3269_v59 }
 0xa25   :  { %v4305_v35 = vpop.eup %4304  ;;  %4308 = vpow2.f32 %v3247_v58 }
 0xa26   :  { %v4307_v53 = vpop.eup %4306  ;;  %v3907_v30 = vadd.f32 1.0, %v4305_v35  ;;  %4310 = vpow2.f32 %v3270_v52 }
 0xa27   :  { %v3930_v4 = vadd.f32 1.0, %v4307_v53  ;;  %v6069_v53 = vld [vmem:[#allocation28_spill] sm:$0xff] }
 0xa28   :  { %4312 = vrcp.f32 %v3907_v30  ;;  %v3917_v12 = vand.u32 2147483647, %v3907_v30  ;;  %v3919_v63 = vand.u32 2147483648, %v3907_v30  ;;  %vm3913_vm7 = vweird.f32 %v3907_v30 }
 0xa29   :  { %4314 = vrcp.f32 %v3930_v4  ;;  %v3940_v55 = vand.u32 2147483647, %v3930_v4  ;;  %v3942_v44 = vand.u32 2147483648, %v3930_v4  ;;  %vm3936_vm11 = vweird.f32 %v3930_v4 }
 0xa2a   :  { %vm5757_vm10 = vcmp.eq.f32.partialorder %v3917_v12, 8.507059e+37  ;;  %v3920_v3 = vor.u32 1.1754944e-38, %v3919_v63 }
 0xa2b   :  { %v4309_v10 = vpop.eup %4308  ;;  %vm5761_vm13 = vcmp.eq.f32.partialorder %v3940_v55, 8.507059e+37  ;;  %v3943_v26 = vor.u32 1.1754944e-38, %v3942_v44 }
 0xa2c   :  { %v4311_v47 = vpop.eup %4310  ;;  %v3249_v49 = vadd.f32 1.0, %v4309_v10 }
 0xa2d   :  { %v3272_v13 = vadd.f32 1.0, %v4311_v47 }
 0xa2e   :  { %v4313_v45 = vpop.eup %4312  ;;  %4316 = vrcp.f32 %v3249_v49  ;;  %v3259_v56 = vand.u32 2147483647, %v3249_v49  ;;  %v3261_v43 = vand.u32 2147483648, %v3249_v49  ;;  %vm3255_vm1 = vweird.f32 %v3249_v49 }
 0xa2f   :  { %v4315_v61 = vpop.eup %4314  ;;  %v3909_v31 = vmul.f32 %v4313_v45, %v3907_v30  ;;  %4318 = vrcp.f32 %v3272_v13  ;;  %vm3914_vm8 = vweird.f32 %v4313_v45  ;;  %v3282_v0 = vand.u32 2147483647, %v3272_v13 }
 0xa30   :  { %v3932_v62 = vmul.f32 %v4315_v61, %v3930_v4  ;;  %vm3937_vm12 = vweird.f32 %v4315_v61  ;;  %vm3915_vm14 = vmor %vm3913_vm7, %vm3914_vm8  ;;  %v3284_v50 = vand.u32 2147483648, %v3272_v13  ;;  %vm3278_vm4 = vweird.f32 %v3272_v13 }
 0xa31   :  { %v3910_v20 = vsub.f32 1.0, %v3909_v31  ;;  %vm3938_vm15 = vmor %vm3936_vm11, %vm3937_vm12  ;;  %vm3260_vm7 = vcmp.eq.f32.partialorder %v3259_v56, 8.507059e+37 }
 0xa32   :  { %v3933_v51 = vsub.f32 1.0, %v3932_v62 }
 0xa33   :  { %v3911_v48 = vmul.f32 %v4313_v45, %v3910_v20 }
 0xa34   :  { %v4317_v60 = vpop.eup %4316  ;;  %v3934_v25 = vmul.f32 %v4315_v61, %v3933_v51 }
 0xa35   :  { %v4319_v27 = vpop.eup %4318  ;;  %v3912_v37 = vadd.f32 %v4313_v45, %v3911_v48  ;;  %v3251_v5 = vmul.f32 %v4317_v60, %v3249_v49  ;;  %vm3256_vm0 = vweird.f32 %v4317_v60 }
 0xa36   :  { %v3935_v16 = vadd.f32 %v4315_v61, %v3934_v25  ;;  %v3274_v42 = vmul.f32 %v4319_v27, %v3272_v13  ;;  %vm3279_vm2 = vweird.f32 %v4319_v27  ;;  %vm3257_vm5 = vmor %vm3255_vm1, %vm3256_vm0  ;;  %v6071_v25 = vld [vmem:[#allocation34_spill] sm:$0xff] }
 0xa37   :  { %v3916_v14 = vsel %vm3915_vm14, %v4313_v45, %v3912_v37  ;;  %v3252_v11 = vsub.f32 1.0, %v3251_v5  ;;  %vm3280_vm8 = vmor %vm3278_vm4, %vm3279_vm2  ;;  %v6072_v37 = vld [vmem:[#allocation35_spill] sm:$0xff] }
 0xa38   :  { %v3921_v23 = vsel %vm5757_vm10, %v3920_v3, %v3916_v14  ;;  %v3939_v41 = vsel %vm3938_vm15, %v4315_v61, %v3935_v16  ;;  %v3275_v57 = vsub.f32 1.0, %v3274_v42  ;;  %vm3283_vm10 = vcmp.eq.f32.partialorder %v3282_v0, 8.507059e+37  ;;  %v6070_v61 = vld [vmem:[#allocation32_spill] sm:$0xff]  ;;  %v6074_v42 = vld [vmem:[#allocation37_spill] sm:$0xff] }
 0xa39   :  { %v3922_v29 = vmul.f32 %v3921_v23, %v5740_v2  ;;  %v3944_v33 = vsel %vm5761_vm13, %v3943_v26, %v3939_v41  ;;  %v3253_v38 = vmul.f32 %v4317_v60, %v3252_v11  ;;  %v3262_v2 = vor.u32 1.1754944e-38, %v3261_v43  ;;  %v6073_v26 = vld [vmem:[#allocation36_spill] sm:$0xff]  ;;  %v6076_v23 = vld [vmem:[#allocation41_spill] sm:$0xff] }
 0xa3a   :  { %v3945_v34 = vmul.f32 %v3944_v33, %v5743_v22  ;;  %v3276_v8 = vmul.f32 %v4319_v27, %v3275_v57  ;;  %v3285_v22 = vor.u32 1.1754944e-38, %v3284_v50  ;;  %v954_v3 = vsel %vm510_vm9, %v6072_v37, 0.0  ;;  %v6075_v43 = vld [vmem:[#allocation40_spill] sm:$0xff] }
 0xa3b   :  { %v3946_v39 = vmul.f32 %v3922_v29, %v6065_v54  ;;  %v3254_v40 = vadd.f32 %v4317_v60, %v3253_v38  ;;  %v3950_v46 = vmul.f32 %v3922_v29, %v6066_v15  ;;  %v964_v56 = vsel %vm510_vm9, %v6073_v26, 0.0  ;;  %v6077_v29 = vld [vmem:[#allocation38_spill] sm:$0xff]  ;;  %v6078_v38 = vld [vmem:[#allocation39_spill] sm:$0xff] }
 0xa3c   :  { %v3947_v24 = vmul.f32 %v3945_v34, %v6067_v1  ;;  %v3277_v6 = vadd.f32 %v4319_v27, %v3276_v8  ;;  %v3951_v9 = vmul.f32 %v3945_v34, %v6068_v19  ;;  %v965_v14 = vsel %vm510_vm9, %v6074_v42, 0.0 }
 0xa3d   :  { %v3258_v32 = vsel %vm3257_vm5, %v4317_v60, %v3254_v40  ;;  %v989_v0 = vsel %vm510_vm9, %v6075_v43, 0.0  ;;  %v990_v41 = vsel %vm510_vm9, %v6076_v23, 0.0  ;;  %v966_v57 = vadd.f32 %v965_v14, %v964_v56 }
 0xa3e   :  { %v3948_v28 = vadd.f32 %v3947_v24, %v3946_v39  ;;  %v3263_v7 = vsel %vm3260_vm7, %v3262_v2, %v3258_v32  ;;  %v3281_v59 = vsel %vm3280_vm8, %v4319_v27, %v3277_v6  ;;  %v3952_v58 = vadd.f32 %v3951_v9, %v3950_v46  ;;  %v4077_v39 = vpop.f32.mrf.mxu0 }
 0xa3f   :  { %v3264_v52 = vmul.f32 %v3263_v7, %v5750_v21  ;;  %v3286_v35 = vsel %vm3283_vm10, %v3285_v22, %v3281_v59  ;;  %v953_v27 = vsel %vm510_vm9, %v6071_v25, 0.0  ;;  %v991_v50 = vadd.f32 %v990_v41, %v989_v0 }
 0xa40   :  { %v5777_v30 = vadd.f32 %v3948_v28, %v6069_v53  ;;  %v3287_v4 = vmul.f32 %v3286_v35, %v5753_v18  ;;  %v5788_v21 = vadd.f32 %v3952_v58, %v6070_v61  ;;  %v955_v5 = vadd.f32 %v954_v3, %v953_v27 }
 0xa41   :  { %v3288_v10 = vmul.f32 %v3264_v52, %v6065_v54  ;;  %v3292_v47 = vmul.f32 %v3264_v52, %v6066_v15  ;;  %v977_v33 = vsel %vm510_vm9, %v6077_v29, 0.0  ;;  %v978_v34 = vsel %vm510_vm9, %v6078_v38, 0.0  ;;  %v4209_v54 = vld [vmem:[#allocation13] ss:$0 sm:$0xff] }
 0xa42   :  { %v3954_v49 = vsel %vm3781_vm3, %v5777_v30, 0.0  ;;  %v3961_v13 = vmul.f32 %v5777_v30, %v5777_v30  ;;  %v3289_v45 = vmul.f32 %v3287_v4, %v6067_v1  ;;  %v3293_v31 = vmul.f32 %v3287_v4, %v6068_v19 }
 0xa43   :  { %3955 = vadd.xlane.f32.xlu0 %v3954_v49  ;;  %v3965_v63 = vmul.f32 %v5788_v21, %v5788_v21  ;;  %v3957_v17 = vsel %vm3781_vm3, %v5788_v21, 0.0  ;;  %v979_v8 = vadd.f32 %v978_v34, %v977_v33  ;;  %v4078_v40 = vadd.f32 %v4209_v54, %v4077_v39 }
 0xa44   :  { %v3962_v18 = vsel %vm3781_vm3, %v3961_v13, 0.0  ;;  %v3290_v12 = vadd.f32 %v3289_v45, %v3288_v10  ;;  %v3294_v62 = vadd.f32 %v3293_v31, %v3292_v47  ;;  %v1025_v0 = vstv %s4183_s25 }
 0xa45   :  { %3963 = vadd.xlane.f32.xlu1 %v3962_v18  ;;  %v3966_v44 = vsel %vm3781_vm3, %v3965_v63, 0.0  ;;  %v1050_v23 = vstv %s4184_s6  ;;  %v1027_v38 = vstv %s4189_s7  ;;  %v1052_v34 = vstv %s4190_s26 }
 0xa46   :  { %v5793_v20 = vadd.f32 %v3290_v12, %v6069_v53  ;;  %v5800_v51 = vadd.f32 %v3294_v62, %v6070_v61 }
 0xa48   :  { %v3296_v55 = vsel %vm3123_vm6, %v5793_v20, 0.0  ;;  %v3299_v48 = vsel %vm3123_vm6, %v5800_v51, 0.0  ;;  %v3303_v60 = vmul.f32 %v5793_v20, %v5793_v20  ;;  %v3307_v16 = vmul.f32 %v5800_v51, %v5800_v51 }
 0xa49   :  { %3297 = vadd.xlane.f32.xlu2 %v3296_v55 }
 0xa4a   :  { %v3304_v36 = vsel %vm3123_vm6, %v3303_v60, 0.0  ;;  %v3308_v11 = vsel %vm3123_vm6, %v3307_v16, 0.0 }
 0xa4b   :  { %3967 = vadd.xlane.f32.xlu0 %v3966_v44 }
 0xa4d   :  { %3300 = vadd.xlane.f32.xlu1 %v3299_v48 }
 0xa51   :  { %3958 = vadd.xlane.f32.xlu2 %v3957_v17 }
 0xa53   :  { %3305 = vadd.xlane.f32.xlu0 %v3304_v36 }
 0xa55   :  { %956 = vadd.xlane.f32.xlu1 %v955_v5 }
 0xa59   :  { %3309 = vadd.xlane.f32.xlu2 %v3308_v11 }
 0xa5b   :  { %967 = vadd.xlane.f32.xlu0 %v966_v57 }
 0xa5d   :  { %992 = vadd.xlane.f32.xlu1 %v991_v50 }
 0xa61   :  { %980 = vadd.xlane.f32.xlu2 %v979_v8 }
 0xa79   :  { %4097 = vrot.lane.b32.xlu2 %v4078_v40, %s4560_s24 }
 0xab6   :  { %v3956_v15 = vpop.xlane.xlu0 %3955 }
 0xab8   :  { %v3964_v46 = vpop.xlane.xlu1 %3963 }
 0xabc   :  { %v3298_v1 = vpop.xlane.xlu2 %3297 }
 0xabe   :  { %v3968_v24 = vpop.xlane.xlu0 %3967 }
 0xabf   :  { %v3969_v19 = vadd.f32 %v3968_v24, %v3964_v46 }
 0xac0   :  { %v3301_v2 = vpop.xlane.xlu1 %3300 }
 0xac1   :  { %v3302_v22 = vadd.f32 %v3301_v2, %v3298_v1  ;;  %v3971_v7 = vmul.f32 0.03125, %v3969_v19 }
 0xac3   :  { %v5829_v52 = vmul.f32 0.0078125, %v3302_v22 }
 0xac4   :  { %v3959_v6 = vpop.xlane.xlu2 %3958 }
 0xac5   :  { %v3960_v9 = vadd.f32 %v3959_v6, %v3956_v15  ;;  %v3314_v45 = vmul.f32 %v5829_v52, %v5829_v52 }
 0xac6   :  { %v3306_v32 = vpop.xlane.xlu0 %3305 }
 0xac7   :  { %v3970_v28 = vmul.f32 0.03125, %v3960_v9 }
 0xac8   :  { %v957_v58 = vpop.xlane.xlu1 %956 }
 0xac9   :  { %v3972_v59 = vmul.f32 %v3970_v28, %v3970_v28  ;;  %v3986_v11 = vsub.f32 %v5777_v30, %v3970_v28  ;;  %v4009_v43 = vsub.f32 %v5788_v21, %v3970_v28  ;;  %v3328_v30 = vsub.f32 %v5793_v20, %v5829_v52 }
 0xaca   :  { %v3351_v21 = vsub.f32 %v5800_v51, %v5829_v52 }
 0xacb   :  { %v3973_v35 = vsub.f32 %v3971_v7, %v3972_v59 }
 0xacc   :  { %v3310_v53 = vpop.xlane.xlu2 %3309 }
 0xacd   :  { %v3974_v4 = vmax.f32 %v3973_v35, 0.0  ;;  %v3311_v10 = vadd.f32 %v3310_v53, %v3306_v32 }
 0xace   :  { %v968_v47 = vpop.xlane.xlu0 %967 }
 0xacf   :  { %v3975_v49 = vadd.f32 1e-05, %v3974_v4  ;;  %v3313_v13 = vmul.f32 0.0078125, %v3311_v10  ;;  %v969_v61 = vadd.f32 %v968_v47, %v957_v58  ;;  %v6079_v58 = vld [vmem:[#allocation20_spill] sm:$0xff] }
 0xad0   :  { %v993_v62 = vpop.xlane.xlu1 %992 }
 0xad1   :  { %4320 = vrsqrt.f32 %v3975_v49  ;;  %v3315_v31 = vsub.f32 %v3313_v13, %v3314_v45  ;;  %v995_v12 = vmul.f32 0.001953125, %v969_v61  ;;  %vm3982_vm3 = vweird.f32 %v3975_v49  ;;  %v6081_v61 = vld [vmem:[#allocation33_spill] sm:$0xff] }
 0xad3   :  { %v3316_v18 = vmax.f32 %v3315_v31, 0.0  ;;  %v997_v60 = vmul.f32 %v995_v12, %v995_v12  ;;  %v1015_v51 = vperm.slane %v995_v12, %v6079_v58 }
 0xad4   :  { %v981_v63 = vpop.xlane.xlu2 %980 }
 0xad5   :  { %v3317_v55 = vadd.f32 1e-05, %v3316_v18  ;;  %v994_v44 = vadd.f32 %v993_v62, %v981_v63  ;;  %v1048_v31 = vsub.f32 %v6081_v61, %v1015_v51 }
 0xad7   :  { %v4321_v48 = vpop.eup %4320  ;;  %4322 = vrsqrt.f32 %v3317_v55  ;;  %v996_v17 = vmul.f32 0.001953125, %v994_v44  ;;  %vm3324_vm13 = vweird.f32 %v3317_v55 }
 0xad8   :  { %v3977_v25 = vmul.f32 %v4321_v48, %v3975_v49  ;;  %vm3983_vm6 = vweird.f32 %v4321_v48  ;;  %v6080_v49 = vld [vmem:[#allocation31_spill] sm:$0xff] }
 0xad9   :  { %v998_v27 = vsub.f32 %v996_v17, %v997_v60  ;;  %vm3984_vm11 = vmor %vm3982_vm3, %vm3983_vm6  ;;  %v1017_v13 = vsub.f32 %v6080_v49, %v1015_v51 }
 0xada   :  { %v3978_v37 = vmul.f32 %v4321_v48, %v3977_v25 }
 0xadb   :  { %v999_v3 = vmax.f32 %v998_v27, 0.0 }
 0xadc   :  { %v3979_v36 = vmul.f32 0.5, %v3978_v37 }
 0xadd   :  { %v4323_v5 = vpop.eup %4322  ;;  %v1000_v16 = vadd.f32 1e-05, %v999_v3 }
 0xade   :  { %v3980_v26 = vsub.f32 1.5, %v3979_v36  ;;  %v3319_v56 = vmul.f32 %v4323_v5, %v3317_v55  ;;  %vm3325_vm12 = vweird.f32 %v4323_v5 }
 0xadf   :  { %4324 = vrsqrt.f32 %v1000_v16  ;;  %vm3326_vm14 = vmor %vm3324_vm13, %vm3325_vm12  ;;  %vm1007_vm0 = vweird.f32 %v1000_v16 }
 0xae0   :  { %v3981_v42 = vmul.f32 %v4321_v48, %v3980_v26  ;;  %v3320_v14 = vmul.f32 %v4323_v5, %v3319_v56 }
 0xae2   :  { %v3985_v41 = vsel %vm3984_vm11, %v4321_v48, %v3981_v42  ;;  %v3321_v57 = vmul.f32 0.5, %v3320_v14 }
 0xae3   :  { %v3987_v50 = vmul.f32 %v3986_v11, %v3985_v41  ;;  %v4010_v29 = vmul.f32 %v4009_v43, %v3985_v41 }
 0xae4   :  { %v3322_v33 = vsub.f32 1.5, %v3321_v57  ;;  %v5870_v57 = vstv %s4167_s11 }
 0xae5   :  { %v4325_v8 = vpop.eup %4324  ;;  %v3988_v54 = vmul.f32 %v3987_v50, %v1025_v0  ;;  %v4011_v39 = vmul.f32 %v4010_v29, %v1050_v23  ;;  %v5872_v29 = vstv %s4168_s12 }
 0xae6   :  { %v3323_v40 = vmul.f32 %v4323_v5, %v3322_v33  ;;  %v1002_v15 = vmul.f32 %v4325_v8, %v1000_v16  ;;  %vm1008_vm15 = vweird.f32 %v4325_v8  ;;  %v5874_v33 = vstv %s4177_s28 }
 0xae7   :  { %v5839_v46 = vadd.f32 %v3988_v54, %v1027_v38  ;;  %v5841_v1 = vadd.f32 %v4011_v39, %v1052_v34  ;;  %vm1009_vm1 = vmor %vm1007_vm0, %vm1008_vm15 }
 0xae8   :  { %v3327_v24 = vsel %vm3326_vm14, %v4323_v5, %v3323_v40  ;;  %v1003_v2 = vmul.f32 %v4325_v8, %v1002_v15  ;;  %v5883_v40 = vstv %s4178_s29 }
 0xae9   :  { %v3329_v6 = vmul.f32 %v3328_v30, %v3327_v24  ;;  %v3352_v19 = vmul.f32 %v3351_v21, %v3327_v24  ;;  %v3990_v9 = vsub.f32 0.0, %v5839_v46  ;;  %v4013_v32 = vsub.f32 0.0, %v5841_v1 }
 0xaea   :  { %v1004_v22 = vmul.f32 0.5, %v1003_v2 }
 0xaeb   :  { %v3991_v28 = vmul.f32 1.442695, %v3990_v9  ;;  %v4014_v7 = vmul.f32 1.442695, %v4013_v32  ;;  %v3330_v20 = vmul.f32 %v3329_v6, %v1025_v0  ;;  %v3353_v59 = vmul.f32 %v3352_v19, %v1050_v23 }
 0xaec   :  { %v1005_v52 = vsub.f32 1.5, %v1004_v22 }
 0xaed   :  { %4326 = vpow2.f32 %v3991_v28  ;;  %v5846_v35 = vadd.f32 %v3330_v20, %v1027_v38  ;;  %v5848_v53 = vadd.f32 %v3353_v59, %v1052_v34 }
 0xaee   :  { %v1006_v4 = vmul.f32 %v4325_v8, %v1005_v52  ;;  %4328 = vpow2.f32 %v4014_v7 }
 0xaef   :  { %v3332_v10 = vsub.f32 0.0, %v5846_v35  ;;  %v3355_v47 = vsub.f32 0.0, %v5848_v53 }
 0xaf0   :  { %v1010_v45 = vsel %vm1009_vm1, %v4325_v8, %v1006_v4  ;;  %v5878_v8 = vstv %s4170_s27 }
 0xaf1   :  { %v1022_v18 = vperm.slane %v1010_v45, %v6079_v58  ;;  %v3333_v12 = vmul.f32 1.442695, %v3332_v10  ;;  %v3356_v62 = vmul.f32 1.442695, %v3355_v47 }
 0xaf3   :  { %v4327_v63 = vpop.eup %4326  ;;  %v1024_v55 = vmul.f32 %v1022_v18, %v1017_v13  ;;  %v1049_v44 = vmul.f32 %v1048_v31, %v1022_v18  ;;  %4330 = vpow2.f32 %v3333_v12 }
 0xaf4   :  { %v4329_v48 = vpop.eup %4328  ;;  %v3993_v60 = vadd.f32 1.0, %v4327_v63  ;;  %4332 = vpow2.f32 %v3356_v62 }
 0xaf5   :  { %v1026_v17 = vmul.f32 %v1025_v0, %v1024_v55  ;;  %v1051_v25 = vmul.f32 %v1050_v23, %v1049_v44  ;;  %v5855_v27 = vadd.f32 1.0, %v4329_v48 }
 0xaf6   :  { %4334 = vrcp.f32 %v3993_v60  ;;  %v4003_v15 = vand.u32 2147483647, %v3993_v60  ;;  %v4005_v30 = vand.u32 2147483648, %v3993_v60  ;;  %vm3999_vm4 = vweird.f32 %v3993_v60 }
 0xaf7   :  { %v5857_v37 = vadd.f32 %v1027_v38, %v1026_v17  ;;  %v5859_v3 = vadd.f32 %v1052_v34, %v1051_v25  ;;  %4336 = vrcp.f32 %v5855_v27  ;;  %v5876_v38 = vstv %s4169_s0 }
 0xaf8   :  { %v4028_v6 = vand.u32 2147483648, %v5855_v27  ;;  %v4026_v7 = vand.u32 2147483647, %v5855_v27  ;;  %vm4022_vm8 = vweird.f32 %v5855_v27  ;;  %vm4004_vm10 = vcmp.eq.f32.partialorder %v4003_v15, 8.507059e+37 }
 0xaf9   :  { %v4331_v36 = vpop.eup %4330  ;;  %v1029_v5 = vsub.f32 0.0, %v5857_v37  ;;  %v1054_v16 = vsub.f32 0.0, %v5859_v3  ;;  %v4006_v51 = vor.u32 1.1754944e-38, %v4005_v30 }
 0xafa   :  { %v4333_v26 = vpop.eup %4332  ;;  %v5864_v56 = vadd.f32 1.0, %v4331_v36  ;;  %v4029_v10 = vor.u32 1.1754944e-38, %v4028_v6  ;;  %vm4027_vm3 = vcmp.eq.f32.partialorder %v4026_v7, 8.507059e+37 }
 0xafb   :  { %v1030_v42 = vmul.f32 1.442695, %v1029_v5  ;;  %v1055_v14 = vmul.f32 1.442695, %v1054_v16  ;;  %v5867_v23 = vadd.f32 1.0, %v4333_v26 }
 0xafc   :  { %v4335_v11 = vpop.eup %4334  ;;  %4338 = vrcp.f32 %v5864_v56  ;;  %v3345_v58 = vand.u32 2147483647, %v5864_v56  ;;  %v3347_v47 = vand.u32 2147483648, %v5864_v56  ;;  %vm3341_vm11 = vweird.f32 %v5864_v56 }
 0xafd   :  { %v4337_v43 = vpop.eup %4336  ;;  %4340 = vpow2.f32 %v1030_v42  ;;  %v3995_v0 = vmul.f32 %v4335_v11, %v3993_v60  ;;  %vm4000_vm2 = vweird.f32 %v4335_v11  ;;  %v3368_v49 = vand.u32 2147483647, %v5867_v23 }
 0xafe   :  { %4342 = vpow2.f32 %v1055_v14  ;;  %v4018_v41 = vmul.f32 %v4337_v43, %v5855_v27  ;;  %vm5890_vm5 = vmor %vm3999_vm4, %vm4000_vm2  ;;  %vm4023_vm7 = vweird.f32 %v4337_v43  ;;  %vm5909_vm12 = vcmp.eq.f32.partialorder %v3345_v58, 8.507059e+37 }
 0xaff   :  { %v3996_v50 = vsub.f32 1.0, %v3995_v0  ;;  %4344 = vrcp.f32 %v5867_v23  ;;  %vm4024_vm6 = vmor %vm4022_vm8, %vm4023_vm7  ;;  %vm3364_vm13 = vweird.f32 %v5867_v23  ;;  %v3370_v12 = vand.u32 2147483648, %v5867_v23 }
 0xb00   :  { %v4019_v34 = vsub.f32 1.0, %v4018_v41  ;;  %v3348_v48 = vor.u32 1.1754944e-38, %v3347_v47  ;;  %vm5922_vm15 = vcmp.eq.f32.partialorder %v3368_v49, 8.507059e+37 }
 0xb01   :  { %v3997_v54 = vmul.f32 %v4335_v11, %v3996_v50  ;;  %v3371_v14 = vor.u32 1.1754944e-38, %v3370_v12 }
 0xb02   :  { %v5881_v39 = vpop.eup %4338  ;;  %v4020_v21 = vmul.f32 %v4337_v43, %v4019_v34 }
 0xb03   :  { %v4341_v24 = vpop.eup %4340  ;;  %v3998_v2 = vadd.f32 %v4335_v11, %v3997_v54  ;;  %v3337_v19 = vmul.f32 %v5881_v39, %v5864_v56  ;;  %vm3342_vm14 = vweird.f32 %v5881_v39 }
 0xb04   :  { %v4343_v9 = vpop.eup %4342  ;;  %v5888_v32 = vadd.f32 1.0, %v4341_v24  ;;  %v4021_v28 = vadd.f32 %v4337_v43, %v4020_v21  ;;  %vm3343_vm0 = vmor %vm3341_vm11, %vm3342_vm14  ;;  %vm4102_vm14 = vcmask 130048  }
 0xb05   :  { %v5895_v20 = vadd.f32 1.0, %v4343_v9  ;;  %v4002_v59 = vsel %vm5890_vm5, %v4335_v11, %v3998_v2  ;;  %v3338_v52 = vsub.f32 1.0, %v3337_v19  ;;  %v5902_v4 = vpop.eup %4344 }
 0xb06   :  { %4346 = vrcp.f32 %v5888_v32  ;;  %v4007_v13 = vsel %vm4004_vm10, %v4006_v51, %v4002_v59  ;;  %v4025_v45 = vsel %vm4024_vm6, %v4337_v43, %v4021_v28  ;;  %v3360_v55 = vmul.f32 %v5902_v4, %v5867_v23 }
 0xb07   :  { %4348 = vrcp.f32 %v5895_v20  ;;  %v4008_v61 = vmul.f32 %v4007_v13, %v5839_v46  ;;  %v4030_v31 = vsel %vm4027_vm3, %v4029_v10, %v4025_v45  ;;  %v3339_v63 = vmul.f32 %v5881_v39, %v3338_v52 }
 0xb08   :  { %v4031_v62 = vmul.f32 %v4030_v31, %v5841_v1  ;;  %v3361_v36 = vsub.f32 1.0, %v3360_v55  ;;  %v1042_v26 = vand.u32 2147483647, %v5888_v32  ;;  %v1044_v42 = vand.u32 2147483648, %v5888_v32 }
 0xb09   :  { %v4032_v46 = vmul.f32 %v4008_v61, %v5870_v57  ;;  %v4036_v44 = vmul.f32 %v4008_v61, %v5876_v38  ;;  %v3340_v27 = vadd.f32 %v5881_v39, %v3339_v63  ;;  %vm3365_vm1 = vweird.f32 %v5902_v4 }
 0xb0a   :  { %v4033_v25 = vmul.f32 %v4031_v62, %v5872_v29  ;;  %v4037_v1 = vmul.f32 %v4031_v62, %v5878_v8  ;;  %v3362_v34 = vmul.f32 %v5902_v4, %v3361_v36  ;;  %v1069_v30 = vand.u32 2147483648, %v5895_v20  ;;  %vm3366_vm5 = vmor %vm3364_vm13, %vm3365_vm1 }
 0xb0b   :  { %v3344_v0 = vsel %vm3343_vm0, %v5881_v39, %v3340_v27  ;;  %v1067_v19 = vand.u32 2147483647, %v5895_v20  ;;  %vm1038_vm7 = vweird.f32 %v5888_v32  ;;  %vm1063_vm8 = vweird.f32 %v5895_v20 }
 0xb0c   :  { %v4347_v17 = vpop.eup %4346  ;;  %v4038_v43 = vadd.f32 %v4037_v1, %v4036_v44  ;;  %v3349_v50 = vsel %vm5909_vm12, %v3348_v48, %v3344_v0  ;;  %v4034_v54 = vadd.f32 %v4033_v25, %v4032_v46  ;;  %v3363_v39 = vadd.f32 %v5902_v4, %v3362_v34 }
 0xb0d   :  { %v4349_v5 = vpop.eup %4348  ;;  %v1034_v16 = vmul.f32 %v4347_v17, %v5888_v32  ;;  %v3350_v21 = vmul.f32 %v3349_v50, %v5846_v35  ;;  %vm1039_vm2 = vweird.f32 %v4347_v17  ;;  %vm1043_vm6 = vcmp.eq.f32.partialorder %v1042_v26, 8.507059e+37 }
 0xb0e   :  { %v1059_v11 = vmul.f32 %v4349_v5, %v5895_v20  ;;  %v4039_v56 = vadd.f32 %v4038_v43, %v5883_v40  ;;  %v5947_v2 = vadd.f32 %v4034_v54, %v5874_v33  ;;  %vm1064_vm4 = vweird.f32 %v4349_v5  ;;  %vm1040_vm10 = vmor %vm1038_vm7, %vm1039_vm2 }
 0xb0f   :  { %v1035_v41 = vsub.f32 1.0, %v1034_v16  ;;  %v3374_v35 = vmul.f32 %v3350_v21, %v5870_v57  ;;  %v3367_v22 = vsel %vm3366_vm5, %v5902_v4, %v3363_v39  ;;  %v1045_v28 = vor.u32 1.1754944e-38, %v1044_v42  ;;  %vm1065_vm3 = vmor %vm1063_vm8, %vm1064_vm4 }
 0xb10   :  { %v1060_v15 = vsub.f32 1.0, %v1059_v11  ;;  %4093 = vrot.lane.b32.xlu0 %v4039_v56, %s4547_s17  ;;  %v3372_v59 = vsel %vm5922_vm15, %v3371_v14, %v3367_v22  ;;  %v1070_v23 = vor.u32 1.1754944e-38, %v1069_v30  ;;  %v3378_v52 = vmul.f32 %v3350_v21, %v5876_v38 }
 0xb11   :  { %v1036_v24 = vmul.f32 %v4347_v17, %v1035_v41  ;;  %v3373_v51 = vmul.f32 %v3372_v59, %v5848_v53  ;;  %vm1068_vm11 = vcmp.eq.f32.partialorder %v1067_v19, 8.507059e+37  ;;  %vm4116_vm12 = vcmask 1045508  }
 0xb12   :  { %v1061_v6 = vmul.f32 %v4349_v5, %v1060_v15  ;;  %vm4118_vm13 = vcmask 1043456   ;;  %vm4104_vm15 = vcmask 261120   ;;  %vm4106_vm0 = vcmask 392192  }
 0xb13   :  { %v1037_v9 = vadd.f32 %v4347_v17, %v1036_v24  ;;  %v3379_v47 = vmul.f32 %v3373_v51, %v5878_v8  ;;  %v3375_v49 = vmul.f32 %v3373_v51, %v5872_v29  ;;  %vm4100_vm1 = vcmask 523264  }
 0xb14   :  { %v1062_v7 = vadd.f32 %v4349_v5, %v1061_v6 }
 0xb15   :  { %v1041_v58 = vsel %vm1040_vm10, %v4347_v17, %v1037_v9  ;;  %v3380_v61 = vadd.f32 %v3379_v47, %v3378_v52  ;;  %v3376_v31 = vadd.f32 %v3375_v49, %v3374_v35 }
 0xb16   :  { %v1046_v32 = vsel %vm1043_vm6, %v1045_v28, %v1041_v58  ;;  %v1066_v10 = vsel %vm1065_vm3, %v4349_v5, %v1062_v7 }
 0xb17   :  { %v1047_v20 = vmul.f32 %v1046_v32, %v5857_v37  ;;  %v1071_v4 = vsel %vm1068_vm11, %v1070_v23, %v1066_v10  ;;  %v3381_v18 = vadd.f32 %v3380_v61, %v5883_v40  ;;  %v3377_v12 = vadd.f32 %v3376_v31, %v5874_v33 }
 0xb18   :  { %v1072_v13 = vmul.f32 %v1071_v4, %v5859_v3 }
 0xb19   :  { %v1074_v45 = vmul.f32 %v5870_v57, %v1047_v20  ;;  %4089 = vrot.lane.b32.xlu1 %v3381_v18, %s4558_s8  ;;  %v1081_v63 = vmul.f32 %v5876_v38, %v1047_v20 }
 0xb1a   :  { %v1076_v53 = vmul.f32 %v5872_v29, %v1072_v13  ;;  %v1083_v55 = vmul.f32 %v5878_v8, %v1072_v13 }
 0xb1c   :  { %v1077_v62 = vadd.f32 %v1076_v53, %v1074_v45  ;;  %v1084_v3 = vadd.f32 %v1083_v55, %v1081_v63 }
 0xb1e   :  { %v1079_v37 = vadd.f32 %v5874_v33, %v1077_v62  ;;  %v1086_v57 = vadd.f32 %v5883_v40, %v1084_v3  ;;  %v4098_v40 = vpop.permute.xlu2 %4097 }
 0xb20   :  { %4081 = vst [vmem:[#allocation1] ss:$4 sm:$0xff] %v1079_v37 }
 0xb27   :  { %v4082_v46 = vld.sshfl [vmem:[#allocation1] sm:$0xff pattern:$0x73625140]  ;;  %v4083_v44 = vld.sshfl [vmem:[#allocation1 + $0x8] sm:$0xff pattern:$0x73625140] }
 0xb28   :  { %4085 = vst [vmem:[#allocation1] ss:$4 sm:$0xff] %v1086_v57  ;;  %v4111_v29 = vrot.slane %v4083_v44, 6 }
 0xb2a   :  { %v4115_v33 = vsel %vm510_vm9, %v4082_v46, %v4111_v29 }
 0xb2f   :  { %v4086_v48 = vld.sshfl [vmem:[#allocation1] sm:$0xff pattern:$0x73625140]  ;;  %v4087_v60 = vld.sshfl [vmem:[#allocation1 + $0x8] sm:$0xff pattern:$0x73625140] }
 0xb30   :  { %v4112_v17 = vrot.slane %v4086_v48, 4  ;;  %v4113_v25 = vrot.slane %v4087_v60, 2 }
 0xb32   :  { %v4117_v1 = vsel %vm4116_vm12, %v4112_v17, %v4113_v25 }
 0xb33   :  { %v4119_v38 = vsel %vm4118_vm13, %v4115_v33, %v4117_v1 }
 0xb34   :  { %4123 = vst [vmem:[%s5999_s13] sm:$0xff] %v4119_v38 }
 0xb82   :  { %v4094_v8 = vpop.permute.xlu0 %4093 }
 0xb83   :  { %v4103_v27 = vsel %vm4102_vm14, %v5947_v2, %v4094_v8 }
 0xb84   :  { %v4105_v36 = vsel %vm4104_vm15, %v4103_v27, %v4098_v40 }
 0xb85   :  { %v4107_v5 = vsel %vm4106_vm0, %v4105_v36, %v4098_v40 }
 0xb86   :  { %v4108_v16 = vsel %vm4100_vm1, %v4107_v5, 0.0 }
 0xb87   :  { %v4114_v26 = vrot.slane %v4108_v16, 6 }
 0xb8b   :  { %v4090_v42 = vpop.permute.xlu1 %4089 }
 0xb8c   :  { %v4101_v14 = vsel %vm4100_vm1, %v3377_v12, %v4090_v42 }
 0xb8d   :  { %v4120_v11 = vsel %vm510_vm9, %v4101_v14, %v4114_v26 }
 0xb8e   :  { %4124 = vst [vmem:[%s5999_s13 + $0x8] sm:$0xf] %v4120_v11 }
 0xb8f   :  { %4129 = vsyncpa [#allocation3], 1 }
 0xb90   :  { %4130 = vsyncpa [#allocation6], 1 }
 0xb91   :  { %4131 = vsyncpa [#allocation9], 1 }
 0xb92   :  { %4132 = vsyncpa [#allocation12], 1 }
 0xb93   :  { %4133 = vsyncpa [#allocation4], 1 }

</bundles_post_ra>
